<compile_context>
chip_gen: v5e
topology: v5e:2x2
jax: 0.10.0
libtpu: 0.0.40
codegen_flags: <defaults>
</compile_context>

<pallas_src>
import jax
import jax.numpy as jnp
from jax.experimental import pallas as pl
from jax.experimental.pallas import tpu as pltpu

_EPS = 1e-5


# ----------------------------- in-kernel helpers -----------------------------

def _fill_padded(pad_ref, interior, H, W):
    """Write `interior` (H, W, C) into pad_ref (H+2, W+2, C), zeroing only the
    1-pixel halo strips (not the whole buffer)."""
    C = pad_ref.shape[-1]
    zrow = jnp.zeros((1, W + 2, C), pad_ref.dtype)
    zcol = jnp.zeros((H + 2, 1, C), pad_ref.dtype)
    pad_ref[0:1, :, :] = zrow
    pad_ref[H + 1:H + 2, :, :] = zrow
    pad_ref[:, 0:1, :] = zcol
    pad_ref[:, W + 1:W + 2, :] = zcol
    pad_ref[1:H + 1, 1:W + 1, :] = interior


def _conv3x3(pad_ref, patch_ref, w_ref, H, W):
    """3x3 conv of the padded tile as a single MXU matmul.

    pad_ref:   (H+2, W+2, C)  f32 padded activation
    patch_ref: (H*W, 9*C)     bf16 im2col scratch
    w_ref:     (9*C, Co)      bf16 packed weights (tap-major, channel-minor)
    returns    (H*W, Co)      f32
    """
    C = pad_ref.shape[-1]
    for k in range(9):
        dy, dx = divmod(k, 3)
        patch_ref[:, k * C:(k + 1) * C] = (
            pad_ref[dy:dy + H, dx:dx + W, :]
            .reshape(H * W, C)
            .astype(jnp.bfloat16))
    return jnp.dot(patch_ref[...], w_ref[...],
                   preferred_element_type=jnp.float32)


# --------------------------------- kernels -----------------------------------

def conv_stats_kernel(x_ref, w_ref, y_ref, sum_ref, ssq_ref, pad_ref, patch_ref):
    """conv1 (no bias) + per-tile sum / sum-of-squares for BatchNorm stats."""
    _, H, W, Ci = x_ref.shape
    Co = w_ref.shape[-1]
    _fill_padded(pad_ref, x_ref[...].reshape(H, W, Ci), H, W)
    y = _conv3x3(pad_ref, patch_ref, w_ref, H, W)          # (H*W, Co) f32
    y_ref[...] = y.reshape(1, H, W, Co)
    sum_ref[...] = jnp.sum(y, axis=0, keepdims=True).reshape(1, 1, Co)
    ssq_ref[...] = jnp.sum(y * y, axis=0, keepdims=True).reshape(1, 1, Co)


def bn_relu_conv_stats_kernel(y1_ref, scale_ref, shift_ref, w_ref,
                              y_ref, sum_ref, ssq_ref, pad_ref, patch_ref):
    """BN1 (folded scale/shift) + ReLU + conv2 (no bias) + BN2 stats."""
    _, H, W, C = y1_ref.shape
    Co = w_ref.shape[-1]
    a = jnp.maximum(
        y1_ref[...].reshape(H, W, C) * scale_ref[...] + shift_ref[...], 0.0)
    _fill_padded(pad_ref, a, H, W)
    y = _conv3x3(pad_ref, patch_ref, w_ref, H, W)          # (H*W, Co) f32
    y_ref[...] = y.reshape(1, H, W, Co)
    sum_ref[...] = jnp.sum(y, axis=0, keepdims=True).reshape(1, 1, Co)
    ssq_ref[...] = jnp.sum(y * y, axis=0, keepdims=True).reshape(1, 1, Co)


def bn_relu_kernel(y_ref, scale_ref, shift_ref, o_ref):
    """Final BN2 (folded scale/shift) + ReLU."""
    o_ref[...] = jnp.maximum(y_ref[...] * scale_ref[...] + shift_ref[...], 0.0)


# ---------------------------- pallas_call wrappers ----------------------------

def _conv1_call(x, w):
    N, H, W, Ci = x.shape
    Co = w.shape[-1]
    return pl.pallas_call(
        conv_stats_kernel,
        grid=(N,),
        in_specs=[
            pl.BlockSpec((1, H, W, Ci), lambda n: (n, 0, 0, 0)),
            pl.BlockSpec((9 * Ci, Co), lambda n: (0, 0)),      # resident weights
        ],
        out_specs=(
            pl.BlockSpec((1, H, W, Co), lambda n: (n, 0, 0, 0)),
            pl.BlockSpec((1, 1, Co), lambda n: (n, 0, 0)),
            pl.BlockSpec((1, 1, Co), lambda n: (n, 0, 0)),
        ),
        out_shape=(
            jax.ShapeDtypeStruct((N, H, W, Co), jnp.float32),
            jax.ShapeDtypeStruct((N, 1, Co), jnp.float32),
            jax.ShapeDtypeStruct((N, 1, Co), jnp.float32),
        ),
        scratch_shapes=[
            pltpu.VMEM((H + 2, W + 2, Ci), jnp.float32),
            pltpu.VMEM((H * W, 9 * Ci), jnp.bfloat16),
        ],
        compiler_params=pltpu.CompilerParams(
            dimension_semantics=("parallel",)),
    )(x, w)


def _conv2_call(y1, scale, shift, w):
    N, H, W, C = y1.shape
    Co = w.shape[-1]
    return pl.pallas_call(
        bn_relu_conv_stats_kernel,
        grid=(N,),
        in_specs=[
            pl.BlockSpec((1, H, W, C), lambda n: (n, 0, 0, 0)),
            pl.BlockSpec((1, C), lambda n: (0, 0)),
            pl.BlockSpec((1, C), lambda n: (0, 0)),
            pl.BlockSpec((9 * C, Co), lambda n: (0, 0)),
        ],
        out_specs=(
            pl.BlockSpec((1, H, W, Co), lambda n: (n, 0, 0, 0)),
            pl.BlockSpec((1, 1, Co), lambda n: (n, 0, 0)),
            pl.BlockSpec((1, 1, Co), lambda n: (n, 0, 0)),
        ),
        out_shape=(
            jax.ShapeDtypeStruct((N, H, W, Co), jnp.float32),
            jax.ShapeDtypeStruct((N, 1, Co), jnp.float32),
            jax.ShapeDtypeStruct((N, 1, Co), jnp.float32),
        ),
        scratch_shapes=[
            pltpu.VMEM((H + 2, W + 2, C), jnp.float32),
            pltpu.VMEM((H * W, 9 * C), jnp.bfloat16),
        ],
        compiler_params=pltpu.CompilerParams(
            dimension_semantics=("parallel",)),
    )(y1, scale, shift, w)


def _bn_relu_call(y, scale, shift):
    N, H, W, C = y.shape
    return pl.pallas_call(
        bn_relu_kernel,
        grid=(N,),
        in_specs=[
            pl.BlockSpec((1, H, W, C), lambda n: (n, 0, 0, 0)),
            pl.BlockSpec((1, C), lambda n: (0, 0)),
            pl.BlockSpec((1, C), lambda n: (0, 0)),
        ],
        out_specs=pl.BlockSpec((1, H, W, C), lambda n: (n, 0, 0, 0)),
        out_shape=jax.ShapeDtypeStruct((N, H, W, C), jnp.float32),
        compiler_params=pltpu.CompilerParams(
            dimension_semantics=("parallel",)),
    )(y, scale, shift)


# ------------------------------- host-side glue -------------------------------

def _bn_scale_shift(sums, ssqs, gamma, beta, count, eps=_EPS):
    """Fold training-mode BatchNorm into per-channel scale/shift from the
    cross-tile-reduced sum / sum-of-squares."""
    mean = jnp.sum(sums, axis=(0, 1)) / count                  # (C,)
    ex2 = jnp.sum(ssqs, axis=(0, 1)) / count                   # (C,)
    var = jnp.maximum(ex2 - mean * mean, 0.0)                  # biased variance
    scale = gamma * jax.lax.rsqrt(var + eps)                   # (1, C)
    shift = beta - mean * scale                                # (1, C)
    return scale, shift


def init_params(key, in_channels, out_channels):
    """PyTorch-style inits.  Conv weights: uniform(+-1/sqrt(fan_in)) packed as
    (9*Ci, Co) bf16 for the MXU; BN gamma=1, beta=0.  Conv biases are omitted:
    training-mode BN's mean subtraction cancels them exactly."""
    k1, k2 = jax.random.split(key, 2)

    def conv_init(k, ci, co):
        bound = 1.0 / float((ci * 9) ** 0.5)
        w = jax.random.uniform(k, (co, ci, 3, 3), jnp.float32, -bound, bound)
        # (co, ci, kh, kw) -> (kh, kw, ci, co) -> (9*ci, co), tap-major.
        return jnp.transpose(w, (2, 3, 1, 0)).reshape(9 * ci, co).astype(jnp.bfloat16)

    w1 = conv_init(k1, in_channels, out_channels)
    w2 = conv_init(k2, out_channels, out_channels)
    g1 = jnp.ones((1, out_channels), jnp.float32)
    be1 = jnp.zeros((1, out_channels), jnp.float32)
    g2 = jnp.ones((1, out_channels), jnp.float32)
    be2 = jnp.zeros((1, out_channels), jnp.float32)
    return (w1, g1, be1, w2, g2, be2)


def double_conv(x_nchw, params):
    """x_nchw: (N, Cin, H, W) f32 -> (N, Cout, H, W) f32."""
    w1, g1, be1, w2, g2, be2 = params
    N, _, H, W = x_nchw.shape
    count = N * H * W

    # NCHW -> NHWC (channels on the lane axis inside the kernels).
    x = jnp.transpose(x_nchw, (0, 2, 3, 1)).astype(jnp.float32)

    # conv1 + batch stats  ->  fold BN1  ->  BN1+ReLU+conv2 + stats  ->  fold BN2  ->  BN2+ReLU
    y1, s1_sum, s1_ssq = _conv1_call(x, w1)
    scale1, shift1 = _bn_scale_shift(s1_sum, s1_ssq, g1, be1, count)
    y2, s2_sum, s2_ssq = _conv2_call(y1, scale1, shift1, w2)
    scale2, shift2 = _bn_scale_shift(s2_sum, s2_ssq, g2, be2, count)
    out = _bn_relu_call(y2, scale2, shift2)

    # NHWC -> NCHW
    return jnp.transpose(out, (0, 3, 1, 2))


if __name__ == "__main__":
    key = jax.random.PRNGKey(0)
    kx, kp = jax.random.split(key)

    N, Cin, Cout, H, W = 2, 4, 8, 16, 16
    x = jax.random.normal(kx, (N, Cin, H, W), jnp.float32)
    params = init_params(kp, Cin, Cout)

    fwd = jax.jit(double_conv)
    y = fwd(x, params)
    jax.block_until_ready(y)

    assert y.shape == (N, Cout, H, W)
    assert bool(jnp.all(y >= 0.0))  # ReLU output
    print("KERNEL_OK")
</pallas_src>

<mosaic_0001>
module attributes {stable_mosaic.version = 11 : i64} {
  func.func @bn_relu_conv_stats_kernel(%arg0: i32, %arg1: memref<1x16x16x8xf32, #tpu.memory_space<vmem>>, %arg2: memref<1x8xf32, #tpu.memory_space<vmem>>, %arg3: memref<1x8xf32, #tpu.memory_space<vmem>>, %arg4: memref<72x8xbf16, #tpu.memory_space<vmem>>, %arg5: memref<1x16x16x8xf32, #tpu.memory_space<vmem>>, %arg6: memref<1x1x8xf32, #tpu.memory_space<vmem>>, %arg7: memref<1x1x8xf32, #tpu.memory_space<vmem>>, %arg8: memref<18x18x8xf32, #tpu.memory_space<vmem>>, %arg9: memref<256x72xbf16, #tpu.memory_space<vmem>>) attributes {dimension_semantics = [#tpu.dimension_semantics<parallel>], iteration_bounds = array<i64: 2>, scalar_prefetch = 0 : i64, scratch_operands = 2 : i64, tpu.core_type = #tpu.core_type<tc>, window_params = [{transform_indices = @transform_0, window_bounds = array<i64: 1, 16, 16, 8>}, {pipeline_mode = #tpu.pipeline_mode<synchronous>, transform_indices = @transform_1, window_bounds = array<i64: 1, 8>}, {pipeline_mode = #tpu.pipeline_mode<synchronous>, transform_indices = @transform_2, window_bounds = array<i64: 1, 8>}, {pipeline_mode = #tpu.pipeline_mode<synchronous>, transform_indices = @transform_3, window_bounds = array<i64: 72, 8>}, {transform_indices = @transform_4, window_bounds = array<i64: 1, 16, 16, 8>}, {transform_indices = @transform_5, window_bounds = array<i64: 1, 1, 8>}, {transform_indices = @transform_6, window_bounds = array<i64: 1, 1, 8>}]} {
    %c0 = arith.constant 0 : index
    %c0_0 = arith.constant 0 : index
    %c0_1 = arith.constant 0 : index
    %c0_2 = arith.constant 0 : index
    %0 = vector.load %arg1[%c0, %c0_0, %c0_1, %c0_2] : memref<1x16x16x8xf32, #tpu.memory_space<vmem>>, vector<1x16x16x8xf32>
    %1 = vector.shape_cast %0 : vector<1x16x16x8xf32> to vector<16x16x8xf32>
    %c0_3 = arith.constant 0 : index
    %c0_4 = arith.constant 0 : index
    %2 = vector.load %arg2[%c0_3, %c0_4] : memref<1x8xf32, #tpu.memory_space<vmem>>, vector<1x8xf32>
    %3 = vector.shape_cast %2 : vector<1x8xf32> to vector<1x1x8xf32>
    %4 = vector.broadcast %3 : vector<1x1x8xf32> to vector<16x16x8xf32>
    %5 = arith.mulf %1, %4 : vector<16x16x8xf32>
    %c0_5 = arith.constant 0 : index
    %c0_6 = arith.constant 0 : index
    %6 = vector.load %arg3[%c0_5, %c0_6] : memref<1x8xf32, #tpu.memory_space<vmem>>, vector<1x8xf32>
    %7 = vector.shape_cast %6 : vector<1x8xf32> to vector<1x1x8xf32>
    %8 = vector.broadcast %7 : vector<1x1x8xf32> to vector<16x16x8xf32>
    %9 = arith.addf %5, %8 : vector<16x16x8xf32>
    %cst = arith.constant 0.000000e+00 : f32
    %10 = vector.broadcast %cst : f32 to vector<16x16x8xf32>
    %11 = arith.maximumf %9, %10 : vector<16x16x8xf32>
    %cst_7 = arith.constant 0.000000e+00 : f32
    %12 = vector.broadcast %cst_7 : f32 to vector<1x18x8xf32>
    %cst_8 = arith.constant 0.000000e+00 : f32
    %13 = vector.broadcast %cst_8 : f32 to vector<18x1x8xf32>
    %c0_9 = arith.constant 0 : index
    %c0_10 = arith.constant 0 : index
    %c0_11 = arith.constant 0 : index
    %14 = vector.load %arg8[%c0_9, %c0_10, %c0_11] : memref<18x18x8xf32, #tpu.memory_space<vmem>>, vector<1x18x8xf32>
    tpu.vector_store %arg8[%c0_9, %c0_10, %c0_11], %12 {strides = array<i32>} : memref<18x18x8xf32, #tpu.memory_space<vmem>>, vector<1x18x8xf32>,
    %c17 = arith.constant 17 : index
    %c0_12 = arith.constant 0 : index
    %c0_13 = arith.constant 0 : index
    %15 = vector.load %arg8[%c17, %c0_12, %c0_13] : memref<18x18x8xf32, #tpu.memory_space<vmem>>, vector<1x18x8xf32>
    tpu.vector_store %arg8[%c17, %c0_12, %c0_13], %12 {strides = array<i32>} : memref<18x18x8xf32, #tpu.memory_space<vmem>>, vector<1x18x8xf32>,
    %c0_14 = arith.constant 0 : index
    %c0_15 = arith.constant 0 : index
    %c0_16 = arith.constant 0 : index
    %16 = vector.load %arg8[%c0_14, %c0_15, %c0_16] : memref<18x18x8xf32, #tpu.memory_space<vmem>>, vector<18x1x8xf32>
    tpu.vector_store %arg8[%c0_14, %c0_15, %c0_16], %13 {strides = array<i32>} : memref<18x18x8xf32, #tpu.memory_space<vmem>>, vector<18x1x8xf32>,
    %c0_17 = arith.constant 0 : index
    %c17_18 = arith.constant 17 : index
    %c0_19 = arith.constant 0 : index
    %17 = vector.load %arg8[%c0_17, %c17_18, %c0_19] : memref<18x18x8xf32, #tpu.memory_space<vmem>>, vector<18x1x8xf32>
    tpu.vector_store %arg8[%c0_17, %c17_18, %c0_19], %13 {strides = array<i32>} : memref<18x18x8xf32, #tpu.memory_space<vmem>>, vector<18x1x8xf32>,
    %c1 = arith.constant 1 : index
    %c1_20 = arith.constant 1 : index
    %c0_21 = arith.constant 0 : index
    %18 = vector.load %arg8[%c1, %c1_20, %c0_21] : memref<18x18x8xf32, #tpu.memory_space<vmem>>, vector<16x16x8xf32>
    tpu.vector_store %arg8[%c1, %c1_20, %c0_21], %11 {strides = array<i32>} : memref<18x18x8xf32, #tpu.memory_space<vmem>>, vector<16x16x8xf32>,
    %c0_22 = arith.constant 0 : index
    %c0_23 = arith.constant 0 : index
    %c0_24 = arith.constant 0 : index
    %19 = vector.load %arg8[%c0_22, %c0_23, %c0_24] : memref<18x18x8xf32, #tpu.memory_space<vmem>>, vector<16x16x8xf32>
    %20 = vector.shape_cast %19 : vector<16x16x8xf32> to vector<256x8xf32>
    %21 = arith.truncf %20 : vector<256x8xf32> to vector<256x8xbf16>
    %c0_25 = arith.constant 0 : index
    %c0_26 = arith.constant 0 : index
    %22 = vector.load %arg9[%c0_25, %c0_26] : memref<256x72xbf16, #tpu.memory_space<vmem>>, vector<256x8xbf16>
    tpu.vector_store %arg9[%c0_25, %c0_26], %21 {strides = array<i32>} : memref<256x72xbf16, #tpu.memory_space<vmem>>, vector<256x8xbf16>,
    %c0_27 = arith.constant 0 : index
    %c1_28 = arith.constant 1 : index
    %c0_29 = arith.constant 0 : index
    %23 = vector.load %arg8[%c0_27, %c1_28, %c0_29] : memref<18x18x8xf32, #tpu.memory_space<vmem>>, vector<16x16x8xf32>
    %24 = vector.shape_cast %23 : vector<16x16x8xf32> to vector<256x8xf32>
    %25 = arith.truncf %24 : vector<256x8xf32> to vector<256x8xbf16>
    %c0_30 = arith.constant 0 : index
    %c8 = arith.constant 8 : index
    %26 = vector.load %arg9[%c0_30, %c8] : memref<256x72xbf16, #tpu.memory_space<vmem>>, vector<256x8xbf16>
    tpu.vector_store %arg9[%c0_30, %c8], %25 {strides = array<i32>} : memref<256x72xbf16, #tpu.memory_space<vmem>>, vector<256x8xbf16>,
    %c0_31 = arith.constant 0 : index
    %c2 = arith.constant 2 : index
    %c0_32 = arith.constant 0 : index
    %27 = vector.load %arg8[%c0_31, %c2, %c0_32] : memref<18x18x8xf32, #tpu.memory_space<vmem>>, vector<16x16x8xf32>
    %28 = vector.shape_cast %27 : vector<16x16x8xf32> to vector<256x8xf32>
    %29 = arith.truncf %28 : vector<256x8xf32> to vector<256x8xbf16>
    %c0_33 = arith.constant 0 : index
    %c16 = arith.constant 16 : index
    %30 = vector.load %arg9[%c0_33, %c16] : memref<256x72xbf16, #tpu.memory_space<vmem>>, vector<256x8xbf16>
    tpu.vector_store %arg9[%c0_33, %c16], %29 {strides = array<i32>} : memref<256x72xbf16, #tpu.memory_space<vmem>>, vector<256x8xbf16>,
    %c1_34 = arith.constant 1 : index
    %c0_35 = arith.constant 0 : index
    %c0_36 = arith.constant 0 : index
    %31 = vector.load %arg8[%c1_34, %c0_35, %c0_36] : memref<18x18x8xf32, #tpu.memory_space<vmem>>, vector<16x16x8xf32>
    %32 = vector.shape_cast %31 : vector<16x16x8xf32> to vector<256x8xf32>
    %33 = arith.truncf %32 : vector<256x8xf32> to vector<256x8xbf16>
    %c0_37 = arith.constant 0 : index
    %c24 = arith.constant 24 : index
    %34 = vector.load %arg9[%c0_37, %c24] : memref<256x72xbf16, #tpu.memory_space<vmem>>, vector<256x8xbf16>
    tpu.vector_store %arg9[%c0_37, %c24], %33 {strides = array<i32>} : memref<256x72xbf16, #tpu.memory_space<vmem>>, vector<256x8xbf16>,
    %c1_38 = arith.constant 1 : index
    %c1_39 = arith.constant 1 : index
    %c0_40 = arith.constant 0 : index
    %35 = vector.load %arg8[%c1_38, %c1_39, %c0_40] : memref<18x18x8xf32, #tpu.memory_space<vmem>>, vector<16x16x8xf32>
    %36 = vector.shape_cast %35 : vector<16x16x8xf32> to vector<256x8xf32>
    %37 = arith.truncf %36 : vector<256x8xf32> to vector<256x8xbf16>
    %c0_41 = arith.constant 0 : index
    %c32 = arith.constant 32 : index
    %38 = vector.load %arg9[%c0_41, %c32] : memref<256x72xbf16, #tpu.memory_space<vmem>>, vector<256x8xbf16>
    tpu.vector_store %arg9[%c0_41, %c32], %37 {strides = array<i32>} : memref<256x72xbf16, #tpu.memory_space<vmem>>, vector<256x8xbf16>,
    %c1_42 = arith.constant 1 : index
    %c2_43 = arith.constant 2 : index
    %c0_44 = arith.constant 0 : index
    %39 = vector.load %arg8[%c1_42, %c2_43, %c0_44] : memref<18x18x8xf32, #tpu.memory_space<vmem>>, vector<16x16x8xf32>
    %40 = vector.shape_cast %39 : vector<16x16x8xf32> to vector<256x8xf32>
    %41 = arith.truncf %40 : vector<256x8xf32> to vector<256x8xbf16>
    %c0_45 = arith.constant 0 : index
    %c40 = arith.constant 40 : index
    %42 = vector.load %arg9[%c0_45, %c40] : memref<256x72xbf16, #tpu.memory_space<vmem>>, vector<256x8xbf16>
    tpu.vector_store %arg9[%c0_45, %c40], %41 {strides = array<i32>} : memref<256x72xbf16, #tpu.memory_space<vmem>>, vector<256x8xbf16>,
    %c2_46 = arith.constant 2 : index
    %c0_47 = arith.constant 0 : index
    %c0_48 = arith.constant 0 : index
    %43 = vector.load %arg8[%c2_46, %c0_47, %c0_48] : memref<18x18x8xf32, #tpu.memory_space<vmem>>, vector<16x16x8xf32>
    %44 = vector.shape_cast %43 : vector<16x16x8xf32> to vector<256x8xf32>
    %45 = arith.truncf %44 : vector<256x8xf32> to vector<256x8xbf16>
    %c0_49 = arith.constant 0 : index
    %c48 = arith.constant 48 : index
    %46 = vector.load %arg9[%c0_49, %c48] : memref<256x72xbf16, #tpu.memory_space<vmem>>, vector<256x8xbf16>
    tpu.vector_store %arg9[%c0_49, %c48], %45 {strides = array<i32>} : memref<256x72xbf16, #tpu.memory_space<vmem>>, vector<256x8xbf16>,
    %c2_50 = arith.constant 2 : index
    %c1_51 = arith.constant 1 : index
    %c0_52 = arith.constant 0 : index
    %47 = vector.load %arg8[%c2_50, %c1_51, %c0_52] : memref<18x18x8xf32, #tpu.memory_space<vmem>>, vector<16x16x8xf32>
    %48 = vector.shape_cast %47 : vector<16x16x8xf32> to vector<256x8xf32>
    %49 = arith.truncf %48 : vector<256x8xf32> to vector<256x8xbf16>
    %c0_53 = arith.constant 0 : index
    %c56 = arith.constant 56 : index
    %50 = vector.load %arg9[%c0_53, %c56] : memref<256x72xbf16, #tpu.memory_space<vmem>>, vector<256x8xbf16>
    tpu.vector_store %arg9[%c0_53, %c56], %49 {strides = array<i32>} : memref<256x72xbf16, #tpu.memory_space<vmem>>, vector<256x8xbf16>,
    %c2_54 = arith.constant 2 : index
    %c2_55 = arith.constant 2 : index
    %c0_56 = arith.constant 0 : index
    %51 = vector.load %arg8[%c2_54, %c2_55, %c0_56] : memref<18x18x8xf32, #tpu.memory_space<vmem>>, vector<16x16x8xf32>
    %52 = vector.shape_cast %51 : vector<16x16x8xf32> to vector<256x8xf32>
    %53 = arith.truncf %52 : vector<256x8xf32> to vector<256x8xbf16>
    %c0_57 = arith.constant 0 : index
    %c64 = arith.constant 64 : index
    %54 = vector.load %arg9[%c0_57, %c64] : memref<256x72xbf16, #tpu.memory_space<vmem>>, vector<256x8xbf16>
    tpu.vector_store %arg9[%c0_57, %c64], %53 {strides = array<i32>} : memref<256x72xbf16, #tpu.memory_space<vmem>>, vector<256x8xbf16>,
    %c0_58 = arith.constant 0 : index
    %c0_59 = arith.constant 0 : index
    %55 = vector.load %arg9[%c0_58, %c0_59] : memref<256x72xbf16, #tpu.memory_space<vmem>>, vector<256x72xbf16>
    %c0_60 = arith.constant 0 : index
    %c0_61 = arith.constant 0 : index
    %56 = vector.load %arg4[%c0_60, %c0_61] : memref<72x8xbf16, #tpu.memory_space<vmem>>, vector<72x8xbf16>
    %cst_62 = arith.constant dense<0.000000e+00> : vector<256x8xf32>
    %57 = tpu.matmul %55, %56, %cst_62 {dimension_numbers = #tpu.dot_dimension_numbers<[1], [0], [0], [1], [0, 0, 1, 1], [], []>} : vector<256x72xbf16>, vector<72x8xbf16>, vector<256x8xf32> -> vector<256x8xf32>
    %58 = vector.shape_cast %57 : vector<256x8xf32> to vector<1x16x16x8xf32>
    %c0_63 = arith.constant 0 : index
    %c0_64 = arith.constant 0 : index
    %c0_65 = arith.constant 0 : index
    %c0_66 = arith.constant 0 : index
    %59 = vector.load %arg5[%c0_63, %c0_64, %c0_65, %c0_66] : memref<1x16x16x8xf32, #tpu.memory_space<vmem>>, vector<1x16x16x8xf32>
    tpu.vector_store %arg5[%c0_63, %c0_64, %c0_65, %c0_66], %58 {strides = array<i32>} : memref<1x16x16x8xf32, #tpu.memory_space<vmem>>, vector<1x16x16x8xf32>,
    %cst_67 = arith.constant dense<0.000000e+00> : vector<8xf32>
    %60 = vector.multi_reduction <add>, %57, %cst_67 [0] : vector<256x8xf32> to vector<8xf32>
    %61 = vector.shape_cast %60 : vector<8xf32> to vector<1x8xf32>
    %62 = vector.shape_cast %61 : vector<1x8xf32> to vector<1x1x8xf32>
    %c0_68 = arith.constant 0 : index
    %c0_69 = arith.constant 0 : index
    %c0_70 = arith.constant 0 : index
    %63 = vector.load %arg6[%c0_68, %c0_69, %c0_70] : memref<1x1x8xf32, #tpu.memory_space<vmem>>, vector<1x1x8xf32>
    tpu.vector_store %arg6[%c0_68, %c0_69, %c0_70], %62 {strides = array<i32>} : memref<1x1x8xf32, #tpu.memory_space<vmem>>, vector<1x1x8xf32>,
    %64 = arith.mulf %57, %57 : vector<256x8xf32>
    %cst_71 = arith.constant dense<0.000000e+00> : vector<8xf32>
    %65 = vector.multi_reduction <add>, %64, %cst_71 [0] : vector<256x8xf32> to vector<8xf32>
    %66 = vector.shape_cast %65 : vector<8xf32> to vector<1x8xf32>
    %67 = vector.shape_cast %66 : vector<1x8xf32> to vector<1x1x8xf32>
    %c0_72 = arith.constant 0 : index
    %c0_73 = arith.constant 0 : index
    %c0_74 = arith.constant 0 : index
    %68 = vector.load %arg7[%c0_72, %c0_73, %c0_74] : memref<1x1x8xf32, #tpu.memory_space<vmem>>, vector<1x1x8xf32>
    tpu.vector_store %arg7[%c0_72, %c0_73, %c0_74], %67 {strides = array<i32>} : memref<1x1x8xf32, #tpu.memory_space<vmem>>, vector<1x1x8xf32>,
    return
  }
  func.func @transform_0(%arg0: i32) -> (i32, i32, i32, i32) {
    %c0_i32 = arith.constant 0 : i32
    %c0_i32_0 = arith.constant 0 : i32
    %c0_i32_1 = arith.constant 0 : i32
    %c0_i32_2 = arith.constant 0 : i32
    return %arg0, %c0_i32, %c0_i32_0, %c0_i32_1 : i32, i32, i32, i32
  }
  func.func @transform_1(%arg0: i32) -> (i32, i32) {
    %c0_i32 = arith.constant 0 : i32
    %c0_i32_0 = arith.constant 0 : i32
    %c0_i32_1 = arith.constant 0 : i32
    return %c0_i32, %c0_i32_0 : i32, i32
  }
  func.func @transform_2(%arg0: i32) -> (i32, i32) {
    %c0_i32 = arith.constant 0 : i32
    %c0_i32_0 = arith.constant 0 : i32
    %c0_i32_1 = arith.constant 0 : i32
    return %c0_i32, %c0_i32_0 : i32, i32
  }
  func.func @transform_3(%arg0: i32) -> (i32, i32) {
    %c0_i32 = arith.constant 0 : i32
    %c0_i32_0 = arith.constant 0 : i32
    %c0_i32_1 = arith.constant 0 : i32
    return %c0_i32, %c0_i32_0 : i32, i32
  }
  func.func @transform_4(%arg0: i32) -> (i32, i32, i32, i32) {
    %c0_i32 = arith.constant 0 : i32
    %c0_i32_0 = arith.constant 0 : i32
    %c0_i32_1 = arith.constant 0 : i32
    %c0_i32_2 = arith.constant 0 : i32
    return %arg0, %c0_i32, %c0_i32_0, %c0_i32_1 : i32, i32, i32, i32
  }
  func.func @transform_5(%arg0: i32) -> (i32, i32, i32) {
    %c0_i32 = arith.constant 0 : i32
    %c0_i32_0 = arith.constant 0 : i32
    %c0_i32_1 = arith.constant 0 : i32
    return %arg0, %c0_i32, %c0_i32_0 : i32, i32, i32
  }
  func.func @transform_6(%arg0: i32) -> (i32, i32, i32) {
    %c0_i32 = arith.constant 0 : i32
    %c0_i32_0 = arith.constant 0 : i32
    %c0_i32_1 = arith.constant 0 : i32
    return %arg0, %c0_i32, %c0_i32_0 : i32, i32, i32
  }
}

module attributes {stable_mosaic.version = 11 : i64} {
  func.func @conv_stats_kernel(%arg0: i32, %arg1: memref<1x16x16x4xf32, #tpu.memory_space<vmem>>, %arg2: memref<36x8xbf16, #tpu.memory_space<vmem>>, %arg3: memref<1x16x16x8xf32, #tpu.memory_space<vmem>>, %arg4: memref<1x1x8xf32, #tpu.memory_space<vmem>>, %arg5: memref<1x1x8xf32, #tpu.memory_space<vmem>>, %arg6: memref<18x18x4xf32, #tpu.memory_space<vmem>>, %arg7: memref<256x36xbf16, #tpu.memory_space<vmem>>) attributes {dimension_semantics = [#tpu.dimension_semantics<parallel>], iteration_bounds = array<i64: 2>, scalar_prefetch = 0 : i64, scratch_operands = 2 : i64, tpu.core_type = #tpu.core_type<tc>, window_params = [{transform_indices = @transform_0, window_bounds = array<i64: 1, 16, 16, 4>}, {pipeline_mode = #tpu.pipeline_mode<synchronous>, transform_indices = @transform_1, window_bounds = array<i64: 36, 8>}, {transform_indices = @transform_2, window_bounds = array<i64: 1, 16, 16, 8>}, {transform_indices = @transform_3, window_bounds = array<i64: 1, 1, 8>}, {transform_indices = @transform_4, window_bounds = array<i64: 1, 1, 8>}]} {
    %c0 = arith.constant 0 : index
    %c0_0 = arith.constant 0 : index
    %c0_1 = arith.constant 0 : index
    %c0_2 = arith.constant 0 : index
    %0 = vector.load %arg1[%c0, %c0_0, %c0_1, %c0_2] : memref<1x16x16x4xf32, #tpu.memory_space<vmem>>, vector<1x16x16x4xf32>
    %1 = vector.shape_cast %0 : vector<1x16x16x4xf32> to vector<16x16x4xf32>
    %cst = arith.constant 0.000000e+00 : f32
    %2 = vector.broadcast %cst : f32 to vector<1x18x4xf32>
    %cst_3 = arith.constant 0.000000e+00 : f32
    %3 = vector.broadcast %cst_3 : f32 to vector<18x1x4xf32>
    %c0_4 = arith.constant 0 : index
    %c0_5 = arith.constant 0 : index
    %c0_6 = arith.constant 0 : index
    %4 = vector.load %arg6[%c0_4, %c0_5, %c0_6] : memref<18x18x4xf32, #tpu.memory_space<vmem>>, vector<1x18x4xf32>
    tpu.vector_store %arg6[%c0_4, %c0_5, %c0_6], %2 {strides = array<i32>} : memref<18x18x4xf32, #tpu.memory_space<vmem>>, vector<1x18x4xf32>,
    %c17 = arith.constant 17 : index
    %c0_7 = arith.constant 0 : index
    %c0_8 = arith.constant 0 : index
    %5 = vector.load %arg6[%c17, %c0_7, %c0_8] : memref<18x18x4xf32, #tpu.memory_space<vmem>>, vector<1x18x4xf32>
    tpu.vector_store %arg6[%c17, %c0_7, %c0_8], %2 {strides = array<i32>} : memref<18x18x4xf32, #tpu.memory_space<vmem>>, vector<1x18x4xf32>,
    %c0_9 = arith.constant 0 : index
    %c0_10 = arith.constant 0 : index
    %c0_11 = arith.constant 0 : index
    %6 = vector.load %arg6[%c0_9, %c0_10, %c0_11] : memref<18x18x4xf32, #tpu.memory_space<vmem>>, vector<18x1x4xf32>
    tpu.vector_store %arg6[%c0_9, %c0_10, %c0_11], %3 {strides = array<i32>} : memref<18x18x4xf32, #tpu.memory_space<vmem>>, vector<18x1x4xf32>,
    %c0_12 = arith.constant 0 : index
    %c17_13 = arith.constant 17 : index
    %c0_14 = arith.constant 0 : index
    %7 = vector.load %arg6[%c0_12, %c17_13, %c0_14] : memref<18x18x4xf32, #tpu.memory_space<vmem>>, vector<18x1x4xf32>
    tpu.vector_store %arg6[%c0_12, %c17_13, %c0_14], %3 {strides = array<i32>} : memref<18x18x4xf32, #tpu.memory_space<vmem>>, vector<18x1x4xf32>,
    %c1 = arith.constant 1 : index
    %c1_15 = arith.constant 1 : index
    %c0_16 = arith.constant 0 : index
    %8 = vector.load %arg6[%c1, %c1_15, %c0_16] : memref<18x18x4xf32, #tpu.memory_space<vmem>>, vector<16x16x4xf32>
    tpu.vector_store %arg6[%c1, %c1_15, %c0_16], %1 {strides = array<i32>} : memref<18x18x4xf32, #tpu.memory_space<vmem>>, vector<16x16x4xf32>,
    %c0_17 = arith.constant 0 : index
    %c0_18 = arith.constant 0 : index
    %c0_19 = arith.constant 0 : index
    %9 = vector.load %arg6[%c0_17, %c0_18, %c0_19] : memref<18x18x4xf32, #tpu.memory_space<vmem>>, vector<16x16x4xf32>
    %10 = vector.shape_cast %9 : vector<16x16x4xf32> to vector<256x4xf32>
    %11 = arith.truncf %10 : vector<256x4xf32> to vector<256x4xbf16>
    %c0_20 = arith.constant 0 : index
    %c0_21 = arith.constant 0 : index
    %12 = vector.load %arg7[%c0_20, %c0_21] : memref<256x36xbf16, #tpu.memory_space<vmem>>, vector<256x4xbf16>
    tpu.vector_store %arg7[%c0_20, %c0_21], %11 {strides = array<i32>} : memref<256x36xbf16, #tpu.memory_space<vmem>>, vector<256x4xbf16>,
    %c0_22 = arith.constant 0 : index
    %c1_23 = arith.constant 1 : index
    %c0_24 = arith.constant 0 : index
    %13 = vector.load %arg6[%c0_22, %c1_23, %c0_24] : memref<18x18x4xf32, #tpu.memory_space<vmem>>, vector<16x16x4xf32>
    %14 = vector.shape_cast %13 : vector<16x16x4xf32> to vector<256x4xf32>
    %15 = arith.truncf %14 : vector<256x4xf32> to vector<256x4xbf16>
    %c0_25 = arith.constant 0 : index
    %c4 = arith.constant 4 : index
    %16 = vector.load %arg7[%c0_25, %c4] : memref<256x36xbf16, #tpu.memory_space<vmem>>, vector<256x4xbf16>
    tpu.vector_store %arg7[%c0_25, %c4], %15 {strides = array<i32>} : memref<256x36xbf16, #tpu.memory_space<vmem>>, vector<256x4xbf16>,
    %c0_26 = arith.constant 0 : index
    %c2 = arith.constant 2 : index
    %c0_27 = arith.constant 0 : index
    %17 = vector.load %arg6[%c0_26, %c2, %c0_27] : memref<18x18x4xf32, #tpu.memory_space<vmem>>, vector<16x16x4xf32>
    %18 = vector.shape_cast %17 : vector<16x16x4xf32> to vector<256x4xf32>
    %19 = arith.truncf %18 : vector<256x4xf32> to vector<256x4xbf16>
    %c0_28 = arith.constant 0 : index
    %c8 = arith.constant 8 : index
    %20 = vector.load %arg7[%c0_28, %c8] : memref<256x36xbf16, #tpu.memory_space<vmem>>, vector<256x4xbf16>
    tpu.vector_store %arg7[%c0_28, %c8], %19 {strides = array<i32>} : memref<256x36xbf16, #tpu.memory_space<vmem>>, vector<256x4xbf16>,
    %c1_29 = arith.constant 1 : index
    %c0_30 = arith.constant 0 : index
    %c0_31 = arith.constant 0 : index
    %21 = vector.load %arg6[%c1_29, %c0_30, %c0_31] : memref<18x18x4xf32, #tpu.memory_space<vmem>>, vector<16x16x4xf32>
    %22 = vector.shape_cast %21 : vector<16x16x4xf32> to vector<256x4xf32>
    %23 = arith.truncf %22 : vector<256x4xf32> to vector<256x4xbf16>
    %c0_32 = arith.constant 0 : index
    %c12 = arith.constant 12 : index
    %24 = vector.load %arg7[%c0_32, %c12] : memref<256x36xbf16, #tpu.memory_space<vmem>>, vector<256x4xbf16>
    tpu.vector_store %arg7[%c0_32, %c12], %23 {strides = array<i32>} : memref<256x36xbf16, #tpu.memory_space<vmem>>, vector<256x4xbf16>,
    %c1_33 = arith.constant 1 : index
    %c1_34 = arith.constant 1 : index
    %c0_35 = arith.constant 0 : index
    %25 = vector.load %arg6[%c1_33, %c1_34, %c0_35] : memref<18x18x4xf32, #tpu.memory_space<vmem>>, vector<16x16x4xf32>
    %26 = vector.shape_cast %25 : vector<16x16x4xf32> to vector<256x4xf32>
    %27 = arith.truncf %26 : vector<256x4xf32> to vector<256x4xbf16>
    %c0_36 = arith.constant 0 : index
    %c16 = arith.constant 16 : index
    %28 = vector.load %arg7[%c0_36, %c16] : memref<256x36xbf16, #tpu.memory_space<vmem>>, vector<256x4xbf16>
    tpu.vector_store %arg7[%c0_36, %c16], %27 {strides = array<i32>} : memref<256x36xbf16, #tpu.memory_space<vmem>>, vector<256x4xbf16>,
    %c1_37 = arith.constant 1 : index
    %c2_38 = arith.constant 2 : index
    %c0_39 = arith.constant 0 : index
    %29 = vector.load %arg6[%c1_37, %c2_38, %c0_39] : memref<18x18x4xf32, #tpu.memory_space<vmem>>, vector<16x16x4xf32>
    %30 = vector.shape_cast %29 : vector<16x16x4xf32> to vector<256x4xf32>
    %31 = arith.truncf %30 : vector<256x4xf32> to vector<256x4xbf16>
    %c0_40 = arith.constant 0 : index
    %c20 = arith.constant 20 : index
    %32 = vector.load %arg7[%c0_40, %c20] : memref<256x36xbf16, #tpu.memory_space<vmem>>, vector<256x4xbf16>
    tpu.vector_store %arg7[%c0_40, %c20], %31 {strides = array<i32>} : memref<256x36xbf16, #tpu.memory_space<vmem>>, vector<256x4xbf16>,
    %c2_41 = arith.constant 2 : index
    %c0_42 = arith.constant 0 : index
    %c0_43 = arith.constant 0 : index
    %33 = vector.load %arg6[%c2_41, %c0_42, %c0_43] : memref<18x18x4xf32, #tpu.memory_space<vmem>>, vector<16x16x4xf32>
    %34 = vector.shape_cast %33 : vector<16x16x4xf32> to vector<256x4xf32>
    %35 = arith.truncf %34 : vector<256x4xf32> to vector<256x4xbf16>
    %c0_44 = arith.constant 0 : index
    %c24 = arith.constant 24 : index
    %36 = vector.load %arg7[%c0_44, %c24] : memref<256x36xbf16, #tpu.memory_space<vmem>>, vector<256x4xbf16>
    tpu.vector_store %arg7[%c0_44, %c24], %35 {strides = array<i32>} : memref<256x36xbf16, #tpu.memory_space<vmem>>, vector<256x4xbf16>,
    %c2_45 = arith.constant 2 : index
    %c1_46 = arith.constant 1 : index
    %c0_47 = arith.constant 0 : index
    %37 = vector.load %arg6[%c2_45, %c1_46, %c0_47] : memref<18x18x4xf32, #tpu.memory_space<vmem>>, vector<16x16x4xf32>
    %38 = vector.shape_cast %37 : vector<16x16x4xf32> to vector<256x4xf32>
    %39 = arith.truncf %38 : vector<256x4xf32> to vector<256x4xbf16>
    %c0_48 = arith.constant 0 : index
    %c28 = arith.constant 28 : index
    %40 = vector.load %arg7[%c0_48, %c28] : memref<256x36xbf16, #tpu.memory_space<vmem>>, vector<256x4xbf16>
    tpu.vector_store %arg7[%c0_48, %c28], %39 {strides = array<i32>} : memref<256x36xbf16, #tpu.memory_space<vmem>>, vector<256x4xbf16>,
    %c2_49 = arith.constant 2 : index
    %c2_50 = arith.constant 2 : index
    %c0_51 = arith.constant 0 : index
    %41 = vector.load %arg6[%c2_49, %c2_50, %c0_51] : memref<18x18x4xf32, #tpu.memory_space<vmem>>, vector<16x16x4xf32>
    %42 = vector.shape_cast %41 : vector<16x16x4xf32> to vector<256x4xf32>
    %43 = arith.truncf %42 : vector<256x4xf32> to vector<256x4xbf16>
    %c0_52 = arith.constant 0 : index
    %c32 = arith.constant 32 : index
    %44 = vector.load %arg7[%c0_52, %c32] : memref<256x36xbf16, #tpu.memory_space<vmem>>, vector<256x4xbf16>
    tpu.vector_store %arg7[%c0_52, %c32], %43 {strides = array<i32>} : memref<256x36xbf16, #tpu.memory_space<vmem>>, vector<256x4xbf16>,
    %c0_53 = arith.constant 0 : index
    %c0_54 = arith.constant 0 : index
    %45 = vector.load %arg7[%c0_53, %c0_54] : memref<256x36xbf16, #tpu.memory_space<vmem>>, vector<256x36xbf16>
    %c0_55 = arith.constant 0 : index
    %c0_56 = arith.constant 0 : index
    %46 = vector.load %arg2[%c0_55, %c0_56] : memref<36x8xbf16, #tpu.memory_space<vmem>>, vector<36x8xbf16>
    %cst_57 = arith.constant dense<0.000000e+00> : vector<256x8xf32>
    %47 = tpu.matmul %45, %46, %cst_57 {dimension_numbers = #tpu.dot_dimension_numbers<[1], [0], [0], [1], [0, 0, 1, 1], [], []>} : vector<256x36xbf16>, vector<36x8xbf16>, vector<256x8xf32> -> vector<256x8xf32>
    %48 = vector.shape_cast %47 : vector<256x8xf32> to vector<1x16x16x8xf32>
    %c0_58 = arith.constant 0 : index
    %c0_59 = arith.constant 0 : index
    %c0_60 = arith.constant 0 : index
    %c0_61 = arith.constant 0 : index
    %49 = vector.load %arg3[%c0_58, %c0_59, %c0_60, %c0_61] : memref<1x16x16x8xf32, #tpu.memory_space<vmem>>, vector<1x16x16x8xf32>
    tpu.vector_store %arg3[%c0_58, %c0_59, %c0_60, %c0_61], %48 {strides = array<i32>} : memref<1x16x16x8xf32, #tpu.memory_space<vmem>>, vector<1x16x16x8xf32>,
    %cst_62 = arith.constant dense<0.000000e+00> : vector<8xf32>
    %50 = vector.multi_reduction <add>, %47, %cst_62 [0] : vector<256x8xf32> to vector<8xf32>
    %51 = vector.shape_cast %50 : vector<8xf32> to vector<1x8xf32>
    %52 = vector.shape_cast %51 : vector<1x8xf32> to vector<1x1x8xf32>
    %c0_63 = arith.constant 0 : index
    %c0_64 = arith.constant 0 : index
    %c0_65 = arith.constant 0 : index
    %53 = vector.load %arg4[%c0_63, %c0_64, %c0_65] : memref<1x1x8xf32, #tpu.memory_space<vmem>>, vector<1x1x8xf32>
    tpu.vector_store %arg4[%c0_63, %c0_64, %c0_65], %52 {strides = array<i32>} : memref<1x1x8xf32, #tpu.memory_space<vmem>>, vector<1x1x8xf32>,
    %54 = arith.mulf %47, %47 : vector<256x8xf32>
    %cst_66 = arith.constant dense<0.000000e+00> : vector<8xf32>
    %55 = vector.multi_reduction <add>, %54, %cst_66 [0] : vector<256x8xf32> to vector<8xf32>
    %56 = vector.shape_cast %55 : vector<8xf32> to vector<1x8xf32>
    %57 = vector.shape_cast %56 : vector<1x8xf32> to vector<1x1x8xf32>
    %c0_67 = arith.constant 0 : index
    %c0_68 = arith.constant 0 : index
    %c0_69 = arith.constant 0 : index
    %58 = vector.load %arg5[%c0_67, %c0_68, %c0_69] : memref<1x1x8xf32, #tpu.memory_space<vmem>>, vector<1x1x8xf32>
    tpu.vector_store %arg5[%c0_67, %c0_68, %c0_69], %57 {strides = array<i32>} : memref<1x1x8xf32, #tpu.memory_space<vmem>>, vector<1x1x8xf32>,
    return
  }
  func.func @transform_0(%arg0: i32) -> (i32, i32, i32, i32) {
    %c0_i32 = arith.constant 0 : i32
    %c0_i32_0 = arith.constant 0 : i32
    %c0_i32_1 = arith.constant 0 : i32
    %c0_i32_2 = arith.constant 0 : i32
    return %arg0, %c0_i32, %c0_i32_0, %c0_i32_1 : i32, i32, i32, i32
  }
  func.func @transform_1(%arg0: i32) -> (i32, i32) {
    %c0_i32 = arith.constant 0 : i32
    %c0_i32_0 = arith.constant 0 : i32
    %c0_i32_1 = arith.constant 0 : i32
    return %c0_i32, %c0_i32_0 : i32, i32
  }
  func.func @transform_2(%arg0: i32) -> (i32, i32, i32, i32) {
    %c0_i32 = arith.constant 0 : i32
    %c0_i32_0 = arith.constant 0 : i32
    %c0_i32_1 = arith.constant 0 : i32
    %c0_i32_2 = arith.constant 0 : i32
    return %arg0, %c0_i32, %c0_i32_0, %c0_i32_1 : i32, i32, i32, i32
  }
  func.func @transform_3(%arg0: i32) -> (i32, i32, i32) {
    %c0_i32 = arith.constant 0 : i32
    %c0_i32_0 = arith.constant 0 : i32
    %c0_i32_1 = arith.constant 0 : i32
    return %arg0, %c0_i32, %c0_i32_0 : i32, i32, i32
  }
  func.func @transform_4(%arg0: i32) -> (i32, i32, i32) {
    %c0_i32 = arith.constant 0 : i32
    %c0_i32_0 = arith.constant 0 : i32
    %c0_i32_1 = arith.constant 0 : i32
    return %arg0, %c0_i32, %c0_i32_0 : i32, i32, i32
  }
}

module attributes {stable_mosaic.version = 11 : i64} {
  func.func @bn_relu_kernel(%arg0: i32, %arg1: memref<1x16x16x8xf32, #tpu.memory_space<vmem>>, %arg2: memref<1x8xf32, #tpu.memory_space<vmem>>, %arg3: memref<1x8xf32, #tpu.memory_space<vmem>>, %arg4: memref<1x16x16x8xf32, #tpu.memory_space<vmem>>) attributes {dimension_semantics = [#tpu.dimension_semantics<parallel>], iteration_bounds = array<i64: 2>, scalar_prefetch = 0 : i64, scratch_operands = 0 : i64, tpu.core_type = #tpu.core_type<tc>, window_params = [{transform_indices = @transform_0, window_bounds = array<i64: 1, 16, 16, 8>}, {pipeline_mode = #tpu.pipeline_mode<synchronous>, transform_indices = @transform_1, window_bounds = array<i64: 1, 8>}, {pipeline_mode = #tpu.pipeline_mode<synchronous>, transform_indices = @transform_2, window_bounds = array<i64: 1, 8>}, {transform_indices = @transform_3, window_bounds = array<i64: 1, 16, 16, 8>}]} {
    %c0 = arith.constant 0 : index
    %c0_0 = arith.constant 0 : index
    %c0_1 = arith.constant 0 : index
    %c0_2 = arith.constant 0 : index
    %0 = vector.load %arg1[%c0, %c0_0, %c0_1, %c0_2] : memref<1x16x16x8xf32, #tpu.memory_space<vmem>>, vector<1x16x16x8xf32>
    %c0_3 = arith.constant 0 : index
    %c0_4 = arith.constant 0 : index
    %1 = vector.load %arg2[%c0_3, %c0_4] : memref<1x8xf32, #tpu.memory_space<vmem>>, vector<1x8xf32>
    %2 = vector.shape_cast %1 : vector<1x8xf32> to vector<1x1x1x8xf32>
    %3 = vector.broadcast %2 : vector<1x1x1x8xf32> to vector<1x16x16x8xf32>
    %4 = arith.mulf %0, %3 : vector<1x16x16x8xf32>
    %c0_5 = arith.constant 0 : index
    %c0_6 = arith.constant 0 : index
    %5 = vector.load %arg3[%c0_5, %c0_6] : memref<1x8xf32, #tpu.memory_space<vmem>>, vector<1x8xf32>
    %6 = vector.shape_cast %5 : vector<1x8xf32> to vector<1x1x1x8xf32>
    %7 = vector.broadcast %6 : vector<1x1x1x8xf32> to vector<1x16x16x8xf32>
    %8 = arith.addf %4, %7 : vector<1x16x16x8xf32>
    %cst = arith.constant 0.000000e+00 : f32
    %9 = vector.broadcast %cst : f32 to vector<1x16x16x8xf32>
    %10 = arith.maximumf %8, %9 : vector<1x16x16x8xf32>
    %c0_7 = arith.constant 0 : index
    %c0_8 = arith.constant 0 : index
    %c0_9 = arith.constant 0 : index
    %c0_10 = arith.constant 0 : index
    %11 = vector.load %arg4[%c0_7, %c0_8, %c0_9, %c0_10] : memref<1x16x16x8xf32, #tpu.memory_space<vmem>>, vector<1x16x16x8xf32>
    tpu.vector_store %arg4[%c0_7, %c0_8, %c0_9, %c0_10], %10 {strides = array<i32>} : memref<1x16x16x8xf32, #tpu.memory_space<vmem>>, vector<1x16x16x8xf32>,
    return
  }
  func.func @transform_0(%arg0: i32) -> (i32, i32, i32, i32) {
    %c0_i32 = arith.constant 0 : i32
    %c0_i32_0 = arith.constant 0 : i32
    %c0_i32_1 = arith.constant 0 : i32
    %c0_i32_2 = arith.constant 0 : i32
    return %arg0, %c0_i32, %c0_i32_0, %c0_i32_1 : i32, i32, i32, i32
  }
  func.func @transform_1(%arg0: i32) -> (i32, i32) {
    %c0_i32 = arith.constant 0 : i32
    %c0_i32_0 = arith.constant 0 : i32
    %c0_i32_1 = arith.constant 0 : i32
    return %c0_i32, %c0_i32_0 : i32, i32
  }
  func.func @transform_2(%arg0: i32) -> (i32, i32) {
    %c0_i32 = arith.constant 0 : i32
    %c0_i32_0 = arith.constant 0 : i32
    %c0_i32_1 = arith.constant 0 : i32
    return %c0_i32, %c0_i32_0 : i32, i32
  }
  func.func @transform_3(%arg0: i32) -> (i32, i32, i32, i32) {
    %c0_i32 = arith.constant 0 : i32
    %c0_i32_0 = arith.constant 0 : i32
    %c0_i32_1 = arith.constant 0 : i32
    %c0_i32_2 = arith.constant 0 : i32
    return %arg0, %c0_i32, %c0_i32_0, %c0_i32_1 : i32, i32, i32, i32
  }
}

</mosaic_0001>

<bundles_post_ra>
// kernel: double_conv.5
= control target key start
LH: loop header
LB: loop body
LE: loop exit
PB: predicated region body
PF: predicated region fallthrough
CT: control target
= control target key end

     0   :  { %s446_s12 = smov 0   ;;  %s637_s0 = inlined_call_operand.vmem [shape: f32[2,16,16,8], index: 0, kind: input, shape index: {}]   ;;  %s638_s1 = inlined_call_operand.vmem [shape: f32[1,8], index: 1, kind: input, shape index: {}]   ;;  %s639_s2 = inlined_call_operand.vmem [shape: f32[1,8], index: 2, kind: input, shape index: {}]   ;;  %s640_s3 = inlined_call_operand.vmem [shape: f32[2,16,16,8], index: 3, kind: output, shape index: {}]  }
   0x1 LB: > { %s395_s13 = sadd.s32 4294967295, %s424_s12   ;;  %p399_p0 = scmp.ge.s32.totalorder %s424_s12, 1  ;;  %s424_s12 = sphi %s446_s12, %s13_s12  }
   0x2   : > { %p137_p1 = scmp.lt.s32.totalorder %s424_s12, 3 }
   0x4   : > { %p138_p2 = pnand %p399_p0, %p137_p1 }
   0x5   : > { %p161_p3 = scmp.lt.s32.totalorder (!%p138_p2), %s395_s13, 1 }
   0x6   : > { %141 = sbr.rel (%p138_p2) target bundleno = 53 (0x35), region = 32 }
   0xb   : > { %s642_s13 = smov (!%p161_p3, %s395_s13), 1  ;;  %v457_v0 = vld [vmem:[%s638_s1] ss:$0 sm:$0xff]  ;;  %vm307_vm0 = vcmask 64512  }
   0xc   : > { %s406_s16 = sshll.u32 %s642_s13, 8  ;;  %v467_v1 = vld [vmem:[%s639_s2] ss:$0 sm:$0xff] }
   0xd   : > { %s462_s19 = scalar_lea.vmem %s637_s0, %s406_s16  ;;  %s490_s24 = scalar_lea.vmem %s640_s3, %s406_s16 }
   0xe   : > { %v171_v2 = vld [vmem:[%s462_s19] sm:$0xff]  ;;  %v172_v3 = vld [vmem:[%s462_s19 + $0x8] sm:$0xff]  ;;  %v173_v4 = vld [vmem:[%s462_s19 + $0x10] sm:$0xff] }
   0xf   : > { %v207_v5 = vmul.f32 %v457_v0, %v171_v2  ;;  %v208_v6 = vmul.f32 %v457_v0, %v172_v3  ;;  %v209_v7 = vmul.f32 %v457_v0, %v173_v4  ;;  %v174_v8 = vld [vmem:[%s462_s19 + $0x18] sm:$0xff]  ;;  %v175_v9 = vld [vmem:[%s462_s19 + $0x20] sm:$0xff]  ;;  %v176_v10 = vld [vmem:[%s462_s19 + $0x28] sm:$0xff] }
  0x10   : > { %v210_v11 = vmul.f32 %v457_v0, %v174_v8  ;;  %v211_v12 = vmul.f32 %v457_v0, %v175_v9  ;;  %v212_v13 = vmul.f32 %v457_v0, %v176_v10  ;;  %v177_v14 = vld [vmem:[%s462_s19 + $0x30] sm:$0xff]  ;;  %v178_v15 = vld [vmem:[%s462_s19 + $0x38] sm:$0xff]  ;;  %v179_v24 = vld [vmem:[%s462_s19 + $0x40] sm:$0xff] }
  0x11   : > { %v243_v16 = vadd.f32 %v467_v1, %v207_v5  ;;  %v244_v17 = vadd.f32 %v467_v1, %v208_v6  ;;  %v245_v18 = vadd.f32 %v467_v1, %v209_v7  ;;  %v213_v19 = vmul.f32 %v457_v0, %v177_v14  ;;  %v180_v25 = vld [vmem:[%s462_s19 + $0x48] sm:$0xff]  ;;  %v181_v26 = vld [vmem:[%s462_s19 + $0x50] sm:$0xff]  ;;  %v182_v31 = vld [vmem:[%s462_s19 + $0x58] sm:$0xff] }
  0x12   : > { %v246_v20 = vadd.f32 %v467_v1, %v210_v11  ;;  %v247_v21 = vadd.f32 %v467_v1, %v211_v12  ;;  %v248_v22 = vadd.f32 %v467_v1, %v212_v13  ;;  %v214_v23 = vmul.f32 %v457_v0, %v178_v15  ;;  %v183_v32 = vld [vmem:[%s462_s19 + $0x60] sm:$0xff]  ;;  %v184_v33 = vld [vmem:[%s462_s19 + $0x68] sm:$0xff]  ;;  %v185_v37 = vld [vmem:[%s462_s19 + $0x70] sm:$0xff] }
  0x13   : > { %v275_v27 = vmax.f32 %v243_v16, 0.0  ;;  %v276_v28 = vmax.f32 %v244_v17, 0.0  ;;  %v277_v29 = vmax.f32 %v245_v18, 0.0  ;;  %v249_v30 = vadd.f32 %v467_v1, %v213_v19  ;;  %v186_v42 = vld [vmem:[%s462_s19 + $0x78] sm:$0xff]  ;;  %v187_v54 = vld [vmem:[%s462_s19 + $0x80] sm:$0xff]  ;;  %v188_v55 = vld [vmem:[%s462_s19 + $0x88] sm:$0xff] }
  0x14   : > { %v278_v34 = vmax.f32 %v246_v20, 0.0  ;;  %v279_v35 = vmax.f32 %v247_v21, 0.0  ;;  %v250_v36 = vadd.f32 %v467_v1, %v214_v23  ;;  %v280_v38 = vmax.f32 %v248_v22, 0.0  ;;  %v189_v56 = vld [vmem:[%s462_s19 + $0x90] sm:$0xff]  ;;  %v190_v59 = vld [vmem:[%s462_s19 + $0x98] sm:$0xff]  ;;  %v191_v63 = vld [vmem:[%s462_s19 + $0xa0] sm:$0xff] }
  0x15   : > { %308 = vst.msk [vmem:[%s490_s24] sm:$0xff] %vm307_vm0, %v275_v27  ;;  %v215_v39 = vmul.f32 %v457_v0, %v179_v24  ;;  %v216_v40 = vmul.f32 %v457_v0, %v180_v25  ;;  %v217_v41 = vmul.f32 %v457_v0, %v181_v26  ;;  %v281_v43 = vmax.f32 %v249_v30, 0.0  ;;  %v192_v6 = vld [vmem:[%s462_s19 + $0xa8] sm:$0xff]  ;;  %v193_v10 = vld [vmem:[%s462_s19 + $0xb0] sm:$0xff]  ;;  %v194_v14 = vld [vmem:[%s462_s19 + $0xb8] sm:$0xff] }
  0x16   : > { %309 = vst.msk [vmem:[%s490_s24 + $0x8] sm:$0xff] %vm307_vm0, %v276_v28  ;;  %v218_v44 = vmul.f32 %v457_v0, %v182_v31  ;;  %v219_v45 = vmul.f32 %v457_v0, %v183_v32  ;;  %v220_v46 = vmul.f32 %v457_v0, %v184_v33  ;;  %v221_v50 = vmul.f32 %v457_v0, %v185_v37  ;;  %v195_v18 = vld [vmem:[%s462_s19 + $0xc0] sm:$0xff]  ;;  %v196_v22 = vld [vmem:[%s462_s19 + $0xc8] sm:$0xff]  ;;  %v197_v26 = vld [vmem:[%s462_s19 + $0xd0] sm:$0xff] }
  0x17   : > { %310 = vst.msk [vmem:[%s490_s24 + $0x10] sm:$0xff] %vm307_vm0, %v277_v29  ;;  %v251_v47 = vadd.f32 %v467_v1, %v215_v39  ;;  %v252_v48 = vadd.f32 %v467_v1, %v216_v40  ;;  %v253_v49 = vadd.f32 %v467_v1, %v217_v41  ;;  %v282_v51 = vmax.f32 %v250_v36, 0.0  ;;  %v198_v30 = vld [vmem:[%s462_s19 + $0xd8] sm:$0xff] }
  0x18   : > { %311 = vst.msk [vmem:[%s490_s24 + $0x18] sm:$0xff] %vm307_vm0, %v278_v34  ;;  %v254_v52 = vadd.f32 %v467_v1, %v218_v44  ;;  %v222_v53 = vmul.f32 %v457_v0, %v186_v42  ;;  %v255_v58 = vadd.f32 %v467_v1, %v219_v45  ;;  %v256_v62 = vadd.f32 %v467_v1, %v220_v46  ;;  %v199_v34 = vld [vmem:[%s462_s19 + $0xe0] sm:$0xff]  ;;  %v201_v42 = vld [vmem:[%s462_s19 + $0xf0] sm:$0xff]  ;;  %v202_v46 = vld [vmem:[%s462_s19 + $0xf8] sm:$0xff] }
  0x19   : > { %312 = vst.msk [vmem:[%s490_s24 + $0x20] sm:$0xff] %vm307_vm0, %v279_v35  ;;  %v283_v57 = vmax.f32 %v251_v47, 0.0  ;;  %v284_v60 = vmax.f32 %v252_v48, 0.0  ;;  %v285_v61 = vmax.f32 %v253_v49, 0.0  ;;  %v257_v2 = vadd.f32 %v467_v1, %v221_v50 }
  0x1a   : > { %313 = vst.msk [vmem:[%s490_s24 + $0x28] sm:$0xff] %vm307_vm0, %v280_v38  ;;  %v223_v3 = vmul.f32 %v457_v0, %v187_v54  ;;  %v224_v4 = vmul.f32 %v457_v0, %v188_v55  ;;  %v225_v5 = vmul.f32 %v457_v0, %v189_v56  ;;  %v286_v7 = vmax.f32 %v254_v52, 0.0  ;;  %v200_v38 = vld [vmem:[%s462_s19 + $0xe8] sm:$0xff] }
  0x1b   : > { %314 = vst.msk [vmem:[%s490_s24 + $0x30] sm:$0xff] %vm307_vm0, %v281_v43  ;;  %v258_v8 = vadd.f32 %v467_v1, %v222_v53  ;;  %v226_v9 = vmul.f32 %v457_v0, %v190_v59  ;;  %v287_v11 = vmax.f32 %v255_v58, 0.0  ;;  %v227_v13 = vmul.f32 %v457_v0, %v191_v63 }
  0x1c   : > { %315 = vst.msk [vmem:[%s490_s24 + $0x38] sm:$0xff] %vm307_vm0, %v282_v51  ;;  %v259_v12 = vadd.f32 %v467_v1, %v223_v3  ;;  %v288_v15 = vmax.f32 %v256_v62, 0.0  ;;  %v260_v16 = vadd.f32 %v467_v1, %v224_v4  ;;  %v228_v17 = vmul.f32 %v457_v0, %v192_v6 }
  0x1d   : > { %316 = vst.msk [vmem:[%s490_s24 + $0x40] sm:$0xff] %vm307_vm0, %v283_v57  ;;  %v289_v19 = vmax.f32 %v257_v2, 0.0  ;;  %v261_v20 = vadd.f32 %v467_v1, %v225_v5  ;;  %v229_v21 = vmul.f32 %v457_v0, %v193_v10  ;;  %v290_v23 = vmax.f32 %v258_v8, 0.0 }
  0x1e   : > { %317 = vst.msk [vmem:[%s490_s24 + $0x48] sm:$0xff] %vm307_vm0, %v284_v60  ;;  %v262_v24 = vadd.f32 %v467_v1, %v226_v9  ;;  %v230_v25 = vmul.f32 %v457_v0, %v194_v14  ;;  %v291_v27 = vmax.f32 %v259_v12, 0.0  ;;  %v263_v28 = vadd.f32 %v467_v1, %v227_v13 }
  0x1f   : > { %318 = vst.msk [vmem:[%s490_s24 + $0x50] sm:$0xff] %vm307_vm0, %v285_v61  ;;  %v231_v29 = vmul.f32 %v457_v0, %v195_v18  ;;  %v292_v31 = vmax.f32 %v260_v16, 0.0  ;;  %v264_v32 = vadd.f32 %v467_v1, %v228_v17  ;;  %v232_v33 = vmul.f32 %v457_v0, %v196_v22 }
  0x20   : > { %319 = vst.msk [vmem:[%s490_s24 + $0x58] sm:$0xff] %vm307_vm0, %v286_v7  ;;  %v293_v35 = vmax.f32 %v261_v20, 0.0  ;;  %v265_v36 = vadd.f32 %v467_v1, %v229_v21  ;;  %v233_v37 = vmul.f32 %v457_v0, %v197_v26  ;;  %v294_v39 = vmax.f32 %v262_v24, 0.0 }
  0x21   : > { %320 = vst.msk [vmem:[%s490_s24 + $0x60] sm:$0xff] %vm307_vm0, %v287_v11  ;;  %v266_v40 = vadd.f32 %v467_v1, %v230_v25  ;;  %v234_v41 = vmul.f32 %v457_v0, %v198_v30  ;;  %v295_v43 = vmax.f32 %v263_v28, 0.0  ;;  %v267_v44 = vadd.f32 %v467_v1, %v231_v29 }
  0x22   : > { %321 = vst.msk [vmem:[%s490_s24 + $0x68] sm:$0xff] %vm307_vm0, %v288_v15  ;;  %v235_v45 = vmul.f32 %v457_v0, %v199_v34  ;;  %v296_v47 = vmax.f32 %v264_v32, 0.0  ;;  %v268_v48 = vadd.f32 %v467_v1, %v232_v33  ;;  %v236_v49 = vmul.f32 %v457_v0, %v200_v38 }
  0x23   : > { %322 = vst.msk [vmem:[%s490_s24 + $0x70] sm:$0xff] %vm307_vm0, %v289_v19  ;;  %v297_v50 = vmax.f32 %v265_v36, 0.0  ;;  %v269_v51 = vadd.f32 %v467_v1, %v233_v37  ;;  %v237_v52 = vmul.f32 %v457_v0, %v201_v42  ;;  %v298_v53 = vmax.f32 %v266_v40, 0.0 }
  0x24   : > { %323 = vst.msk [vmem:[%s490_s24 + $0x78] sm:$0xff] %vm307_vm0, %v290_v23  ;;  %v270_v54 = vadd.f32 %v467_v1, %v234_v41  ;;  %v238_v55 = vmul.f32 %v457_v0, %v202_v46  ;;  %v299_v56 = vmax.f32 %v267_v44, 0.0  ;;  %v271_v57 = vadd.f32 %v467_v1, %v235_v45 }
  0x25   : > { %324 = vst.msk [vmem:[%s490_s24 + $0x80] sm:$0xff] %vm307_vm0, %v291_v27  ;;  %v300_v58 = vmax.f32 %v268_v48, 0.0  ;;  %v272_v59 = vadd.f32 %v467_v1, %v236_v49  ;;  %v301_v60 = vmax.f32 %v269_v51, 0.0  ;;  %v273_v0 = vadd.f32 %v467_v1, %v237_v52 }
  0x26   : > { %325 = vst.msk [vmem:[%s490_s24 + $0x88] sm:$0xff] %vm307_vm0, %v292_v31  ;;  %v302_v61 = vmax.f32 %v270_v54, 0.0  ;;  %v274_v62 = vadd.f32 %v467_v1, %v238_v55  ;;  %v303_v63 = vmax.f32 %v271_v57, 0.0 }
  0x27   : > { %326 = vst.msk [vmem:[%s490_s24 + $0x90] sm:$0xff] %vm307_vm0, %v293_v35  ;;  %v304_v2 = vmax.f32 %v272_v59, 0.0  ;;  %v305_v3 = vmax.f32 %v273_v0, 0.0 }
  0x28   : > { %327 = vst.msk [vmem:[%s490_s24 + $0x98] sm:$0xff] %vm307_vm0, %v294_v39  ;;  %v306_v4 = vmax.f32 %v274_v62, 0.0 }
  0x29   : > { %328 = vst.msk [vmem:[%s490_s24 + $0xa0] sm:$0xff] %vm307_vm0, %v295_v43 }
  0x2a   : > { %329 = vst.msk [vmem:[%s490_s24 + $0xa8] sm:$0xff] %vm307_vm0, %v296_v47 }
  0x2b   : > { %330 = vst.msk [vmem:[%s490_s24 + $0xb0] sm:$0xff] %vm307_vm0, %v297_v50 }
  0x2c   : > { %331 = vst.msk [vmem:[%s490_s24 + $0xb8] sm:$0xff] %vm307_vm0, %v298_v53 }
  0x2d   : > { %332 = vst.msk [vmem:[%s490_s24 + $0xc0] sm:$0xff] %vm307_vm0, %v299_v56 }
  0x2e   : > { %333 = vst.msk [vmem:[%s490_s24 + $0xc8] sm:$0xff] %vm307_vm0, %v300_v58 }
  0x2f   : > { %334 = vst.msk [vmem:[%s490_s24 + $0xd0] sm:$0xff] %vm307_vm0, %v301_v60 }
  0x30   : > { %335 = vst.msk [vmem:[%s490_s24 + $0xd8] sm:$0xff] %vm307_vm0, %v302_v61 }
  0x31   : > { %336 = vst.msk [vmem:[%s490_s24 + $0xe0] sm:$0xff] %vm307_vm0, %v303_v63 }
  0x32   : > { %337 = vst.msk [vmem:[%s490_s24 + $0xe8] sm:$0xff] %vm307_vm0, %v304_v2 }
  0x33   : > { %338 = vst.msk [vmem:[%s490_s24 + $0xf0] sm:$0xff] %vm307_vm0, %v305_v3 }
  0x34   : > { %339 = vst.msk [vmem:[%s490_s24 + $0xf8] sm:$0xff] %vm307_vm0, %v306_v4 }
  0x35 PF: > { %s13_s12 = sadd.s32 1, %s424_s12  }
  0x36   : > { %p10_p4 = scmp.ge.s32.totalorder %s13_s12, 4  }
  0x38   :  { %12 = sbr.rel (!%p10_p4) target bundleno = 1 (0x1), region = 62 }

// kernel: double_conv.3
= control target key start
LH: loop header
LB: loop body
LE: loop exit
PB: predicated region body
PF: predicated region fallthrough
CT: control target
= control target key end

     0   :  { %s2997_s15 = smov 0   ;;  %s4210_s0 = inlined_call_operand.vmem [shape: f32[2,16,16,4], index: 0, kind: input, shape index: {}]   ;;  %s4211_s1 = inlined_call_operand.vmem [shape: bf16[36,8], index: 1, kind: input, shape index: {}]   ;;  %s4212_s2 = inlined_call_operand.vmem [shape: f32[2,16,16,8], index: 2, kind: output, shape index: {0}]   ;;  %s4213_s3 = inlined_call_operand.vmem [shape: f32[2,1,8], index: 3, kind: output, shape index: {1}]   ;;  %s4214_s4 = inlined_call_operand.vmem [shape: f32[2,1,8], index: 4, kind: output, shape index: {2}]  }
   0x1 LB: > { %s2810_s16 = sadd.s32 4294967295, %s2961_s15   ;;  %p2814_p0 = scmp.ge.s32.totalorder %s2961_s15, 1  ;;  %s2961_s15 = sphi %s2997_s15, %s15_s15  }
   0x2   : > { %p167_p1 = scmp.lt.s32.totalorder %s2961_s15, 3 }
   0x4   : > { %p168_p2 = pnand %p2814_p0, %p167_p1 }
   0x5   : > { %s2964_s17 = smov (!%p168_p2), 4   ;;  %p199_p3 = scmp.lt.s32.totalorder (!%p168_p2), %s2810_s16, 1 }
   0x6   : > { %171 = sbr.rel (%p168_p2) target bundleno = 1014 (0x3f6), region = 28  ;;  %s2965_s22 = smov (!%p168_p2), 8  }
   0x7   : > { %s2966_s23 = smov (!%p168_p2), 12   ;;  %s2967_s24 = smov (!%p168_p2), 16  }
   0x8   : > { %s2968_s25 = smov (!%p168_p2), 20   ;;  %s2969_s26 = smov (!%p168_p2), 24  }
   0x9   : > { %s2970_s27 = smov (!%p168_p2), 28   ;;  %s2971_s28 = smov (!%p168_p2), 32  }
   0xb   : > { %vm248_vm0 = vcmask 31744   ;;  %v2963_v0 = vmov 0.0   ;;  %vm257_vm1 = vcmask 24576   ;;  %s4216_s16 = smov (!%p199_p3, %s2810_s16), 1  ;;  %vm251_vm2 = vcmask 25600  }
   0xc   : > { %249 = vst.msk [vmem:[#allocation2] sm:$0xff] %vm248_vm0, %v2963_v0  ;;  %s2909_s18 = sshll.u32 %s4216_s16, 8  ;;  %vm391_vm3 = vcmask 27648   ;;  %vm616_vm4 = vcmask 60448   ;;  %vm841_vm5 = vcmask 93248   ;;  %vm1066_vm6 = vcmask 126048   ;;  %s211_s14 = scalar_lea.vmem %s4213_s3, %s4216_s16 }
   0xd   : > { %250 = vst.msk [vmem:[#allocation2 + $0x8] sm:$0xff] %vm248_vm0, %v2963_v0  ;;  %s3050_s21 = scalar_lea.vmem %s4210_s0, %s2909_s18  ;;  %vm1291_vm7 = vcmask 158848   ;;  %vm1516_vm8 = vcmask 191648   ;;  %vm2406_vm9 = vcmask 1041408   ;;  %vm1742_vm10 = vcmask 224448   ;;  %s3942_s11 = scalar_lea.vmem %s4212_s2, %s2909_s18 }
   0xe   : > { %258 = vst.msk [vmem:[#allocation2] sm:$0x1] %vm257_vm1, %v2963_v0  ;;  %v216_v3 = vld [vmem:[%s3050_s21] sm:$0xff]  ;;  %v217_v4 = vld [vmem:[%s3050_s21 + $0x8] sm:$0xff]  ;;  %v223_v7 = vld [vmem:[%s3050_s21 + $0x38] sm:$0xff]  ;;  %vm1967_vm11 = vcmask 257248   ;;  %s214_s19 = scalar_lea.vmem %s4214_s4, %s4216_s16 }
   0xf   : > { %254 = vst.msk [vmem:[#allocation2 + $0x198] sm:$0xff] %vm248_vm0, %v2963_v0  ;;  %v220_v5 = vld [vmem:[%s3050_s21 + $0x20] sm:$0xff]  ;;  %v221_v6 = vld [vmem:[%s3050_s21 + $0x28] sm:$0xff]  ;;  %v218_v9 = vld [vmem:[%s3050_s21 + $0x10] sm:$0xff]  ;;  %vm2192_vm12 = vcmask 290048   ;;  %vm2357_vm13 = vcmask 293888  }
  0x10   : > { %255 = vst.msk [vmem:[#allocation2 + $0x1a0] sm:$0xff] %vm248_vm0, %v2963_v0  ;;  %v224_v11 = vld [vmem:[%s3050_s21 + $0x40] sm:$0xff]  ;;  %v226_v13 = vld [vmem:[%s3050_s21 + $0x50] sm:$0xff]  ;;  %v219_v15 = vld [vmem:[%s3050_s21 + $0x18] sm:$0xff]  ;;  %vm2499_vm14 = vcmask 64512   ;;  %vm2601_vm15 = vcmask 57344  }
  0x11   : > { %259 = vst.msk [vmem:[#allocation2 + $0x18] sm:$0x1] %vm257_vm1, %v2963_v0  ;;  %v227_v16 = vld [vmem:[%s3050_s21 + $0x58] sm:$0xff]  ;;  %v229_v17 = vld [vmem:[%s3050_s21 + $0x68] sm:$0xff]  ;;  %v222_v19 = vld [vmem:[%s3050_s21 + $0x30] sm:$0xff] }
  0x12   : > { %260 = vst.msk [vmem:[#allocation2 + $0x30] sm:$0x1] %vm257_vm1, %v2963_v0  ;;  %v230_v22 = vld [vmem:[%s3050_s21 + $0x70] sm:$0xff]  ;;  %v232_v23 = vld [vmem:[%s3050_s21 + $0x80] sm:$0xff]  ;;  %v225_v25 = vld [vmem:[%s3050_s21 + $0x48] sm:$0xff] }
  0x13   : > { %261 = vst.msk [vmem:[#allocation2 + $0x48] sm:$0x1] %vm257_vm1, %v2963_v0  ;;  %v233_v27 = vld [vmem:[%s3050_s21 + $0x88] sm:$0xff]  ;;  %v235_v29 = vld [vmem:[%s3050_s21 + $0x98] sm:$0xff]  ;;  %v228_v34 = vld [vmem:[%s3050_s21 + $0x60] sm:$0xff] }
  0x14   : > { %v424_v1 = vld [vmem:[#allocation2 + $0x1] sm:$0xff]  ;;  %262 = vst.msk [vmem:[#allocation2 + $0x60] sm:$0x1] %vm257_vm1, %v2963_v0  ;;  %v238_v38 = vld [vmem:[%s3050_s21 + $0xb0] sm:$0xff]  ;;  %v231_v43 = vld [vmem:[%s3050_s21 + $0x78] sm:$0xff] }
  0x15   : > { %v456_v2 = vpack.c.bf16 %v424_v1, %v424_v1  ;;  %263 = vst.msk [vmem:[#allocation2 + $0x78] sm:$0x1] %vm257_vm1, %v2963_v0  ;;  %v236_v35 = vld [vmem:[%s3050_s21 + $0xa0] sm:$0xff]  ;;  %v239_v44 = vld [vmem:[%s3050_s21 + $0xb8] sm:$0xff]  ;;  %v241_v47 = vld [vmem:[%s3050_s21 + $0xc8] sm:$0xff] }
  0x16   : > { %264 = vst.msk [vmem:[#allocation2 + $0x90] sm:$0x1] %vm257_vm1, %v2963_v0  ;;  %v234_v52 = vld [vmem:[%s3050_s21 + $0x90] sm:$0xff]  ;;  %v244_v56 = vld [vmem:[%s3050_s21 + $0xe0] sm:$0xff]  ;;  %v237_v61 = vld [vmem:[%s3050_s21 + $0xa8] sm:$0xff] }
  0x17   : > { %520 = vrot.lane.b32.xlu0 %v456_v2, %s2964_s17  ;;  %265 = vst.msk [vmem:[#allocation2 + $0xa8] sm:$0x1] %vm257_vm1, %v2963_v0  ;;  %v242_v53 = vld [vmem:[%s3050_s21 + $0xd0] sm:$0xff]  ;;  %v245_v62 = vld [vmem:[%s3050_s21 + $0xe8] sm:$0xff] }
  0x18   : > { %266 = vst.msk [vmem:[#allocation2 + $0xc0] sm:$0x1] %vm257_vm1, %v2963_v0 }
  0x19   : > { %267 = vst.msk [vmem:[#allocation2 + $0xd8] sm:$0x1] %vm257_vm1, %v2963_v0 }
  0x1a   : > { %268 = vst.msk [vmem:[#allocation2 + $0xf0] sm:$0x1] %vm257_vm1, %v2963_v0 }
  0x1b   : > { %269 = vst.msk [vmem:[#allocation2 + $0x108] sm:$0x1] %vm257_vm1, %v2963_v0 }
  0x1c   : > { %270 = vst.msk [vmem:[#allocation2 + $0x120] sm:$0x1] %vm257_vm1, %v2963_v0 }
  0x1d   : > { %271 = vst.msk [vmem:[#allocation2 + $0x138] sm:$0x1] %vm257_vm1, %v2963_v0 }
  0x1e   : > { %272 = vst.msk [vmem:[#allocation2 + $0x150] sm:$0x1] %vm257_vm1, %v2963_v0 }
  0x1f   : > { %273 = vst.msk [vmem:[#allocation2 + $0x168] sm:$0x1] %vm257_vm1, %v2963_v0 }
  0x20   : > { %274 = vst.msk [vmem:[#allocation2 + $0x180] sm:$0x1] %vm257_vm1, %v2963_v0 }
  0x21   : > { %277 = vst.msk [vmem:[#allocation2 + $0x29] sm:$0x1] %vm257_vm1, %v2963_v0 }
  0x22   : > { %278 = vst.msk [vmem:[#allocation2 + $0x41] sm:$0x1] %vm257_vm1, %v2963_v0 }
  0x23   : > { %279 = vst.msk [vmem:[#allocation2 + $0x59] sm:$0x1] %vm257_vm1, %v2963_v0 }
  0x24   : > { %280 = vst.msk [vmem:[#allocation2 + $0x71] sm:$0x1] %vm257_vm1, %v2963_v0 }
  0x25   : > { %281 = vst.msk [vmem:[#allocation2 + $0x89] sm:$0x1] %vm257_vm1, %v2963_v0 }
  0x26   : > { %282 = vst.msk [vmem:[#allocation2 + $0xa1] sm:$0x1] %vm257_vm1, %v2963_v0 }
  0x27   : > { %283 = vst.msk [vmem:[#allocation2 + $0xb9] sm:$0x1] %vm257_vm1, %v2963_v0 }
  0x28   : > { %284 = vst.msk [vmem:[#allocation2 + $0xd1] sm:$0x1] %vm257_vm1, %v2963_v0 }
  0x29   : > { %285 = vst.msk [vmem:[#allocation2 + $0xe9] sm:$0x1] %vm257_vm1, %v2963_v0 }
  0x2a   : > { %286 = vst.msk [vmem:[#allocation2 + $0x101] sm:$0x1] %vm257_vm1, %v2963_v0 }
  0x2b   : > { %287 = vst.msk [vmem:[#allocation2 + $0x119] sm:$0x1] %vm257_vm1, %v2963_v0 }
  0x2c   : > { %288 = vst.msk [vmem:[#allocation2 + $0x131] sm:$0x1] %vm257_vm1, %v2963_v0 }
  0x2d   : > { %289 = vst.msk [vmem:[#allocation2 + $0x149] sm:$0x1] %vm257_vm1, %v2963_v0 }
  0x2e   : > { %290 = vst.msk [vmem:[#allocation2 + $0x161] sm:$0x1] %vm257_vm1, %v2963_v0 }
  0x2f   : > { %291 = vst.msk [vmem:[#allocation2 + $0x179] sm:$0x1] %vm257_vm1, %v2963_v0 }
  0x30   : > { %292 = vst.msk [vmem:[#allocation2 + $0x191] sm:$0x1] %vm257_vm1, %v2963_v0 }
  0x31   : > { %295 = vst.msk [vmem:[#allocation2 + $0x19] sm:$0xff] %vm248_vm0, %v216_v3 }
  0x32   : > { %275 = vst.msk [vmem:[#allocation2 + $0x198] sm:$0x1] %vm257_vm1, %v2963_v0 }
  0x33   : > { %252 = vst.msk [vmem:[#allocation2 + $0x10] sm:$0x3] %vm251_vm2, %v2963_v0 }
  0x34   : > { %256 = vst.msk [vmem:[#allocation2 + $0x1a8] sm:$0x3] %vm251_vm2, %v2963_v0 }
  0x35   : > { %276 = vst.msk [vmem:[#allocation2 + $0x11] sm:$0x1] %vm257_vm1, %v2963_v0 }
  0x36   : > { %293 = vst.msk [vmem:[#allocation2 + $0x1a9] sm:$0x1] %vm257_vm1, %v2963_v0 }
  0x37   : > { %296 = vst.msk [vmem:[#allocation2 + $0x21] sm:$0xff] %vm248_vm0, %v217_v4 }
  0x38   : > { %v426_v8 = vld [vmem:[#allocation2 + $0x19] sm:$0xff]  ;;  %299 = vst.msk [vmem:[#allocation2 + $0x49] sm:$0xff] %vm248_vm0, %v220_v5 }
  0x39   : > { %v458_v10 = vpack.c.bf16 %v426_v8, %v426_v8  ;;  %300 = vst.msk [vmem:[#allocation2 + $0x51] sm:$0xff] %vm248_vm0, %v221_v6  ;;  %v240_v5 = vld [vmem:[%s3050_s21 + $0xc0] sm:$0xff] }
  0x3a   : > { %v425_v12 = vld [vmem:[#allocation2 + $0x9] sm:$0xff]  ;;  %302 = vst.msk [vmem:[#allocation2 + $0x69] sm:$0xff] %vm248_vm0, %v223_v7 }
  0x3b   : > { %524 = vrot.lane.b32.xlu1 %v458_v10, %s2964_s17  ;;  %v457_v14 = vpack.c.bf16 %v425_v12, %v425_v12  ;;  %297 = vst.msk [vmem:[#allocation2 + $0x31] sm:$0xff] %vm248_vm0, %v218_v9  ;;  %v243_v12 = vld [vmem:[%s3050_s21 + $0xd8] sm:$0xff] }
  0x3c   : > { %303 = vst.msk [vmem:[#allocation2 + $0x79] sm:$0xff] %vm248_vm0, %v224_v11 }
  0x3d   : > { %522 = vrot.lane.b32.xlu0 %v457_v14, %s2964_s17  ;;  %305 = vst.msk [vmem:[#allocation2 + $0x91] sm:$0xff] %vm248_vm0, %v226_v13 }
  0x3e   : > { %v427_v18 = vld [vmem:[#allocation2 + $0x21] sm:$0xff]  ;;  %298 = vst.msk [vmem:[#allocation2 + $0x39] sm:$0xff] %vm248_vm0, %v219_v15 }
  0x3f   : > { %v459_v20 = vpack.c.bf16 %v427_v18, %v427_v18  ;;  %v430_v21 = vld [vmem:[#allocation2 + $0x49] sm:$0xff]  ;;  %306 = vst.msk [vmem:[#allocation2 + $0x99] sm:$0xff] %vm248_vm0, %v227_v16 }
  0x40   : > { %308 = vst.msk [vmem:[#allocation2 + $0xb1] sm:$0xff] %vm248_vm0, %v229_v17  ;;  %v462_v24 = vpack.c.bf16 %v430_v21, %v430_v21  ;;  %v431_v30 = vld [vmem:[#allocation2 + $0x51] sm:$0xff] }
  0x41   : > { %301 = vst.msk [vmem:[#allocation2 + $0x61] sm:$0xff] %vm248_vm0, %v222_v19  ;;  %v433_v31 = vld [vmem:[#allocation2 + $0x69] sm:$0xff]  ;;  %v463_v33 = vpack.c.bf16 %v431_v30, %v431_v30 }
  0x42   : > { %v428_v26 = vld [vmem:[#allocation2 + $0x31] sm:$0xff]  ;;  %309 = vst.msk [vmem:[#allocation2 + $0xc1] sm:$0xff] %vm248_vm0, %v230_v22  ;;  %v465_v36 = vpack.c.bf16 %v433_v31, %v433_v31 }
  0x43   : > { %526 = vrot.lane.b32.xlu1 %v459_v20, %s2964_s17  ;;  %v460_v28 = vpack.c.bf16 %v428_v26, %v428_v26  ;;  %311 = vst.msk [vmem:[#allocation2 + $0xd9] sm:$0xff] %vm248_vm0, %v232_v23  ;;  %v434_v39 = vld [vmem:[#allocation2 + $0x79] sm:$0xff]  ;;  %v650_v30 = vld [vmem:[#allocation2 + $0xa] sm:$0xff] }
  0x44   : > { %304 = vst.msk [vmem:[#allocation2 + $0x81] sm:$0xff] %vm248_vm0, %v225_v25  ;;  %v436_v40 = vld [vmem:[#allocation2 + $0x91] sm:$0xff]  ;;  %v466_v42 = vpack.c.bf16 %v434_v39, %v434_v39 }
  0x45   : > { %532 = vrot.lane.b32.xlu0 %v462_v24, %s2964_s17  ;;  %528 = vrot.lane.b32.xlu2 %v460_v28, %s2964_s17  ;;  %312 = vst.msk [vmem:[#allocation2 + $0xe1] sm:$0xff] %vm248_vm0, %v233_v27  ;;  %v429_v32 = vld [vmem:[#allocation2 + $0x39] sm:$0xff]  ;;  %v468_v45 = vpack.c.bf16 %v436_v40, %v436_v40  ;;  %v328_v40 = vld [vmem:[#allocation2 + $0x8] sm:$0xff] }
  0x46   : > { %314 = vst.msk [vmem:[#allocation2 + $0xf9] sm:$0xff] %vm248_vm0, %v235_v29  ;;  %v461_v37 = vpack.c.bf16 %v429_v32, %v429_v32  ;;  %v437_v48 = vld [vmem:[#allocation2 + $0x99] sm:$0xff] }
  0x47   : > { %307 = vst.msk [vmem:[#allocation2 + $0xa9] sm:$0xff] %vm248_vm0, %v228_v34  ;;  %v439_v49 = vld [vmem:[#allocation2 + $0xb1] sm:$0xff]  ;;  %v469_v51 = vpack.c.bf16 %v437_v48, %v437_v48  ;;  %v327_v28 = vld [vmem:[#allocation2] sm:$0xff] }
  0x48   : > { %315 = vst.msk [vmem:[#allocation2 + $0x109] sm:$0xff] %vm248_vm0, %v236_v35  ;;  %v432_v41 = vld [vmem:[#allocation2 + $0x61] sm:$0xff]  ;;  %v471_v54 = vpack.c.bf16 %v439_v49, %v439_v49  ;;  %v359_v29 = vpack.c.bf16 %v327_v28, %v327_v28 }
  0x49   : > { %317 = vst.msk [vmem:[#allocation2 + $0x121] sm:$0xff] %vm248_vm0, %v238_v38  ;;  %v464_v46 = vpack.c.bf16 %v432_v41, %v432_v41  ;;  %v440_v57 = vld [vmem:[#allocation2 + $0xc1] sm:$0xff]  ;;  %v331_v38 = vld [vmem:[#allocation2 + $0x30] sm:$0xff] }
  0x4a   : > { %310 = vst.msk [vmem:[#allocation2 + $0xc9] sm:$0xff] %vm248_vm0, %v231_v43  ;;  %v442_v58 = vld [vmem:[#allocation2 + $0xd9] sm:$0xff]  ;;  %v472_v60 = vpack.c.bf16 %v440_v57, %v440_v57  ;;  %v3156_v41 = vpack.c.bf16 %v331_v38, %v331_v38 }
  0x4b   : > { %534 = vrot.lane.b32.xlu1 %v463_v33, %s2964_s17  ;;  %318 = vst.msk [vmem:[#allocation2 + $0x129] sm:$0xff] %vm248_vm0, %v239_v44  ;;  %v435_v50 = vld [vmem:[#allocation2 + $0x81] sm:$0xff]  ;;  %v474_v63 = vpack.c.bf16 %v442_v58, %v442_v58  ;;  %v682_v33 = vpack.c.bf16 %v650_v30, %v650_v30  ;;  %v653_v43 = vld [vmem:[#allocation2 + $0x32] sm:$0xff] }
  0x4c   : > { %320 = vst.msk [vmem:[#allocation2 + $0x141] sm:$0xff] %vm248_vm0, %v241_v47  ;;  %v467_v55 = vpack.c.bf16 %v435_v50, %v435_v50  ;;  %v443_v1 = vld [vmem:[#allocation2 + $0xe1] sm:$0xff]  ;;  %v332_v50 = vld [vmem:[#allocation2 + $0x38] sm:$0xff] }
  0x4d   : > { %538 = vrot.lane.b32.xlu0 %v465_v36, %s2964_s17  ;;  %530 = vrot.lane.b32.xlu2 %v461_v37, %s2964_s17  ;;  %313 = vst.msk [vmem:[#allocation2 + $0xf1] sm:$0xff] %vm248_vm0, %v234_v52  ;;  %v445_v2 = vld [vmem:[#allocation2 + $0xf9] sm:$0xff]  ;;  %v475_v4 = vpack.c.bf16 %v443_v1, %v443_v1  ;;  %v649_v44 = vld [vmem:[#allocation2 + $0x2] sm:$0xff] }
  0x4e   : > { %321 = vst.msk [vmem:[#allocation2 + $0x151] sm:$0xff] %vm248_vm0, %v242_v53  ;;  %v438_v59 = vld [vmem:[#allocation2 + $0xa9] sm:$0xff]  ;;  %v477_v6 = vpack.c.bf16 %v445_v2, %v445_v2  ;;  %v329_v36 = vld [vmem:[#allocation2 + $0x18] sm:$0xff]  ;;  %v681_v47 = vpack.c.bf16 %v649_v44, %v649_v44  ;;  %v330_v48 = vld [vmem:[#allocation2 + $0x20] sm:$0xff]  ;;  %v3168_v53 = vpack.c.bf16 %v332_v50, %v332_v50 }
  0x4f   : > { %323 = vst.msk [vmem:[#allocation2 + $0x169] sm:$0xff] %vm248_vm0, %v244_v56  ;;  %v470_v0 = vpack.c.bf16 %v438_v59, %v438_v59  ;;  %v446_v8 = vld [vmem:[#allocation2 + $0x109] sm:$0xff]  ;;  %v651_v37 = vld [vmem:[#allocation2 + $0x1a] sm:$0xff]  ;;  %v3152_v39 = vpack.c.bf16 %v329_v36, %v329_v36 }
  0x50   : > { %316 = vst.msk [vmem:[#allocation2 + $0x111] sm:$0xff] %vm248_vm0, %v237_v61  ;;  %v448_v9 = vld [vmem:[#allocation2 + $0x121] sm:$0xff]  ;;  %v478_v11 = vpack.c.bf16 %v446_v8, %v446_v8 }
  0x51   : > { %324 = vst.msk [vmem:[#allocation2 + $0x171] sm:$0xff] %vm248_vm0, %v245_v62  ;;  %v441_v3 = vld [vmem:[#allocation2 + $0xc9] sm:$0xff]  ;;  %v480_v13 = vpack.c.bf16 %v448_v9, %v448_v9  ;;  %v654_v49 = vld [vmem:[#allocation2 + $0x3a] sm:$0xff] }
  0x52   : > { %v473_v7 = vpack.c.bf16 %v441_v3, %v441_v3  ;;  %319 = vst.msk [vmem:[#allocation2 + $0x139] sm:$0xff] %vm248_vm0, %v240_v5  ;;  %v449_v15 = vld [vmem:[#allocation2 + $0x129] sm:$0xff]  ;;  %v686_v57 = vpack.c.bf16 %v654_v49, %v654_v49  ;;  %v335_v62 = vld [vmem:[#allocation2 + $0x60] sm:$0xff]  ;;  %v337_v9 = vld [vmem:[#allocation2 + $0x78] sm:$0xff] }
  0x53   : > { %540 = vrot.lane.b32.xlu1 %v466_v42, %s2964_s17  ;;  %322 = vst.msk [vmem:[#allocation2 + $0x159] sm:$0xff] %vm248_vm0, %v243_v12  ;;  %v451_v16 = vld [vmem:[#allocation2 + $0x141] sm:$0xff]  ;;  %v481_v18 = vpack.c.bf16 %v449_v15, %v449_v15  ;;  %v360_v42 = vpack.c.bf16 %v328_v40, %v328_v40  ;;  %v3183_v1 = vpack.c.bf16 %v335_v62, %v335_v62  ;;  %v666_v38 = vld [vmem:[#allocation2 + $0xca] sm:$0xff] }
  0x54   : > { %v444_v10 = vld [vmem:[#allocation2 + $0xf1] sm:$0xff]  ;;  %v483_v19 = vpack.c.bf16 %v451_v16, %v451_v16  ;;  %392 = vst.msk [vmem:[#allocation3] sm:$0xf] %vm391_vm3, %v359_v29  ;;  %v333_v52 = vld [vmem:[#allocation2 + $0x48] sm:$0xff]  ;;  %v659_v3 = vld [vmem:[#allocation2 + $0x7a] sm:$0xff]  ;;  %v3195_v12 = vpack.c.bf16 %v337_v9, %v337_v9  ;;  %v698_v49 = vpack.c.bf16 %v666_v38, %v666_v38 }
  0x55   : > { %544 = vrot.lane.b32.xlu0 %v468_v45, %s2964_s17  ;;  %536 = vrot.lane.b32.xlu2 %v464_v46, %s2964_s17  ;;  %v476_v14 = vpack.c.bf16 %v444_v10, %v444_v10  ;;  %v452_v21 = vld [vmem:[#allocation2 + $0x151] sm:$0xff]  ;;  %394 = vst.msk [vmem:[#allocation3 + $0x8] sm:$0xf] %vm391_vm3, %v3152_v39  ;;  %v683_v45 = vpack.c.bf16 %v651_v37, %v651_v37  ;;  %v652_v56 = vld [vmem:[#allocation2 + $0x22] sm:$0xff]  ;;  %v662_v16 = vld [vmem:[#allocation2 + $0x9a] sm:$0xff] }
  0x56   : > { %v454_v22 = vld [vmem:[#allocation2 + $0x169] sm:$0xff]  ;;  %v484_v24 = vpack.c.bf16 %v452_v21, %v452_v21  ;;  %396 = vst.msk [vmem:[#allocation3 + $0x10] sm:$0xf] %vm391_vm3, %v3156_v41  ;;  %v685_v46 = vpack.c.bf16 %v653_v43, %v653_v43  ;;  %v684_v59 = vpack.c.bf16 %v652_v56, %v652_v56  ;;  %v661_v29 = vld [vmem:[#allocation2 + $0x92] sm:$0xff]  ;;  %v343_v37 = vld [vmem:[#allocation2 + $0xc0] sm:$0xff] }
  0x57   : > { %v447_v17 = vld [vmem:[#allocation2 + $0x111] sm:$0xff]  ;;  %v486_v25 = vpack.c.bf16 %v454_v22, %v454_v22  ;;  %393 = vst.msk [vmem:[#allocation3 + $0x4] sm:$0xf] %vm391_vm3, %v360_v42  ;;  %v657_v61 = vld [vmem:[#allocation2 + $0x62] sm:$0xff]  ;;  %v3227_v36 = vpack.c.bf16 %v661_v29, %v661_v29 }
  0x58   : > { %v479_v20 = vpack.c.bf16 %v447_v17, %v447_v17  ;;  %v455_v27 = vld [vmem:[#allocation2 + $0x171] sm:$0xff]  ;;  %397 = vst.msk [vmem:[#allocation3 + $0x14] sm:$0xf] %vm391_vm3, %v3168_v53  ;;  %v689_v5 = vpack.c.bf16 %v657_v61, %v657_v61  ;;  %v660_v10 = vld [vmem:[#allocation2 + $0x82] sm:$0xff] }
  0x59   : > { %v450_v23 = vld [vmem:[#allocation2 + $0x139] sm:$0xff]  ;;  %v487_v32 = vpack.c.bf16 %v455_v27, %v455_v27  ;;  %400 = vst.msk [vmem:[#allocation3 + $0x20] sm:$0xf] %vm391_vm3, %v3183_v1  ;;  %v658_v17 = vld [vmem:[#allocation2 + $0x6a] sm:$0xff]  ;;  %v665_v28 = vld [vmem:[#allocation2 + $0xc2] sm:$0xff] }
  0x5a   : > { %v482_v26 = vpack.c.bf16 %v450_v23, %v450_v23  ;;  %v453_v31 = vld [vmem:[#allocation2 + $0x159] sm:$0xff]  ;;  %402 = vst.msk [vmem:[#allocation3 + $0x28] sm:$0xf] %vm391_vm3, %v3195_v12  ;;  %v3208_v21 = vpack.c.bf16 %v658_v17, %v658_v17  ;;  %v663_v23 = vld [vmem:[#allocation2 + $0xaa] sm:$0xff] }
  0x5b   : > { %546 = vrot.lane.b32.xlu1 %v469_v51, %s2964_s17  ;;  %v485_v34 = vpack.c.bf16 %v453_v31, %v453_v31  ;;  %v3164_v51 = vpack.c.bf16 %v330_v48, %v330_v48  ;;  %v340_v22 = vld [vmem:[#allocation2 + $0x98] sm:$0xff]  ;;  %v344_v40 = vld [vmem:[#allocation2 + $0xc8] sm:$0xff]  ;;  %v351_v17 = vld [vmem:[#allocation2 + $0x120] sm:$0xff] }
  0x5c   : > { %v3219_v30 = vpack.c.bf16 %v340_v22, %v340_v22  ;;  %v345_v42 = vld [vmem:[#allocation2 + $0xd8] sm:$0xff]  ;;  %v3237_v44 = vpack.c.bf16 %v344_v40, %v344_v40 }
  0x5d   : > { %550 = vrot.lane.b32.xlu0 %v471_v54, %s2964_s17  ;;  %542 = vrot.lane.b32.xlu2 %v467_v55, %s2964_s17  ;;  %v3170_v54 = vpack.c.bf16 %v333_v52, %v333_v52  ;;  %v656_v55 = vld [vmem:[#allocation2 + $0x52] sm:$0xff]  ;;  %395 = vst.msk [vmem:[#allocation3 + $0xc] sm:$0xf] %vm391_vm3, %v3164_v51  ;;  %v3244_v52 = vpack.c.bf16 %v345_v42, %v345_v42  ;;  %v670_v22 = vld [vmem:[#allocation2 + $0xfa] sm:$0xff] }
  0x5e   : > { %v688_v58 = vpack.c.bf16 %v656_v55, %v656_v55  ;;  %405 = vst.msk [vmem:[#allocation3 + $0x34] sm:$0xf] %vm391_vm3, %v3219_v30  ;;  %v677_v42 = vld [vmem:[#allocation2 + $0x152] sm:$0xff] }
  0x5f   : > { %398 = vst.msk [vmem:[#allocation3 + $0x18] sm:$0xf] %vm391_vm3, %v3170_v54 }
  0x60   : > { %409 = vst.msk [vmem:[#allocation3 + $0x44] sm:$0xf] %vm391_vm3, %v3237_v44 }
  0x61   : > { %410 = vst.msk [vmem:[#allocation3 + $0x48] sm:$0xf] %vm391_vm3, %v3244_v52 }
  0x63   : > { %552 = vrot.lane.b32.xlu1 %v472_v60, %s2964_s17  ;;  %v334_v60 = vld [vmem:[#allocation2 + $0x50] sm:$0xff] }
  0x65   : > { %556 = vrot.lane.b32.xlu0 %v474_v63, %s2964_s17  ;;  %548 = vrot.lane.b32.xlu2 %v470_v0, %s2964_s17  ;;  %v3179_v63 = vpack.c.bf16 %v334_v60, %v334_v60  ;;  %v336_v0 = vld [vmem:[#allocation2 + $0x68] sm:$0xff]  ;;  %v348_v60 = vld [vmem:[#allocation2 + $0xf8] sm:$0xff] }
  0x66   : > { %v3185_v2 = vpack.c.bf16 %v336_v0, %v336_v0  ;;  %v671_v0 = vld [vmem:[#allocation2 + $0x10a] sm:$0xff] }
  0x67   : > { %399 = vst.msk [vmem:[#allocation3 + $0x1c] sm:$0xf] %vm391_vm3, %v3179_v63  ;;  %v703_v9 = vpack.c.bf16 %v671_v0, %v671_v0 }
  0x68   : > { %401 = vst.msk [vmem:[#allocation3 + $0x24] sm:$0xf] %vm391_vm3, %v3185_v2 }
  0x6b   : > { %558 = vrot.lane.b32.xlu1 %v475_v4, %s2964_s17  ;;  %v655_v4 = vld [vmem:[#allocation2 + $0x4a] sm:$0xff] }
  0x6c   : > { %v687_v8 = vpack.c.bf16 %v655_v4, %v655_v4 }
  0x6d   : > { %562 = vrot.lane.b32.xlu0 %v477_v6, %s2964_s17  ;;  %554 = vrot.lane.b32.xlu2 %v473_v7, %s2964_s17  ;;  %v691_v7 = vpack.c.bf16 %v659_v3, %v659_v3  ;;  %v667_v3 = vld [vmem:[#allocation2 + $0xda] sm:$0xff] }
  0x73   : > { %564 = vrot.lane.b32.xlu1 %v478_v11, %s2964_s17  ;;  %v338_v11 = vld [vmem:[#allocation2 + $0x80] sm:$0xff] }
  0x75   : > { %568 = vrot.lane.b32.xlu0 %v480_v13, %s2964_s17  ;;  %560 = vrot.lane.b32.xlu2 %v476_v14, %s2964_s17  ;;  %v339_v13 = vld [vmem:[#allocation2 + $0x90] sm:$0xff]  ;;  %v3199_v14 = vpack.c.bf16 %v338_v11, %v338_v11  ;;  %v349_v11 = vld [vmem:[#allocation2 + $0x108] sm:$0xff] }
  0x76   : > { %v3201_v15 = vpack.c.bf16 %v339_v13, %v339_v13  ;;  %v672_v13 = vld [vmem:[#allocation2 + $0x112] sm:$0xff] }
  0x77   : > { %403 = vst.msk [vmem:[#allocation3 + $0x2c] sm:$0xf] %vm391_vm3, %v3199_v14 }
  0x78   : > { %404 = vst.msk [vmem:[#allocation3 + $0x30] sm:$0xf] %vm391_vm3, %v3201_v15 }
  0x7b   : > { %570 = vrot.lane.b32.xlu1 %v481_v18, %s2964_s17  ;;  %v692_v18 = vpack.c.bf16 %v660_v10, %v660_v10  ;;  %v3269_v10 = vpack.c.bf16 %v667_v3, %v667_v3 }
  0x7d   : > { %574 = vrot.lane.b32.xlu0 %v483_v19, %s2964_s17  ;;  %566 = vrot.lane.b32.xlu2 %v479_v20, %s2964_s17  ;;  %v694_v20 = vpack.c.bf16 %v662_v16, %v662_v16  ;;  %v350_v16 = vld [vmem:[#allocation2 + $0x110] sm:$0xff] }
  0x83   : > { %576 = vrot.lane.b32.xlu1 %v484_v24, %s2964_s17  ;;  %v341_v24 = vld [vmem:[#allocation2 + $0xa8] sm:$0xff] }
  0x84   : > { %v3216_v27 = vpack.c.bf16 %v341_v24, %v341_v24 }
  0x85   : > { %580 = vrot.lane.b32.xlu0 %v486_v25, %s2964_s17  ;;  %572 = vrot.lane.b32.xlu2 %v482_v26, %s2964_s17  ;;  %v342_v25 = vld [vmem:[#allocation2 + $0xb0] sm:$0xff] }
  0x86   : > { %406 = vst.msk [vmem:[#allocation3 + $0x38] sm:$0xf] %vm391_vm3, %v3216_v27 }
  0x89   : > { %v521_v35 = vpop.permute.xlu0 %520 }
  0x8a   : > { %617 = vst.msk [vmem:[#allocation3] sm:$0xf] %vm616_vm4, %v521_v35  ;;  %v697_v35 = vpack.c.bf16 %v665_v28, %v665_v28  ;;  %v3286_v28 = vpack.c.bf16 %v351_v17, %v351_v17 }
  0x8b   : > { %582 = vrot.lane.b32.xlu1 %v487_v32, %s2964_s17  ;;  %v695_v32 = vpack.c.bf16 %v663_v23, %v663_v23  ;;  %v3282_v23 = vpack.c.bf16 %v349_v11, %v349_v11 }
  0x8c   : > { %416 = vst.msk [vmem:[#allocation3 + $0x60] sm:$0xf] %vm391_vm3, %v3286_v28 }
  0x8d   : > { %747 = vrot.lane.b32.xlu0 %v682_v33, %s2965_s22  ;;  %578 = vrot.lane.b32.xlu2 %v485_v34, %s2964_s17  ;;  %v3223_v34 = vpack.c.bf16 %v342_v25, %v342_v25  ;;  %v704_v25 = vpack.c.bf16 %v672_v13, %v672_v13  ;;  %414 = vst.msk [vmem:[#allocation3 + $0x58] sm:$0xf] %vm391_vm3, %v3282_v23 }
  0x8f   : > { %407 = vst.msk [vmem:[#allocation3 + $0x3c] sm:$0xf] %vm391_vm3, %v3223_v34 }
  0x93   : > { %749 = vrot.lane.b32.xlu1 %v683_v45, %s2965_s22  ;;  %v668_v45 = vld [vmem:[#allocation2 + $0xe2] sm:$0xff] }
  0x94   : > { %v700_v55 = vpack.c.bf16 %v668_v45, %v668_v45 }
  0x95   : > { %753 = vrot.lane.b32.xlu0 %v685_v46, %s2965_s22  ;;  %745 = vrot.lane.b32.xlu2 %v681_v47, %s2965_s22  ;;  %v664_v46 = vld [vmem:[#allocation2 + $0xb2] sm:$0xff]  ;;  %v3240_v47 = vpack.c.bf16 %v343_v37, %v343_v37  ;;  %v354_v37 = vld [vmem:[#allocation2 + $0x140] sm:$0xff] }
  0x96   : > { %v3248_v56 = vpack.c.bf16 %v664_v46, %v664_v46 }
  0x97   : > { %408 = vst.msk [vmem:[#allocation3 + $0x40] sm:$0xf] %vm391_vm3, %v3240_v47 }
  0x9b   : > { %755 = vrot.lane.b32.xlu1 %v686_v57, %s2965_s22  ;;  %v346_v57 = vld [vmem:[#allocation2 + $0xe0] sm:$0xff] }
  0x9c   : > { %v3261_v4 = vpack.c.bf16 %v346_v57, %v346_v57 }
  0x9d   : > { %759 = vrot.lane.b32.xlu0 %v688_v58, %s2965_s22  ;;  %751 = vrot.lane.b32.xlu2 %v684_v59, %s2965_s22  ;;  %v669_v58 = vld [vmem:[#allocation2 + $0xf2] sm:$0xff] }
  0x9e   : > { %v347_v59 = vld [vmem:[#allocation2 + $0xf0] sm:$0xff]  ;;  %411 = vst.msk [vmem:[#allocation3 + $0x4c] sm:$0xf] %vm391_vm3, %v3261_v4 }
  0x9f   : > { %v529_v6 = vpop.permute.xlu2 %528  ;;  %v3258_v62 = vpack.c.bf16 %v347_v59, %v347_v59  ;;  %v678_v59 = vld [vmem:[#allocation2 + $0x15a] sm:$0xff] }
  0xa0   : > { %621 = vst.msk [vmem:[#allocation3 + $0x10] sm:$0xf] %vm616_vm4, %v529_v6  ;;  %v701_v6 = vpack.c.bf16 %v669_v58, %v669_v58  ;;  %v355_v58 = vld [vmem:[#allocation2 + $0x150] sm:$0xff]  ;;  %v710_v11 = vpack.c.bf16 %v678_v59, %v678_v59  ;;  %v1100_v59 = vld [vmem:[#allocation2 + $0x21] sm:$0xff] }
  0xa1   : > { %412 = vst.msk [vmem:[#allocation3 + $0x50] sm:$0xf] %vm391_vm3, %v3258_v62 }
  0xa3   : > { %761 = vrot.lane.b32.xlu1 %v689_v5, %s2965_s22 }
  0xa5   : > { %765 = vrot.lane.b32.xlu0 %v691_v7, %s2965_s22  ;;  %757 = vrot.lane.b32.xlu2 %v687_v8, %s2965_s22  ;;  %v3265_v8 = vpack.c.bf16 %v348_v60, %v348_v60  ;;  %v356_v60 = vld [vmem:[#allocation2 + $0x158] sm:$0xff] }
  0xa6   : > { %v3321_v3 = vpack.c.bf16 %v356_v60, %v356_v60 }
  0xa7   : > { %v531_v19 = vpop.permute.xlu2 %530  ;;  %413 = vst.msk [vmem:[#allocation3 + $0x54] sm:$0xf] %vm391_vm3, %v3265_v8 }
  0xa8   : > { %622 = vst.msk [vmem:[#allocation3 + $0x14] sm:$0xf] %vm616_vm4, %v531_v19  ;;  %v3279_v19 = vpack.c.bf16 %v350_v16, %v350_v16 }
  0xa9   : > { %421 = vst.msk [vmem:[#allocation3 + $0x74] sm:$0xf] %vm391_vm3, %v3321_v3 }
  0xaa   : > { %415 = vst.msk [vmem:[#allocation3 + $0x5c] sm:$0xf] %vm391_vm3, %v3279_v19 }
  0xab   : > { %767 = vrot.lane.b32.xlu1 %v692_v18, %s2965_s22 }
  0xad   : > { %771 = vrot.lane.b32.xlu0 %v694_v20, %s2965_s22  ;;  %v525_v26 = vpop.permute.xlu1 %524  ;;  %763 = vrot.lane.b32.xlu2 %v3208_v21, %s2965_s22  ;;  %v674_v20 = vld [vmem:[#allocation2 + $0x12a] sm:$0xff] }
  0xae   : > { %619 = vst.msk [vmem:[#allocation3 + $0x8] sm:$0xf] %vm616_vm4, %v525_v26  ;;  %v706_v29 = vpack.c.bf16 %v674_v20, %v674_v20  ;;  %v358_v20 = vld [vmem:[#allocation2 + $0x170] sm:$0xff] }
  0xaf   : > { %v523_v31 = vpop.permute.xlu0 %522  ;;  %v537_v33 = vpop.permute.xlu2 %536 }
  0xb0   : > { %618 = vst.msk [vmem:[#allocation3 + $0x4] sm:$0xf] %vm616_vm4, %v523_v31  ;;  %v3290_v31 = vpack.c.bf16 %v670_v22, %v670_v22  ;;  %v3339_v22 = vpack.c.bf16 %v358_v20, %v358_v20 }
  0xb1   : > { %625 = vst.msk [vmem:[#allocation3 + $0x20] sm:$0xf] %vm616_vm4, %v537_v33  ;;  %v675_v33 = vld [vmem:[#allocation2 + $0x13a] sm:$0xff] }
  0xb2   : > { %423 = vst.msk [vmem:[#allocation3 + $0x7c] sm:$0xf] %vm391_vm3, %v3339_v22 }
  0xb3   : > { %773 = vrot.lane.b32.xlu1 %v695_v32, %s2965_s22  ;;  %v352_v32 = vld [vmem:[#allocation2 + $0x128] sm:$0xff] }
  0xb4   : > { %v3303_v45 = vpack.c.bf16 %v352_v32, %v352_v32 }
  0xb5   : > { %777 = vrot.lane.b32.xlu0 %v697_v35, %s2965_s22  ;;  %v527_v43 = vpop.permute.xlu1 %526  ;;  %769 = vrot.lane.b32.xlu2 %v3227_v36, %s2965_s22  ;;  %v353_v35 = vld [vmem:[#allocation2 + $0x138] sm:$0xff] }
  0xb6   : > { %620 = vst.msk [vmem:[#allocation3 + $0xc] sm:$0xf] %vm616_vm4, %v527_v43  ;;  %v3300_v40 = vpack.c.bf16 %v353_v35, %v353_v35  ;;  %v673_v43 = vld [vmem:[#allocation2 + $0x122] sm:$0xff] }
  0xb7   : > { %v533_v48 = vpop.permute.xlu0 %532  ;;  %v543_v50 = vpop.permute.xlu2 %542  ;;  %v3311_v57 = vpack.c.bf16 %v673_v43, %v673_v43  ;;  %417 = vst.msk [vmem:[#allocation3 + $0x64] sm:$0xf] %vm391_vm3, %v3303_v45  ;;  %v247_v43 = vld [vmem:[%s3050_s21 + $0xf8] sm:$0xff] }
  0xb8   : > { %623 = vst.msk [vmem:[#allocation3 + $0x18] sm:$0xf] %vm616_vm4, %v533_v48  ;;  %v707_v48 = vpack.c.bf16 %v675_v33, %v675_v33 }
  0xb9   : > { %628 = vst.msk [vmem:[#allocation3 + $0x2c] sm:$0xf] %vm616_vm4, %v543_v50  ;;  %v3307_v50 = vpack.c.bf16 %v354_v37, %v354_v37 }
  0xba   : > { %418 = vst.msk [vmem:[#allocation3 + $0x68] sm:$0xf] %vm391_vm3, %v3300_v40 }
  0xbb   : > { %779 = vrot.lane.b32.xlu1 %v698_v49, %s2965_s22  ;;  %419 = vst.msk [vmem:[#allocation3 + $0x6c] sm:$0xf] %vm391_vm3, %v3307_v50 }
  0xbc   : > { %326 = vst.msk [vmem:[#allocation2 + $0x189] sm:$0xff] %vm248_vm0, %v247_v43  ;;  %v1115_v43 = vld [vmem:[#allocation2 + $0xd9] sm:$0xff] }
  0xbd   : > { %783 = vrot.lane.b32.xlu0 %v700_v55, %s2965_s22  ;;  %v535_v61 = vpop.permute.xlu1 %534  ;;  %775 = vrot.lane.b32.xlu2 %v3248_v56, %s2965_s22  ;;  %v709_v55 = vpack.c.bf16 %v677_v42, %v677_v42  ;;  %v246_v42 = vld [vmem:[%s3050_s21 + $0xf0] sm:$0xff] }
  0xbe   : > { %624 = vst.msk [vmem:[#allocation3 + $0x1c] sm:$0xf] %vm616_vm4, %v535_v61  ;;  %v357_v61 = vld [vmem:[#allocation2 + $0x168] sm:$0xff] }
  0xbf   : > { %v539_v5 = vpop.permute.xlu0 %538  ;;  %v549_v7 = vpop.permute.xlu2 %548  ;;  %v3328_v16 = vpack.c.bf16 %v357_v61, %v357_v61  ;;  %325 = vst.msk [vmem:[#allocation2 + $0x181] sm:$0xff] %vm248_vm0, %v246_v42 }
  0xc0   : > { %626 = vst.msk [vmem:[#allocation3 + $0x24] sm:$0xf] %vm616_vm4, %v539_v5  ;;  %v680_v5 = vld [vmem:[#allocation2 + $0x172] sm:$0xff] }
  0xc1   : > { %631 = vst.msk [vmem:[#allocation3 + $0x38] sm:$0xf] %vm616_vm4, %v549_v7  ;;  %v3324_v7 = vpack.c.bf16 %v355_v58, %v355_v58  ;;  %v712_v17 = vpack.c.bf16 %v680_v5, %v680_v5 }
  0xc2   : > { %422 = vst.msk [vmem:[#allocation3 + $0x78] sm:$0xf] %vm391_vm3, %v3328_v16 }
  0xc3   : > { %785 = vrot.lane.b32.xlu1 %v701_v6, %s2965_s22  ;;  %v676_v6 = vld [vmem:[#allocation2 + $0x142] sm:$0xff]  ;;  %420 = vst.msk [vmem:[#allocation3 + $0x70] sm:$0xf] %vm391_vm3, %v3324_v7 }
  0xc5   : > { %789 = vrot.lane.b32.xlu0 %v703_v9, %s2965_s22  ;;  %v541_v18 = vpop.permute.xlu1 %540  ;;  %781 = vrot.lane.b32.xlu2 %v3269_v10, %s2965_s22 }
  0xc6   : > { %627 = vst.msk [vmem:[#allocation3 + $0x28] sm:$0xf] %vm616_vm4, %v541_v18  ;;  %v3332_v18 = vpack.c.bf16 %v676_v6, %v676_v6  ;;  %v905_v61 = vld [vmem:[#allocation2 + $0x188] sm:$0xff] }
  0xc7   : > { %v545_v24 = vpop.permute.xlu0 %544  ;;  %v555_v26 = vpop.permute.xlu2 %554 }
  0xc8   : > { %629 = vst.msk [vmem:[#allocation3 + $0x30] sm:$0xf] %vm616_vm4, %v545_v24 }
  0xc9   : > { %634 = vst.msk [vmem:[#allocation3 + $0x44] sm:$0xf] %vm616_vm4, %v555_v26 }
  0xcb   : > { %791 = vrot.lane.b32.xlu1 %v704_v25, %s2965_s22  ;;  %v679_v25 = vld [vmem:[#allocation2 + $0x16a] sm:$0xff] }
  0xcc   : > { %v3349_v32 = vpack.c.bf16 %v679_v25, %v679_v25 }
  0xcd   : > { %795 = vrot.lane.b32.xlu0 %v706_v29, %s2965_s22  ;;  %v547_v38 = vpop.permute.xlu1 %546  ;;  %787 = vrot.lane.b32.xlu2 %v3290_v31, %s2965_s22 }
  0xce   : > { %630 = vst.msk [vmem:[#allocation3 + $0x34] sm:$0xf] %vm616_vm4, %v547_v38 }
  0xcf   : > { %v551_v46 = vpop.permute.xlu0 %550  ;;  %v561_v49 = vpop.permute.xlu2 %560 }
  0xd0   : > { %632 = vst.msk [vmem:[#allocation3 + $0x3c] sm:$0xf] %vm616_vm4, %v551_v46  ;;  %v904_v46 = vld [vmem:[#allocation2 + $0x180] sm:$0xff] }
  0xd1   : > { %637 = vst.msk [vmem:[#allocation3 + $0x50] sm:$0xf] %vm616_vm4, %v561_v49  ;;  %v936_v49 = vpack.c.bf16 %v904_v46, %v904_v46 }
  0xd3   : > { %797 = vrot.lane.b32.xlu1 %v707_v48, %s2965_s22 }
  0xd5   : > { %801 = vrot.lane.b32.xlu0 %v709_v55, %s2965_s22  ;;  %v553_v0 = vpop.permute.xlu1 %552  ;;  %793 = vrot.lane.b32.xlu2 %v3311_v57, %s2965_s22 }
  0xd6   : > { %633 = vst.msk [vmem:[#allocation3 + $0x40] sm:$0xf] %vm616_vm4, %v553_v0 }
  0xd7   : > { %v557_v9 = vpop.permute.xlu0 %556  ;;  %v567_v13 = vpop.permute.xlu2 %566 }
  0xd8   : > { %635 = vst.msk [vmem:[#allocation3 + $0x48] sm:$0xf] %vm616_vm4, %v557_v9  ;;  %v1103_v9 = vld [vmem:[#allocation2 + $0x49] sm:$0xff] }
  0xd9   : > { %640 = vst.msk [vmem:[#allocation3 + $0x5c] sm:$0xf] %vm616_vm4, %v567_v13  ;;  %v1105_v13 = vld [vmem:[#allocation2 + $0x61] sm:$0xff]  ;;  %v3459_v20 = vpack.c.bf16 %v1103_v9, %v1103_v9 }
  0xdb   : > { %803 = vrot.lane.b32.xlu1 %v710_v11, %s2965_s22 }
  0xdd   : > { %807 = vrot.lane.b32.xlu0 %v712_v17, %s2965_s22  ;;  %v559_v24 = vpop.permute.xlu1 %558  ;;  %799 = vrot.lane.b32.xlu2 %v3332_v18, %s2965_s22 }
  0xde   : > { %636 = vst.msk [vmem:[#allocation3 + $0x4c] sm:$0xf] %vm616_vm4, %v559_v24  ;;  %v3462_v24 = vpack.c.bf16 %v1105_v13, %v1105_v13  ;;  %v1119_v13 = vld [vmem:[#allocation2 + $0x109] sm:$0xff] }
  0xdf   : > { %v563_v26 = vpop.permute.xlu0 %562  ;;  %v573_v29 = vpop.permute.xlu2 %572 }
  0xe0   : > { %638 = vst.msk [vmem:[#allocation3 + $0x54] sm:$0xf] %vm616_vm4, %v563_v26  ;;  %v1106_v26 = vld [vmem:[#allocation2 + $0x69] sm:$0xff] }
  0xe1   : > { %643 = vst.msk [vmem:[#allocation3 + $0x68] sm:$0xf] %vm616_vm4, %v573_v29 }
  0xe3   : > { %970 = vrot.lane.b32.xlu1 %v3152_v39, %s2966_s23 }
  0xe5   : > { %974 = vrot.lane.b32.xlu0 %v3156_v41, %s2966_s23  ;;  %v565_v33 = vpop.permute.xlu1 %564  ;;  %805 = vrot.lane.b32.xlu2 %v3349_v32, %s2965_s22 }
  0xe6   : > { %639 = vst.msk [vmem:[#allocation3 + $0x58] sm:$0xf] %vm616_vm4, %v565_v33  ;;  %v1108_v33 = vld [vmem:[#allocation2 + $0x81] sm:$0xff] }
  0xe7   : > { %v569_v35 = vpop.permute.xlu0 %568  ;;  %v579_v37 = vpop.permute.xlu2 %578 }
  0xe8   : > { %641 = vst.msk [vmem:[#allocation3 + $0x60] sm:$0xf] %vm616_vm4, %v569_v35  ;;  %v1104_v35 = vld [vmem:[#allocation2 + $0x51] sm:$0xff] }
  0xe9   : > { %646 = vst.msk [vmem:[#allocation3 + $0x74] sm:$0xf] %vm616_vm4, %v579_v37 }
  0xeb   : > { %976 = vrot.lane.b32.xlu1 %v3168_v53, %s2966_s23 }
  0xed   : > { %980 = vrot.lane.b32.xlu0 %v3179_v63, %s2966_s23  ;;  %v571_v39 = vpop.permute.xlu1 %570  ;;  %972 = vrot.lane.b32.xlu2 %v3164_v51, %s2966_s23 }
  0xee   : > { %642 = vst.msk [vmem:[#allocation3 + $0x64] sm:$0xf] %vm616_vm4, %v571_v39  ;;  %v3474_v39 = vpack.c.bf16 %v1106_v26, %v1106_v26 }
  0xef   : > { %v575_v41 = vpop.permute.xlu0 %574  ;;  %v746_v38 = vpop.permute.xlu2 %745 }
  0xf0   : > { %644 = vst.msk [vmem:[#allocation3 + $0x6c] sm:$0xf] %vm616_vm4, %v575_v41 }
  0xf1   : > { %842 = vst.msk [vmem:[#allocation3] sm:$0xf] %vm841_vm5, %v746_v38  ;;  %v1140_v38 = vpack.c.bf16 %v1108_v33, %v1108_v33  ;;  %v1124_v33 = vld [vmem:[#allocation2 + $0x141] sm:$0xff] }
  0xf3   : > { %982 = vrot.lane.b32.xlu1 %v3183_v1, %s2966_s23 }
  0xf5   : > { %986 = vrot.lane.b32.xlu0 %v3195_v12, %s2966_s23  ;;  %v577_v53 = vpop.permute.xlu1 %576  ;;  %978 = vrot.lane.b32.xlu2 %v3170_v54, %s2966_s23 }
  0xf6   : > { %645 = vst.msk [vmem:[#allocation3 + $0x70] sm:$0xf] %vm616_vm4, %v577_v53  ;;  %v3478_v53 = vpack.c.bf16 %v1104_v35, %v1104_v35 }
  0xf7   : > { %v581_v51 = vpop.permute.xlu0 %580  ;;  %v752_v63 = vpop.permute.xlu2 %751 }
  0xf8   : > { %647 = vst.msk [vmem:[#allocation3 + $0x78] sm:$0xf] %vm616_vm4, %v581_v51  ;;  %v1109_v51 = vld [vmem:[#allocation2 + $0x91] sm:$0xff] }
  0xf9   : > { %845 = vst.msk [vmem:[#allocation3 + $0xc] sm:$0xf] %vm841_vm5, %v752_v63 }
  0xfb   : > { %988 = vrot.lane.b32.xlu1 %v3199_v14, %s2966_s23 }
  0xfd   : > { %992 = vrot.lane.b32.xlu0 %v3219_v30, %s2966_s23  ;;  %v583_v1 = vpop.permute.xlu1 %582  ;;  %984 = vrot.lane.b32.xlu2 %v3185_v2, %s2966_s23 }
  0xfe   : > { %648 = vst.msk [vmem:[#allocation3 + $0x7c] sm:$0xf] %vm616_vm4, %v583_v1  ;;  %v1111_v1 = vld [vmem:[#allocation2 + $0xa9] sm:$0xff] }
  0xff   : > { %v748_v54 = vpop.permute.xlu0 %747  ;;  %v758_v12 = vpop.permute.xlu2 %757 }
 0x100   : > { %843 = vst.msk [vmem:[#allocation3 + $0x4] sm:$0xf] %vm841_vm5, %v748_v54  ;;  %v1107_v54 = vld [vmem:[#allocation2 + $0x79] sm:$0xff] }
 0x101   : > { %848 = vst.msk [vmem:[#allocation3 + $0x18] sm:$0xf] %vm841_vm5, %v758_v12  ;;  %v1139_v42 = vpack.c.bf16 %v1107_v54, %v1107_v54 }
 0x103   : > { %994 = vrot.lane.b32.xlu1 %v3216_v27, %s2966_s23 }
 0x105   : > { %998 = vrot.lane.b32.xlu0 %v3240_v47, %s2966_s23  ;;  %v750_v14 = vpop.permute.xlu1 %749  ;;  %990 = vrot.lane.b32.xlu2 %v3201_v15, %s2966_s23 }
 0x106   : > { %844 = vst.msk [vmem:[#allocation3 + $0x8] sm:$0xf] %vm841_vm5, %v750_v14  ;;  %v3486_v14 = vpack.c.bf16 %v1109_v51, %v1109_v51  ;;  %v1156_v51 = vpack.c.bf16 %v1124_v33, %v1124_v33 }
 0x107   : > { %v754_v2 = vpop.permute.xlu0 %753  ;;  %v764_v30 = vpop.permute.xlu2 %763 }
 0x108   : > { %846 = vst.msk [vmem:[#allocation3 + $0x10] sm:$0xf] %vm841_vm5, %v754_v2 }
 0x109   : > { %851 = vst.msk [vmem:[#allocation3 + $0x24] sm:$0xf] %vm841_vm5, %v764_v30  ;;  %v3489_v30 = vpack.c.bf16 %v1111_v1, %v1111_v1 }
 0x10b   : > { %1000 = vrot.lane.b32.xlu1 %v3237_v44, %s2966_s23 }
 0x10d   : > { %1004 = vrot.lane.b32.xlu0 %v3261_v4, %s2966_s23  ;;  %v756_v27 = vpop.permute.xlu1 %755  ;;  %996 = vrot.lane.b32.xlu2 %v3223_v34, %s2966_s23 }
 0x10e   : > { %847 = vst.msk [vmem:[#allocation3 + $0x14] sm:$0xf] %vm841_vm5, %v756_v27  ;;  %v1112_v27 = vld [vmem:[#allocation2 + $0xb1] sm:$0xff] }
 0x10f   : > { %v760_v15 = vpop.permute.xlu0 %759  ;;  %v770_v47 = vpop.permute.xlu2 %769 }
 0x110   : > { %849 = vst.msk [vmem:[#allocation3 + $0x1c] sm:$0xf] %vm841_vm5, %v760_v15 }
 0x111   : > { %854 = vst.msk [vmem:[#allocation3 + $0x30] sm:$0xf] %vm841_vm5, %v770_v47  ;;  %v1114_v47 = vld [vmem:[#allocation2 + $0xc9] sm:$0xff] }
 0x113   : > { %1006 = vrot.lane.b32.xlu1 %v3258_v62, %s2966_s23 }
 0x115   : > { %1010 = vrot.lane.b32.xlu0 %v3282_v23, %s2966_s23  ;;  %v762_v44 = vpop.permute.xlu1 %761  ;;  %1002 = vrot.lane.b32.xlu2 %v3244_v52, %s2966_s23 }
 0x116   : > { %850 = vst.msk [vmem:[#allocation3 + $0x20] sm:$0xf] %vm841_vm5, %v762_v44  ;;  %v1110_v44 = vld [vmem:[#allocation2 + $0x99] sm:$0xff] }
 0x117   : > { %v766_v34 = vpop.permute.xlu0 %765  ;;  %v776_v4 = vpop.permute.xlu2 %775 }
 0x118   : > { %852 = vst.msk [vmem:[#allocation3 + $0x28] sm:$0xf] %vm841_vm5, %v766_v34 }
 0x119   : > { %857 = vst.msk [vmem:[#allocation3 + $0x3c] sm:$0xf] %vm841_vm5, %v776_v4  ;;  %v3498_v4 = vpack.c.bf16 %v1112_v27, %v1112_v27  ;;  %v1125_v27 = vld [vmem:[#allocation2 + $0x151] sm:$0xff] }
 0x11b   : > { %1012 = vrot.lane.b32.xlu1 %v3279_v19, %s2966_s23 }
 0x11d   : > { %1016 = vrot.lane.b32.xlu0 %v3303_v45, %s2966_s23  ;;  %v768_v62 = vpop.permute.xlu1 %767  ;;  %1008 = vrot.lane.b32.xlu2 %v3265_v8, %s2966_s23 }
 0x11e   : > { %853 = vst.msk [vmem:[#allocation3 + $0x2c] sm:$0xf] %vm841_vm5, %v768_v62 }
 0x11f   : > { %v772_v52 = vpop.permute.xlu0 %771  ;;  %v782_v23 = vpop.permute.xlu2 %781 }
 0x120   : > { %855 = vst.msk [vmem:[#allocation3 + $0x34] sm:$0xf] %vm841_vm5, %v772_v52  ;;  %v1146_v52 = vpack.c.bf16 %v1114_v47, %v1114_v47 }
 0x121   : > { %860 = vst.msk [vmem:[#allocation3 + $0x48] sm:$0xf] %vm841_vm5, %v782_v23  ;;  %v3502_v23 = vpack.c.bf16 %v1110_v44, %v1110_v44 }
 0x123   : > { %1018 = vrot.lane.b32.xlu1 %v3300_v40, %s2966_s23 }
 0x125   : > { %1022 = vrot.lane.b32.xlu0 %v3324_v7, %s2966_s23  ;;  %v774_v19 = vpop.permute.xlu1 %773  ;;  %1014 = vrot.lane.b32.xlu2 %v3286_v28, %s2966_s23  ;;  %v1099_v28 = vld [vmem:[#allocation2 + $0x19] sm:$0xff]  ;;  %v937_v7 = vpack.c.bf16 %v905_v61, %v905_v61 }
 0x126   : > { %856 = vst.msk [vmem:[#allocation3 + $0x38] sm:$0xf] %vm841_vm5, %v774_v19  ;;  %v1131_v58 = vpack.c.bf16 %v1099_v28, %v1099_v28 }
 0x127   : > { %v778_v8 = vpop.permute.xlu0 %777  ;;  %v788_v45 = vpop.permute.xlu2 %787 }
 0x128   : > { %858 = vst.msk [vmem:[#allocation3 + $0x40] sm:$0xf] %vm841_vm5, %v778_v8  ;;  %v1117_v8 = vld [vmem:[#allocation2 + $0xf1] sm:$0xff] }
 0x129   : > { %863 = vst.msk [vmem:[#allocation3 + $0x54] sm:$0xf] %vm841_vm5, %v788_v45  ;;  %v1113_v45 = vld [vmem:[#allocation2 + $0xc1] sm:$0xff] }
 0x12b   : > { %1024 = vrot.lane.b32.xlu1 %v3321_v3, %s2966_s23  ;;  %v1132_v3 = vpack.c.bf16 %v1100_v59, %v1100_v59  ;;  %v1120_v59 = vld [vmem:[#allocation2 + $0x111] sm:$0xff] }
 0x12d   : > { %1028 = vrot.lane.b32.xlu0 %v3339_v22, %s2966_s23  ;;  %v780_v40 = vpop.permute.xlu1 %779  ;;  %1020 = vrot.lane.b32.xlu2 %v3307_v50, %s2966_s23  ;;  %v1102_v50 = vld [vmem:[#allocation2 + $0x39] sm:$0xff] }
 0x12e   : > { %859 = vst.msk [vmem:[#allocation3 + $0x44] sm:$0xf] %vm841_vm5, %v780_v40  ;;  %v3451_v6 = vpack.c.bf16 %v1102_v50, %v1102_v50  ;;  %v1147_v40 = vpack.c.bf16 %v1115_v43, %v1115_v43 }
 0x12f   : > { %v784_v48 = vpop.permute.xlu0 %783  ;;  %v794_v55 = vpop.permute.xlu2 %793 }
 0x130   : > { %861 = vst.msk [vmem:[#allocation3 + $0x4c] sm:$0xf] %vm841_vm5, %v784_v48  ;;  %v3511_v48 = vpack.c.bf16 %v1117_v8, %v1117_v8  ;;  %v1128_v8 = vld [vmem:[#allocation2 + $0x171] sm:$0xff] }
 0x131   : > { %866 = vst.msk [vmem:[#allocation3 + $0x60] sm:$0xf] %vm841_vm5, %v794_v55  ;;  %v1118_v55 = vld [vmem:[#allocation2 + $0xf9] sm:$0xff] }
 0x132   : > { %v3522_v61 = vpack.c.bf16 %v1118_v55, %v1118_v55  ;;  %v1160_v55 = vpack.c.bf16 %v1128_v8, %v1128_v8 }
 0x133   : > { %1030 = vrot.lane.b32.xlu1 %v936_v49, %s2966_s23  ;;  %v3514_v49 = vpack.c.bf16 %v1113_v45, %v1113_v45 }
 0x135   : > { %1195 = vrot.lane.b32.xlu0 %v1131_v58, %s2967_s24  ;;  %v786_v60 = vpop.permute.xlu1 %785  ;;  %1026 = vrot.lane.b32.xlu2 %v3328_v16, %s2966_s23  ;;  %v1101_v16 = vld [vmem:[#allocation2 + $0x31] sm:$0xff] }
 0x136   : > { %862 = vst.msk [vmem:[#allocation3 + $0x50] sm:$0xf] %vm841_vm5, %v786_v60  ;;  %v3465_v25 = vpack.c.bf16 %v1101_v16, %v1101_v16  ;;  %v1116_v60 = vld [vmem:[#allocation2 + $0xe1] sm:$0xff] }
 0x137   : > { %v790_v0 = vpop.permute.xlu0 %789  ;;  %v800_v5 = vpop.permute.xlu2 %799 }
 0x138   : > { %864 = vst.msk [vmem:[#allocation3 + $0x58] sm:$0xf] %vm841_vm5, %v790_v0 }
 0x139   : > { %869 = vst.msk [vmem:[#allocation3 + $0x6c] sm:$0xf] %vm841_vm5, %v800_v5  ;;  %v1148_v5 = vpack.c.bf16 %v1116_v60, %v1116_v60  ;;  %v1328_v60 = vld [vmem:[#allocation2 + $0x4a] sm:$0xff] }
 0x13b   : > { %1197 = vrot.lane.b32.xlu1 %v1132_v3, %s2967_s24  ;;  %v3525_v3 = vpack.c.bf16 %v1120_v59, %v1120_v59 }
 0x13d   : > { %1201 = vrot.lane.b32.xlu0 %v3451_v6, %s2967_s24  ;;  %v792_v11 = vpop.permute.xlu1 %791  ;;  %1032 = vrot.lane.b32.xlu2 %v937_v7, %s2966_s23  ;;  %v1121_v7 = vld [vmem:[#allocation2 + $0x121] sm:$0xff] }
 0x13e   : > { %865 = vst.msk [vmem:[#allocation3 + $0x5c] sm:$0xf] %vm841_vm5, %v792_v11  ;;  %v1123_v11 = vld [vmem:[#allocation2 + $0x139] sm:$0xff] }
 0x13f   : > { %v796_v17 = vpop.permute.xlu0 %795  ;;  %v806_v22 = vpop.permute.xlu2 %805  ;;  %v1155_v26 = vpack.c.bf16 %v1123_v11, %v1123_v11 }
 0x140   : > { %867 = vst.msk [vmem:[#allocation3 + $0x64] sm:$0xf] %vm841_vm5, %v796_v17  ;;  %v1153_v17 = vpack.c.bf16 %v1121_v7, %v1121_v7 }
 0x141   : > { %872 = vst.msk [vmem:[#allocation3 + $0x78] sm:$0xf] %vm841_vm5, %v806_v22 }
 0x143   : > { %1203 = vrot.lane.b32.xlu1 %v3459_v20, %s2967_s24 }
 0x145   : > { %1207 = vrot.lane.b32.xlu0 %v3462_v24, %s2967_s24  ;;  %v798_v29 = vpop.permute.xlu1 %797  ;;  %1199 = vrot.lane.b32.xlu2 %v3465_v25, %s2967_s24 }
 0x146   : > { %868 = vst.msk [vmem:[#allocation3 + $0x68] sm:$0xf] %vm841_vm5, %v798_v29  ;;  %v3536_v29 = vpack.c.bf16 %v1119_v13, %v1119_v13  ;;  %v1329_v13 = vld [vmem:[#allocation2 + $0x52] sm:$0xff] }
 0x147   : > { %v802_v37 = vpop.permute.xlu0 %801  ;;  %v973_v41 = vpop.permute.xlu2 %972 }
 0x148   : > { %870 = vst.msk [vmem:[#allocation3 + $0x70] sm:$0xf] %vm841_vm5, %v802_v37  ;;  %v1126_v37 = vld [vmem:[#allocation2 + $0x159] sm:$0xff] }
 0x149   : > { %1068 = vst.msk [vmem:[#allocation3 + $0x4] sm:$0xf] %vm1066_vm6, %v973_v41  ;;  %v1122_v41 = vld [vmem:[#allocation2 + $0x129] sm:$0xff]  ;;  %v3544_v1 = vpack.c.bf16 %v1126_v37, %v1126_v37  ;;  %v1332_v37 = vld [vmem:[#allocation2 + $0x7a] sm:$0xff] }
 0x14a   : > { %v3547_v54 = vpack.c.bf16 %v1122_v41, %v1122_v41 }
 0x14b   : > { %1209 = vrot.lane.b32.xlu1 %v3474_v39, %s2967_s24 }
 0x14d   : > { %1213 = vrot.lane.b32.xlu0 %v1140_v38, %s2967_s24  ;;  %v804_v63 = vpop.permute.xlu1 %803  ;;  %1205 = vrot.lane.b32.xlu2 %v3478_v53, %s2967_s24 }
 0x14e   : > { %871 = vst.msk [vmem:[#allocation3 + $0x74] sm:$0xf] %vm841_vm5, %v804_v63 }
 0x14f   : > { %v808_v12 = vpop.permute.xlu0 %807  ;;  %v979_v2 = vpop.permute.xlu2 %978 }
 0x150   : > { %873 = vst.msk [vmem:[#allocation3 + $0x7c] sm:$0xf] %vm841_vm5, %v808_v12  ;;  %v1127_v12 = vld [vmem:[#allocation2 + $0x169] sm:$0xff] }
 0x151   : > { %1071 = vst.msk [vmem:[#allocation3 + $0x10] sm:$0xf] %vm1066_vm6, %v979_v2  ;;  %v1159_v47 = vpack.c.bf16 %v1127_v12, %v1127_v12 }
 0x153   : > { %1215 = vrot.lane.b32.xlu1 %v3486_v14, %s2967_s24 }
 0x155   : > { %1219 = vrot.lane.b32.xlu0 %v3489_v30, %s2967_s24  ;;  %v971_v15 = vpop.permute.xlu1 %970  ;;  %1211 = vrot.lane.b32.xlu2 %v1139_v42, %s2967_s24  ;;  %v1129_v42 = vld [vmem:[#allocation2 + $0x181] sm:$0xff] }
 0x156   : > { %1067 = vst.msk [vmem:[#allocation3] sm:$0xf] %vm1066_vm6, %v971_v15 }
 0x157   : > { %v975_v34 = vpop.permute.xlu0 %974  ;;  %v985_v62 = vpop.permute.xlu2 %984 }
 0x158   : > { %1069 = vst.msk [vmem:[#allocation3 + $0x8] sm:$0xf] %vm1066_vm6, %v975_v34  ;;  %v1161_v34 = vpack.c.bf16 %v1129_v42, %v1129_v42 }
 0x159   : > { %1074 = vst.msk [vmem:[#allocation3 + $0x1c] sm:$0xf] %vm1066_vm6, %v985_v62  ;;  %v3557_v62 = vpack.c.bf16 %v1125_v27, %v1125_v27  ;;  %v1333_v27 = vld [vmem:[#allocation2 + $0x82] sm:$0xff] }
 0x15b   : > { %1221 = vrot.lane.b32.xlu1 %v3498_v4, %s2967_s24 }
 0x15d   : > { %1225 = vrot.lane.b32.xlu0 %v1146_v52, %s2967_s24  ;;  %v977_v19 = vpop.permute.xlu1 %976  ;;  %1217 = vrot.lane.b32.xlu2 %v3502_v23, %s2967_s24  ;;  %v1130_v52 = vld [vmem:[#allocation2 + $0x189] sm:$0xff] }
 0x15e   : > { %1070 = vst.msk [vmem:[#allocation3 + $0xc] sm:$0xf] %vm1066_vm6, %v977_v19  ;;  %v1325_v19 = vld [vmem:[#allocation2 + $0x22] sm:$0xff] }
 0x15f   : > { %v981_v46 = vpop.permute.xlu0 %980  ;;  %v991_v28 = vpop.permute.xlu2 %990 }
 0x160   : > { %1072 = vst.msk [vmem:[#allocation3 + $0x14] sm:$0xf] %vm1066_vm6, %v981_v46  ;;  %v1162_v46 = vpack.c.bf16 %v1130_v52, %v1130_v52 }
 0x161   : > { %1077 = vst.msk [vmem:[#allocation3 + $0x28] sm:$0xf] %vm1066_vm6, %v991_v28  ;;  %v1357_v28 = vpack.c.bf16 %v1325_v19, %v1325_v19 }
 0x163   : > { %1227 = vrot.lane.b32.xlu1 %v1147_v40, %s2967_s24 }
 0x165   : > { %1231 = vrot.lane.b32.xlu0 %v3511_v48, %s2967_s24  ;;  %v983_v58 = vpop.permute.xlu1 %982  ;;  %1223 = vrot.lane.b32.xlu2 %v3514_v49, %s2967_s24 }
 0x166   : > { %1073 = vst.msk [vmem:[#allocation3 + $0x18] sm:$0xf] %vm1066_vm6, %v983_v58  ;;  %v1326_v58 = vld [vmem:[#allocation2 + $0x32] sm:$0xff] }
 0x167   : > { %v987_v50 = vpop.permute.xlu0 %986  ;;  %v997_v0 = vpop.permute.xlu2 %996 }
 0x168   : > { %1075 = vst.msk [vmem:[#allocation3 + $0x20] sm:$0xf] %vm1066_vm6, %v987_v50  ;;  %v1324_v50 = vld [vmem:[#allocation2 + $0x1a] sm:$0xff] }
 0x169   : > { %1080 = vst.msk [vmem:[#allocation3 + $0x34] sm:$0xf] %vm1066_vm6, %v997_v0  ;;  %v1356_v11 = vpack.c.bf16 %v1324_v50, %v1324_v50 }
 0x16b   : > { %1233 = vrot.lane.b32.xlu1 %v3522_v61, %s2967_s24 }
 0x16d   : > { %1237 = vrot.lane.b32.xlu0 %v3525_v3, %s2967_s24  ;;  %v989_v9 = vpop.permute.xlu1 %988  ;;  %1229 = vrot.lane.b32.xlu2 %v1148_v5, %s2967_s24  ;;  %v3570_v5 = vpack.c.bf16 %v1326_v58, %v1326_v58 }
 0x16e   : > { %1076 = vst.msk [vmem:[#allocation3 + $0x24] sm:$0xf] %vm1066_vm6, %v989_v9  ;;  %v3573_v9 = vpack.c.bf16 %v1328_v60, %v1328_v60 }
 0x16f   : > { %v993_v16 = vpop.permute.xlu0 %992  ;;  %v1003_v22 = vpop.permute.xlu2 %1002 }
 0x170   : > { %1078 = vst.msk [vmem:[#allocation3 + $0x2c] sm:$0xf] %vm1066_vm6, %v993_v16 }
 0x171   : > { %1083 = vst.msk [vmem:[#allocation3 + $0x40] sm:$0xf] %vm1066_vm6, %v1003_v22 }
 0x173   : > { %1239 = vrot.lane.b32.xlu1 %v1153_v17, %s2967_s24  ;;  %v1327_v17 = vld [vmem:[#allocation2 + $0x3a] sm:$0xff] }
 0x175   : > { %1243 = vrot.lane.b32.xlu0 %v1155_v26, %s2967_s24  ;;  %v995_v35 = vpop.permute.xlu1 %994  ;;  %1235 = vrot.lane.b32.xlu2 %v3536_v29, %s2967_s24  ;;  %v3582_v26 = vpack.c.bf16 %v1329_v13, %v1329_v13 }
 0x176   : > { %1079 = vst.msk [vmem:[#allocation3 + $0x30] sm:$0xf] %vm1066_vm6, %v995_v35  ;;  %v3586_v35 = vpack.c.bf16 %v1327_v17, %v1327_v17 }
 0x177   : > { %v999_v38 = vpop.permute.xlu0 %998  ;;  %v1009_v63 = vpop.permute.xlu2 %1008 }
 0x178   : > { %1081 = vst.msk [vmem:[#allocation3 + $0x38] sm:$0xf] %vm1066_vm6, %v999_v38  ;;  %v1330_v38 = vld [vmem:[#allocation2 + $0x62] sm:$0xff] }
 0x179   : > { %1086 = vst.msk [vmem:[#allocation3 + $0x4c] sm:$0xf] %vm1066_vm6, %v1009_v63  ;;  %v3595_v63 = vpack.c.bf16 %v1332_v37, %v1332_v37 }
 0x17b   : > { %1245 = vrot.lane.b32.xlu1 %v1156_v51, %s2967_s24 }
 0x17d   : > { %1249 = vrot.lane.b32.xlu0 %v3544_v1, %s2967_s24  ;;  %v1001_v2 = vpop.permute.xlu1 %1000  ;;  %1241 = vrot.lane.b32.xlu2 %v3547_v54, %s2967_s24 }
 0x17e   : > { %1082 = vst.msk [vmem:[#allocation3 + $0x3c] sm:$0xf] %vm1066_vm6, %v1001_v2  ;;  %v3599_v2 = vpack.c.bf16 %v1330_v38, %v1330_v38 }
 0x17f   : > { %v1005_v15 = vpop.permute.xlu0 %1004  ;;  %v1015_v44 = vpop.permute.xlu2 %1014 }
 0x180   : > { %1084 = vst.msk [vmem:[#allocation3 + $0x44] sm:$0xf] %vm1066_vm6, %v1005_v15 }
 0x181   : > { %1089 = vst.msk [vmem:[#allocation3 + $0x58] sm:$0xf] %vm1066_vm6, %v1015_v44 }
 0x183   : > { %1251 = vrot.lane.b32.xlu1 %v1159_v47, %s2967_s24 }
 0x185   : > { %1255 = vrot.lane.b32.xlu0 %v1161_v34, %s2967_s24  ;;  %v1007_v43 = vpop.permute.xlu1 %1006  ;;  %1247 = vrot.lane.b32.xlu2 %v3557_v62, %s2967_s24  ;;  %v3612_v34 = vpack.c.bf16 %v1333_v27, %v1333_v27 }
 0x186   : > { %1085 = vst.msk [vmem:[#allocation3 + $0x48] sm:$0xf] %vm1066_vm6, %v1007_v43  ;;  %v1336_v43 = vld [vmem:[#allocation2 + $0xaa] sm:$0xff] }
 0x187   : > { %v1011_v45 = vpop.permute.xlu0 %1010  ;;  %v1021_v40 = vpop.permute.xlu2 %1020 }
 0x188   : > { %1087 = vst.msk [vmem:[#allocation3 + $0x50] sm:$0xf] %vm1066_vm6, %v1011_v45 }
 0x189   : > { %1092 = vst.msk [vmem:[#allocation3 + $0x64] sm:$0xf] %vm1066_vm6, %v1021_v40 }
 0x18b   : > { %1257 = vrot.lane.b32.xlu1 %v1162_v46, %s2967_s24  ;;  %v3625_v46 = vpack.c.bf16 %v1336_v43, %v1336_v43 }
 0x18d   : > { %1422 = vrot.lane.b32.xlu0 %v1357_v28, %s2968_s25  ;;  %v1013_v59 = vpop.permute.xlu1 %1012  ;;  %1253 = vrot.lane.b32.xlu2 %v1160_v55, %s2967_s24  ;;  %v1339_v28 = vld [vmem:[#allocation2 + $0xca] sm:$0xff] }
 0x18e   : > { %1088 = vst.msk [vmem:[#allocation3 + $0x54] sm:$0xf] %vm1066_vm6, %v1013_v59  ;;  %v3638_v60 = vpack.c.bf16 %v1339_v28, %v1339_v28 }
 0x18f   : > { %v1017_v0 = vpop.permute.xlu0 %1016  ;;  %v1027_v7 = vpop.permute.xlu2 %1026 }
 0x190   : > { %1090 = vst.msk [vmem:[#allocation3 + $0x5c] sm:$0xf] %vm1066_vm6, %v1017_v0  ;;  %v1342_v0 = vld [vmem:[#allocation2 + $0xf2] sm:$0xff] }
 0x191   : > { %1095 = vst.msk [vmem:[#allocation3 + $0x70] sm:$0xf] %vm1066_vm6, %v1027_v7 }
 0x193   : > { %1424 = vrot.lane.b32.xlu1 %v3570_v5, %s2968_s25 }
 0x195   : > { %1428 = vrot.lane.b32.xlu0 %v3573_v9, %s2968_s25  ;;  %v1019_v16 = vpop.permute.xlu1 %1018  ;;  %1420 = vrot.lane.b32.xlu2 %v1356_v11, %s2968_s25 }
 0x196   : > { %1091 = vst.msk [vmem:[#allocation3 + $0x60] sm:$0xf] %vm1066_vm6, %v1019_v16  ;;  %v3651_v16 = vpack.c.bf16 %v1342_v0, %v1342_v0 }
 0x197   : > { %v1023_v22 = vpop.permute.xlu0 %1022  ;;  %v1033_v33 = vpop.permute.xlu2 %1032 }
 0x198   : > { %1093 = vst.msk [vmem:[#allocation3 + $0x68] sm:$0xf] %vm1066_vm6, %v1023_v22  ;;  %v1345_v22 = vld [vmem:[#allocation2 + $0x112] sm:$0xff] }
 0x199   : > { %1098 = vst.msk [vmem:[#allocation3 + $0x7c] sm:$0xf] %vm1066_vm6, %v1033_v33  ;;  %v3664_v38 = vpack.c.bf16 %v1345_v22, %v1345_v22 }
 0x19b   : > { %1430 = vrot.lane.b32.xlu1 %v3582_v26, %s2968_s25 }
 0x19d   : > { %1434 = vrot.lane.b32.xlu0 %v3208_v21, %s2968_s25  ;;  %v1025_v41 = vpop.permute.xlu1 %1024  ;;  %1426 = vrot.lane.b32.xlu2 %v3586_v35, %s2968_s25  ;;  %v1335_v21 = vld [vmem:[#allocation2 + $0x9a] sm:$0xff] }
 0x19e   : > { %1094 = vst.msk [vmem:[#allocation3 + $0x6c] sm:$0xf] %vm1066_vm6, %v1025_v41  ;;  %v3608_v47 = vpack.c.bf16 %v1335_v21, %v1335_v21 }
 0x19f   : > { %v1029_v51 = vpop.permute.xlu0 %1028  ;;  %v1200_v12 = vpop.permute.xlu2 %1199 }
 0x1a0   : > { %1096 = vst.msk [vmem:[#allocation3 + $0x74] sm:$0xf] %vm1066_vm6, %v1029_v51 }
 0x1a1   : > { %1294 = vst.msk [vmem:[#allocation3 + $0x8] sm:$0xf] %vm1291_vm7, %v1200_v12  ;;  %v1348_v12 = vld [vmem:[#allocation2 + $0x13a] sm:$0xff] }
 0x1a3   : > { %1436 = vrot.lane.b32.xlu1 %v3595_v63, %s2968_s25 }
 0x1a5   : > { %1440 = vrot.lane.b32.xlu0 %v3227_v36, %s2968_s25  ;;  %v1031_v42 = vpop.permute.xlu1 %1030  ;;  %1432 = vrot.lane.b32.xlu2 %v3599_v2, %s2968_s25  ;;  %v1338_v36 = vld [vmem:[#allocation2 + $0xc2] sm:$0xff] }
 0x1a6   : > { %1097 = vst.msk [vmem:[#allocation3 + $0x78] sm:$0xf] %vm1066_vm6, %v1031_v42  ;;  %v3621_v8 = vpack.c.bf16 %v1338_v36, %v1338_v36  ;;  %v1351_v36 = vld [vmem:[#allocation2 + $0x15a] sm:$0xff] }
 0x1a7   : > { %v1196_v15 = vpop.permute.xlu0 %1195  ;;  %v1206_v44 = vpop.permute.xlu2 %1205 }
 0x1a8   : > { %1292 = vst.msk [vmem:[#allocation3] sm:$0xf] %vm1291_vm7, %v1196_v15  ;;  %v3677_v15 = vpack.c.bf16 %v1348_v12, %v1348_v12 }
 0x1a9   : > { %1297 = vst.msk [vmem:[#allocation3 + $0x14] sm:$0xf] %vm1291_vm7, %v1206_v44 }
 0x1ab   : > { %1442 = vrot.lane.b32.xlu1 %v3608_v47, %s2968_s25 }
 0x1ad   : > { %1446 = vrot.lane.b32.xlu0 %v3248_v56, %s2968_s25  ;;  %v1198_v52 = vpop.permute.xlu1 %1197  ;;  %1438 = vrot.lane.b32.xlu2 %v3612_v34, %s2968_s25  ;;  %v1341_v56 = vld [vmem:[#allocation2 + $0xe2] sm:$0xff] }
 0x1ae   : > { %1293 = vst.msk [vmem:[#allocation3 + $0x4] sm:$0xf] %vm1291_vm7, %v1198_v52  ;;  %v3634_v58 = vpack.c.bf16 %v1341_v56, %v1341_v56  ;;  %v1551_v56 = vld [vmem:[#allocation2 + $0x38] sm:$0xff] }
 0x1af   : > { %v1202_v19 = vpop.permute.xlu0 %1201  ;;  %v1212_v45 = vpop.permute.xlu2 %1211 }
 0x1b0   : > { %1295 = vst.msk [vmem:[#allocation3 + $0xc] sm:$0xf] %vm1291_vm7, %v1202_v19 }
 0x1b1   : > { %1300 = vst.msk [vmem:[#allocation3 + $0x20] sm:$0xf] %vm1291_vm7, %v1212_v45  ;;  %v3688_v45 = vpack.c.bf16 %v1351_v36, %v1351_v36 }
 0x1b3   : > { %1448 = vrot.lane.b32.xlu1 %v3621_v8, %s2968_s25 }
 0x1b5   : > { %1452 = vrot.lane.b32.xlu0 %v3269_v10, %s2968_s25  ;;  %v1204_v40 = vpop.permute.xlu1 %1203  ;;  %1444 = vrot.lane.b32.xlu2 %v3625_v46, %s2968_s25  ;;  %v1344_v10 = vld [vmem:[#allocation2 + $0x10a] sm:$0xff] }
 0x1b6   : > { %1296 = vst.msk [vmem:[#allocation3 + $0x10] sm:$0xf] %vm1291_vm7, %v1204_v40  ;;  %v3647_v11 = vpack.c.bf16 %v1344_v10, %v1344_v10  ;;  %v1558_v10 = vld [vmem:[#allocation2 + $0x90] sm:$0xff] }
 0x1b7   : > { %v1208_v55 = vpop.permute.xlu0 %1207  ;;  %v1218_v59 = vpop.permute.xlu2 %1217 }
 0x1b8   : > { %1298 = vst.msk [vmem:[#allocation3 + $0x18] sm:$0xf] %vm1291_vm7, %v1208_v55  ;;  %v1583_v55 = vpack.c.bf16 %v1551_v56, %v1551_v56  ;;  %v1554_v56 = vld [vmem:[#allocation2 + $0x60] sm:$0xff] }
 0x1b9   : > { %1303 = vst.msk [vmem:[#allocation3 + $0x2c] sm:$0xf] %vm1291_vm7, %v1218_v59  ;;  %v1552_v59 = vld [vmem:[#allocation2 + $0x48] sm:$0xff] }
 0x1ba   : > { %v1584_v0 = vpack.c.bf16 %v1552_v59, %v1552_v59 }
 0x1bb   : > { %1454 = vrot.lane.b32.xlu1 %v3634_v58, %s2968_s25 }
 0x1bd   : > { %1458 = vrot.lane.b32.xlu0 %v3290_v31, %s2968_s25  ;;  %v1210_v50 = vpop.permute.xlu1 %1209  ;;  %1450 = vrot.lane.b32.xlu2 %v3638_v60, %s2968_s25  ;;  %v1347_v31 = vld [vmem:[#allocation2 + $0x12a] sm:$0xff] }
 0x1be   : > { %1299 = vst.msk [vmem:[#allocation3 + $0x1c] sm:$0xf] %vm1291_vm7, %v1210_v50  ;;  %v3660_v37 = vpack.c.bf16 %v1347_v31, %v1347_v31  ;;  %v1553_v31 = vld [vmem:[#allocation2 + $0x50] sm:$0xff] }
 0x1bf   : > { %v1214_v7 = vpop.permute.xlu0 %1213  ;;  %v1224_v13 = vpop.permute.xlu2 %1223 }
 0x1c0   : > { %1301 = vst.msk [vmem:[#allocation3 + $0x24] sm:$0xf] %vm1291_vm7, %v1214_v7 }
 0x1c1   : > { %1306 = vst.msk [vmem:[#allocation3 + $0x38] sm:$0xf] %vm1291_vm7, %v1224_v13  ;;  %v1590_v13 = vpack.c.bf16 %v1558_v10, %v1558_v10 }
 0x1c3   : > { %1460 = vrot.lane.b32.xlu1 %v3647_v11, %s2968_s25 }
 0x1c5   : > { %1464 = vrot.lane.b32.xlu0 %v3311_v57, %s2968_s25  ;;  %v1216_v17 = vpop.permute.xlu1 %1215  ;;  %1456 = vrot.lane.b32.xlu2 %v3651_v16, %s2968_s25  ;;  %v1350_v57 = vld [vmem:[#allocation2 + $0x152] sm:$0xff] }
 0x1c6   : > { %1302 = vst.msk [vmem:[#allocation3 + $0x28] sm:$0xf] %vm1291_vm7, %v1216_v17  ;;  %v3673_v42 = vpack.c.bf16 %v1350_v57, %v1350_v57 }
 0x1c7   : > { %v1220_v33 = vpop.permute.xlu0 %1219  ;;  %v1230_v41 = vpop.permute.xlu2 %1229 }
 0x1c8   : > { %1304 = vst.msk [vmem:[#allocation3 + $0x30] sm:$0xf] %vm1291_vm7, %v1220_v33 }
 0x1c9   : > { %1309 = vst.msk [vmem:[#allocation3 + $0x44] sm:$0xf] %vm1291_vm7, %v1230_v41  ;;  %v1585_v41 = vpack.c.bf16 %v1553_v31, %v1553_v31 }
 0x1cb   : > { %1466 = vrot.lane.b32.xlu1 %v3660_v37, %s2968_s25 }
 0x1cd   : > { %1470 = vrot.lane.b32.xlu0 %v3332_v18, %s2968_s25  ;;  %v1222_v51 = vpop.permute.xlu1 %1221  ;;  %1462 = vrot.lane.b32.xlu2 %v3664_v38, %s2968_s25  ;;  %v1550_v18 = vld [vmem:[#allocation2 + $0x30] sm:$0xff] }
 0x1ce   : > { %1305 = vst.msk [vmem:[#allocation3 + $0x34] sm:$0xf] %vm1291_vm7, %v1222_v51  ;;  %v1582_v43 = vpack.c.bf16 %v1550_v18, %v1550_v18 }
 0x1cf   : > { %v1226_v21 = vpop.permute.xlu0 %1225  ;;  %v1236_v27 = vpop.permute.xlu2 %1235 }
 0x1d0   : > { %1307 = vst.msk [vmem:[#allocation3 + $0x3c] sm:$0xf] %vm1291_vm7, %v1226_v21 }
 0x1d1   : > { %1312 = vst.msk [vmem:[#allocation3 + $0x50] sm:$0xf] %vm1291_vm7, %v1236_v27  ;;  %v1566_v27 = vld [vmem:[#allocation2 + $0xf0] sm:$0xff] }
 0x1d2   : > { %v1598_v18 = vpack.c.bf16 %v1566_v27, %v1566_v27 }
 0x1d3   : > { %1472 = vrot.lane.b32.xlu1 %v3673_v42, %s2968_s25 }
 0x1d5   : > { %1476 = vrot.lane.b32.xlu0 %v3349_v32, %s2968_s25  ;;  %v1228_v44 = vpop.permute.xlu1 %1227  ;;  %1468 = vrot.lane.b32.xlu2 %v3677_v15, %s2968_s25 }
 0x1d6   : > { %1308 = vst.msk [vmem:[#allocation3 + $0x40] sm:$0xf] %vm1291_vm7, %v1228_v44 }
 0x1d7   : > { %v1232_v52 = vpop.permute.xlu0 %1231  ;;  %v1242_v19 = vpop.permute.xlu2 %1241 }
 0x1d8   : > { %1310 = vst.msk [vmem:[#allocation3 + $0x48] sm:$0xf] %vm1291_vm7, %v1232_v52 }
 0x1d9   : > { %1315 = vst.msk [vmem:[#allocation3 + $0x5c] sm:$0xf] %vm1291_vm7, %v1242_v19 }
 0x1db   : > { %1646 = vrot.lane.b32.xlu1 %v1582_v43, %s2969_s26 }
 0x1dd   : > { %1871 = vrot.lane.b32.xlu0 %v3465_v25, %s2970_s27  ;;  %v1234_v32 = vpop.permute.xlu1 %1233  ;;  %1474 = vrot.lane.b32.xlu2 %v3688_v45, %s2968_s25 }
 0x1de   : > { %1311 = vst.msk [vmem:[#allocation3 + $0x4c] sm:$0xf] %vm1291_vm7, %v1234_v32 }
 0x1df   : > { %v1238_v40 = vpop.permute.xlu0 %1237  ;;  %v1248_v28 = vpop.permute.xlu2 %1247 }
 0x1e0   : > { %1313 = vst.msk [vmem:[#allocation3 + $0x54] sm:$0xf] %vm1291_vm7, %v1238_v40  ;;  %v1560_v40 = vld [vmem:[#allocation2 + $0xa8] sm:$0xff] }
 0x1e1   : > { %1318 = vst.msk [vmem:[#allocation3 + $0x68] sm:$0xf] %vm1291_vm7, %v1248_v28 }
 0x1e3   : > { %1873 = vrot.lane.b32.xlu1 %v3451_v6, %s2970_s27  ;;  %v1559_v6 = vld [vmem:[#allocation2 + $0x98] sm:$0xff] }
 0x1e4   : > { %v1591_v22 = vpack.c.bf16 %v1559_v6, %v1559_v6 }
 0x1e5   : > { %2098 = vrot.lane.b32.xlu0 %v3586_v35, %s2971_s28  ;;  %v1240_v25 = vpop.permute.xlu1 %1239  ;;  %1648 = vrot.lane.b32.xlu2 %v1583_v55, %s2969_s26  ;;  %v1586_v55 = vpack.c.bf16 %v1554_v56, %v1554_v56 }
 0x1e6   : > { %1314 = vst.msk [vmem:[#allocation3 + $0x58] sm:$0xf] %vm1291_vm7, %v1240_v25  ;;  %v1592_v25 = vpack.c.bf16 %v1560_v40, %v1560_v40 }
 0x1e7   : > { %v1244_v50 = vpop.permute.xlu0 %1243  ;;  %v1254_v7 = vpop.permute.xlu2 %1253 }
 0x1e8   : > { %1316 = vst.msk [vmem:[#allocation3 + $0x60] sm:$0xf] %vm1291_vm7, %v1244_v50  ;;  %v1555_v50 = vld [vmem:[#allocation2 + $0x68] sm:$0xff] }
 0x1e9   : > { %1321 = vst.msk [vmem:[#allocation3 + $0x74] sm:$0xf] %vm1291_vm7, %v1254_v7  ;;  %v1587_v6 = vpack.c.bf16 %v1555_v50, %v1555_v50 }
 0x1eb   : > { %1650 = vrot.lane.b32.xlu1 %v1584_v0, %s2969_s26 }
 0x1ed   : > { %1662 = vrot.lane.b32.xlu0 %v1590_v13, %s2969_s26  ;;  %v1246_v35 = vpop.permute.xlu1 %1245  ;;  %2096 = vrot.lane.b32.xlu2 %v3570_v5, %s2971_s28 }
 0x1ee   : > { %1317 = vst.msk [vmem:[#allocation3 + $0x64] sm:$0xf] %vm1291_vm7, %v1246_v35 }
 0x1ef   : > { %v1250_v17 = vpop.permute.xlu0 %1249  ;;  %v1421_v33 = vpop.permute.xlu2 %1420 }
 0x1f0   : > { %1319 = vst.msk [vmem:[#allocation3 + $0x6c] sm:$0xf] %vm1291_vm7, %v1250_v17  ;;  %v2005_v17 = vld [vmem:[#allocation2 + $0x6a] sm:$0xff] }
 0x1f1   : > { %1517 = vst.msk [vmem:[#allocation3] sm:$0xf] %vm1516_vm8, %v1421_v33 }
 0x1f3   : > { %1664 = vrot.lane.b32.xlu1 %v1591_v22, %s2969_s26 }
 0x1f5   : > { %1877 = vrot.lane.b32.xlu0 %v3478_v53, %s2970_s27  ;;  %v1252_v57 = vpop.permute.xlu1 %1251  ;;  %1652 = vrot.lane.b32.xlu2 %v1585_v41, %s2969_s26  ;;  %v2037_v41 = vpack.c.bf16 %v2005_v17, %v2005_v17 }
 0x1f6   : > { %1320 = vst.msk [vmem:[#allocation3 + $0x70] sm:$0xf] %vm1291_vm7, %v1252_v57 }
 0x1f7   : > { %v1256_v5 = vpop.permute.xlu0 %1255  ;;  %v1427_v51 = vpop.permute.xlu2 %1426 }
 0x1f8   : > { %1322 = vst.msk [vmem:[#allocation3 + $0x78] sm:$0xf] %vm1291_vm7, %v1256_v5 }
 0x1f9   : > { %1520 = vst.msk [vmem:[#allocation3 + $0xc] sm:$0xf] %vm1516_vm8, %v1427_v51 }
 0x1fb   : > { %1887 = vrot.lane.b32.xlu1 %v3486_v14, %s2970_s27 }
 0x1fd   : > { %2100 = vrot.lane.b32.xlu0 %v3573_v9, %s2971_s28  ;;  %v1258_v12 = vpop.permute.xlu1 %1257  ;;  %1875 = vrot.lane.b32.xlu2 %v3459_v20, %s2970_s27  ;;  %v2008_v20 = vld [vmem:[#allocation2 + $0x92] sm:$0xff] }
 0x1fe   : > { %1323 = vst.msk [vmem:[#allocation3 + $0x7c] sm:$0xf] %vm1291_vm7, %v1258_v12  ;;  %v2040_v36 = vpack.c.bf16 %v2008_v20, %v2008_v20 }
 0x1ff   : > { %v1423_v53 = vpop.permute.xlu0 %1422  ;;  %v1433_v21 = vpop.permute.xlu2 %1432 }
 0x200   : > { %1518 = vst.msk [vmem:[#allocation3 + $0x4] sm:$0xf] %vm1516_vm8, %v1423_v53 }
 0x201   : > { %1523 = vst.msk [vmem:[#allocation3 + $0x18] sm:$0xf] %vm1516_vm8, %v1433_v21  ;;  %v1574_v21 = vld [vmem:[#allocation2 + $0x150] sm:$0xff] }
 0x203   : > { %2102 = vrot.lane.b32.xlu1 %v3582_v26, %s2971_s28 }
 0x205   : > { %2114 = vrot.lane.b32.xlu0 %v3608_v47, %s2971_s28  ;;  %v1425_v14 = vpop.permute.xlu1 %1424  ;;  %1889 = vrot.lane.b32.xlu2 %v3502_v23, %s2970_s27  ;;  %v2017_v23 = vld [vmem:[#allocation2 + $0xfa] sm:$0xff] }
 0x206   : > { %1519 = vst.msk [vmem:[#allocation3 + $0x8] sm:$0xf] %vm1516_vm8, %v1425_v14  ;;  %v1567_v47 = vld [vmem:[#allocation2 + $0xf8] sm:$0xff]  ;;  %v2049_v19 = vpack.c.bf16 %v2017_v23, %v2017_v23 }
 0x207   : > { %v1429_v9 = vpop.permute.xlu0 %1428  ;;  %v1439_v44 = vpop.permute.xlu2 %1438  ;;  %v1599_v32 = vpack.c.bf16 %v1567_v47, %v1567_v47 }
 0x208   : > { %1521 = vst.msk [vmem:[#allocation3 + $0x10] sm:$0xf] %vm1516_vm8, %v1429_v9  ;;  %v2928_v9 = vld [vmem:[%s4211_s1 + $0x8] sm:$0xff] }
 0x209   : > { %1526 = vst.msk [vmem:[#allocation3 + $0x24] sm:$0xf] %vm1516_vm8, %v1439_v44  ;;  %v2927_v44 = vld [vmem:[%s4211_s1] sm:$0xff] }
 0x20b   : > { %1678 = vrot.lane.b32.xlu1 %v1598_v18, %s2969_s26  ;;  %v1606_v18 = vpack.c.bf16 %v1574_v21, %v1574_v21 }
 0x20d   : > { %1903 = vrot.lane.b32.xlu0 %v3511_v48, %s2970_s27  ;;  %v1431_v26 = vpop.permute.xlu1 %1430  ;;  %2112 = vrot.lane.b32.xlu2 %v2040_v36, %s2971_s28 }
 0x20e   : > { %1522 = vst.msk [vmem:[#allocation3 + $0x14] sm:$0xf] %vm1516_vm8, %v1431_v26  ;;  %v1569_v26 = vld [vmem:[#allocation2 + $0x110] sm:$0xff] }
 0x20f   : > { %v1435_v52 = vpop.permute.xlu0 %1434  ;;  %v1445_v43 = vpop.permute.xlu2 %1444 }
 0x210   : > { %1524 = vst.msk [vmem:[#allocation3 + $0x1c] sm:$0xf] %vm1516_vm8, %v1435_v52 }
 0x211   : > { %1529 = vst.msk [vmem:[#allocation3 + $0x30] sm:$0xf] %vm1516_vm8, %v1445_v43  ;;  %v1601_v43 = vpack.c.bf16 %v1569_v26, %v1569_v26 }
 0x213   : > { %1905 = vrot.lane.b32.xlu1 %v3522_v61, %s2970_s27  ;;  %v1561_v61 = vld [vmem:[#allocation2 + $0xb0] sm:$0xff] }
 0x214   : > { %v1593_v7 = vpack.c.bf16 %v1561_v61, %v1561_v61 }
 0x215   : > { %2130 = vrot.lane.b32.xlu0 %v2049_v19, %s2971_s28  ;;  %v1437_v48 = vpop.permute.xlu1 %1436  ;;  %1680 = vrot.lane.b32.xlu2 %v1599_v32, %s2969_s26 }
 0x216   : > { %1525 = vst.msk [vmem:[#allocation3 + $0x20] sm:$0xf] %vm1516_vm8, %v1437_v48 }
 0x217   : > { %v1441_v28 = vpop.permute.xlu0 %1440  ;;  %v1451_v59 = vpop.permute.xlu2 %1450 }
 0x218   : > { %1527 = vst.msk [vmem:[#allocation3 + $0x28] sm:$0xf] %vm1516_vm8, %v1441_v28 }
 0x219   : > { %1532 = vst.msk [vmem:[#allocation3 + $0x3c] sm:$0xf] %vm1516_vm8, %v1451_v59 }
 0x21b   : > { %1654 = vrot.lane.b32.xlu1 %v1586_v55, %s2969_s26 }
 0x21d   : > { %1666 = vrot.lane.b32.xlu0 %v1592_v25, %s2969_s26  ;;  %v1443_v10 = vpop.permute.xlu1 %1442  ;;  %2128 = vrot.lane.b32.xlu2 %v3651_v16, %s2971_s28 }
 0x21e   : > { %1528 = vst.msk [vmem:[#allocation3 + $0x2c] sm:$0xf] %vm1516_vm8, %v1443_v10 }
 0x21f   : > { %v1447_v0 = vpop.permute.xlu0 %1446  ;;  %v1457_v13 = vpop.permute.xlu2 %1456 }
 0x220   : > { %1530 = vst.msk [vmem:[#allocation3 + $0x34] sm:$0xf] %vm1516_vm8, %v1447_v0 }
 0x221   : > { %1535 = vst.msk [vmem:[#allocation3 + $0x48] sm:$0xf] %vm1516_vm8, %v1457_v13 }
 0x223   : > { %1668 = vrot.lane.b32.xlu1 %v1593_v7, %s2969_s26 }
 0x225   : > { %1881 = vrot.lane.b32.xlu0 %v3474_v39, %s2970_s27  ;;  %v1449_v35 = vpop.permute.xlu1 %1448  ;;  %1656 = vrot.lane.b32.xlu2 %v1587_v6, %s2969_s26  ;;  %v2011_v39 = vld [vmem:[#allocation2 + $0xb2] sm:$0xff] }
 0x226   : > { %1531 = vst.msk [vmem:[#allocation3 + $0x38] sm:$0xf] %vm1516_vm8, %v1449_v35  ;;  %v2043_v5 = vpack.c.bf16 %v2011_v39, %v2011_v39  ;;  %v1781_v6 = vld [vmem:[#allocation2 + $0x79] sm:$0xff] }
 0x227   : > { %v1453_v16 = vpop.permute.xlu0 %1452  ;;  %v1463_v31 = vpop.permute.xlu2 %1462 }
 0x228   : > { %1533 = vst.msk [vmem:[#allocation3 + $0x40] sm:$0xf] %vm1516_vm8, %v1453_v16 }
 0x229   : > { %1538 = vst.msk [vmem:[#allocation3 + $0x54] sm:$0xf] %vm1516_vm8, %v1463_v31  ;;  %v1813_v31 = vpack.c.bf16 %v1781_v6, %v1781_v6 }
 0x22b   : > { %1891 = vrot.lane.b32.xlu1 %v3489_v30, %s2970_s27  ;;  %v2261_v30 = vld [vmem:[%s4211_s1 + $0x10] sm:$0x3] }
 0x22d   : > { %2104 = vrot.lane.b32.xlu0 %v3599_v2, %s2971_s28  ;;  %v1455_v22 = vpop.permute.xlu1 %1454  ;;  %1879 = vrot.lane.b32.xlu2 %v3462_v24, %s2970_s27  ;;  %v2351_v2 = vunpack.c.l.b16 %v2261_v30  ;;  %v1568_v24 = vld [vmem:[#allocation2 + $0x108] sm:$0xff] }
 0x22e   : > { %1534 = vst.msk [vmem:[#allocation3 + $0x44] sm:$0xf] %vm1516_vm8, %v1455_v22  ;;  %v1600_v14 = vpack.c.bf16 %v1568_v24, %v1568_v24  ;;  %v1788_v22 = vld [vmem:[#allocation2 + $0xc9] sm:$0xff] }
 0x22f   : > { %v1459_v33 = vpop.permute.xlu0 %1458  ;;  %v1469_v57 = vpop.permute.xlu2 %1468  ;;  %v2354_v51 = vpack.c.b16 %v2351_v2, %v2351_v2  ;;  %v1577_v24 = vld [vmem:[#allocation2 + $0x170] sm:$0xff] }
 0x230   : > { %1536 = vst.msk [vmem:[#allocation3 + $0x4c] sm:$0xf] %vm1516_vm8, %v1459_v33 }
 0x231   : > { %1541 = vst.msk [vmem:[#allocation3 + $0x60] sm:$0xf] %vm1516_vm8, %v1469_v57  ;;  %v2408_v53 = vsel %vm2406_vm9, %v2354_v51, 0  ;;  %v1576_v57 = vld [vmem:[#allocation2 + $0x168] sm:$0xff] }
 0x232   : > { %2415 = vmatpush.bf16.msra.mxu0 %v2408_v53  ;;  %2929 = vmatpush.bf16.msra.mxu1 %v2408_v53  ;;  %v1608_v51 = vpack.c.bf16 %v1576_v57, %v1576_v57 }
 0x233   : > { %2106 = vrot.lane.b32.xlu1 %v2037_v41, %s2971_s28  ;;  %2930 = vmatpush.bf16.msra.mxu2 %v2408_v53  ;;  %v1820_v41 = vpack.c.bf16 %v1788_v22, %v1788_v22  ;;  %v1797_v22 = vld [vmem:[#allocation2 + $0x139] sm:$0xff] }
 0x234   : > { %2931 = vmatpush.bf16.msra.mxu3 %v2408_v53  ;;  %v1829_v57 = vpack.c.bf16 %v1797_v22, %v1797_v22 }
 0x235   : > { %2118 = vrot.lane.b32.xlu0 %v2043_v5, %s2971_s28  ;;  %v1461_v12 = vpop.permute.xlu1 %1460  ;;  %1893 = vrot.lane.b32.xlu2 %v3498_v4, %s2970_s27  ;;  %v1575_v4 = vld [vmem:[#allocation2 + $0x158] sm:$0xff] }
 0x236   : > { %1537 = vst.msk [vmem:[#allocation3 + $0x50] sm:$0xf] %vm1516_vm8, %v1461_v12  ;;  %2416 = vmatpush.bf16.msra.mxu0 %v2928_v9  ;;  %2932 = vmatpush.bf16.msra.mxu1 %v2928_v9  ;;  %v1607_v47 = vpack.c.bf16 %v1575_v4, %v1575_v4  ;;  %v1795_v4 = vld [vmem:[#allocation2 + $0x121] sm:$0xff] }
 0x237   : > { %v1465_v27 = vpop.permute.xlu0 %1464  ;;  %v1475_v20 = vpop.permute.xlu2 %1474  ;;  %2933 = vmatpush.bf16.msra.mxu2 %v2928_v9 }
 0x238   : > { %1539 = vst.msk [vmem:[#allocation3 + $0x58] sm:$0xf] %vm1516_vm8, %v1465_v27  ;;  %2934 = vmatpush.bf16.msra.mxu3 %v2928_v9  ;;  %v1609_v27 = vpack.c.bf16 %v1577_v24, %v1577_v24  ;;  %v1579_v24 = vld [vmem:[#allocation2 + $0x188] sm:$0xff] }
 0x239   : > { %1544 = vst.msk [vmem:[#allocation3 + $0x6c] sm:$0xf] %vm1516_vm8, %v1475_v20 }
 0x23a   : > { %2417 = vmatpush.bf16.msra.mxu0 %v2927_v44  ;;  %2935 = vmatpush.bf16.msra.mxu1 %v2927_v44 }
 0x23b   : > { %1682 = vrot.lane.b32.xlu1 %v1600_v14, %s2969_s26  ;;  %2936 = vmatpush.bf16.msra.mxu2 %v2927_v44 }
 0x23c   : > { %2937 = vmatpush.bf16.msra.mxu3 %v2927_v44 }
 0x23d   : > { %1694 = vrot.lane.b32.xlu0 %v1606_v18, %s2969_s26  ;;  %v1467_v36 = vpop.permute.xlu1 %1466  ;;  %2116 = vrot.lane.b32.xlu2 %v3625_v46, %s2971_s28  ;;  %v2020_v18 = vld [vmem:[#allocation2 + $0x122] sm:$0xff] }
 0x23e   : > { %1540 = vst.msk [vmem:[#allocation3 + $0x5c] sm:$0xf] %vm1516_vm8, %v1467_v36 }
 0x23f   : > { %v1471_v23 = vpop.permute.xlu0 %1470  ;;  %v1649_v52 = vpop.permute.xlu2 %1648 }
 0x240   : > { %1542 = vst.msk [vmem:[#allocation3 + $0x64] sm:$0xf] %vm1516_vm8, %v1471_v23  ;;  %v2052_v23 = vpack.c.bf16 %v2020_v18, %v2020_v18 }
 0x241   : > { %1744 = vst.msk [vmem:[#allocation3 + $0x4] sm:$0xf] %vm1742_vm10, %v1649_v52 }
 0x243   : > { %1696 = vrot.lane.b32.xlu1 %v1607_v47, %s2969_s26  ;;  %v1827_v47 = vpack.c.bf16 %v1795_v4, %v1795_v4 }
 0x245   : > { %1909 = vrot.lane.b32.xlu0 %v3525_v3, %s2970_s27  ;;  %v1473_v46 = vpop.permute.xlu1 %1472  ;;  %1684 = vrot.lane.b32.xlu2 %v1601_v43, %s2969_s26  ;;  %v1802_v43 = vld [vmem:[#allocation2 + $0x171] sm:$0xff] }
 0x246   : > { %1543 = vst.msk [vmem:[#allocation3 + $0x68] sm:$0xf] %vm1516_vm8, %v1473_v46 }
 0x247   : > { %v1477_v19 = vpop.permute.xlu0 %1476  ;;  %v2097_v32 = vpop.permute.xlu2 %2096 }
 0x248   : > { %1545 = vst.msk [vmem:[#allocation3 + $0x70] sm:$0xf] %vm1516_vm8, %v1477_v19 }
 0x24b   : > { %1919 = vrot.lane.b32.xlu1 %v3557_v62, %s2970_s27  ;;  %v1556_v62 = vld [vmem:[#allocation2 + $0x78] sm:$0xff] }
 0x24c   : > { %v1588_v28 = vpack.c.bf16 %v1556_v62, %v1556_v62 }
 0x24d   : > { %2132 = vrot.lane.b32.xlu0 %v3647_v11, %s2971_s28  ;;  %v1647_v56 = vpop.permute.xlu1 %1646  ;;  %1907 = vrot.lane.b32.xlu2 %v3536_v29, %s2970_s27  ;;  %v1562_v29 = vld [vmem:[#allocation2 + $0xc0] sm:$0xff] }
 0x24e   : > { %1743 = vst.msk [vmem:[#allocation3] sm:$0xf] %vm1742_vm10, %v1647_v56  ;;  %v1594_v59 = vpack.c.bf16 %v1562_v29, %v1562_v29  ;;  %v2026_v29 = vld [vmem:[#allocation2 + $0x16a] sm:$0xff] }
 0x24f   : > { %v1872_v3 = vpop.permute.xlu0 %1871  ;;  %v1653_v48 = vpop.permute.xlu2 %1652 }
 0x250   : > { %1968 = vst.msk [vmem:[#allocation3] sm:$0xf] %vm1967_vm11, %v1872_v3  ;;  %v1834_v3 = vpack.c.bf16 %v1802_v43, %v1802_v43  ;;  %v1580_v43 = vld [vmem:[#allocation2 + $0x198] sm:$0xff] }
 0x251   : > { %2193 = vst.msk [vmem:[#allocation3] sm:$0xf] %vm2192_vm12, %v2097_v32 }
 0x252   : > { %1746 = vst.msk [vmem:[#allocation3 + $0xc] sm:$0xf] %vm1742_vm10, %v1653_v48  ;;  %v1564_v48 = vld [vmem:[#allocation2 + $0xd8] sm:$0xff] }
 0x253   : > { %2134 = vrot.lane.b32.xlu1 %v3664_v38, %s2971_s28  ;;  %v1563_v38 = vld [vmem:[#allocation2 + $0xc8] sm:$0xff] }
 0x254   : > { %v1595_v50 = vpack.c.bf16 %v1563_v38, %v1563_v38  ;;  %v2058_v38 = vpack.c.bf16 %v2026_v29, %v2026_v29 }
 0x255   : > { %2146 = vrot.lane.b32.xlu0 %v3688_v45, %s2971_s28  ;;  %v1874_v11 = vpop.permute.xlu1 %1873  ;;  %1921 = vrot.lane.b32.xlu2 %v3544_v1, %s2970_s27  ;;  %v1782_v1 = vld [vmem:[#allocation2 + $0x81] sm:$0xff] }
 0x256   : > { %1969 = vst.msk [vmem:[#allocation3 + $0x4] sm:$0xf] %vm1967_vm11, %v1874_v11  ;;  %v1557_v45 = vld [vmem:[#allocation2 + $0x80] sm:$0xff]  ;;  %v1814_v7 = vpack.c.bf16 %v1782_v1, %v1782_v1 }
 0x257   : > { %v2099_v40 = vpop.permute.xlu0 %2098  ;;  %v1876_v55 = vpop.permute.xlu2 %1875  ;;  %v1589_v13 = vpack.c.bf16 %v1557_v45, %v1557_v45  ;;  %v1789_v11 = vld [vmem:[#allocation2 + $0xd9] sm:$0xff] }
 0x258   : > { %2194 = vst.msk [vmem:[#allocation3 + $0x4] sm:$0xf] %vm2192_vm12, %v2099_v40  ;;  %v1565_v1 = vld [vmem:[#allocation2 + $0xe0] sm:$0xff] }
 0x25b   : > { %1658 = vrot.lane.b32.xlu1 %v1588_v28, %s2969_s26  ;;  %v1596_v28 = vpack.c.bf16 %v1564_v48, %v1564_v48 }
 0x25d   : > { %1670 = vrot.lane.b32.xlu0 %v1594_v59, %s2969_s26  ;;  %v1651_v25 = vpop.permute.xlu1 %1650  ;;  %2144 = vrot.lane.b32.xlu2 %v3673_v42, %s2971_s28  ;;  %v1821_v59 = vpack.c.bf16 %v1789_v11, %v1789_v11  ;;  %v1806_v11 = vld [vmem:[#allocation2 + $0x1a1] sm:$0xff] }
 0x25e   : > { %1745 = vst.msk [vmem:[#allocation3 + $0x8] sm:$0xf] %vm1742_vm10, %v1651_v25 }
 0x25f   : > { %v1663_v61 = vpop.permute.xlu0 %1662  ;;  %v2911_v10 = vld [vmem:[#allocation3] sm:$0xff]  ;;  %1970 = vst.msk [vmem:[#allocation3 + $0x8] sm:$0xf] %vm1967_vm11, %v1876_v55  ;;  %v1890_v0 = vpop.permute.xlu2 %1889 }
 0x260   : > { %1751 = vst.msk [vmem:[#allocation3 + $0x20] sm:$0xf] %vm1742_vm10, %v1663_v61  ;;  %2891 = vmatmul.msk.bf16.vlgmr.msra.gmra.mxu0 %vm2357_vm13, %v2911_v10 }
 0x263   : > { %1672 = vrot.lane.b32.xlu1 %v1595_v50, %s2969_s26  ;;  %v1597_v50 = vpack.c.bf16 %v1565_v1, %v1565_v1 }
 0x265   : > { %1885 = vrot.lane.b32.xlu0 %v1814_v7, %s2970_s27  ;;  %v1665_v42 = vpop.permute.xlu1 %1664  ;;  %1660 = vrot.lane.b32.xlu2 %v1589_v13, %s2969_s26  ;;  %v1573_v7 = vld [vmem:[#allocation2 + $0x140] sm:$0xff] }
 0x266   : > { %1752 = vst.msk [vmem:[#allocation3 + $0x24] sm:$0xf] %vm1742_vm10, %v1665_v42  ;;  %v2014_v13 = vld [vmem:[#allocation2 + $0xda] sm:$0xff] }
 0x267   : > { %v1878_v35 = vpop.permute.xlu0 %1877  ;;  %1977 = vst.msk [vmem:[#allocation3 + $0x24] sm:$0xf] %vm1967_vm11, %v1890_v0  ;;  %v2113_v16 = vpop.permute.xlu2 %2112 }
 0x268   : > { %1971 = vst.msk [vmem:[#allocation3 + $0xc] sm:$0xf] %vm1967_vm11, %v1878_v35  ;;  %v1605_v35 = vpack.c.bf16 %v1573_v7, %v1573_v7 }
 0x26b   : > { %1895 = vrot.lane.b32.xlu1 %v3514_v49, %s2970_s27  ;;  %v1570_v49 = vld [vmem:[#allocation2 + $0x120] sm:$0xff] }
 0x26c   : > { %v1602_v5 = vpack.c.bf16 %v1570_v49, %v1570_v49 }
 0x26d   : > { %2108 = vrot.lane.b32.xlu0 %v3595_v63, %s2971_s28  ;;  %v1888_v17 = vpop.permute.xlu1 %1887  ;;  %1883 = vrot.lane.b32.xlu2 %v1813_v31, %s2970_s27  ;;  %v1578_v31 = vld [vmem:[#allocation2 + $0x180] sm:$0xff] }
 0x26e   : > { %1976 = vst.msk [vmem:[#allocation3 + $0x20] sm:$0xf] %vm1967_vm11, %v1888_v17  ;;  %v1610_v49 = vpack.c.bf16 %v1578_v31, %v1578_v31 }
 0x26f   : > { %v2101_v39 = vpop.permute.xlu0 %2100  ;;  %2201 = vst.msk [vmem:[#allocation3 + $0x20] sm:$0xf] %vm2192_vm12, %v2113_v16  ;;  %v1681_v33 = vpop.permute.xlu2 %1680  ;;  %v2046_v16 = vpack.c.bf16 %v2014_v13, %v2014_v13 }
 0x270   : > { %2195 = vst.msk [vmem:[#allocation3 + $0x8] sm:$0xf] %vm2192_vm12, %v2101_v39  ;;  %v1572_v39 = vld [vmem:[#allocation2 + $0x138] sm:$0xff] }
 0x271   : > { %1760 = vst.msk [vmem:[#allocation3 + $0x44] sm:$0xf] %vm1742_vm10, %v1681_v33 }
 0x273   : > { %2110 = vrot.lane.b32.xlu1 %v3612_v34, %s2971_s28 }
 0x275   : > { %2122 = vrot.lane.b32.xlu0 %v3638_v60, %s2971_s28  ;;  %v2103_v63 = vpop.permute.xlu1 %2102  ;;  %1897 = vrot.lane.b32.xlu2 %v1820_v41, %s2970_s27  ;;  %v1571_v60 = vld [vmem:[#allocation2 + $0x128] sm:$0xff] }
 0x276   : > { %2196 = vst.msk [vmem:[#allocation3 + $0xc] sm:$0xf] %vm2192_vm12, %v2103_v63  ;;  %v1603_v20 = vpack.c.bf16 %v1571_v60, %v1571_v60 }
 0x277   : > { %v2115_v30 = vpop.permute.xlu0 %2114  ;;  %v2129_v2 = vpop.permute.xlu2 %2128 }
 0x278   : > { %2202 = vst.msk [vmem:[#allocation3 + $0x24] sm:$0xf] %vm2192_vm12, %v2115_v30  ;;  %v1604_v30 = vpack.c.bf16 %v1572_v39, %v1572_v39 }
 0x27b   : > { %1686 = vrot.lane.b32.xlu1 %v1602_v5, %s2969_s26  ;;  %v1798_v5 = vld [vmem:[#allocation2 + $0x141] sm:$0xff] }
 0x27d   : > { %1698 = vrot.lane.b32.xlu0 %v1608_v51, %s2969_s26  ;;  %v1679_v34 = vpop.permute.xlu1 %1678  ;;  %v2912_v12 = vld [vmem:[#allocation3 + $0x8] sm:$0xff]  ;;  %2120 = vrot.lane.b32.xlu2 %v3621_v8, %s2971_s28  ;;  %v1801_v8 = vld [vmem:[#allocation2 + $0x169] sm:$0xff] }
 0x27e   : > { %1759 = vst.msk [vmem:[#allocation3 + $0x40] sm:$0xf] %vm1742_vm10, %v1679_v34  ;;  %2892 = vmatmul.msk.bf16.gmra.mxu0 %vm2357_vm13, %v2912_v12  ;;  %v1833_v36 = vpack.c.bf16 %v1801_v8, %v1801_v8  ;;  %v1804_v51 = vld [vmem:[#allocation2 + $0x189] sm:$0xff]  ;;  %v1830_v12 = vpack.c.bf16 %v1798_v5, %v1798_v5 }
 0x27f   : > { %v1904_v53 = vpop.permute.xlu0 %1903  ;;  %v2915_v21 = vld [vmem:[#allocation3 + $0x20] sm:$0xff]  ;;  %v1657_v14 = vpop.permute.xlu2 %1656 }
 0x280   : > { %1984 = vst.msk [vmem:[#allocation3 + $0x40] sm:$0xf] %vm1967_vm11, %v1904_v53  ;;  %2895 = vmatmul.msk.bf16.vlgmr.msra.gmra.mxu1 %vm2357_vm13, %v2915_v21  ;;  %v1836_v53 = vpack.c.bf16 %v1804_v51, %v1804_v51  ;;  %v1611_v21 = vpack.c.bf16 %v1579_v24, %v1579_v24 }
 0x281   : > { %2209 = vst.msk [vmem:[#allocation3 + $0x40] sm:$0xf] %vm2192_vm12, %v2129_v2 }
 0x282   : > { %1748 = vst.msk [vmem:[#allocation3 + $0x14] sm:$0xf] %vm1742_vm10, %v1657_v14  ;;  %v2028_v14 = vld [vmem:[#allocation2 + $0x182] sm:$0xff] }
 0x283   : > { %1700 = vrot.lane.b32.xlu1 %v1609_v27, %s2969_s26  ;;  %v2060_v18 = vpack.c.bf16 %v2028_v14, %v2028_v14 }
 0x285   : > { %1913 = vrot.lane.b32.xlu0 %v3547_v54, %s2970_s27  ;;  %v1906_v9 = vpop.permute.xlu1 %1905  ;;  %1688 = vrot.lane.b32.xlu2 %v1603_v20, %s2969_s26  ;;  %v2027_v54 = vld [vmem:[#allocation2 + $0x172] sm:$0xff]  ;;  %v1803_v20 = vld [vmem:[#allocation2 + $0x181] sm:$0xff] }
 0x286   : > { %1985 = vst.msk [vmem:[#allocation3 + $0x44] sm:$0xf] %vm1967_vm11, %v1906_v9  ;;  %v2059_v56 = vpack.c.bf16 %v2027_v54, %v2027_v54  ;;  %v1835_v4 = vpack.c.bf16 %v1803_v20, %v1803_v20 }
 0x287   : > { %v2131_v44 = vpop.permute.xlu0 %2130  ;;  %v1880_v26 = vpop.permute.xlu2 %1879 }
 0x288   : > { %2210 = vst.msk [vmem:[#allocation3 + $0x44] sm:$0xf] %vm2192_vm12, %v2131_v44  ;;  %v2029_v44 = vld [vmem:[#allocation2 + $0x18a] sm:$0xff] }
 0x28b   : > { %1923 = vrot.lane.b32.xlu1 %v1833_v36, %s2970_s27 }
 0x28d   : > { %2136 = vrot.lane.b32.xlu0 %v2052_v23, %s2971_s28  ;;  %v1655_v52 = vpop.permute.xlu1 %1654  ;;  %1911 = vrot.lane.b32.xlu2 %v1827_v47, %s2970_s27  ;;  %v2061_v47 = vpack.c.bf16 %v2029_v44, %v2029_v44 }
 0x28e   : > { %1747 = vst.msk [vmem:[#allocation3 + $0x10] sm:$0xf] %vm1742_vm10, %v1655_v52 }
 0x28f   : > { %v1667_v46 = vpop.permute.xlu0 %1666  ;;  %v2919_v19 = vld [vmem:[#allocation3 + $0x40] sm:$0xff]  ;;  %1972 = vst.msk [vmem:[#allocation3 + $0x10] sm:$0xf] %vm1967_vm11, %v1880_v26  ;;  %v1894_v32 = vpop.permute.xlu2 %1893  ;;  %v2023_v26 = vld [vmem:[#allocation2 + $0x142] sm:$0xff] }
 0x290   : > { %1753 = vst.msk [vmem:[#allocation3 + $0x28] sm:$0xf] %vm1742_vm10, %v1667_v46  ;;  %2899 = vmatmul.msk.bf16.vlgmr.msra.gmra.mxu2 %vm2357_vm13, %v2919_v19  ;;  %v2055_v54 = vpack.c.bf16 %v2023_v26, %v2023_v26  ;;  %v1805_v19 = vld [vmem:[#allocation2 + $0x199] sm:$0xff] }
 0x293   : > { %2138 = vrot.lane.b32.xlu1 %v3660_v37, %s2971_s28  ;;  %v1790_v37 = vld [vmem:[#allocation2 + $0xe1] sm:$0xff] }
 0x294   : > { %v1822_v61 = vpack.c.bf16 %v1790_v37, %v1790_v37 }
 0x295   : > { %2150 = vrot.lane.b32.xlu0 %v2059_v56, %s2971_s28  ;;  %v1669_v62 = vpop.permute.xlu1 %1668  ;;  %1925 = vrot.lane.b32.xlu2 %v1834_v3, %s2970_s27  ;;  %v1612_v3 = vpack.c.bf16 %v1580_v43, %v1580_v43 }
 0x296   : > { %1754 = vst.msk [vmem:[#allocation3 + $0x2c] sm:$0xf] %vm1742_vm10, %v1669_v62  ;;  %v1837_v62 = vpack.c.bf16 %v1805_v19, %v1805_v19 }
 0x297   : > { %v1882_v40 = vpop.permute.xlu0 %1881  ;;  %1979 = vst.msk [vmem:[#allocation3 + $0x2c] sm:$0xf] %vm1967_vm11, %v1894_v32  ;;  %v2117_v55 = vpop.permute.xlu2 %2116 }
 0x298   : > { %1973 = vst.msk [vmem:[#allocation3 + $0x14] sm:$0xf] %vm1967_vm11, %v1882_v40  ;;  %v2031_v40 = vld [vmem:[#allocation2 + $0x1a2] sm:$0xff] }
 0x299   : > { %v2063_v37 = vpack.c.bf16 %v2031_v40, %v2031_v40 }
 0x29b   : > { %1674 = vrot.lane.b32.xlu1 %v1596_v28, %s2969_s26  ;;  %v1581_v28 = vld [vmem:[#allocation2 + $0x1a0] sm:$0xff] }
 0x29d   : > { %1899 = vrot.lane.b32.xlu0 %v1821_v59, %s2970_s27  ;;  %v1892_v25 = vpop.permute.xlu1 %1891  ;;  %2148 = vrot.lane.b32.xlu2 %v2058_v38, %s2971_s28  ;;  %v1838_v59 = vpack.c.bf16 %v1806_v11, %v1806_v11 }
 0x29e   : > { %1978 = vst.msk [vmem:[#allocation3 + $0x28] sm:$0xf] %vm1967_vm11, %v1892_v25  ;;  %v1613_v25 = vpack.c.bf16 %v1581_v28, %v1581_v28 }
 0x29f   : > { %v2105_v45 = vpop.permute.xlu0 %2104  ;;  %2203 = vst.msk [vmem:[#allocation3 + $0x28] sm:$0xf] %vm2192_vm12, %v2117_v55  ;;  %v1685_v10 = vpop.permute.xlu2 %1684 }
 0x2a0   : > { %2197 = vst.msk [vmem:[#allocation3 + $0x10] sm:$0xf] %vm2192_vm12, %v2105_v45 }
 0x2a1   : > { %1762 = vst.msk [vmem:[#allocation3 + $0x4c] sm:$0xf] %vm1742_vm10, %v1685_v10 }
 0x2a3   : > { %1901 = vrot.lane.b32.xlu1 %v1822_v61, %s2970_s27  ;;  %v2030_v61 = vld [vmem:[#allocation2 + $0x19a] sm:$0xff] }
 0x2a5   : > { %2126 = vrot.lane.b32.xlu0 %v3634_v58, %s2971_s28  ;;  %v2107_v0 = vpop.permute.xlu1 %2106  ;;  %1676 = vrot.lane.b32.xlu2 %v1597_v50, %s2969_s26 }
 0x2a6   : > { %2198 = vst.msk [vmem:[#allocation3 + $0x14] sm:$0xf] %vm2192_vm12, %v2107_v0  ;;  %v2062_v0 = vpack.c.bf16 %v2030_v61, %v2030_v61 }
 0x2a7   : > { %v2119_v42 = vpop.permute.xlu0 %2118  ;;  %v1908_v6 = vpop.permute.xlu2 %1907 }
 0x2a8   : > { %2204 = vst.msk [vmem:[#allocation3 + $0x2c] sm:$0xf] %vm2192_vm12, %v2119_v42 }
 0x2ab   : > { %1478 = vrot.lane.b32.xlu1 %v2059_v56, %s2968_s25 }
 0x2ad   : > { %1692 = vrot.lane.b32.xlu0 %v1605_v35, %s2969_s26  ;;  %v1683_v17 = vpop.permute.xlu1 %1682  ;;  %v2913_v58 = vld [vmem:[#allocation3 + $0x10] sm:$0xff]  ;;  %2124 = vrot.lane.b32.xlu2 %v2046_v16, %s2971_s28 }
 0x2ae   : > { %1761 = vst.msk [vmem:[#allocation3 + $0x48] sm:$0xf] %vm1742_vm10, %v1683_v17  ;;  %2893 = vmatmul.msk.bf16.gmra.mxu0 %vm2357_vm13, %v2913_v58 }
 0x2af   : > { %v1695_v33 = vpop.permute.xlu0 %1694  ;;  %v2916_v41 = vld [vmem:[#allocation3 + $0x28] sm:$0xff]  ;;  %1986 = vst.msk [vmem:[#allocation3 + $0x48] sm:$0xf] %vm1967_vm11, %v1908_v6  ;;  %v1922_v63 = vpop.permute.xlu2 %1921 }
 0x2b0   : > { %1767 = vst.msk [vmem:[#allocation3 + $0x60] sm:$0xf] %vm1742_vm10, %v1695_v33  ;;  %2896 = vmatmul.msk.bf16.gmra.mxu1 %vm2357_vm13, %v2916_v41 }
 0x2b3   : > { %1702 = vrot.lane.b32.xlu1 %v1610_v49, %s2969_s26 }
 0x2b5   : > { %1915 = vrot.lane.b32.xlu0 %v1829_v57, %s2970_s27  ;;  %v1697_v2 = vpop.permute.xlu1 %1696  ;;  %1690 = vrot.lane.b32.xlu2 %v1604_v30, %s2969_s26 }
 0x2b6   : > { %1768 = vst.msk [vmem:[#allocation3 + $0x64] sm:$0xf] %vm1742_vm10, %v1697_v2 }
 0x2b7   : > { %v1910_v34 = vpop.permute.xlu0 %1909  ;;  %1993 = vst.msk [vmem:[#allocation3 + $0x64] sm:$0xf] %vm1967_vm11, %v1922_v63  ;;  %v2145_v60 = vpop.permute.xlu2 %2144 }
 0x2b8   : > { %1987 = vst.msk [vmem:[#allocation3 + $0x4c] sm:$0xf] %vm1967_vm11, %v1910_v34 }
 0x2bb   : > { %1917 = vrot.lane.b32.xlu1 %v1830_v12, %s2970_s27 }
 0x2bd   : > { %1929 = vrot.lane.b32.xlu0 %v1836_v53, %s2970_s27  ;;  %v1920_v27 = vpop.permute.xlu1 %1919  ;;  %1704 = vrot.lane.b32.xlu2 %v1611_v21, %s2969_s26 }
 0x2be   : > { %1992 = vst.msk [vmem:[#allocation3 + $0x60] sm:$0xf] %vm1967_vm11, %v1920_v27 }
 0x2bf   : > { %v2133_v8 = vpop.permute.xlu0 %2132  ;;  %2217 = vst.msk [vmem:[#allocation3 + $0x60] sm:$0xf] %vm2192_vm12, %v2145_v60  ;;  %v1661_v9 = vpop.permute.xlu2 %1660 }
 0x2c0   : > { %2211 = vst.msk [vmem:[#allocation3 + $0x48] sm:$0xf] %vm2192_vm12, %v2133_v8 }
 0x2c1   : > { %1750 = vst.msk [vmem:[#allocation3 + $0x1c] sm:$0xf] %vm1742_vm10, %v1661_v9 }
 0x2c3   : > { %2140 = vrot.lane.b32.xlu1 %v3677_v15, %s2971_s28 }
 0x2c5   : > { %2152 = vrot.lane.b32.xlu0 %v2060_v18, %s2971_s28  ;;  %v2135_v36 = vpop.permute.xlu1 %2134  ;;  %1927 = vrot.lane.b32.xlu2 %v1835_v4, %s2970_s27 }
 0x2c6   : > { %2212 = vst.msk [vmem:[#allocation3 + $0x4c] sm:$0xf] %vm2192_vm12, %v2135_v36 }
 0x2c7   : > { %v2147_v23 = vpop.permute.xlu0 %2146  ;;  %v1884_v52 = vpop.permute.xlu2 %1883 }
 0x2c8   : > { %2218 = vst.msk [vmem:[#allocation3 + $0x64] sm:$0xf] %vm2192_vm12, %v2147_v23 }
 0x2cb   : > { %2154 = vrot.lane.b32.xlu1 %v2061_v47, %s2971_s28 }
 0x2cd   : > { %1482 = vrot.lane.b32.xlu0 %v2061_v47, %s2968_s25  ;;  %v1659_v15 = vpop.permute.xlu1 %1658  ;;  %v2920_v46 = vld [vmem:[#allocation3 + $0x48] sm:$0xff]  ;;  %2142 = vrot.lane.b32.xlu2 %v2055_v54, %s2971_s28 }
 0x2ce   : > { %1749 = vst.msk [vmem:[#allocation3 + $0x18] sm:$0xf] %vm1742_vm10, %v1659_v15  ;;  %2900 = vmatmul.msk.bf16.gmra.mxu2 %vm2357_vm13, %v2920_v46 }
 0x2cf   : > { %v1671_v32 = vpop.permute.xlu0 %1670  ;;  %v2923_v56 = vld [vmem:[#allocation3 + $0x60] sm:$0xff]  ;;  %1974 = vst.msk [vmem:[#allocation3 + $0x18] sm:$0xf] %vm1967_vm11, %v1884_v52  ;;  %v1898_v48 = vpop.permute.xlu2 %1897 }
 0x2d0   : > { %1755 = vst.msk [vmem:[#allocation3 + $0x30] sm:$0xf] %vm1742_vm10, %v1671_v32  ;;  %2903 = vmatmul.msk.bf16.vlgmr.msra.gmra.mxu3 %vm2357_vm13, %v2923_v56 }
 0x2d3   : > { %1706 = vrot.lane.b32.xlu1 %v1612_v3, %s2969_s26 }
 0x2d5   : > { %1931 = vrot.lane.b32.xlu0 %v1837_v62, %s2970_s27  ;;  %v1673_v29 = vpop.permute.xlu1 %1672  ;;  %1480 = vrot.lane.b32.xlu2 %v2060_v18, %s2968_s25 }
 0x2d6   : > { %1756 = vst.msk [vmem:[#allocation3 + $0x34] sm:$0xf] %vm1742_vm10, %v1673_v29 }
 0x2d7   : > { %v1886_v55 = vpop.permute.xlu0 %1885  ;;  %1981 = vst.msk [vmem:[#allocation3 + $0x34] sm:$0xf] %vm1967_vm11, %v1898_v48  ;;  %v2121_v38 = vpop.permute.xlu2 %2120 }
 0x2d8   : > { %1975 = vst.msk [vmem:[#allocation3 + $0x1c] sm:$0xf] %vm1967_vm11, %v1886_v55 }
 0x2db   : > { %1933 = vrot.lane.b32.xlu1 %v1838_v59, %s2970_s27 }
 0x2dd   : > { %2158 = vrot.lane.b32.xlu0 %v2063_v37, %s2971_s28  ;;  %v1896_v1 = vpop.permute.xlu1 %1895  ;;  %1708 = vrot.lane.b32.xlu2 %v1613_v25, %s2969_s26  ;;  %v2419_v45 = vpop.f32.mrf.mxu0 }
 0x2de   : > { %1980 = vst.msk [vmem:[#allocation3 + $0x30] sm:$0xf] %vm1967_vm11, %v1896_v1  ;;  %v2603_v7 = vmul.f32 %v2419_v45, %v2419_v45  ;;  %v2532_v6 = vsel %vm2499_vm14, %v2419_v45, 0.0 }
 0x2df   : > { %v2109_v10 = vpop.permute.xlu0 %2108  ;;  %2500 = vst.msk [vmem:[%s3942_s11] sm:$0xff] %vm2499_vm14, %v2419_v45  ;;  %v1689_v50 = vpop.permute.xlu2 %1688 }
 0x2e0   : > { %2199 = vst.msk [vmem:[#allocation3 + $0x18] sm:$0xf] %vm2192_vm12, %v2109_v10  ;;  %v2635_v22 = vsel %vm2499_vm14, %v2603_v7, 0.0 }
 0x2e1   : > { %2205 = vst.msk [vmem:[#allocation3 + $0x30] sm:$0xf] %vm2192_vm12, %v2121_v38 }
 0x2e2   : > { %1764 = vst.msk [vmem:[#allocation3 + $0x54] sm:$0xf] %vm1742_vm10, %v1689_v50 }
 0x2e5   : > { %v2111_v13 = vpop.permute.xlu1 %2110  ;;  %2156 = vrot.lane.b32.xlu2 %v2062_v0, %s2971_s28  ;;  %v2421_v42 = vpop.f32.mrf.mxu0 }
 0x2e6   : > { %2200 = vst.msk [vmem:[#allocation3 + $0x1c] sm:$0xf] %vm2192_vm12, %v2111_v13  ;;  %v2533_v16 = vsel %vm2499_vm14, %v2421_v42, 0.0  ;;  %v2604_v31 = vmul.f32 %v2421_v42, %v2421_v42 }
 0x2e7   : > { %v2123_v35 = vpop.permute.xlu0 %2122  ;;  %2501 = vst.msk [vmem:[%s3942_s11 + $0x8] sm:$0xff] %vm2499_vm14, %v2421_v42  ;;  %v1912_v17 = vpop.permute.xlu2 %1911  ;;  %v2534_v58 = vadd.f32 %v2533_v16, %v2532_v6 }
 0x2e8   : > { %2206 = vst.msk [vmem:[#allocation3 + $0x34] sm:$0xf] %vm2192_vm12, %v2123_v35  ;;  %v2636_v39 = vsel %vm2499_vm14, %v2604_v31, 0.0 }
 0x2e9   : > { %v2637_v33 = vadd.f32 %v2636_v39, %v2635_v22 }
 0x2ed   : > { %v1687_v41 = vpop.permute.xlu1 %1686  ;;  %v2914_v49 = vld [vmem:[#allocation3 + $0x18] sm:$0xff] }
 0x2ee   : > { %1763 = vst.msk [vmem:[#allocation3 + $0x50] sm:$0xf] %vm1742_vm10, %v1687_v41  ;;  %2894 = vmatmul.msk.bf16.gmra.mxu0 %vm2357_vm13, %v2914_v49 }
 0x2ef   : > { %v1699_v63 = vpop.permute.xlu0 %1698  ;;  %v2917_v57 = vld [vmem:[#allocation3 + $0x30] sm:$0xff]  ;;  %1988 = vst.msk [vmem:[#allocation3 + $0x50] sm:$0xf] %vm1967_vm11, %v1912_v17  ;;  %v1926_v30 = vpop.permute.xlu2 %1925 }
 0x2f0   : > { %1769 = vst.msk [vmem:[#allocation3 + $0x68] sm:$0xf] %vm1742_vm10, %v1699_v63  ;;  %2897 = vmatmul.msk.bf16.gmra.mxu1 %vm2357_vm13, %v2917_v57 }
 0x2f5   : > { %v1701_v5 = vpop.permute.xlu1 %1700 }
 0x2f6   : > { %1770 = vst.msk [vmem:[#allocation3 + $0x6c] sm:$0xf] %vm1742_vm10, %v1701_v5 }
 0x2f7   : > { %v1914_v2 = vpop.permute.xlu0 %1913  ;;  %1995 = vst.msk [vmem:[#allocation3 + $0x6c] sm:$0xf] %vm1967_vm11, %v1926_v30  ;;  %v2149_v51 = vpop.permute.xlu2 %2148 }
 0x2f8   : > { %1989 = vst.msk [vmem:[#allocation3 + $0x54] sm:$0xf] %vm1967_vm11, %v1914_v2 }
 0x2fb   : > { %v2424_v24 = vpop.f32.mrf.mxu0 }
 0x2fc   : > { %2502 = vst.msk [vmem:[%s3942_s11 + $0x10] sm:$0xff] %vm2499_vm14, %v2424_v24  ;;  %v2535_v12 = vsel %vm2499_vm14, %v2424_v24, 0.0  ;;  %v2605_v60 = vmul.f32 %v2424_v24, %v2424_v24 }
 0x2fd   : > { %v1924_v34 = vpop.permute.xlu1 %1923  ;;  %v2536_v53 = vadd.f32 %v2535_v12, %v2534_v58  ;;  %v3973_v21 = vpop.f32.mrf.mxu1 }
 0x2fe   : > { %1994 = vst.msk [vmem:[#allocation3 + $0x68] sm:$0xf] %vm1967_vm11, %v1924_v34  ;;  %v2638_v27 = vsel %vm2499_vm14, %v2605_v60, 0.0 }
 0x2ff   : > { %v2137_v14 = vpop.permute.xlu0 %2136  ;;  %2508 = vst.msk [vmem:[%s3942_s11 + $0x40] sm:$0xff] %vm2499_vm14, %v3973_v21  ;;  %v1677_v20 = vpop.permute.xlu2 %1676  ;;  %v2639_v8 = vadd.f32 %v2638_v27, %v2637_v33 }
 0x300   : > { %2213 = vst.msk [vmem:[#allocation3 + $0x50] sm:$0xf] %vm2192_vm12, %v2137_v14 }
 0x301   : > { %2219 = vst.msk [vmem:[#allocation3 + $0x68] sm:$0xf] %vm2192_vm12, %v2149_v51 }
 0x302   : > { %1758 = vst.msk [vmem:[#allocation3 + $0x3c] sm:$0xf] %vm1742_vm10, %v1677_v20 }
 0x303   : > { %v2426_v9 = vpop.f32.mrf.mxu0 }
 0x304   : > { %2503 = vst.msk [vmem:[%s3942_s11 + $0x18] sm:$0xff] %vm2499_vm14, %v2426_v9  ;;  %v2537_v4 = vsel %vm2499_vm14, %v2426_v9, 0.0  ;;  %v2606_v44 = vmul.f32 %v2426_v9, %v2426_v9 }
 0x305   : > { %v2139_v18 = vpop.permute.xlu1 %2138  ;;  %v2538_v36 = vadd.f32 %v2537_v4, %v2536_v53  ;;  %v3986_v26 = vpop.f32.mrf.mxu1 }
 0x306   : > { %2214 = vst.msk [vmem:[#allocation3 + $0x54] sm:$0xf] %vm2192_vm12, %v2139_v18  ;;  %v2640_v23 = vsel %vm2499_vm14, %v2606_v44, 0.0 }
 0x307   : > { %v2151_v47 = vpop.permute.xlu0 %2150  ;;  %2509 = vst.msk [vmem:[%s3942_s11 + $0x48] sm:$0xff] %vm2499_vm14, %v3986_v26  ;;  %v2125_v52 = vpop.permute.xlu2 %2124  ;;  %v2641_v54 = vadd.f32 %v2640_v23, %v2639_v8 }
 0x308   : > { %2220 = vst.msk [vmem:[#allocation3 + $0x6c] sm:$0xf] %vm2192_vm12, %v2151_v47  ;;  %v2611_v47 = vmul.f32 %v3973_v21, %v3973_v21 }
 0x30d   : > { %v1675_v43 = vpop.permute.xlu1 %1674  ;;  %v2921_v15 = vld [vmem:[#allocation3 + $0x50] sm:$0xff] }
 0x30e   : > { %1757 = vst.msk [vmem:[#allocation3 + $0x38] sm:$0xf] %vm1742_vm10, %v1675_v43  ;;  %2901 = vmatmul.msk.bf16.gmra.mxu2 %vm2357_vm13, %v2921_v15 }
 0x30f   : > { %v1900_v46 = vpop.permute.xlu0 %1899  ;;  %v2924_v19 = vld [vmem:[#allocation3 + $0x68] sm:$0xff]  ;;  %v1691_v32 = vpop.permute.xlu2 %1690 }
 0x310   : > { %1982 = vst.msk [vmem:[#allocation3 + $0x38] sm:$0xf] %vm1967_vm11, %v1900_v46  ;;  %2904 = vmatmul.msk.bf16.gmra.mxu3 %vm2357_vm13, %v2924_v19  ;;  %v2547_v46 = vsel %vm2499_vm14, %v3973_v21, 0.0  ;;  %v2612_v19 = vmul.f32 %v3986_v26, %v3986_v26 }
 0x311   : > { %2207 = vst.msk [vmem:[#allocation3 + $0x38] sm:$0xf] %vm2192_vm12, %v2125_v52 }
 0x312   : > { %1765 = vst.msk [vmem:[#allocation3 + $0x58] sm:$0xf] %vm1742_vm10, %v1691_v32  ;;  %v2652_v21 = vsel %vm2499_vm14, %v2612_v19, 0.0 }
 0x313   : > { %v3999_v56 = vpop.f32.mrf.mxu2 }
 0x314   : > { %2516 = vst.msk [vmem:[%s3942_s11 + $0x80] sm:$0xff] %vm2499_vm14, %v3999_v56 }
 0x315   : > { %v1902_v3 = vpop.permute.xlu1 %1901 }
 0x316   : > { %1983 = vst.msk [vmem:[#allocation3 + $0x3c] sm:$0xf] %vm1967_vm11, %v1902_v3 }
 0x317   : > { %v2127_v48 = vpop.permute.xlu0 %2126  ;;  %v1705_v62 = vpop.permute.xlu2 %1704 }
 0x318   : > { %2208 = vst.msk [vmem:[#allocation3 + $0x3c] sm:$0xf] %vm2192_vm12, %v2127_v48 }
 0x31b   : > { %v4006_v11 = vpop.f32.mrf.mxu2 }
 0x31c   : > { %2517 = vst.msk [vmem:[%s3942_s11 + $0x88] sm:$0xff] %vm2499_vm14, %v4006_v11 }
 0x31d   : > { %v1479_v29 = vpop.permute.xlu1 %1478 }
 0x31e   : > { %1546 = vst.msk [vmem:[#allocation3 + $0x74] sm:$0xf] %vm1516_vm8, %v1479_v29  ;;  %v2549_v29 = vsel %vm2499_vm14, %v3986_v26, 0.0 }
 0x31f   : > { %v1693_v40 = vpop.permute.xlu0 %1692  ;;  %v2918_v28 = vld [vmem:[#allocation3 + $0x38] sm:$0xff]  ;;  %1772 = vst.msk [vmem:[#allocation3 + $0x74] sm:$0xf] %vm1742_vm10, %v1705_v62  ;;  %v1928_v55 = vpop.permute.xlu2 %1927  ;;  %v2650_v62 = vsel %vm2499_vm14, %v2611_v47, 0.0 }
 0x320   : > { %1766 = vst.msk [vmem:[#allocation3 + $0x5c] sm:$0xf] %vm1742_vm10, %v1693_v40  ;;  %2898 = vmatmul.msk.bf16.gmra.mxu1 %vm2357_vm13, %v2918_v28 }
 0x325   : > { %v1703_v59 = vpop.permute.xlu1 %1702 }
 0x326   : > { %1771 = vst.msk [vmem:[#allocation3 + $0x70] sm:$0xf] %vm1742_vm10, %v1703_v59 }
 0x327   : > { %v1916_v38 = vpop.permute.xlu0 %1915  ;;  %1996 = vst.msk [vmem:[#allocation3 + $0x70] sm:$0xf] %vm1967_vm11, %v1928_v55  ;;  %v2143_v37 = vpop.permute.xlu2 %2142 }
 0x328   : > { %1990 = vst.msk [vmem:[#allocation3 + $0x58] sm:$0xf] %vm1967_vm11, %v1916_v38 }
 0x32b   : > { %v2429_v25 = vpop.f32.mrf.mxu0 }
 0x32c   : > { %2504 = vst.msk [vmem:[%s3942_s11 + $0x20] sm:$0xff] %vm2499_vm14, %v2429_v25  ;;  %v2539_v45 = vsel %vm2499_vm14, %v2429_v25, 0.0  ;;  %v2607_v61 = vmul.f32 %v2429_v25, %v2429_v25 }
 0x32d   : > { %v1918_v1 = vpop.permute.xlu1 %1917  ;;  %v2540_v10 = vadd.f32 %v2539_v45, %v2538_v36  ;;  %v4022_v50 = vpop.f32.mrf.mxu1 }
 0x32e   : > { %1991 = vst.msk [vmem:[#allocation3 + $0x5c] sm:$0xf] %vm1967_vm11, %v1918_v1  ;;  %v2642_v0 = vsel %vm2499_vm14, %v2607_v61, 0.0  ;;  %v2613_v40 = vmul.f32 %v4022_v50, %v4022_v50  ;;  %v2551_v59 = vsel %vm2499_vm14, %v4022_v50, 0.0 }
 0x32f   : > { %v1930_v7 = vpop.permute.xlu0 %1929  ;;  %2510 = vst.msk [vmem:[%s3942_s11 + $0x50] sm:$0xff] %vm2499_vm14, %v4022_v50  ;;  %v1481_v13 = vpop.permute.xlu2 %1480  ;;  %v2643_v42 = vadd.f32 %v2642_v0, %v2641_v54 }
 0x330   : > { %1997 = vst.msk [vmem:[#allocation3 + $0x74] sm:$0xf] %vm1967_vm11, %v1930_v7  ;;  %v2654_v1 = vsel %vm2499_vm14, %v2613_v40, 0.0 }
 0x331   : > { %2216 = vst.msk [vmem:[#allocation3 + $0x5c] sm:$0xf] %vm2192_vm12, %v2143_v37 }
 0x332   : > { %1547 = vst.msk [vmem:[#allocation3 + $0x78] sm:$0xf] %vm1516_vm8, %v1481_v13 }
 0x333   : > { %v2431_v6 = vpop.f32.mrf.mxu0 }
 0x334   : > { %2505 = vst.msk [vmem:[%s3942_s11 + $0x28] sm:$0xff] %vm2499_vm14, %v2431_v6  ;;  %v2541_v16 = vsel %vm2499_vm14, %v2431_v6, 0.0  ;;  %v2608_v31 = vmul.f32 %v2431_v6, %v2431_v6 }
 0x335   : > { %v2141_v35 = vpop.permute.xlu1 %2140  ;;  %v2542_v17 = vadd.f32 %v2541_v16, %v2540_v10  ;;  %v4035_v58 = vpop.f32.mrf.mxu1 }
 0x336   : > { %2215 = vst.msk [vmem:[#allocation3 + $0x58] sm:$0xf] %vm2192_vm12, %v2141_v35  ;;  %v2644_v22 = vsel %vm2499_vm14, %v2608_v31, 0.0  ;;  %v2614_v38 = vmul.f32 %v4035_v58, %v4035_v58  ;;  %v2553_v26 = vsel %vm2499_vm14, %v4035_v58, 0.0 }
 0x337   : > { %v2153_v39 = vpop.permute.xlu0 %2152  ;;  %2511 = vst.msk [vmem:[%s3942_s11 + $0x58] sm:$0xff] %vm2499_vm14, %v4035_v58  ;;  %v2645_v33 = vadd.f32 %v2644_v22, %v2643_v42  ;;  %v1709_v41 = vpop.permute.xlu2 %1708 }
 0x338   : > { %2221 = vst.msk [vmem:[#allocation3 + $0x70] sm:$0xf] %vm2192_vm12, %v2153_v39  ;;  %v2656_v0 = vsel %vm2499_vm14, %v2614_v38, 0.0 }
 0x33d   : > { %v2155_v49 = vpop.permute.xlu1 %2154  ;;  %v2922_v63 = vld [vmem:[#allocation3 + $0x58] sm:$0xff] }
 0x33e   : > { %2222 = vst.msk [vmem:[#allocation3 + $0x74] sm:$0xf] %vm2192_vm12, %v2155_v49  ;;  %2902 = vmatmul.msk.bf16.gmra.mxu2 %vm2357_vm13, %v2922_v63 }
 0x33f   : > { %v1483_v57 = vpop.permute.xlu0 %1482  ;;  %v2157_v2 = vpop.permute.xlu2 %2156 }
 0x340   : > { %1548 = vst.msk [vmem:[#allocation3 + $0x7c] sm:$0xf] %vm1516_vm8, %v1483_v57 }
 0x341   : > { %1774 = vst.msk [vmem:[#allocation3 + $0x7c] sm:$0xf] %vm1742_vm10, %v1709_v41 }
 0x345   : > { %v1707_v30 = vpop.permute.xlu1 %1706  ;;  %v2925_v5 = vld [vmem:[#allocation3 + $0x70] sm:$0xff] }
 0x346   : > { %1773 = vst.msk [vmem:[#allocation3 + $0x78] sm:$0xf] %vm1742_vm10, %v1707_v30  ;;  %2905 = vmatmul.msk.bf16.gmra.mxu3 %vm2357_vm13, %v2925_v5 }
 0x347   : > { %v1932_v51 = vpop.permute.xlu0 %1931 }
 0x348   : > { %1998 = vst.msk [vmem:[#allocation3 + $0x78] sm:$0xf] %vm1967_vm11, %v1932_v51  ;;  %v2619_v51 = vmul.f32 %v3999_v56, %v3999_v56 }
 0x349   : > { %2223 = vst.msk [vmem:[#allocation3 + $0x78] sm:$0xf] %vm2192_vm12, %v2157_v2 }
 0x34d   : > { %v1934_v24 = vpop.permute.xlu1 %1933 }
 0x34e   : > { %1999 = vst.msk [vmem:[#allocation3 + $0x7c] sm:$0xf] %vm1967_vm11, %v1934_v24 }
 0x34f   : > { %v2159_v34 = vpop.permute.xlu0 %2158 }
 0x350   : > { %2224 = vst.msk [vmem:[#allocation3 + $0x7c] sm:$0xf] %vm2192_vm12, %v2159_v34 }
 0x351   : > { %v4052_v12 = vpop.f32.mrf.mxu2 }
 0x352   : > { %2518 = vst.msk [vmem:[%s3942_s11 + $0x90] sm:$0xff] %vm2499_vm14, %v4052_v12  ;;  %v2621_v47 = vmul.f32 %v4052_v12, %v4052_v12 }
 0x353   : > { %v4057_v60 = vpop.f32.mrf.mxu3 }
 0x354   : > { %2524 = vst.msk [vmem:[%s3942_s11 + $0xc0] sm:$0xff] %vm2499_vm14, %v4057_v60 }
 0x357   : > { %v2926_v53 = vld [vmem:[#allocation3 + $0x78] sm:$0xff] }
 0x358   : > { %2906 = vmatmul.msk.bf16.gmra.mxu3 %vm2357_vm13, %v2926_v53 }
 0x359   : > { %v4063_v27 = vpop.f32.mrf.mxu2 }
 0x35a   : > { %2519 = vst.msk [vmem:[%s3942_s11 + $0x98] sm:$0xff] %vm2499_vm14, %v4063_v27 }
 0x35b   : > { %v4068_v14 = vpop.f32.mrf.mxu3 }
 0x35c   : > { %2525 = vst.msk [vmem:[%s3942_s11 + $0xc8] sm:$0xff] %vm2499_vm14, %v4068_v14 }
 0x36b   : > { %v2434_v20 = vpop.f32.mrf.mxu0 }
 0x36c   : > { %2506 = vst.msk [vmem:[%s3942_s11 + $0x30] sm:$0xff] %vm2499_vm14, %v2434_v20  ;;  %v2543_v8 = vsel %vm2499_vm14, %v2434_v20, 0.0  ;;  %v2609_v9 = vmul.f32 %v2434_v20, %v2434_v20 }
 0x36d   : > { %v2544_v18 = vadd.f32 %v2543_v8, %v2542_v17  ;;  %v2449_v4 = vpop.f32.mrf.mxu1  ;;  %v2563_v8 = vsel %vm2499_vm14, %v3999_v56, 0.0 }
 0x36e   : > { %v2646_v44 = vsel %vm2499_vm14, %v2609_v9, 0.0  ;;  %2512 = vst.msk [vmem:[%s3942_s11 + $0x60] sm:$0xff] %vm2499_vm14, %v2449_v4  ;;  %v2615_v45 = vmul.f32 %v2449_v4, %v2449_v4  ;;  %v2555_v50 = vsel %vm2499_vm14, %v2449_v4, 0.0  ;;  %v2620_v9 = vmul.f32 %v4006_v11, %v4006_v11 }
 0x36f   : > { %v2647_v36 = vadd.f32 %v2646_v44, %v2645_v33 }
 0x370   : > { %v2658_v6 = vsel %vm2499_vm14, %v2615_v45, 0.0  ;;  %v2668_v56 = vsel %vm2499_vm14, %v2620_v9, 0.0 }
 0x373   : > { %v2436_v23 = vpop.f32.mrf.mxu0 }
 0x374   : > { %2507 = vst.msk [vmem:[%s3942_s11 + $0x38] sm:$0xff] %vm2499_vm14, %v2436_v23  ;;  %v2545_v52 = vsel %vm2499_vm14, %v2436_v23, 0.0  ;;  %v2610_v54 = vmul.f32 %v2436_v23, %v2436_v23  ;;  %v2565_v23 = vsel %vm2499_vm14, %v4006_v11, 0.0  ;;  %v2569_v11 = vsel %vm2499_vm14, %v4063_v27, 0.0 }
 0x375   : > { %v2546_v43 = vadd.f32 %v2545_v52, %v2544_v18  ;;  %v2451_v15 = vpop.f32.mrf.mxu1 }
 0x376   : > { %v2648_v32 = vsel %vm2499_vm14, %v2610_v54, 0.0  ;;  %2513 = vst.msk [vmem:[%s3942_s11 + $0x68] sm:$0xff] %vm2499_vm14, %v2451_v15  ;;  %v2616_v7 = vmul.f32 %v2451_v15, %v2451_v15  ;;  %v2557_v35 = vsel %vm2499_vm14, %v2451_v15, 0.0  ;;  %v2622_v15 = vmul.f32 %v4063_v27, %v4063_v27 }
 0x377   : > { %v2548_v3 = vadd.f32 %v2547_v46, %v2546_v43  ;;  %v2649_v48 = vadd.f32 %v2648_v32, %v2647_v36  ;;  %v2666_v36 = vsel %vm2499_vm14, %v2619_v51, 0.0  ;;  %v2567_v43 = vsel %vm2499_vm14, %v4052_v12, 0.0 }
 0x378   : > { %v2660_v17 = vsel %vm2499_vm14, %v2616_v7, 0.0  ;;  %v2670_v32 = vsel %vm2499_vm14, %v2621_v47, 0.0  ;;  %v2627_v7 = vmul.f32 %v4057_v60, %v4057_v60 }
 0x379   : > { %v2550_v28 = vadd.f32 %v2549_v29, %v2548_v3  ;;  %v2651_v55 = vadd.f32 %v2650_v62, %v2649_v48  ;;  %v2672_v62 = vsel %vm2499_vm14, %v2622_v15, 0.0 }
 0x37b   : > { %v2552_v37 = vadd.f32 %v2551_v59, %v2550_v28  ;;  %v2653_v25 = vadd.f32 %v2652_v21, %v2651_v55 }
 0x37d   : > { %v2655_v61 = vadd.f32 %v2654_v1, %v2653_v25  ;;  %v2554_v10 = vadd.f32 %v2553_v26, %v2552_v37 }
 0x37f   : > { %v2556_v13 = vadd.f32 %v2555_v50, %v2554_v10  ;;  %v2657_v42 = vadd.f32 %v2656_v0, %v2655_v61 }
 0x381   : > { %v2558_v16 = vadd.f32 %v2557_v35, %v2556_v13  ;;  %v2659_v31 = vadd.f32 %v2658_v6, %v2657_v42 }
 0x383   : > { %v2661_v58 = vadd.f32 %v2660_v17, %v2659_v31  ;;  %v2628_v31 = vmul.f32 %v4068_v14, %v4068_v14 }
 0x391   : > { %v2469_v22 = vpop.f32.mrf.mxu2 }
 0x392   : > { %2520 = vst.msk [vmem:[%s3942_s11 + $0xa0] sm:$0xff] %vm2499_vm14, %v2469_v22  ;;  %v2623_v40 = vmul.f32 %v2469_v22, %v2469_v22  ;;  %v2571_v55 = vsel %vm2499_vm14, %v2469_v22, 0.0 }
 0x393   : > { %v4111_v39 = vpop.f32.mrf.mxu3 }
 0x394   : > { %2526 = vst.msk [vmem:[%s3942_s11 + $0xd0] sm:$0xff] %vm2499_vm14, %v4111_v39  ;;  %v2674_v21 = vsel %vm2499_vm14, %v2623_v40, 0.0 }
 0x399   : > { %v2471_v33 = vpop.f32.mrf.mxu2 }
 0x39a   : > { %2521 = vst.msk [vmem:[%s3942_s11 + $0xa8] sm:$0xff] %vm2499_vm14, %v2471_v33  ;;  %v2624_v59 = vmul.f32 %v2471_v33, %v2471_v33  ;;  %v2573_v27 = vsel %vm2499_vm14, %v2471_v33, 0.0  ;;  %v2682_v33 = vsel %vm2499_vm14, %v2627_v7, 0.0 }
 0x39b   : > { %v4118_v41 = vpop.f32.mrf.mxu3 }
 0x39c   : > { %2527 = vst.msk [vmem:[%s3942_s11 + $0xd8] sm:$0xff] %vm2499_vm14, %v4118_v41  ;;  %v2676_v26 = vsel %vm2499_vm14, %v2624_v59, 0.0 }
 0x39d   : > { %v2454_v49 = vpop.f32.mrf.mxu1 }
 0x39e   : > { %2514 = vst.msk [vmem:[%s3942_s11 + $0x70] sm:$0xff] %vm2499_vm14, %v2454_v49  ;;  %v2617_v63 = vmul.f32 %v2454_v49, %v2454_v49  ;;  %v2559_v57 = vsel %vm2499_vm14, %v2454_v49, 0.0  ;;  %v2581_v49 = vsel %vm2499_vm14, %v4068_v14, 0.0  ;;  %v2585_v14 = vsel %vm2499_vm14, %v4118_v41, 0.0 }
 0x39f   : > { %v2560_v5 = vadd.f32 %v2559_v57, %v2558_v16  ;;  %v2579_v16 = vsel %vm2499_vm14, %v4057_v60, 0.0  ;;  %v2684_v60 = vsel %vm2499_vm14, %v2628_v31, 0.0 }
 0x3a0   : > { %v2662_v30 = vsel %vm2499_vm14, %v2617_v63, 0.0  ;;  %v2629_v63 = vmul.f32 %v4111_v39, %v4111_v39 }
 0x3a1   : > { %v2663_v53 = vadd.f32 %v2662_v30, %v2661_v58 }
 0x3a5   : > { %v2456_v2 = vpop.f32.mrf.mxu1 }
 0x3a6   : > { %2515 = vst.msk [vmem:[%s3942_s11 + $0x78] sm:$0xff] %vm2499_vm14, %v2456_v2  ;;  %v2561_v24 = vsel %vm2499_vm14, %v2456_v2, 0.0  ;;  %v2618_v34 = vmul.f32 %v2456_v2, %v2456_v2  ;;  %v2630_v2 = vmul.f32 %v4118_v41, %v4118_v41 }
 0x3a7   : > { %v2562_v20 = vadd.f32 %v2561_v24, %v2560_v5  ;;  %v2583_v5 = vsel %vm2499_vm14, %v4111_v39, 0.0 }
 0x3a8   : > { %v2664_v18 = vsel %vm2499_vm14, %v2618_v34, 0.0  ;;  %v2688_v9 = vsel %vm2499_vm14, %v2630_v2, 0.0 }
 0x3a9   : > { %v2564_v4 = vadd.f32 %v2563_v8, %v2562_v20  ;;  %v2665_v44 = vadd.f32 %v2664_v18, %v2663_v53  ;;  %v2686_v53 = vsel %vm2499_vm14, %v2629_v63, 0.0 }
 0x3ab   : > { %v2566_v52 = vadd.f32 %v2565_v23, %v2564_v4  ;;  %v2667_v54 = vadd.f32 %v2666_v36, %v2665_v44 }
 0x3ad   : > { %v2568_v46 = vadd.f32 %v2567_v43, %v2566_v52  ;;  %v2669_v19 = vadd.f32 %v2668_v56, %v2667_v54 }
 0x3af   : > { %v2671_v3 = vadd.f32 %v2670_v32, %v2669_v19  ;;  %v2570_v48 = vadd.f32 %v2569_v11, %v2568_v46 }
 0x3b1   : > { %v2673_v29 = vadd.f32 %v2672_v62, %v2671_v3  ;;  %v2572_v12 = vadd.f32 %v2571_v55, %v2570_v48 }
 0x3b3   : > { %v2675_v37 = vadd.f32 %v2674_v21, %v2673_v29  ;;  %v2574_v1 = vadd.f32 %v2573_v27, %v2572_v12 }
 0x3b5   : > { %v2677_v10 = vadd.f32 %v2676_v26, %v2675_v37 }
 0x3c1   : > { %v2474_v28 = vpop.f32.mrf.mxu2 }
 0x3c2   : > { %2522 = vst.msk [vmem:[%s3942_s11 + $0xb0] sm:$0xff] %vm2499_vm14, %v2474_v28  ;;  %v2625_v38 = vmul.f32 %v2474_v28, %v2474_v28  ;;  %v2575_v25 = vsel %vm2499_vm14, %v2474_v28, 0.0 }
 0x3c3   : > { %v2576_v61 = vadd.f32 %v2575_v25, %v2574_v1 }
 0x3c4   : > { %v2678_v45 = vsel %vm2499_vm14, %v2625_v38, 0.0 }
 0x3c5   : > { %v2679_v6 = vadd.f32 %v2678_v45, %v2677_v10 }
 0x3c9   : > { %v2476_v0 = vpop.f32.mrf.mxu2  ;;  %v2489_v50 = vpop.f32.mrf.mxu3 }
 0x3ca   : > { %2523 = vst.msk [vmem:[%s3942_s11 + $0xb8] sm:$0xff] %vm2499_vm14, %v2476_v0  ;;  %v2577_v13 = vsel %vm2499_vm14, %v2476_v0, 0.0  ;;  %v2626_v42 = vmul.f32 %v2476_v0, %v2476_v0  ;;  %v2631_v4 = vmul.f32 %v2489_v50, %v2489_v50  ;;  %v2587_v44 = vsel %vm2499_vm14, %v2489_v50, 0.0 }
 0x3cb   : > { %v2578_v35 = vadd.f32 %v2577_v13, %v2576_v61  ;;  %2528 = vst.msk [vmem:[%s3942_s11 + $0xe0] sm:$0xff] %vm2499_vm14, %v2489_v50 }
 0x3cc   : > { %v2680_v17 = vsel %vm2499_vm14, %v2626_v42, 0.0  ;;  %v2690_v23 = vsel %vm2499_vm14, %v2631_v4, 0.0 }
 0x3cd   : > { %v2580_v58 = vadd.f32 %v2579_v16, %v2578_v35  ;;  %v2681_v22 = vadd.f32 %v2680_v17, %v2679_v6 }
 0x3cf   : > { %v2582_v57 = vadd.f32 %v2581_v49, %v2580_v58  ;;  %v2683_v30 = vadd.f32 %v2682_v33, %v2681_v22 }
 0x3d1   : > { %v2685_v51 = vadd.f32 %v2684_v60, %v2683_v30  ;;  %v2584_v24 = vadd.f32 %v2583_v5, %v2582_v57  ;;  %v2491_v34 = vpop.f32.mrf.mxu3 }
 0x3d2   : > { %2529 = vst.msk [vmem:[%s3942_s11 + $0xe8] sm:$0xff] %vm2499_vm14, %v2491_v34  ;;  %v2632_v47 = vmul.f32 %v2491_v34, %v2491_v34  ;;  %v2589_v54 = vsel %vm2499_vm14, %v2491_v34, 0.0 }
 0x3d3   : > { %v2586_v20 = vadd.f32 %v2585_v14, %v2584_v24  ;;  %v2687_v8 = vadd.f32 %v2686_v53, %v2685_v51 }
 0x3d4   : > { %v2692_v15 = vsel %vm2499_vm14, %v2632_v47, 0.0 }
 0x3d5   : > { %v2689_v18 = vadd.f32 %v2688_v9, %v2687_v8  ;;  %v2588_v36 = vadd.f32 %v2587_v44, %v2586_v20 }
 0x3d7   : > { %v2691_v41 = vadd.f32 %v2690_v23, %v2689_v18  ;;  %v2590_v43 = vadd.f32 %v2589_v54, %v2588_v36 }
 0x3d9   : > { %v2693_v19 = vadd.f32 %v2692_v15, %v2691_v41 }
 0x3db   : > { %v2494_v39 = vpop.f32.mrf.mxu3 }
 0x3dc   : > { %2530 = vst.msk [vmem:[%s3942_s11 + $0xf0] sm:$0xff] %vm2499_vm14, %v2494_v39  ;;  %v2633_v52 = vmul.f32 %v2494_v39, %v2494_v39  ;;  %v2591_v56 = vsel %vm2499_vm14, %v2494_v39, 0.0 }
 0x3dd   : > { %v2592_v32 = vadd.f32 %v2591_v56, %v2590_v43 }
 0x3de   : > { %v2694_v46 = vsel %vm2499_vm14, %v2633_v52, 0.0 }
 0x3df   : > { %v2695_v62 = vadd.f32 %v2694_v46, %v2693_v19 }
 0x3e3   : > { %v2496_v11 = vpop.f32.mrf.mxu3 }
 0x3e4   : > { %2531 = vst.msk [vmem:[%s3942_s11 + $0xf8] sm:$0xff] %vm2499_vm14, %v2496_v11  ;;  %v2593_v3 = vsel %vm2499_vm14, %v2496_v11, 0.0  ;;  %v2634_v48 = vmul.f32 %v2496_v11, %v2496_v11 }
 0x3e5   : > { %v2594_v29 = vadd.f32 %v2593_v3, %v2592_v32 }
 0x3e6   : > { %v2696_v40 = vsel %vm2499_vm14, %v2634_v48, 0.0 }
 0x3e7   : > { %v2595_v28 = vrot.slane %v2594_v29, 4  ;;  %v2697_v55 = vadd.f32 %v2696_v40, %v2695_v62 }
 0x3e9   : > { %v2596_v12 = vadd.f32 %v2595_v28, %v2594_v29  ;;  %v2698_v21 = vrot.slane %v2697_v55, 4 }
 0x3eb   : > { %v2597_v59 = vrot.slane %v2596_v12, 2  ;;  %v2699_v38 = vadd.f32 %v2698_v21, %v2697_v55 }
 0x3ed   : > { %v2598_v37 = vadd.f32 %v2597_v59, %v2596_v12  ;;  %v2700_v27 = vrot.slane %v2699_v38, 2 }
 0x3ef   : > { %v2599_v25 = vrot.slane %v2598_v37, 1  ;;  %v2701_v1 = vadd.f32 %v2700_v27, %v2699_v38 }
 0x3f1   : > { %v2600_v26 = vadd.f32 %v2599_v25, %v2598_v37  ;;  %v2702_v45 = vrot.slane %v2701_v1, 1 }
 0x3f3   : > { %2602 = vst.msk [vmem:[%s211_s14] sm:$0x1] %vm2601_vm15, %v2600_v26  ;;  %v2703_v61 = vadd.f32 %v2702_v45, %v2701_v1 }
 0x3f5   : > { %2704 = vst.msk [vmem:[%s214_s19] sm:$0x1] %vm2601_vm15, %v2703_v61 }
 0x3f6 PF: > { %s15_s15 = sadd.s32 1, %s2961_s15  }
 0x3f7   : > { %p12_p4 = scmp.ge.s32.totalorder %s15_s15, 4  }
 0x3f9   :  { %14 = sbr.rel (!%p12_p4) target bundleno = 1 (0x1), region = 85 }

// kernel: double_conv.4
= control target key start
LH: loop header
LB: loop body
LE: loop exit
PB: predicated region body
PF: predicated region fallthrough
CT: control target
= control target key end

     0   :  { %s3199_s21 = smov 0   ;;  %s4540_s0 = inlined_call_operand.vmem [shape: f32[2,16,16,8], index: 0, kind: input, shape index: {}]   ;;  %s4541_s1 = inlined_call_operand.vmem [shape: f32[1,8], index: 1, kind: input, shape index: {}]   ;;  %s4542_s2 = inlined_call_operand.vmem [shape: f32[1,8], index: 2, kind: input, shape index: {}]   ;;  %s4543_s3 = inlined_call_operand.vmem [shape: bf16[72,8], index: 3, kind: input, shape index: {}]   ;;  %s4544_s4 = inlined_call_operand.vmem [shape: f32[2,16,16,8], index: 4, kind: output, shape index: {0}]   ;;  %s4545_s5 = inlined_call_operand.vmem [shape: f32[2,1,8], index: 5, kind: output, shape index: {1}]   ;;  %s4546_s6 = inlined_call_operand.vmem [shape: f32[2,1,8], index: 6, kind: output, shape index: {2}]  }
   0x1 LB: > { %s2982_s22 = sadd.s32 4294967295, %s3153_s21   ;;  %p2986_p0 = scmp.ge.s32.totalorder %s3153_s21, 1  ;;  %s3153_s21 = sphi %s3199_s21, %s17_s21  }
   0x2   : > { %p217_p1 = scmp.lt.s32.totalorder %s3153_s21, 3 }
   0x4   : > { %p218_p2 = pnand %p2986_p0, %p217_p1 }
   0x5   : > { %s3156_s23 = smov (!%p218_p2), 8   ;;  %p253_p3 = scmp.lt.s32.totalorder (!%p218_p2), %s2982_s22, 1 }
   0x6   : > { %221 = sbr.rel (%p218_p2) target bundleno = 1018 (0x3fa), region = 36  ;;  %s3157_s8 = smov (!%p218_p2), 16  }
   0x7   : > { %s3158_s9 = smov (!%p218_p2), 24   ;;  %s3159_s14 = smov (!%p218_p2), 32  }
   0x8   : > { %s3160_s15 = smov (!%p218_p2), 40   ;;  %s3161_s16 = smov (!%p218_p2), 56  }
   0x9   : > { %s3162_s17 = smov (!%p218_p2), 48   ;;  %s3163_s18 = smov (!%p218_p2), 64  }
   0xb   : > { %vm406_vm0 = vcmask 64512   ;;  %v3155_v0 = vmov 0.0   ;;  %vm415_vm1 = vcmask 57344   ;;  %s4548_s22 = smov (!%p253_p3, %s2982_s22), 1  ;;  %v3279_v3 = vld [vmem:[%s4541_s1] ss:$0 sm:$0xff] }
   0xc   : > { %407 = vst.msk [vmem:[#allocation2] sm:$0xff] %vm406_vm0, %v3155_v0  ;;  %s3089_s24 = sshll.u32 %s4548_s22, 8  ;;  %v3296_v8 = vld [vmem:[%s4542_s2] ss:$0 sm:$0xff]  ;;  %vm409_vm2 = vcmask 58368   ;;  %vm549_vm3 = vcmask 60416   ;;  %s265_s12 = scalar_lea.vmem %s4545_s5, %s4548_s22 }
   0xd   : > { %408 = vst.msk [vmem:[#allocation2 + $0x8] sm:$0xff] %vm406_vm0, %v3155_v0  ;;  %s3270_s27 = scalar_lea.vmem %s4540_s0, %s3089_s24  ;;  %vm774_vm4 = vcmask 126016   ;;  %vm999_vm5 = vcmask 191616   ;;  %vm1224_vm6 = vcmask 257216   ;;  %vm1449_vm7 = vcmask 322816   ;;  %s4273_s10 = scalar_lea.vmem %s4544_s4, %s3089_s24 }
   0xe   : > { %416 = vst.msk [vmem:[#allocation2] sm:$0x1] %vm415_vm1, %v3155_v0  ;;  %v270_v4 = vld [vmem:[%s3270_s27] sm:$0xff]  ;;  %v271_v6 = vld [vmem:[%s3270_s27 + $0x8] sm:$0xff]  ;;  %v277_v9 = vld [vmem:[%s3270_s27 + $0x38] sm:$0xff]  ;;  %vm1674_vm8 = vcmask 388416  }
   0xf   : > { %412 = vst.msk [vmem:[#allocation2 + $0x198] sm:$0xff] %vm406_vm0, %v3155_v0  ;;  %v274_v5 = vld [vmem:[%s3270_s27 + $0x20] sm:$0xff]  ;;  %v306_v7 = vmul.f32 %v3279_v3, %v270_v4  ;;  %v275_v11 = vld [vmem:[%s3270_s27 + $0x28] sm:$0xff]  ;;  %v307_v12 = vmul.f32 %v3279_v3, %v271_v6  ;;  %v280_v13 = vld [vmem:[%s3270_s27 + $0x50] sm:$0xff]  ;;  %v313_v14 = vmul.f32 %v3279_v3, %v277_v9  ;;  %vm2580_vm9 = vcmask 1043456  }
  0x10   : > { %413 = vst.msk [vmem:[#allocation2 + $0x1a0] sm:$0xff] %vm406_vm0, %v3155_v0  ;;  %v310_v10 = vmul.f32 %v3279_v3, %v274_v5  ;;  %v272_v15 = vld [vmem:[%s3270_s27 + $0x10] sm:$0xff]  ;;  %v311_v17 = vmul.f32 %v3279_v3, %v275_v11  ;;  %v278_v18 = vld [vmem:[%s3270_s27 + $0x40] sm:$0xff]  ;;  %v316_v20 = vmul.f32 %v3279_v3, %v280_v13  ;;  %v283_v21 = vld [vmem:[%s3270_s27 + $0x68] sm:$0xff]  ;;  %vm1900_vm10 = vcmask 454016  }
  0x11   : > { %417 = vst.msk [vmem:[#allocation2 + $0x18] sm:$0x1] %vm415_vm1, %v3155_v0  ;;  %v342_v16 = vadd.f32 %v3296_v8, %v306_v7  ;;  %v343_v22 = vadd.f32 %v3296_v8, %v307_v12  ;;  %v308_v23 = vmul.f32 %v3279_v3, %v272_v15  ;;  %v273_v24 = vld [vmem:[%s3270_s27 + $0x18] sm:$0xff]  ;;  %v349_v25 = vadd.f32 %v3296_v8, %v313_v14  ;;  %v286_v34 = vld [vmem:[%s3270_s27 + $0x80] sm:$0xff]  ;;  %v276_v35 = vld [vmem:[%s3270_s27 + $0x30] sm:$0xff] }
  0x12   : > { %418 = vst.msk [vmem:[#allocation2 + $0x30] sm:$0x1] %vm415_vm1, %v3155_v0  ;;  %v346_v19 = vadd.f32 %v3296_v8, %v310_v10  ;;  %v314_v26 = vmul.f32 %v3279_v3, %v278_v18  ;;  %v281_v27 = vld [vmem:[%s3270_s27 + $0x58] sm:$0xff]  ;;  %v347_v29 = vadd.f32 %v3296_v8, %v311_v17  ;;  %v319_v30 = vmul.f32 %v3279_v3, %v283_v21  ;;  %v284_v47 = vld [vmem:[%s3270_s27 + $0x70] sm:$0xff]  ;;  %v279_v60 = vld [vmem:[%s3270_s27 + $0x48] sm:$0xff] }
  0x13   : > { %419 = vst.msk [vmem:[#allocation2 + $0x48] sm:$0x1] %vm415_vm1, %v3155_v0  ;;  %v374_v28 = vmax.f32 %v342_v16, 0.0  ;;  %v352_v32 = vadd.f32 %v3296_v8, %v316_v20  ;;  %v309_v33 = vmul.f32 %v3279_v3, %v273_v24  ;;  %v375_v36 = vmax.f32 %v343_v22, 0.0  ;;  %v289_v59 = vld [vmem:[%s3270_s27 + $0x98] sm:$0xff]  ;;  %v287_v11 = vld [vmem:[%s3270_s27 + $0x88] sm:$0xff] }
  0x14   : > { %v582_v1 = vld [vmem:[#allocation2 + $0x1] sm:$0xff]  ;;  %420 = vst.msk [vmem:[#allocation2 + $0x60] sm:$0x1] %vm415_vm1, %v3155_v0  ;;  %v378_v31 = vmax.f32 %v346_v19, 0.0  ;;  %v344_v37 = vadd.f32 %v3296_v8, %v308_v23  ;;  %v317_v38 = vmul.f32 %v3279_v3, %v281_v27  ;;  %v381_v39 = vmax.f32 %v349_v25, 0.0  ;;  %v292_v19 = vld [vmem:[%s3270_s27 + $0xb0] sm:$0xff] }
  0x15   : > { %v614_v2 = vpack.c.bf16 %v582_v1, %v582_v1  ;;  %421 = vst.msk [vmem:[#allocation2 + $0x78] sm:$0x1] %vm415_vm1, %v3155_v0  ;;  %v350_v40 = vadd.f32 %v3296_v8, %v314_v26  ;;  %v322_v41 = vmul.f32 %v3279_v3, %v286_v34  ;;  %v379_v42 = vmax.f32 %v347_v29, 0.0  ;;  %v282_v20 = vld [vmem:[%s3270_s27 + $0x60] sm:$0xff] }
  0x16   : > { %422 = vst.msk [vmem:[#allocation2 + $0x90] sm:$0x1] %vm415_vm1, %v3155_v0  ;;  %v355_v43 = vadd.f32 %v3296_v8, %v319_v30  ;;  %v312_v44 = vmul.f32 %v3279_v3, %v276_v35  ;;  %v384_v45 = vmax.f32 %v352_v32, 0.0  ;;  %v345_v46 = vadd.f32 %v3296_v8, %v309_v33  ;;  %v290_v30 = vld [vmem:[%s3270_s27 + $0xa0] sm:$0xff] }
  0x17   : > { %678 = vrot.lane.b32.xlu0 %v614_v2, %s3156_s23  ;;  %423 = vst.msk [vmem:[#allocation2 + $0xa8] sm:$0x1] %vm415_vm1, %v3155_v0  ;;  %v376_v49 = vmax.f32 %v344_v37, 0.0  ;;  %v353_v50 = vadd.f32 %v3296_v8, %v317_v38  ;;  %v320_v51 = vmul.f32 %v3279_v3, %v284_v47  ;;  %v382_v53 = vmax.f32 %v350_v40, 0.0  ;;  %v295_v37 = vld [vmem:[%s3270_s27 + $0xc8] sm:$0xff]  ;;  %v285_v38 = vld [vmem:[%s3270_s27 + $0x78] sm:$0xff] }
  0x18   : > { %424 = vst.msk [vmem:[#allocation2 + $0xc0] sm:$0x1] %vm415_vm1, %v3155_v0  ;;  %v358_v54 = vadd.f32 %v3296_v8, %v322_v41  ;;  %v387_v55 = vmax.f32 %v355_v43, 0.0  ;;  %v348_v56 = vadd.f32 %v3296_v8, %v312_v44  ;;  %v377_v57 = vmax.f32 %v345_v46, 0.0 }
  0x19   : > { %425 = vst.msk [vmem:[#allocation2 + $0xd8] sm:$0x1] %vm415_vm1, %v3155_v0  ;;  %v356_v58 = vadd.f32 %v3296_v8, %v320_v51  ;;  %v385_v61 = vmax.f32 %v353_v50, 0.0  ;;  %v325_v62 = vmul.f32 %v3279_v3, %v289_v59  ;;  %v315_v63 = vmul.f32 %v3279_v3, %v279_v60 }
  0x1a   : > { %426 = vst.msk [vmem:[#allocation2 + $0xf0] sm:$0x1] %vm415_vm1, %v3155_v0  ;;  %v390_v1 = vmax.f32 %v358_v54, 0.0  ;;  %v380_v5 = vmax.f32 %v348_v56, 0.0  ;;  %v323_v14 = vmul.f32 %v3279_v3, %v287_v11  ;;  %v328_v24 = vmul.f32 %v3279_v3, %v292_v19  ;;  %v288_v56 = vld [vmem:[%s3270_s27 + $0x90] sm:$0xff]  ;;  %v291_v11 = vld [vmem:[%s3270_s27 + $0xa8] sm:$0xff] }
  0x1b   : > { %427 = vst.msk [vmem:[#allocation2 + $0x108] sm:$0x1] %vm415_vm1, %v3155_v0  ;;  %v361_v6 = vadd.f32 %v3296_v8, %v325_v62  ;;  %v351_v7 = vadd.f32 %v3296_v8, %v315_v63  ;;  %v388_v10 = vmax.f32 %v356_v58, 0.0  ;;  %v318_v25 = vmul.f32 %v3279_v3, %v282_v20  ;;  %v299_v19 = vld [vmem:[%s3270_s27 + $0xe8] sm:$0xff] }
  0x1c   : > { %428 = vst.msk [vmem:[#allocation2 + $0x120] sm:$0x1] %vm415_vm1, %v3155_v0  ;;  %v359_v16 = vadd.f32 %v3296_v8, %v323_v14  ;;  %v364_v26 = vadd.f32 %v3296_v8, %v328_v24  ;;  %v326_v33 = vmul.f32 %v3279_v3, %v290_v30  ;;  %v321_v43 = vmul.f32 %v3279_v3, %v285_v38 }
  0x1d   : > { %429 = vst.msk [vmem:[#allocation2 + $0x138] sm:$0x1] %vm415_vm1, %v3155_v0  ;;  %v393_v13 = vmax.f32 %v361_v6, 0.0  ;;  %v383_v15 = vmax.f32 %v351_v7, 0.0  ;;  %v354_v27 = vadd.f32 %v3296_v8, %v318_v25  ;;  %v294_v25 = vld [vmem:[%s3270_s27 + $0xc0] sm:$0xff]  ;;  %vm2125_vm11 = vcmask 519616  }
  0x1e   : > { %430 = vst.msk [vmem:[#allocation2 + $0x150] sm:$0x1] %vm415_vm1, %v3155_v0  ;;  %v391_v23 = vmax.f32 %v359_v16, 0.0  ;;  %vm2350_vm12 = vcmask 585216   ;;  %vm2531_vm13 = vcmask 588800  }
  0x1f   : > { %431 = vst.msk [vmem:[#allocation2 + $0x168] sm:$0x1] %vm415_vm1, %v3155_v0  ;;  %v386_v32 = vmax.f32 %v354_v27, 0.0 }
  0x20   : > { %432 = vst.msk [vmem:[#allocation2 + $0x180] sm:$0x1] %vm415_vm1, %v3155_v0 }
  0x21   : > { %435 = vst.msk [vmem:[#allocation2 + $0x29] sm:$0x1] %vm415_vm1, %v3155_v0 }
  0x22   : > { %436 = vst.msk [vmem:[#allocation2 + $0x41] sm:$0x1] %vm415_vm1, %v3155_v0 }
  0x23   : > { %437 = vst.msk [vmem:[#allocation2 + $0x59] sm:$0x1] %vm415_vm1, %v3155_v0 }
  0x24   : > { %438 = vst.msk [vmem:[#allocation2 + $0x71] sm:$0x1] %vm415_vm1, %v3155_v0 }
  0x25   : > { %439 = vst.msk [vmem:[#allocation2 + $0x89] sm:$0x1] %vm415_vm1, %v3155_v0 }
  0x26   : > { %440 = vst.msk [vmem:[#allocation2 + $0xa1] sm:$0x1] %vm415_vm1, %v3155_v0 }
  0x27   : > { %441 = vst.msk [vmem:[#allocation2 + $0xb9] sm:$0x1] %vm415_vm1, %v3155_v0 }
  0x28   : > { %442 = vst.msk [vmem:[#allocation2 + $0xd1] sm:$0x1] %vm415_vm1, %v3155_v0 }
  0x29   : > { %443 = vst.msk [vmem:[#allocation2 + $0xe9] sm:$0x1] %vm415_vm1, %v3155_v0 }
  0x2a   : > { %444 = vst.msk [vmem:[#allocation2 + $0x101] sm:$0x1] %vm415_vm1, %v3155_v0 }
  0x2b   : > { %445 = vst.msk [vmem:[#allocation2 + $0x119] sm:$0x1] %vm415_vm1, %v3155_v0 }
  0x2c   : > { %446 = vst.msk [vmem:[#allocation2 + $0x131] sm:$0x1] %vm415_vm1, %v3155_v0 }
  0x2d   : > { %447 = vst.msk [vmem:[#allocation2 + $0x149] sm:$0x1] %vm415_vm1, %v3155_v0 }
  0x2e   : > { %448 = vst.msk [vmem:[#allocation2 + $0x161] sm:$0x1] %vm415_vm1, %v3155_v0 }
  0x2f   : > { %449 = vst.msk [vmem:[#allocation2 + $0x179] sm:$0x1] %vm415_vm1, %v3155_v0 }
  0x30   : > { %450 = vst.msk [vmem:[#allocation2 + $0x191] sm:$0x1] %vm415_vm1, %v3155_v0 }
  0x31   : > { %410 = vst.msk [vmem:[#allocation2 + $0x10] sm:$0x3] %vm409_vm2, %v3155_v0 }
  0x32   : > { %414 = vst.msk [vmem:[#allocation2 + $0x1a8] sm:$0x3] %vm409_vm2, %v3155_v0 }
  0x33   : > { %433 = vst.msk [vmem:[#allocation2 + $0x198] sm:$0x1] %vm415_vm1, %v3155_v0 }
  0x34   : > { %434 = vst.msk [vmem:[#allocation2 + $0x11] sm:$0x1] %vm415_vm1, %v3155_v0 }
  0x35   : > { %451 = vst.msk [vmem:[#allocation2 + $0x1a9] sm:$0x1] %vm415_vm1, %v3155_v0 }
  0x36   : > { %453 = vst.msk [vmem:[#allocation2 + $0x19] sm:$0xff] %vm406_vm0, %v374_v28 }
  0x37   : > { %457 = vst.msk [vmem:[#allocation2 + $0x49] sm:$0xff] %vm406_vm0, %v378_v31  ;;  %v396_v31 = vmax.f32 %v364_v26, 0.0 }
  0x38   : > { %v583_v48 = vld [vmem:[#allocation2 + $0x9] sm:$0xff]  ;;  %454 = vst.msk [vmem:[#allocation2 + $0x21] sm:$0xff] %vm406_vm0, %v375_v36  ;;  %v362_v36 = vadd.f32 %v3296_v8, %v326_v33 }
  0x39   : > { %v615_v52 = vpack.c.bf16 %v583_v48, %v583_v48  ;;  %460 = vst.msk [vmem:[#allocation2 + $0x69] sm:$0xff] %vm406_vm0, %v381_v39  ;;  %v293_v48 = vld [vmem:[%s3270_s27 + $0xb8] sm:$0xff] }
  0x3a   : > { %458 = vst.msk [vmem:[#allocation2 + $0x51] sm:$0xff] %vm406_vm0, %v379_v42  ;;  %v394_v41 = vmax.f32 %v362_v36, 0.0  ;;  %v331_v42 = vmul.f32 %v3279_v3, %v295_v37  ;;  %v329_v51 = vmul.f32 %v3279_v3, %v293_v48  ;;  %v297_v36 = vld [vmem:[%s3270_s27 + $0xd8] sm:$0xff] }
  0x3b   : > { %680 = vrot.lane.b32.xlu0 %v615_v52, %s3156_s23  ;;  %463 = vst.msk [vmem:[#allocation2 + $0x91] sm:$0xff] %vm406_vm0, %v384_v45  ;;  %v357_v45 = vadd.f32 %v3296_v8, %v321_v43 }
  0x3c   : > { %455 = vst.msk [vmem:[#allocation2 + $0x31] sm:$0xff] %vm406_vm0, %v376_v49  ;;  %v367_v44 = vadd.f32 %v3296_v8, %v331_v42  ;;  %v365_v54 = vadd.f32 %v3296_v8, %v329_v51 }
  0x3d   : > { %v584_v0 = vld [vmem:[#allocation2 + $0x19] sm:$0xff]  ;;  %461 = vst.msk [vmem:[#allocation2 + $0x79] sm:$0xff] %vm406_vm0, %v382_v53  ;;  %v389_v50 = vmax.f32 %v357_v45, 0.0 }
  0x3e   : > { %v616_v2 = vpack.c.bf16 %v584_v0, %v584_v0  ;;  %v588_v4 = vld [vmem:[#allocation2 + $0x49] sm:$0xff]  ;;  %466 = vst.msk [vmem:[#allocation2 + $0xb1] sm:$0xff] %vm406_vm0, %v387_v55  ;;  %v399_v49 = vmax.f32 %v367_v44, 0.0  ;;  %v298_v55 = vld [vmem:[%s3270_s27 + $0xe0] sm:$0xff]  ;;  %v397_v59 = vmax.f32 %v365_v54, 0.0 }
  0x3f   : > { %v620_v9 = vpack.c.bf16 %v588_v4, %v588_v4  ;;  %456 = vst.msk [vmem:[#allocation2 + $0x39] sm:$0xff] %vm406_vm0, %v377_v57  ;;  %v585_v12 = vld [vmem:[#allocation2 + $0x21] sm:$0xff]  ;;  %v334_v60 = vmul.f32 %v3279_v3, %v298_v55 }
  0x40   : > { %682 = vrot.lane.b32.xlu1 %v616_v2, %s3156_s23  ;;  %464 = vst.msk [vmem:[#allocation2 + $0x99] sm:$0xff] %vm406_vm0, %v385_v61  ;;  %v617_v17 = vpack.c.bf16 %v585_v12, %v585_v12  ;;  %v591_v21 = vld [vmem:[#allocation2 + $0x69] sm:$0xff]  ;;  %v324_v61 = vmul.f32 %v3279_v3, %v288_v56  ;;  %v485_v56 = vld [vmem:[#allocation2] sm:$0xff] }
  0x41   : > { %469 = vst.msk [vmem:[#allocation2 + $0xd9] sm:$0xff] %vm406_vm0, %v390_v1  ;;  %v623_v28 = vpack.c.bf16 %v591_v21, %v591_v21  ;;  %v589_v34 = vld [vmem:[#allocation2 + $0x51] sm:$0xff]  ;;  %v370_v62 = vadd.f32 %v3296_v8, %v334_v60  ;;  %v335_v21 = vmul.f32 %v3279_v3, %v299_v19 }
  0x42   : > { %459 = vst.msk [vmem:[#allocation2 + $0x61] sm:$0xff] %vm406_vm0, %v380_v5  ;;  %v621_v39 = vpack.c.bf16 %v589_v34, %v589_v34  ;;  %v594_v40 = vld [vmem:[#allocation2 + $0x91] sm:$0xff]  ;;  %v360_v63 = vadd.f32 %v3296_v8, %v324_v61 }
  0x43   : > { %690 = vrot.lane.b32.xlu0 %v620_v9, %s3156_s23  ;;  %v586_v18 = vld [vmem:[#allocation2 + $0x31] sm:$0xff]  ;;  %467 = vst.msk [vmem:[#allocation2 + $0xc1] sm:$0xff] %vm406_vm0, %v388_v10  ;;  %v626_v46 = vpack.c.bf16 %v594_v40, %v594_v40  ;;  %v402_v4 = vmax.f32 %v370_v62, 0.0  ;;  %v371_v24 = vadd.f32 %v3296_v8, %v335_v21  ;;  %v810_v21 = vld [vmem:[#allocation2 + $0x22] sm:$0xff] }
  0x44   : > { %v618_v22 = vpack.c.bf16 %v586_v18, %v586_v18  ;;  %472 = vst.msk [vmem:[#allocation2 + $0xf9] sm:$0xff] %vm406_vm0, %v393_v13  ;;  %v592_v52 = vld [vmem:[#allocation2 + $0x79] sm:$0xff]  ;;  %v296_v2 = vld [vmem:[%s3270_s27 + $0xd0] sm:$0xff]  ;;  %v392_v5 = vmax.f32 %v360_v63, 0.0 }
  0x45   : > { %462 = vst.msk [vmem:[#allocation2 + $0x81] sm:$0xff] %vm406_vm0, %v383_v15  ;;  %v624_v57 = vpack.c.bf16 %v592_v52, %v592_v52  ;;  %v597_v58 = vld [vmem:[#allocation2 + $0xb1] sm:$0xff]  ;;  %v332_v6 = vmul.f32 %v3279_v3, %v296_v2  ;;  %v327_v15 = vmul.f32 %v3279_v3, %v291_v11 }
  0x46   : > { %686 = vrot.lane.b32.xlu2 %v618_v22, %s3156_s23  ;;  %470 = vst.msk [vmem:[#allocation2 + $0xe1] sm:$0xff] %vm406_vm0, %v391_v23  ;;  %v587_v29 = vld [vmem:[#allocation2 + $0x39] sm:$0xff]  ;;  %v629_v0 = vpack.c.bf16 %v597_v58, %v597_v58  ;;  %v808_v58 = vld [vmem:[#allocation2 + $0xa] sm:$0xff] }
  0x47   : > { %v619_v35 = vpack.c.bf16 %v587_v29, %v587_v29  ;;  %475 = vst.msk [vmem:[#allocation2 + $0x121] sm:$0xff] %vm406_vm0, %v396_v31  ;;  %v595_v7 = vld [vmem:[#allocation2 + $0x99] sm:$0xff]  ;;  %v368_v10 = vadd.f32 %v3296_v8, %v332_v6  ;;  %v363_v16 = vadd.f32 %v3296_v8, %v327_v15  ;;  %v330_v29 = vmul.f32 %v3279_v3, %v294_v25  ;;  %v489_v6 = vld [vmem:[#allocation2 + $0x30] sm:$0xff] }
  0x48   : > { %684 = vrot.lane.b32.xlu1 %v617_v17, %s3156_s23  ;;  %465 = vst.msk [vmem:[#allocation2 + $0xa9] sm:$0xff] %vm406_vm0, %v386_v32  ;;  %v627_v12 = vpack.c.bf16 %v595_v7, %v595_v7  ;;  %v600_v13 = vld [vmem:[#allocation2 + $0xd9] sm:$0xff]  ;;  %v840_v60 = vpack.c.bf16 %v808_v58, %v808_v58 }
  0x49   : > { %473 = vst.msk [vmem:[#allocation2 + $0x109] sm:$0xff] %vm406_vm0, %v394_v41  ;;  %v590_v47 = vld [vmem:[#allocation2 + $0x61] sm:$0xff]  ;;  %v400_v14 = vmax.f32 %v368_v10, 0.0  ;;  %v632_v17 = vpack.c.bf16 %v600_v13, %v600_v13  ;;  %v395_v20 = vmax.f32 %v363_v16, 0.0  ;;  %v366_v30 = vadd.f32 %v3296_v8, %v330_v29  ;;  %v487_v11 = vld [vmem:[#allocation2 + $0x18] sm:$0xff] }
  0x4a   : > { %v622_v53 = vpack.c.bf16 %v590_v47, %v590_v47  ;;  %478 = vst.msk [vmem:[#allocation2 + $0x141] sm:$0xff] %vm406_vm0, %v399_v49  ;;  %v598_v22 = vld [vmem:[#allocation2 + $0xc1] sm:$0xff]  ;;  %v3470_v10 = vpack.c.bf16 %v489_v6, %v489_v6  ;;  %v814_v16 = vld [vmem:[#allocation2 + $0x52] sm:$0xff] }
  0x4b   : > { %696 = vrot.lane.b32.xlu0 %v623_v28, %s3156_s23  ;;  %468 = vst.msk [vmem:[#allocation2 + $0xc9] sm:$0xff] %vm406_vm0, %v389_v50  ;;  %v630_v26 = vpack.c.bf16 %v598_v22, %v598_v22  ;;  %v603_v27 = vld [vmem:[#allocation2 + $0xf9] sm:$0xff]  ;;  %v403_v28 = vmax.f32 %v371_v24, 0.0  ;;  %v398_v33 = vmax.f32 %v366_v30, 0.0 }
  0x4c   : > { %476 = vst.msk [vmem:[#allocation2 + $0x129] sm:$0xff] %vm406_vm0, %v397_v59  ;;  %v593_v1 = vld [vmem:[#allocation2 + $0x81] sm:$0xff]  ;;  %v635_v31 = vpack.c.bf16 %v603_v27, %v603_v27  ;;  %v517_v59 = vpack.c.bf16 %v485_v56, %v485_v56  ;;  %v490_v19 = vld [vmem:[#allocation2 + $0x38] sm:$0xff] }
  0x4d   : > { %v625_v9 = vpack.c.bf16 %v593_v1, %v593_v1  ;;  %481 = vst.msk [vmem:[#allocation2 + $0x169] sm:$0xff] %vm406_vm0, %v402_v4  ;;  %v601_v34 = vld [vmem:[#allocation2 + $0xe1] sm:$0xff]  ;;  %v811_v4 = vld [vmem:[#allocation2 + $0x32] sm:$0xff]  ;;  %v3483_v22 = vpack.c.bf16 %v490_v19, %v490_v19 }
  0x4e   : > { %688 = vrot.lane.b32.xlu2 %v619_v35, %s3156_s23  ;;  %471 = vst.msk [vmem:[#allocation2 + $0xf1] sm:$0xff] %vm406_vm0, %v392_v5  ;;  %v633_v37 = vpack.c.bf16 %v601_v34, %v601_v34  ;;  %v606_v38 = vld [vmem:[#allocation2 + $0x121] sm:$0xff]  ;;  %v843_v7 = vpack.c.bf16 %v811_v4, %v811_v4  ;;  %v819_v58 = vld [vmem:[#allocation2 + $0x92] sm:$0xff] }
  0x4f   : > { %479 = vst.msk [vmem:[#allocation2 + $0x151] sm:$0xff] %vm406_vm0, %v400_v14  ;;  %v596_v18 = vld [vmem:[#allocation2 + $0xa9] sm:$0xff]  ;;  %v638_v41 = vpack.c.bf16 %v606_v38, %v606_v38  ;;  %v809_v13 = vld [vmem:[#allocation2 + $0x1a] sm:$0xff] }
  0x50   : > { %692 = vrot.lane.b32.xlu1 %v621_v39, %s3156_s23  ;;  %v628_v23 = vpack.c.bf16 %v596_v18, %v596_v18  ;;  %474 = vst.msk [vmem:[#allocation2 + $0x111] sm:$0xff] %vm406_vm0, %v395_v20  ;;  %v333_v39 = vmul.f32 %v3279_v3, %v297_v36  ;;  %v604_v44 = vld [vmem:[#allocation2 + $0x109] sm:$0xff]  ;;  %v841_v15 = vpack.c.bf16 %v809_v13, %v809_v13  ;;  %v812_v25 = vld [vmem:[#allocation2 + $0x3a] sm:$0xff]  ;;  %v822_v13 = vld [vmem:[#allocation2 + $0xb2] sm:$0xff] }
  0x51   : > { %482 = vst.msk [vmem:[#allocation2 + $0x171] sm:$0xff] %vm406_vm0, %v403_v28  ;;  %v609_v47 = vld [vmem:[#allocation2 + $0x141] sm:$0xff]  ;;  %v846_v20 = vpack.c.bf16 %v814_v16, %v814_v16  ;;  %v844_v28 = vpack.c.bf16 %v812_v25, %v812_v25 }
  0x52   : > { %v599_v32 = vld [vmem:[#allocation2 + $0xc9] sm:$0xff]  ;;  %477 = vst.msk [vmem:[#allocation2 + $0x139] sm:$0xff] %vm406_vm0, %v398_v33  ;;  %v369_v40 = vadd.f32 %v3296_v8, %v333_v39  ;;  %v641_v3 = vpack.c.bf16 %v609_v47, %v609_v47  ;;  %v817_v29 = vld [vmem:[#allocation2 + $0x7a] sm:$0xff] }
  0x53   : > { %702 = vrot.lane.b32.xlu0 %v626_v46, %s3156_s23  ;;  %v631_v35 = vpack.c.bf16 %v599_v32, %v599_v32  ;;  %v636_v46 = vpack.c.bf16 %v604_v44, %v604_v44  ;;  %v607_v8 = vld [vmem:[#allocation2 + $0x129] sm:$0xff]  ;;  %550 = vst.msk [vmem:[#allocation3] sm:$0xf] %vm549_vm3, %v517_v59  ;;  %v849_v32 = vpack.c.bf16 %v817_v29, %v817_v29  ;;  %v496_v44 = vld [vmem:[#allocation2 + $0x80] sm:$0xff] }
  0x54   : > { %v401_v43 = vmax.f32 %v369_v40, 0.0  ;;  %v639_v50 = vpack.c.bf16 %v607_v8, %v607_v8  ;;  %v612_v51 = vld [vmem:[#allocation2 + $0x169] sm:$0xff]  ;;  %554 = vst.msk [vmem:[#allocation3 + $0x10] sm:$0xf] %vm549_vm3, %v3470_v10  ;;  %v3516_v47 = vpack.c.bf16 %v496_v44, %v496_v44 }
  0x55   : > { %v602_v42 = vld [vmem:[#allocation2 + $0xf1] sm:$0xff]  ;;  %v644_v52 = vpack.c.bf16 %v612_v51, %v612_v51  ;;  %v486_v1 = vld [vmem:[#allocation2 + $0x8] sm:$0xff]  ;;  %555 = vst.msk [vmem:[#allocation3 + $0x14] sm:$0xf] %vm549_vm3, %v3483_v22 }
  0x56   : > { %694 = vrot.lane.b32.xlu2 %v622_v53, %s3156_s23  ;;  %v634_v45 = vpack.c.bf16 %v602_v42, %v602_v42  ;;  %480 = vst.msk [vmem:[#allocation2 + $0x159] sm:$0xff] %vm406_vm0, %v401_v43  ;;  %v610_v54 = vld [vmem:[#allocation2 + $0x151] sm:$0xff]  ;;  %v518_v5 = vpack.c.bf16 %v486_v1, %v486_v1  ;;  %v494_v27 = vld [vmem:[#allocation2 + $0x68] sm:$0xff]  ;;  %v820_v42 = vld [vmem:[#allocation2 + $0x9a] sm:$0xff]  ;;  %v3542_v1 = vpack.c.bf16 %v819_v58, %v819_v58 }
  0x57   : > { %v605_v48 = vld [vmem:[#allocation2 + $0x111] sm:$0xff]  ;;  %v3495_v30 = vpack.c.bf16 %v494_v27, %v494_v27  ;;  %v815_v38 = vld [vmem:[#allocation2 + $0x62] sm:$0xff]  ;;  %561 = vst.msk [vmem:[#allocation3 + $0x2c] sm:$0xf] %vm549_vm3, %v3516_v47 }
  0x58   : > { %698 = vrot.lane.b32.xlu1 %v624_v57, %s3156_s23  ;;  %v637_v49 = vpack.c.bf16 %v605_v48, %v605_v48  ;;  %v642_v57 = vpack.c.bf16 %v610_v54, %v610_v54  ;;  %v613_v62 = vld [vmem:[#allocation2 + $0x171] sm:$0xff]  ;;  %551 = vst.msk [vmem:[#allocation3 + $0x4] sm:$0xf] %vm549_vm3, %v518_v5  ;;  %v499_v56 = vld [vmem:[#allocation2 + $0xa8] sm:$0xff] }
  0x59   : > { %v608_v53 = vld [vmem:[#allocation2 + $0x139] sm:$0xff]  ;;  %v645_v2 = vpack.c.bf16 %v613_v62, %v613_v62  ;;  %559 = vst.msk [vmem:[#allocation3 + $0x24] sm:$0xf] %vm549_vm3, %v3495_v30  ;;  %v813_v33 = vld [vmem:[#allocation2 + $0x4a] sm:$0xff]  ;;  %v3536_v59 = vpack.c.bf16 %v499_v56, %v499_v56  ;;  %v826_v5 = vld [vmem:[#allocation2 + $0xe2] sm:$0xff] }
  0x5a   : > { %v640_v55 = vpack.c.bf16 %v608_v53, %v608_v53  ;;  %v845_v39 = vpack.c.bf16 %v813_v33, %v813_v33  ;;  %v497_v40 = vld [vmem:[#allocation2 + $0x90] sm:$0xff]  ;;  %v823_v53 = vld [vmem:[#allocation2 + $0xc2] sm:$0xff] }
  0x5b   : > { %708 = vrot.lane.b32.xlu0 %v629_v0, %s3156_s23  ;;  %v3511_v43 = vpack.c.bf16 %v497_v40, %v497_v40  ;;  %v500_v51 = vld [vmem:[#allocation2 + $0xb0] sm:$0xff]  ;;  %564 = vst.msk [vmem:[#allocation3 + $0x38] sm:$0xf] %vm549_vm3, %v3536_v59 }
  0x5c   : > { %v3529_v54 = vpack.c.bf16 %v500_v51, %v500_v51  ;;  %v824_v19 = vld [vmem:[#allocation2 + $0xca] sm:$0xff]  ;;  %v828_v51 = vld [vmem:[#allocation2 + $0xfa] sm:$0xff] }
  0x5d   : > { %v611_v61 = vld [vmem:[#allocation2 + $0x159] sm:$0xff]  ;;  %562 = vst.msk [vmem:[#allocation3 + $0x30] sm:$0xf] %vm549_vm3, %v3511_v43  ;;  %v856_v25 = vpack.c.bf16 %v824_v19, %v824_v19  ;;  %v505_v29 = vld [vmem:[#allocation2 + $0xf0] sm:$0xff] }
  0x5e   : > { %700 = vrot.lane.b32.xlu2 %v625_v9, %s3156_s23  ;;  %v643_v0 = vpack.c.bf16 %v611_v61, %v611_v61  ;;  %v807_v9 = vld [vmem:[#allocation2 + $0x2] sm:$0xff]  ;;  %565 = vst.msk [vmem:[#allocation3 + $0x3c] sm:$0xf] %vm549_vm3, %v3529_v54  ;;  %v3578_v33 = vpack.c.bf16 %v505_v29, %v505_v29  ;;  %v833_v19 = vld [vmem:[#allocation2 + $0x13a] sm:$0xff] }
  0x5f   : > { %v839_v14 = vpack.c.bf16 %v807_v9, %v807_v9  ;;  %v502_v9 = vld [vmem:[#allocation2 + $0xc8] sm:$0xff] }
  0x60   : > { %704 = vrot.lane.b32.xlu1 %v627_v12, %s3156_s23  ;;  %v3473_v12 = vpack.c.bf16 %v487_v11, %v487_v11  ;;  %v858_v11 = vpack.c.bf16 %v826_v5, %v826_v5  ;;  %570 = vst.msk [vmem:[#allocation3 + $0x50] sm:$0xf] %vm549_vm3, %v3578_v33  ;;  %v511_v5 = vld [vmem:[#allocation2 + $0x138] sm:$0xff] }
  0x62   : > { %552 = vst.msk [vmem:[#allocation3 + $0x8] sm:$0xf] %vm549_vm3, %v3473_v12 }
  0x63   : > { %714 = vrot.lane.b32.xlu0 %v632_v17, %s3156_s23  ;;  %v491_v17 = vld [vmem:[#allocation2 + $0x48] sm:$0xff] }
  0x64   : > { %v3481_v18 = vpack.c.bf16 %v491_v17, %v491_v17 }
  0x66   : > { %706 = vrot.lane.b32.xlu2 %v628_v23, %s3156_s23  ;;  %v488_v23 = vld [vmem:[#allocation2 + $0x20] sm:$0xff]  ;;  %556 = vst.msk [vmem:[#allocation3 + $0x18] sm:$0xf] %vm549_vm3, %v3481_v18 }
  0x67   : > { %v3488_v24 = vpack.c.bf16 %v488_v23, %v488_v23  ;;  %v506_v23 = vld [vmem:[#allocation2 + $0xf8] sm:$0xff] }
  0x68   : > { %710 = vrot.lane.b32.xlu1 %v630_v26, %s3156_s23  ;;  %v842_v26 = vpack.c.bf16 %v810_v21, %v810_v21  ;;  %v3563_v21 = vpack.c.bf16 %v822_v13, %v822_v13  ;;  %v3571_v27 = vpack.c.bf16 %v506_v23, %v506_v23  ;;  %v510_v13 = vld [vmem:[#allocation2 + $0x128] sm:$0xff] }
  0x69   : > { %553 = vst.msk [vmem:[#allocation3 + $0xc] sm:$0xf] %vm549_vm3, %v3488_v24 }
  0x6a   : > { %571 = vst.msk [vmem:[#allocation3 + $0x54] sm:$0xf] %vm549_vm3, %v3571_v27 }
  0x6b   : > { %720 = vrot.lane.b32.xlu0 %v635_v31, %s3156_s23  ;;  %v493_v31 = vld [vmem:[#allocation2 + $0x60] sm:$0xff] }
  0x6c   : > { %v3500_v34 = vpack.c.bf16 %v493_v31, %v493_v31 }
  0x6e   : > { %712 = vrot.lane.b32.xlu2 %v631_v35, %s3156_s23  ;;  %v492_v35 = vld [vmem:[#allocation2 + $0x50] sm:$0xff]  ;;  %558 = vst.msk [vmem:[#allocation3 + $0x20] sm:$0xf] %vm549_vm3, %v3500_v34 }
  0x70   : > { %716 = vrot.lane.b32.xlu1 %v633_v37, %s3156_s23  ;;  %v3503_v37 = vpack.c.bf16 %v492_v35, %v492_v35  ;;  %v504_v35 = vld [vmem:[#allocation2 + $0xe0] sm:$0xff] }
  0x72   : > { %557 = vst.msk [vmem:[#allocation3 + $0x1c] sm:$0xf] %vm549_vm3, %v3503_v37 }
  0x73   : > { %726 = vrot.lane.b32.xlu0 %v638_v41, %s3156_s23  ;;  %v847_v41 = vpack.c.bf16 %v815_v38, %v815_v38  ;;  %v3581_v38 = vpack.c.bf16 %v504_v35, %v504_v35 }
  0x75   : > { %569 = vst.msk [vmem:[#allocation3 + $0x4c] sm:$0xf] %vm549_vm3, %v3581_v38 }
  0x76   : > { %718 = vrot.lane.b32.xlu2 %v634_v45, %s3156_s23  ;;  %v852_v45 = vpack.c.bf16 %v820_v42, %v820_v42  ;;  %v509_v42 = vld [vmem:[#allocation2 + $0x120] sm:$0xff] }
  0x78   : > { %722 = vrot.lane.b32.xlu1 %v636_v46, %s3156_s23  ;;  %v816_v46 = vld [vmem:[#allocation2 + $0x6a] sm:$0xff] }
  0x7b   : > { %732 = vrot.lane.b32.xlu0 %v641_v3, %s3156_s23  ;;  %v495_v3 = vld [vmem:[#allocation2 + $0x78] sm:$0xff] }
  0x7c   : > { %v3519_v8 = vpack.c.bf16 %v495_v3, %v495_v3 }
  0x7e   : > { %724 = vrot.lane.b32.xlu2 %v637_v49, %s3156_s23  ;;  %v818_v49 = vld [vmem:[#allocation2 + $0x82] sm:$0xff]  ;;  %560 = vst.msk [vmem:[#allocation3 + $0x28] sm:$0xf] %vm549_vm3, %v3519_v8 }
  0x80   : > { %728 = vrot.lane.b32.xlu1 %v639_v50, %s3156_s23  ;;  %v3522_v50 = vpack.c.bf16 %v816_v46, %v816_v46  ;;  %v3592_v46 = vpack.c.bf16 %v509_v42, %v509_v42 }
  0x82   : > { %574 = vst.msk [vmem:[#allocation3 + $0x60] sm:$0xf] %vm549_vm3, %v3592_v46 }
  0x83   : > { %738 = vrot.lane.b32.xlu0 %v644_v52, %s3156_s23  ;;  %v850_v52 = vpack.c.bf16 %v818_v49, %v818_v49 }
  0x86   : > { %730 = vrot.lane.b32.xlu2 %v640_v55, %s3156_s23 }
  0x88   : > { %734 = vrot.lane.b32.xlu1 %v642_v57, %s3156_s23  ;;  %v855_v57 = vpack.c.bf16 %v823_v53, %v823_v53  ;;  %v507_v53 = vld [vmem:[#allocation2 + $0x108] sm:$0xff] }
  0x89   : > { %v679_v63 = vpop.permute.xlu0 %678  ;;  %v3602_v56 = vpack.c.bf16 %v507_v53, %v507_v53  ;;  %v837_v53 = vld [vmem:[#allocation2 + $0x16a] sm:$0xff] }
  0x8a   : > { %775 = vst.msk [vmem:[#allocation3] sm:$0xf] %vm774_vm4, %v679_v63  ;;  %v821_v63 = vld [vmem:[#allocation2 + $0xaa] sm:$0xff] }
  0x8b   : > { %905 = vrot.lane.b32.xlu0 %v840_v60, %s3157_s8  ;;  %v498_v60 = vld [vmem:[#allocation2 + $0x98] sm:$0xff]  ;;  %v853_v4 = vpack.c.bf16 %v821_v63, %v821_v63  ;;  %572 = vst.msk [vmem:[#allocation3 + $0x58] sm:$0xf] %vm549_vm3, %v3602_v56 }
  0x8c   : > { %v3539_v62 = vpack.c.bf16 %v498_v60, %v498_v60  ;;  %v3605_v60 = vpack.c.bf16 %v828_v51, %v828_v51 }
  0x8e   : > { %736 = vrot.lane.b32.xlu2 %v643_v0, %s3156_s23  ;;  %563 = vst.msk [vmem:[#allocation3 + $0x34] sm:$0xf] %vm549_vm3, %v3539_v62 }
  0x90   : > { %740 = vrot.lane.b32.xlu1 %v645_v2, %s3156_s23  ;;  %v503_v2 = vld [vmem:[#allocation2 + $0xd8] sm:$0xff] }
  0x91   : > { %v3550_v6 = vpack.c.bf16 %v503_v2, %v503_v2 }
  0x93   : > { %911 = vrot.lane.b32.xlu0 %v843_v7, %s3157_s8  ;;  %568 = vst.msk [vmem:[#allocation3 + $0x48] sm:$0xf] %vm549_vm3, %v3550_v6 }
  0x96   : > { %903 = vrot.lane.b32.xlu2 %v839_v14, %s3157_s8  ;;  %v3557_v14 = vpack.c.bf16 %v502_v9, %v502_v9  ;;  %v831_v9 = vld [vmem:[#allocation2 + $0x122] sm:$0xff] }
  0x97   : > { %v3626_v23 = vpack.c.bf16 %v831_v9, %v831_v9 }
  0x98   : > { %907 = vrot.lane.b32.xlu1 %v841_v15, %s3157_s8  ;;  %v501_v15 = vld [vmem:[#allocation2 + $0xc0] sm:$0xff]  ;;  %567 = vst.msk [vmem:[#allocation3 + $0x44] sm:$0xf] %vm549_vm3, %v3557_v14 }
  0x99   : > { %v3560_v17 = vpack.c.bf16 %v501_v15, %v501_v15 }
  0x9b   : > { %917 = vrot.lane.b32.xlu0 %v846_v20, %s3157_s8  ;;  %566 = vst.msk [vmem:[#allocation3 + $0x40] sm:$0xf] %vm549_vm3, %v3560_v17 }
  0x9e   : > { %909 = vrot.lane.b32.xlu2 %v842_v26, %s3157_s8  ;;  %v829_v26 = vld [vmem:[#allocation2 + $0x10a] sm:$0xff] }
  0x9f   : > { %v861_v31 = vpack.c.bf16 %v829_v26, %v829_v26  ;;  %v865_v26 = vpack.c.bf16 %v833_v19, %v833_v19 }
  0xa0   : > { %913 = vrot.lane.b32.xlu1 %v844_v28, %s3157_s8  ;;  %v687_v36 = vpop.permute.xlu2 %686 }
  0xa1   : > { %779 = vst.msk [vmem:[#allocation3 + $0x10] sm:$0xf] %vm774_vm4, %v687_v36 }
  0xa3   : > { %923 = vrot.lane.b32.xlu0 %v849_v32, %s3157_s8  ;;  %v825_v32 = vld [vmem:[#allocation2 + $0xda] sm:$0xff] }
  0xa6   : > { %915 = vrot.lane.b32.xlu2 %v845_v39, %s3157_s8  ;;  %v827_v39 = vld [vmem:[#allocation2 + $0xf2] sm:$0xff] }
  0xa7   : > { %v859_v44 = vpack.c.bf16 %v827_v39, %v827_v39 }
  0xa8   : > { %919 = vrot.lane.b32.xlu1 %v847_v41, %s3157_s8  ;;  %v689_v48 = vpop.permute.xlu2 %688  ;;  %v3584_v41 = vpack.c.bf16 %v825_v32, %v825_v32  ;;  %v514_v32 = vld [vmem:[#allocation2 + $0x158] sm:$0xff] }
  0xa9   : > { %780 = vst.msk [vmem:[#allocation3 + $0x14] sm:$0xf] %vm774_vm4, %v689_v48  ;;  %v508_v48 = vld [vmem:[#allocation2 + $0x110] sm:$0xff]  ;;  %v3641_v39 = vpack.c.bf16 %v514_v32, %v514_v32 }
  0xab   : > { %929 = vrot.lane.b32.xlu0 %v852_v45, %s3157_s8  ;;  %v832_v45 = vld [vmem:[#allocation2 + $0x12a] sm:$0xff]  ;;  %579 = vst.msk [vmem:[#allocation3 + $0x74] sm:$0xf] %vm549_vm3, %v3641_v39 }
  0xac   : > { %v864_v49 = vpack.c.bf16 %v832_v45, %v832_v45  ;;  %v836_v45 = vld [vmem:[#allocation2 + $0x15a] sm:$0xff] }
  0xad   : > { %v681_v55 = vpop.permute.xlu0 %680 }
  0xae   : > { %776 = vst.msk [vmem:[#allocation3 + $0x4] sm:$0xf] %vm774_vm4, %v681_v55  ;;  %921 = vrot.lane.b32.xlu2 %v3522_v50, %s3157_s8 }
  0xb0   : > { %925 = vrot.lane.b32.xlu1 %v850_v52, %s3157_s8  ;;  %v695_v61 = vpop.permute.xlu2 %694  ;;  %v3599_v52 = vpack.c.bf16 %v508_v48, %v508_v48 }
  0xb1   : > { %783 = vst.msk [vmem:[#allocation3 + $0x20] sm:$0xf] %vm774_vm4, %v695_v61  ;;  %v512_v61 = vld [vmem:[#allocation2 + $0x140] sm:$0xff] }
  0xb2   : > { %v683_v0 = vpop.permute.xlu1 %682  ;;  %573 = vst.msk [vmem:[#allocation3 + $0x5c] sm:$0xf] %vm549_vm3, %v3599_v52  ;;  %v3613_v2 = vpack.c.bf16 %v512_v61, %v512_v61 }
  0xb3   : > { %777 = vst.msk [vmem:[#allocation3 + $0x8] sm:$0xf] %vm774_vm4, %v683_v0  ;;  %935 = vrot.lane.b32.xlu0 %v855_v57, %s3157_s8  ;;  %v830_v57 = vld [vmem:[#allocation2 + $0x112] sm:$0xff] }
  0xb4   : > { %v862_v63 = vpack.c.bf16 %v830_v57, %v830_v57  ;;  %v835_v0 = vld [vmem:[#allocation2 + $0x152] sm:$0xff]  ;;  %577 = vst.msk [vmem:[#allocation3 + $0x6c] sm:$0xf] %vm549_vm3, %v3613_v2 }
  0xb5   : > { %v691_v7 = vpop.permute.xlu0 %690 }
  0xb6   : > { %781 = vst.msk [vmem:[#allocation3 + $0x18] sm:$0xf] %vm774_vm4, %v691_v7  ;;  %927 = vrot.lane.b32.xlu2 %v3542_v1, %s3157_s8  ;;  %v867_v7 = vpack.c.bf16 %v835_v0, %v835_v0 }
  0xb8   : > { %931 = vrot.lane.b32.xlu1 %v853_v4, %s3157_s8  ;;  %v701_v16 = vpop.permute.xlu2 %700 }
  0xb9   : > { %786 = vst.msk [vmem:[#allocation3 + $0x2c] sm:$0xf] %vm774_vm4, %v701_v16  ;;  %v3623_v16 = vpack.c.bf16 %v510_v13, %v510_v13 }
  0xba   : > { %v685_v20 = vpop.permute.xlu1 %684 }
  0xbb   : > { %778 = vst.msk [vmem:[#allocation3 + $0xc] sm:$0xf] %vm774_vm4, %v685_v20  ;;  %941 = vrot.lane.b32.xlu0 %v858_v11, %s3157_s8  ;;  %v3620_v11 = vpack.c.bf16 %v511_v5, %v511_v5 }
  0xbc   : > { %575 = vst.msk [vmem:[#allocation3 + $0x64] sm:$0xf] %vm549_vm3, %v3623_v16 }
  0xbd   : > { %v697_v28 = vpop.permute.xlu0 %696  ;;  %576 = vst.msk [vmem:[#allocation3 + $0x68] sm:$0xf] %vm549_vm3, %v3620_v11 }
  0xbe   : > { %784 = vst.msk [vmem:[#allocation3 + $0x24] sm:$0xf] %vm774_vm4, %v697_v28  ;;  %933 = vrot.lane.b32.xlu2 %v3563_v21, %s3157_s8  ;;  %v838_v28 = vld [vmem:[#allocation2 + $0x172] sm:$0xff] }
  0xbf   : > { %v870_v35 = vpack.c.bf16 %v838_v28, %v838_v28 }
  0xc0   : > { %937 = vrot.lane.b32.xlu1 %v856_v25, %s3157_s8  ;;  %v707_v36 = vpop.permute.xlu2 %706  ;;  %v515_v25 = vld [vmem:[#allocation2 + $0x168] sm:$0xff] }
  0xc1   : > { %789 = vst.msk [vmem:[#allocation3 + $0x38] sm:$0xf] %vm774_vm4, %v707_v36  ;;  %v3634_v29 = vpack.c.bf16 %v515_v25, %v515_v25  ;;  %v834_v36 = vld [vmem:[#allocation2 + $0x142] sm:$0xff] }
  0xc2   : > { %v693_v40 = vpop.permute.xlu1 %692  ;;  %v3647_v48 = vpack.c.bf16 %v834_v36, %v834_v36 }
  0xc3   : > { %782 = vst.msk [vmem:[#allocation3 + $0x1c] sm:$0xf] %vm774_vm4, %v693_v40  ;;  %947 = vrot.lane.b32.xlu0 %v861_v31, %s3157_s8  ;;  %v513_v40 = vld [vmem:[#allocation2 + $0x150] sm:$0xff] }
  0xc4   : > { %580 = vst.msk [vmem:[#allocation3 + $0x78] sm:$0xf] %vm549_vm3, %v3634_v29 }
  0xc5   : > { %v703_v3 = vpop.permute.xlu0 %702 }
  0xc6   : > { %787 = vst.msk [vmem:[#allocation3 + $0x30] sm:$0xf] %vm774_vm4, %v703_v3  ;;  %939 = vrot.lane.b32.xlu2 %v3584_v41, %s3157_s8 }
  0xc8   : > { %943 = vrot.lane.b32.xlu1 %v859_v44, %s3157_s8  ;;  %v713_v55 = vpop.permute.xlu2 %712  ;;  %v3644_v44 = vpack.c.bf16 %v513_v40, %v513_v40 }
  0xc9   : > { %792 = vst.msk [vmem:[#allocation3 + $0x44] sm:$0xf] %vm774_vm4, %v713_v55  ;;  %v516_v55 = vld [vmem:[#allocation2 + $0x170] sm:$0xff] }
  0xca   : > { %v699_v58 = vpop.permute.xlu1 %698  ;;  %578 = vst.msk [vmem:[#allocation3 + $0x70] sm:$0xf] %vm549_vm3, %v3644_v44 }
  0xcb   : > { %785 = vst.msk [vmem:[#allocation3 + $0x28] sm:$0xf] %vm774_vm4, %v699_v58  ;;  %953 = vrot.lane.b32.xlu0 %v864_v49, %s3157_s8  ;;  %v868_v49 = vpack.c.bf16 %v836_v45, %v836_v45  ;;  %v3659_v58 = vpack.c.bf16 %v516_v55, %v516_v55  ;;  %v1260_v45 = vld [vmem:[#allocation2 + $0x39] sm:$0xff] }
  0xcd   : > { %v709_v4 = vpop.permute.xlu0 %708  ;;  %581 = vst.msk [vmem:[#allocation3 + $0x7c] sm:$0xf] %vm549_vm3, %v3659_v58 }
  0xce   : > { %790 = vst.msk [vmem:[#allocation3 + $0x3c] sm:$0xf] %vm774_vm4, %v709_v4  ;;  %945 = vrot.lane.b32.xlu2 %v3605_v60, %s3157_s8 }
  0xd0   : > { %949 = vrot.lane.b32.xlu1 %v862_v63, %s3157_s8  ;;  %v719_v15 = vpop.permute.xlu2 %718  ;;  %v3662_v63 = vpack.c.bf16 %v837_v53, %v837_v53 }
  0xd1   : > { %795 = vst.msk [vmem:[#allocation3 + $0x50] sm:$0xf] %vm774_vm4, %v719_v15 }
  0xd2   : > { %v705_v20 = vpop.permute.xlu1 %704 }
  0xd3   : > { %788 = vst.msk [vmem:[#allocation3 + $0x34] sm:$0xf] %vm774_vm4, %v705_v20  ;;  %959 = vrot.lane.b32.xlu0 %v867_v7, %s3157_s8 }
  0xd5   : > { %v715_v31 = vpop.permute.xlu0 %714 }
  0xd6   : > { %793 = vst.msk [vmem:[#allocation3 + $0x48] sm:$0xf] %vm774_vm4, %v715_v31  ;;  %951 = vrot.lane.b32.xlu2 %v3626_v23, %s3157_s8 }
  0xd8   : > { %955 = vrot.lane.b32.xlu1 %v865_v26, %s3157_s8  ;;  %v725_v42 = vpop.permute.xlu2 %724  ;;  %v301_v26 = vld [vmem:[%s3270_s27 + $0xf8] sm:$0xff] }
  0xd9   : > { %798 = vst.msk [vmem:[#allocation3 + $0x5c] sm:$0xf] %vm774_vm4, %v725_v42 }
  0xda   : > { %v711_v3 = vpop.permute.xlu1 %710 }
  0xdb   : > { %791 = vst.msk [vmem:[#allocation3 + $0x40] sm:$0xf] %vm774_vm4, %v711_v3  ;;  %965 = vrot.lane.b32.xlu0 %v870_v35, %s3157_s8  ;;  %v1257_v35 = vld [vmem:[#allocation2 + $0x19] sm:$0xff] }
  0xdd   : > { %v721_v51 = vpop.permute.xlu0 %720 }
  0xde   : > { %796 = vst.msk [vmem:[#allocation3 + $0x54] sm:$0xf] %vm774_vm4, %v721_v51  ;;  %957 = vrot.lane.b32.xlu2 %v3647_v48, %s3157_s8  ;;  %v1258_v51 = vld [vmem:[#allocation2 + $0x21] sm:$0xff] }
  0xe0   : > { %961 = vrot.lane.b32.xlu1 %v868_v49, %s3157_s8  ;;  %v731_v57 = vpop.permute.xlu2 %730 }
  0xe1   : > { %801 = vst.msk [vmem:[#allocation3 + $0x68] sm:$0xf] %vm774_vm4, %v731_v57  ;;  %v1290_v57 = vpack.c.bf16 %v1258_v51, %v1258_v51 }
  0xe2   : > { %v717_v61 = vpop.permute.xlu1 %716 }
  0xe3   : > { %794 = vst.msk [vmem:[#allocation3 + $0x4c] sm:$0xf] %vm774_vm4, %v717_v61  ;;  %1132 = vrot.lane.b32.xlu0 %v3470_v10, %s3158_s9 }
  0xe5   : > { %v727_v0 = vpop.permute.xlu0 %726 }
  0xe6   : > { %799 = vst.msk [vmem:[#allocation3 + $0x60] sm:$0xf] %vm774_vm4, %v727_v0  ;;  %963 = vrot.lane.b32.xlu2 %v3662_v63, %s3157_s8  ;;  %v1259_v0 = vld [vmem:[#allocation2 + $0x31] sm:$0xff] }
  0xe8   : > { %1128 = vrot.lane.b32.xlu1 %v3473_v12, %s3158_s9  ;;  %v737_v4 = vpop.permute.xlu2 %736 }
  0xe9   : > { %804 = vst.msk [vmem:[#allocation3 + $0x74] sm:$0xf] %vm774_vm4, %v737_v4 }
  0xea   : > { %v723_v5 = vpop.permute.xlu1 %722 }
  0xeb   : > { %797 = vst.msk [vmem:[#allocation3 + $0x58] sm:$0xf] %vm774_vm4, %v723_v5  ;;  %1138 = vrot.lane.b32.xlu0 %v3503_v37, %s3158_s9  ;;  %v1261_v5 = vld [vmem:[#allocation2 + $0x49] sm:$0xff] }
  0xed   : > { %v733_v7 = vpop.permute.xlu0 %732 }
  0xee   : > { %802 = vst.msk [vmem:[#allocation3 + $0x6c] sm:$0xf] %vm774_vm4, %v733_v7  ;;  %1130 = vrot.lane.b32.xlu2 %v3488_v24, %s3158_s9 }
  0xf0   : > { %1134 = vrot.lane.b32.xlu1 %v3483_v22, %s3158_s9  ;;  %v904_v10 = vpop.permute.xlu2 %903 }
  0xf1   : > { %1000 = vst.msk [vmem:[#allocation3] sm:$0xf] %vm999_vm5, %v904_v10  ;;  %v3784_v10 = vpack.c.bf16 %v1259_v0, %v1259_v0  ;;  %v1277_v0 = vld [vmem:[#allocation2 + $0x109] sm:$0xff] }
  0xf2   : > { %v729_v12 = vpop.permute.xlu1 %728 }
  0xf3   : > { %800 = vst.msk [vmem:[#allocation3 + $0x64] sm:$0xf] %vm774_vm4, %v729_v12  ;;  %1144 = vrot.lane.b32.xlu0 %v3519_v8, %s3158_s9  ;;  %v3789_v12 = vpack.c.bf16 %v1261_v5, %v1261_v5  ;;  %v1279_v5 = vld [vmem:[#allocation2 + $0x121] sm:$0xff] }
  0xf5   : > { %v739_v37 = vpop.permute.xlu0 %738 }
  0xf6   : > { %805 = vst.msk [vmem:[#allocation3 + $0x78] sm:$0xf] %vm774_vm4, %v739_v37  ;;  %1136 = vrot.lane.b32.xlu2 %v3481_v18, %s3158_s9  ;;  %v1266_v37 = vld [vmem:[#allocation2 + $0x81] sm:$0xff] }
  0xf8   : > { %1140 = vrot.lane.b32.xlu1 %v3500_v34, %s3158_s9  ;;  %v910_v24 = vpop.permute.xlu2 %909 }
  0xf9   : > { %1003 = vst.msk [vmem:[#allocation3 + $0xc] sm:$0xf] %vm999_vm5, %v910_v24 }
  0xfa   : > { %v735_v22 = vpop.permute.xlu1 %734 }
  0xfb   : > { %803 = vst.msk [vmem:[#allocation3 + $0x70] sm:$0xf] %vm774_vm4, %v735_v22  ;;  %1150 = vrot.lane.b32.xlu0 %v3539_v62, %s3158_s9  ;;  %v300_v62 = vld [vmem:[%s3270_s27 + $0xf0] sm:$0xff]  ;;  %v1298_v22 = vpack.c.bf16 %v1266_v37, %v1266_v37  ;;  %v3857_v37 = vpack.c.bf16 %v1277_v0, %v1277_v0 }
  0xfd   : > { %v906_v8 = vpop.permute.xlu0 %905 }
  0xfe   : > { %1001 = vst.msk [vmem:[#allocation3 + $0x4] sm:$0xf] %vm999_vm5, %v906_v8  ;;  %1142 = vrot.lane.b32.xlu2 %v3495_v30, %s3158_s9  ;;  %v1262_v8 = vld [vmem:[#allocation2 + $0x51] sm:$0xff] }
 0x100   : > { %1146 = vrot.lane.b32.xlu1 %v3516_v47, %s3158_s9  ;;  %v916_v18 = vpop.permute.xlu2 %915  ;;  %v3145_v47 = vld [vmem:[%s4541_s1] ss:$0 sm:$0xff] }
 0x101   : > { %1006 = vst.msk [vmem:[#allocation3 + $0x18] sm:$0xf] %vm999_vm5, %v916_v18  ;;  %v336_v13 = vmul.f32 %v3145_v47, %v300_v62  ;;  %v3797_v62 = vpack.c.bf16 %v1262_v8, %v1262_v8 }
 0x102   : > { %v741_v34 = vpop.permute.xlu1 %740 }
 0x103   : > { %806 = vst.msk [vmem:[#allocation3 + $0x7c] sm:$0xf] %vm774_vm4, %v741_v34  ;;  %1156 = vrot.lane.b32.xlu0 %v3560_v17, %s3158_s9  ;;  %v3146_v17 = vld [vmem:[%s4542_s2] ss:$0 sm:$0xff]  ;;  %v1264_v34 = vld [vmem:[#allocation2 + $0x69] sm:$0xff] }
 0x104   : > { %v372_v19 = vadd.f32 %v3146_v17, %v336_v13 }
 0x105   : > { %v912_v9 = vpop.permute.xlu0 %911 }
 0x106   : > { %1004 = vst.msk [vmem:[#allocation3 + $0x10] sm:$0xf] %vm999_vm5, %v912_v9  ;;  %1148 = vrot.lane.b32.xlu2 %v3511_v43, %s3158_s9  ;;  %v404_v43 = vmax.f32 %v372_v19, 0.0 }
 0x108   : > { %1152 = vrot.lane.b32.xlu1 %v3536_v59, %s3158_s9  ;;  %v922_v30 = vpop.permute.xlu2 %921  ;;  %483 = vst.msk [vmem:[#allocation2 + $0x181] sm:$0xff] %vm406_vm0, %v404_v43  ;;  %v1267_v43 = vld [vmem:[#allocation2 + $0x91] sm:$0xff] }
 0x109   : > { %1009 = vst.msk [vmem:[#allocation3 + $0x24] sm:$0xf] %vm999_vm5, %v922_v30  ;;  %v3801_v30 = vpack.c.bf16 %v1264_v34, %v1264_v34  ;;  %v1280_v34 = vld [vmem:[#allocation2 + $0x129] sm:$0xff] }
 0x10a   : > { %v908_v15 = vpop.permute.xlu1 %907 }
 0x10b   : > { %1002 = vst.msk [vmem:[#allocation3 + $0x8] sm:$0xf] %vm999_vm5, %v908_v15  ;;  %1162 = vrot.lane.b32.xlu0 %v3581_v38, %s3158_s9 }
 0x10d   : > { %v918_v59 = vpop.permute.xlu0 %917 }
 0x10e   : > { %1007 = vst.msk [vmem:[#allocation3 + $0x1c] sm:$0xf] %vm999_vm5, %v918_v59  ;;  %1154 = vrot.lane.b32.xlu2 %v3529_v54, %s3158_s9 }
 0x10f   : > { %v1062_v40 = vld [vmem:[#allocation2 + $0x180] sm:$0xff] }
 0x110   : > { %1158 = vrot.lane.b32.xlu1 %v3557_v14, %s3158_s9  ;;  %v928_v20 = vpop.permute.xlu2 %927 }
 0x111   : > { %1012 = vst.msk [vmem:[#allocation3 + $0x30] sm:$0xf] %vm999_vm5, %v928_v20 }
 0x112   : > { %v914_v25 = vpop.permute.xlu1 %913 }
 0x113   : > { %1005 = vst.msk [vmem:[#allocation3 + $0x14] sm:$0xf] %vm999_vm5, %v914_v25  ;;  %1168 = vrot.lane.b32.xlu0 %v3602_v56, %s3158_s9  ;;  %v337_v56 = vmul.f32 %v3145_v47, %v301_v26  ;;  %v1269_v47 = vld [vmem:[#allocation2 + $0xa9] sm:$0xff]  ;;  %v3814_v25 = vpack.c.bf16 %v1267_v43, %v1267_v43  ;;  %v1268_v26 = vld [vmem:[#allocation2 + $0x99] sm:$0xff]  ;;  %v1287_v43 = vld [vmem:[#allocation2 + $0x181] sm:$0xff] }
 0x114   : > { %v3806_v15 = vpack.c.bf16 %v1269_v47, %v1269_v47  ;;  %v1282_v47 = vld [vmem:[#allocation2 + $0x141] sm:$0xff] }
 0x115   : > { %v924_v38 = vpop.permute.xlu0 %923 }
 0x116   : > { %1010 = vst.msk [vmem:[#allocation3 + $0x28] sm:$0xf] %vm999_vm5, %v924_v38  ;;  %1160 = vrot.lane.b32.xlu2 %v3550_v6, %s3158_s9  ;;  %v373_v6 = vadd.f32 %v3146_v17, %v337_v56  ;;  %v1265_v17 = vld [vmem:[#allocation2 + $0x79] sm:$0xff]  ;;  %v1272_v38 = vld [vmem:[#allocation2 + $0xc9] sm:$0xff] }
 0x117   : > { %v1297_v20 = vpack.c.bf16 %v1265_v17, %v1265_v17  ;;  %v3868_v17 = vpack.c.bf16 %v1280_v34, %v1280_v34 }
 0x118   : > { %1164 = vrot.lane.b32.xlu1 %v3578_v33, %s3158_s9  ;;  %v934_v54 = vpop.permute.xlu2 %933  ;;  %v405_v31 = vmax.f32 %v373_v6, 0.0 }
 0x119   : > { %1015 = vst.msk [vmem:[#allocation3 + $0x3c] sm:$0xf] %vm999_vm5, %v934_v54 }
 0x11a   : > { %v920_v14 = vpop.permute.xlu1 %919  ;;  %484 = vst.msk [vmem:[#allocation2 + $0x189] sm:$0xff] %vm406_vm0, %v405_v31 }
 0x11b   : > { %1008 = vst.msk [vmem:[#allocation3 + $0x20] sm:$0xf] %vm999_vm5, %v920_v14  ;;  %1174 = vrot.lane.b32.xlu0 %v3623_v16, %s3158_s9  ;;  %v1304_v14 = vpack.c.bf16 %v1272_v38, %v1272_v38  ;;  %v1283_v38 = vld [vmem:[#allocation2 + $0x151] sm:$0xff] }
 0x11d   : > { %v930_v28 = vpop.permute.xlu0 %929 }
 0x11e   : > { %1013 = vst.msk [vmem:[#allocation3 + $0x34] sm:$0xf] %vm999_vm5, %v930_v28  ;;  %1166 = vrot.lane.b32.xlu2 %v3571_v27, %s3158_s9  ;;  %v1270_v28 = vld [vmem:[#allocation2 + $0xb1] sm:$0xff] }
 0x11f   : > { %v3825_v31 = vpack.c.bf16 %v1270_v28, %v1270_v28 }
 0x120   : > { %1170 = vrot.lane.b32.xlu1 %v3599_v52, %s3158_s9  ;;  %v940_v33 = vpop.permute.xlu2 %939 }
 0x121   : > { %1018 = vst.msk [vmem:[#allocation3 + $0x48] sm:$0xf] %vm999_vm5, %v940_v33  ;;  %v3821_v33 = vpack.c.bf16 %v1268_v26, %v1268_v26 }
 0x122   : > { %v926_v32 = vpop.permute.xlu1 %925 }
 0x123   : > { %1011 = vst.msk [vmem:[#allocation3 + $0x2c] sm:$0xf] %vm999_vm5, %v926_v32  ;;  %1180 = vrot.lane.b32.xlu0 %v3644_v44, %s3158_s9  ;;  %v1094_v44 = vpack.c.bf16 %v1062_v40, %v1062_v40  ;;  %v1275_v32 = vld [vmem:[#allocation2 + $0xf1] sm:$0xff] }
 0x125   : > { %v936_v16 = vpop.permute.xlu0 %935 }
 0x126   : > { %1016 = vst.msk [vmem:[#allocation3 + $0x40] sm:$0xf] %vm999_vm5, %v936_v16  ;;  %1172 = vrot.lane.b32.xlu2 %v3592_v46, %s3158_s9  ;;  %v1289_v46 = vpack.c.bf16 %v1257_v35, %v1257_v35 }
 0x128   : > { %1176 = vrot.lane.b32.xlu1 %v3620_v11, %s3158_s9  ;;  %v946_v27 = vpop.permute.xlu2 %945 }
 0x129   : > { %1021 = vst.msk [vmem:[#allocation3 + $0x54] sm:$0xf] %vm999_vm5, %v946_v27  ;;  %v3830_v27 = vpack.c.bf16 %v1275_v32, %v1275_v32 }
 0x12a   : > { %v932_v52 = vpop.permute.xlu1 %931 }
 0x12b   : > { %1014 = vst.msk [vmem:[#allocation3 + $0x38] sm:$0xf] %vm999_vm5, %v932_v52  ;;  %1186 = vrot.lane.b32.xlu0 %v3659_v58, %s3158_s9  ;;  %v1263_v58 = vld [vmem:[#allocation2 + $0x61] sm:$0xff] }
 0x12c   : > { %v1271_v52 = vld [vmem:[#allocation2 + $0xc1] sm:$0xff] }
 0x12d   : > { %v942_v36 = vpop.permute.xlu0 %941 }
 0x12e   : > { %1019 = vst.msk [vmem:[#allocation3 + $0x4c] sm:$0xf] %vm999_vm5, %v942_v36  ;;  %1178 = vrot.lane.b32.xlu2 %v3613_v2, %s3158_s9  ;;  %v3771_v2 = vpack.c.bf16 %v1260_v45, %v1260_v45  ;;  %v1273_v36 = vld [vmem:[#allocation2 + $0xd9] sm:$0xff] }
 0x12f   : > { %v1305_v40 = vpack.c.bf16 %v1273_v36, %v1273_v36  ;;  %v1288_v36 = vld [vmem:[#allocation2 + $0x189] sm:$0xff] }
 0x130   : > { %1182 = vrot.lane.b32.xlu1 %v3641_v39, %s3158_s9  ;;  %v952_v11 = vpop.permute.xlu2 %951  ;;  %v1063_v39 = vld [vmem:[#allocation2 + $0x188] sm:$0xff] }
 0x131   : > { %1024 = vst.msk [vmem:[#allocation3 + $0x60] sm:$0xf] %vm999_vm5, %v952_v11  ;;  %v1095_v55 = vpack.c.bf16 %v1063_v39, %v1063_v39  ;;  %v3835_v11 = vpack.c.bf16 %v1271_v52, %v1271_v52  ;;  %v1286_v52 = vld [vmem:[#allocation2 + $0x171] sm:$0xff] }
 0x132   : > { %v938_v42 = vpop.permute.xlu1 %937 }
 0x133   : > { %1017 = vst.msk [vmem:[#allocation3 + $0x44] sm:$0xf] %vm999_vm5, %v938_v42  ;;  %1353 = vrot.lane.b32.xlu0 %v1289_v46, %s3159_s14  ;;  %v1278_v42 = vld [vmem:[#allocation2 + $0x111] sm:$0xff] }
 0x134   : > { %v3843_v45 = vpack.c.bf16 %v1278_v42, %v1278_v42  ;;  %v1320_v42 = vpack.c.bf16 %v1288_v36, %v1288_v36 }
 0x135   : > { %v948_v3 = vpop.permute.xlu0 %947 }
 0x136   : > { %1022 = vst.msk [vmem:[#allocation3 + $0x58] sm:$0xf] %vm999_vm5, %v948_v3  ;;  %1184 = vrot.lane.b32.xlu2 %v3634_v29, %s3158_s9  ;;  %v3780_v29 = vpack.c.bf16 %v1263_v58, %v1263_v58  ;;  %v1274_v3 = vld [vmem:[#allocation2 + $0xe1] sm:$0xff] }
 0x138   : > { %1188 = vrot.lane.b32.xlu1 %v1094_v44, %s3158_s9  ;;  %v958_v49 = vpop.permute.xlu2 %957 }
 0x139   : > { %1027 = vst.msk [vmem:[#allocation3 + $0x6c] sm:$0xf] %vm999_vm5, %v958_v49  ;;  %v1276_v49 = vld [vmem:[#allocation2 + $0xf9] sm:$0xff] }
 0x13a   : > { %v944_v53 = vpop.permute.xlu1 %943 }
 0x13b   : > { %1020 = vst.msk [vmem:[#allocation3 + $0x50] sm:$0xf] %vm999_vm5, %v944_v53  ;;  %1359 = vrot.lane.b32.xlu0 %v3771_v2, %s3159_s14  ;;  %v1306_v53 = vpack.c.bf16 %v1274_v3, %v1274_v3 }
 0x13d   : > { %v954_v61 = vpop.permute.xlu0 %953 }
 0x13e   : > { %1025 = vst.msk [vmem:[#allocation3 + $0x64] sm:$0xf] %vm999_vm5, %v954_v61  ;;  %1190 = vrot.lane.b32.xlu2 %v1095_v55, %s3158_s9  ;;  %v3850_v55 = vpack.c.bf16 %v1276_v49, %v1276_v49  ;;  %v1482_v49 = vld [vmem:[#allocation2 + $0x1a] sm:$0xff] }
 0x140   : > { %1355 = vrot.lane.b32.xlu1 %v1290_v57, %s3159_s14  ;;  %v964_v4 = vpop.permute.xlu2 %963  ;;  %v1281_v57 = vld [vmem:[#allocation2 + $0x139] sm:$0xff] }
 0x141   : > { %1030 = vst.msk [vmem:[#allocation3 + $0x78] sm:$0xf] %vm999_vm5, %v964_v4  ;;  %v1313_v61 = vpack.c.bf16 %v1281_v57, %v1281_v57 }
 0x142   : > { %v950_v7 = vpop.permute.xlu1 %949 }
 0x143   : > { %1023 = vst.msk [vmem:[#allocation3 + $0x5c] sm:$0xf] %vm999_vm5, %v950_v7  ;;  %1365 = vrot.lane.b32.xlu0 %v3780_v29, %s3159_s14 }
 0x145   : > { %v960_v24 = vpop.permute.xlu0 %959 }
 0x146   : > { %1028 = vst.msk [vmem:[#allocation3 + $0x70] sm:$0xf] %vm999_vm5, %v960_v24  ;;  %1357 = vrot.lane.b32.xlu2 %v3784_v10, %s3159_s14  ;;  %v1311_v24 = vpack.c.bf16 %v1279_v5, %v1279_v5 }
 0x148   : > { %1361 = vrot.lane.b32.xlu1 %v3789_v12, %s3159_s14  ;;  %v1131_v18 = vpop.permute.xlu2 %1130 }
 0x149   : > { %1226 = vst.msk [vmem:[#allocation3 + $0x4] sm:$0xf] %vm1224_vm6, %v1131_v18 }
 0x14a   : > { %v956_v9 = vpop.permute.xlu1 %955 }
 0x14b   : > { %1026 = vst.msk [vmem:[#allocation3 + $0x68] sm:$0xf] %vm999_vm5, %v956_v9  ;;  %1371 = vrot.lane.b32.xlu0 %v1298_v22, %s3159_s14  ;;  %v1284_v22 = vld [vmem:[#allocation2 + $0x159] sm:$0xff] }
 0x14c   : > { %v3864_v18 = vpack.c.bf16 %v1284_v22, %v1284_v22 }
 0x14d   : > { %v966_v13 = vpop.permute.xlu0 %965 }
 0x14e   : > { %1031 = vst.msk [vmem:[#allocation3 + $0x7c] sm:$0xf] %vm999_vm5, %v966_v13  ;;  %1363 = vrot.lane.b32.xlu2 %v3797_v62, %s3159_s14 }
 0x150   : > { %1367 = vrot.lane.b32.xlu1 %v3801_v30, %s3159_s14  ;;  %v1137_v19 = vpop.permute.xlu2 %1136 }
 0x151   : > { %1229 = vst.msk [vmem:[#allocation3 + $0x10] sm:$0xf] %vm1224_vm6, %v1137_v19  ;;  %v1314_v19 = vpack.c.bf16 %v1282_v47, %v1282_v47 }
 0x152   : > { %v962_v59 = vpop.permute.xlu1 %961 }
 0x153   : > { %1029 = vst.msk [vmem:[#allocation3 + $0x74] sm:$0xf] %vm999_vm5, %v962_v59  ;;  %1377 = vrot.lane.b32.xlu0 %v3806_v15, %s3159_s14 }
 0x155   : > { %v1133_v54 = vpop.permute.xlu0 %1132 }
 0x156   : > { %1227 = vst.msk [vmem:[#allocation3 + $0x8] sm:$0xf] %vm1224_vm6, %v1133_v54  ;;  %1369 = vrot.lane.b32.xlu2 %v1297_v20, %s3159_s14  ;;  %v1319_v20 = vpack.c.bf16 %v1287_v43, %v1287_v43 }
 0x158   : > { %1373 = vrot.lane.b32.xlu1 %v3814_v25, %s3159_s14  ;;  %v1143_v56 = vpop.permute.xlu2 %1142 }
 0x159   : > { %1232 = vst.msk [vmem:[#allocation3 + $0x1c] sm:$0xf] %vm1224_vm6, %v1143_v56  ;;  %v3878_v56 = vpack.c.bf16 %v1283_v38, %v1283_v38 }
 0x15a   : > { %v1129_v6 = vpop.permute.xlu1 %1128 }
 0x15b   : > { %1225 = vst.msk [vmem:[#allocation3] sm:$0xf] %vm1224_vm6, %v1129_v6  ;;  %1383 = vrot.lane.b32.xlu0 %v1304_v14, %s3159_s14  ;;  %v1285_v14 = vld [vmem:[#allocation2 + $0x169] sm:$0xff] }
 0x15c   : > { %v1317_v28 = vpack.c.bf16 %v1285_v14, %v1285_v14  ;;  %v1483_v6 = vld [vmem:[#allocation2 + $0x22] sm:$0xff] }
 0x15d   : > { %v1139_v16 = vpop.permute.xlu0 %1138 }
 0x15e   : > { %1230 = vst.msk [vmem:[#allocation3 + $0x14] sm:$0xf] %vm1224_vm6, %v1139_v16  ;;  %1375 = vrot.lane.b32.xlu2 %v3821_v33, %s3159_s14  ;;  %v1515_v16 = vpack.c.bf16 %v1483_v6, %v1483_v6  ;;  %v1494_v6 = vld [vmem:[#allocation2 + $0xaa] sm:$0xff] }
 0x160   : > { %1379 = vrot.lane.b32.xlu1 %v3825_v31, %s3159_s14  ;;  %v1149_v35 = vpop.permute.xlu2 %1148 }
 0x161   : > { %1235 = vst.msk [vmem:[#allocation3 + $0x28] sm:$0xf] %vm1224_vm6, %v1149_v35 }
 0x162   : > { %v1135_v46 = vpop.permute.xlu1 %1134 }
 0x163   : > { %1228 = vst.msk [vmem:[#allocation3 + $0xc] sm:$0xf] %vm1224_vm6, %v1135_v46  ;;  %1389 = vrot.lane.b32.xlu0 %v3830_v27, %s3159_s14 }
 0x165   : > { %v1145_v44 = vpop.permute.xlu0 %1144 }
 0x166   : > { %1233 = vst.msk [vmem:[#allocation3 + $0x20] sm:$0xf] %vm1224_vm6, %v1145_v44  ;;  %1381 = vrot.lane.b32.xlu2 %v3835_v11, %s3159_s14  ;;  %v1486_v44 = vld [vmem:[#allocation2 + $0x4a] sm:$0xff] }
 0x168   : > { %1385 = vrot.lane.b32.xlu1 %v1305_v40, %s3159_s14  ;;  %v1155_v39 = vpop.permute.xlu2 %1154  ;;  %v1318_v40 = vpack.c.bf16 %v1286_v52, %v1286_v52 }
 0x169   : > { %1238 = vst.msk [vmem:[#allocation3 + $0x34] sm:$0xf] %vm1224_vm6, %v1155_v39  ;;  %v3891_v39 = vpack.c.bf16 %v1486_v44, %v1486_v44 }
 0x16a   : > { %v1141_v51 = vpop.permute.xlu1 %1140 }
 0x16b   : > { %1231 = vst.msk [vmem:[#allocation3 + $0x18] sm:$0xf] %vm1224_vm6, %v1141_v51  ;;  %1395 = vrot.lane.b32.xlu0 %v3843_v45, %s3159_s14 }
 0x16d   : > { %v1151_v58 = vpop.permute.xlu0 %1150 }
 0x16e   : > { %1236 = vst.msk [vmem:[#allocation3 + $0x2c] sm:$0xf] %vm1224_vm6, %v1151_v58  ;;  %1387 = vrot.lane.b32.xlu2 %v1306_v53, %s3159_s14  ;;  %v1484_v53 = vld [vmem:[#allocation2 + $0x32] sm:$0xff]  ;;  %v1514_v58 = vpack.c.bf16 %v1482_v49, %v1482_v49 }
 0x170   : > { %1391 = vrot.lane.b32.xlu1 %v3850_v55, %s3159_s14  ;;  %v1161_v4 = vpop.permute.xlu2 %1160 }
 0x171   : > { %1241 = vst.msk [vmem:[#allocation3 + $0x40] sm:$0xf] %vm1224_vm6, %v1161_v4  ;;  %v1485_v4 = vld [vmem:[#allocation2 + $0x3a] sm:$0xff] }
 0x172   : > { %v1147_v7 = vpop.permute.xlu1 %1146  ;;  %v3905_v22 = vpack.c.bf16 %v1485_v4, %v1485_v4 }
 0x173   : > { %1234 = vst.msk [vmem:[#allocation3 + $0x24] sm:$0xf] %vm1224_vm6, %v1147_v7  ;;  %1401 = vrot.lane.b32.xlu0 %v1313_v61, %s3159_s14  ;;  %v3898_v61 = vpack.c.bf16 %v1484_v53, %v1484_v53  ;;  %v1487_v7 = vld [vmem:[#allocation2 + $0x52] sm:$0xff] }
 0x175   : > { %v1157_v8 = vpop.permute.xlu0 %1156 }
 0x176   : > { %1239 = vst.msk [vmem:[#allocation3 + $0x38] sm:$0xf] %vm1224_vm6, %v1157_v8  ;;  %1393 = vrot.lane.b32.xlu2 %v3857_v37, %s3159_s14  ;;  %v3910_v8 = vpack.c.bf16 %v1487_v7, %v1487_v7 }
 0x178   : > { %1397 = vrot.lane.b32.xlu1 %v1311_v24, %s3159_s14  ;;  %v1167_v9 = vpop.permute.xlu2 %1166 }
 0x179   : > { %1244 = vst.msk [vmem:[#allocation3 + $0x4c] sm:$0xf] %vm1224_vm6, %v1167_v9  ;;  %v1488_v9 = vld [vmem:[#allocation2 + $0x62] sm:$0xff] }
 0x17a   : > { %v1153_v13 = vpop.permute.xlu1 %1152  ;;  %v3918_v43 = vpack.c.bf16 %v1488_v9, %v1488_v9 }
 0x17b   : > { %1237 = vst.msk [vmem:[#allocation3 + $0x30] sm:$0xf] %vm1224_vm6, %v1153_v13  ;;  %1407 = vrot.lane.b32.xlu0 %v3864_v18, %s3159_s14  ;;  %v1490_v13 = vld [vmem:[#allocation2 + $0x7a] sm:$0xff] }
 0x17d   : > { %v1163_v59 = vpop.permute.xlu0 %1162 }
 0x17e   : > { %1242 = vst.msk [vmem:[#allocation3 + $0x44] sm:$0xf] %vm1224_vm6, %v1163_v59  ;;  %1399 = vrot.lane.b32.xlu2 %v3868_v17, %s3159_s14 }
 0x180   : > { %1403 = vrot.lane.b32.xlu1 %v1314_v19, %s3159_s14  ;;  %v1173_v54 = vpop.permute.xlu2 %1172 }
 0x181   : > { %1247 = vst.msk [vmem:[#allocation3 + $0x58] sm:$0xf] %vm1224_vm6, %v1173_v54  ;;  %v1493_v54 = vld [vmem:[#allocation2 + $0x9a] sm:$0xff] }
 0x182   : > { %v1159_v26 = vpop.permute.xlu1 %1158 }
 0x183   : > { %1240 = vst.msk [vmem:[#allocation3 + $0x3c] sm:$0xf] %vm1224_vm6, %v1159_v26  ;;  %1413 = vrot.lane.b32.xlu0 %v1319_v20, %s3159_s14  ;;  %v1491_v20 = vld [vmem:[#allocation2 + $0x82] sm:$0xff] }
 0x184   : > { %v3931_v26 = vpack.c.bf16 %v1491_v20, %v1491_v20 }
 0x185   : > { %v1169_v32 = vpop.permute.xlu0 %1168 }
 0x186   : > { %1245 = vst.msk [vmem:[#allocation3 + $0x50] sm:$0xf] %vm1224_vm6, %v1169_v32  ;;  %1405 = vrot.lane.b32.xlu2 %v3878_v56, %s3159_s14 }
 0x188   : > { %1409 = vrot.lane.b32.xlu1 %v1317_v28, %s3159_s14  ;;  %v1179_v35 = vpop.permute.xlu2 %1178 }
 0x189   : > { %1250 = vst.msk [vmem:[#allocation3 + $0x64] sm:$0xf] %vm1224_vm6, %v1179_v35  ;;  %v3944_v35 = vpack.c.bf16 %v1494_v6, %v1494_v6  ;;  %v1708_v6 = vld [vmem:[#allocation2 + $0x30] sm:$0xff] }
 0x18a   : > { %v1165_v46 = vpop.permute.xlu1 %1164 }
 0x18b   : > { %1243 = vst.msk [vmem:[#allocation3 + $0x48] sm:$0xf] %vm1224_vm6, %v1165_v46  ;;  %1580 = vrot.lane.b32.xlu0 %v1515_v16, %s3160_s15  ;;  %v1496_v16 = vld [vmem:[#allocation2 + $0xc2] sm:$0xff]  ;;  %v1497_v46 = vld [vmem:[#allocation2 + $0xca] sm:$0xff] }
 0x18d   : > { %v1175_v3 = vpop.permute.xlu0 %1174 }
 0x18e   : > { %1248 = vst.msk [vmem:[#allocation3 + $0x5c] sm:$0xf] %vm1224_vm6, %v1175_v3  ;;  %1411 = vrot.lane.b32.xlu2 %v1318_v40, %s3159_s14  ;;  %v3957_v3 = vpack.c.bf16 %v1497_v46, %v1497_v46 }
 0x190   : > { %1415 = vrot.lane.b32.xlu1 %v1320_v42, %s3159_s14  ;;  %v1185_v51 = vpop.permute.xlu2 %1184  ;;  %v1499_v42 = vld [vmem:[#allocation2 + $0xe2] sm:$0xff] }
 0x191   : > { %1253 = vst.msk [vmem:[#allocation3 + $0x70] sm:$0xf] %vm1224_vm6, %v1185_v51  ;;  %v1500_v51 = vld [vmem:[#allocation2 + $0xf2] sm:$0xff] }
 0x192   : > { %v1171_v57 = vpop.permute.xlu1 %1170 }
 0x193   : > { %1246 = vst.msk [vmem:[#allocation3 + $0x54] sm:$0xf] %vm1224_vm6, %v1171_v57  ;;  %1586 = vrot.lane.b32.xlu0 %v3891_v39, %s3160_s15  ;;  %v1502_v57 = vld [vmem:[#allocation2 + $0x10a] sm:$0xff] }
 0x195   : > { %v1181_v0 = vpop.permute.xlu0 %1180 }
 0x196   : > { %1251 = vst.msk [vmem:[#allocation3 + $0x68] sm:$0xf] %vm1224_vm6, %v1181_v0  ;;  %1578 = vrot.lane.b32.xlu2 %v1514_v58, %s3160_s15  ;;  %v3970_v0 = vpack.c.bf16 %v1500_v51, %v1500_v51 }
 0x198   : > { %1582 = vrot.lane.b32.xlu1 %v3898_v61, %s3160_s15  ;;  %v1191_v5 = vpop.permute.xlu2 %1190 }
 0x199   : > { %1256 = vst.msk [vmem:[#allocation3 + $0x7c] sm:$0xf] %vm1224_vm6, %v1191_v5  ;;  %v1503_v5 = vld [vmem:[#allocation2 + $0x112] sm:$0xff] }
 0x19a   : > { %v1177_v24 = vpop.permute.xlu1 %1176  ;;  %v3983_v9 = vpack.c.bf16 %v1503_v5, %v1503_v5  ;;  %v1717_v5 = vld [vmem:[#allocation2 + $0x98] sm:$0xff] }
 0x19b   : > { %1249 = vst.msk [vmem:[#allocation3 + $0x60] sm:$0xf] %vm1224_vm6, %v1177_v24  ;;  %1592 = vrot.lane.b32.xlu0 %v3522_v50, %s3160_s15  ;;  %v3923_v50 = vpack.c.bf16 %v1490_v13, %v1490_v13  ;;  %v1505_v24 = vld [vmem:[#allocation2 + $0x12a] sm:$0xff]  ;;  %v1506_v13 = vld [vmem:[#allocation2 + $0x13a] sm:$0xff] }
 0x19d   : > { %v1187_v34 = vpop.permute.xlu0 %1186 }
 0x19e   : > { %1254 = vst.msk [vmem:[#allocation3 + $0x74] sm:$0xf] %vm1224_vm6, %v1187_v34  ;;  %1584 = vrot.lane.b32.xlu2 %v3905_v22, %s3160_s15 }
 0x1a0   : > { %1588 = vrot.lane.b32.xlu1 %v3910_v8, %s3160_s15  ;;  %v1358_v47 = vpop.permute.xlu2 %1357 }
 0x1a1   : > { %1452 = vst.msk [vmem:[#allocation3 + $0x8] sm:$0xf] %vm1449_vm7, %v1358_v47 }
 0x1a2   : > { %v1183_v19 = vpop.permute.xlu1 %1182 }
 0x1a3   : > { %1252 = vst.msk [vmem:[#allocation3 + $0x6c] sm:$0xf] %vm1224_vm6, %v1183_v19  ;;  %1598 = vrot.lane.b32.xlu0 %v3542_v1, %s3160_s15  ;;  %v3936_v1 = vpack.c.bf16 %v1493_v54, %v1493_v54 }
 0x1a5   : > { %v1354_v59 = vpop.permute.xlu0 %1353 }
 0x1a6   : > { %1450 = vst.msk [vmem:[#allocation3] sm:$0xf] %vm1449_vm7, %v1354_v59  ;;  %1590 = vrot.lane.b32.xlu2 %v3918_v43, %s3160_s15  ;;  %v1508_v59 = vld [vmem:[#allocation2 + $0x152] sm:$0xff] }
 0x1a8   : > { %1594 = vrot.lane.b32.xlu1 %v3923_v50, %s3160_s15  ;;  %v1364_v38 = vpop.permute.xlu2 %1363 }
 0x1a9   : > { %1455 = vst.msk [vmem:[#allocation3 + $0x14] sm:$0xf] %vm1449_vm7, %v1364_v38  ;;  %v3996_v38 = vpack.c.bf16 %v1506_v13, %v1506_v13 }
 0x1aa   : > { %v1189_v14 = vpop.permute.xlu1 %1188 }
 0x1ab   : > { %1255 = vst.msk [vmem:[#allocation3 + $0x78] sm:$0xf] %vm1224_vm6, %v1189_v14  ;;  %1604 = vrot.lane.b32.xlu0 %v3563_v21, %s3160_s15  ;;  %v3949_v21 = vpack.c.bf16 %v1496_v16, %v1496_v16  ;;  %v1509_v14 = vld [vmem:[#allocation2 + $0x15a] sm:$0xff] }
 0x1ac   : > { %v4009_v16 = vpack.c.bf16 %v1509_v14, %v1509_v14 }
 0x1ad   : > { %v1360_v28 = vpop.permute.xlu0 %1359 }
 0x1ae   : > { %1453 = vst.msk [vmem:[#allocation3 + $0xc] sm:$0xf] %vm1449_vm7, %v1360_v28  ;;  %1596 = vrot.lane.b32.xlu2 %v3931_v26, %s3160_s15 }
 0x1b0   : > { %1600 = vrot.lane.b32.xlu1 %v3936_v1, %s3160_s15  ;;  %v1370_v32 = vpop.permute.xlu2 %1369 }
 0x1b1   : > { %1458 = vst.msk [vmem:[#allocation3 + $0x20] sm:$0xf] %vm1449_vm7, %v1370_v32 }
 0x1b2   : > { %v1356_v52 = vpop.permute.xlu1 %1355 }
 0x1b3   : > { %1451 = vst.msk [vmem:[#allocation3 + $0x4] sm:$0xf] %vm1449_vm7, %v1356_v52  ;;  %1610 = vrot.lane.b32.xlu0 %v3584_v41, %s3160_s15  ;;  %v3962_v41 = vpack.c.bf16 %v1499_v42, %v1499_v42 }
 0x1b5   : > { %v1366_v36 = vpop.permute.xlu0 %1365 }
 0x1b6   : > { %1456 = vst.msk [vmem:[#allocation3 + $0x18] sm:$0xf] %vm1449_vm7, %v1366_v36  ;;  %1602 = vrot.lane.b32.xlu2 %v3944_v35, %s3160_s15  ;;  %v1709_v36 = vld [vmem:[#allocation2 + $0x38] sm:$0xff] }
 0x1b7   : > { %v1741_v42 = vpack.c.bf16 %v1709_v36, %v1709_v36 }
 0x1b8   : > { %1606 = vrot.lane.b32.xlu1 %v3949_v21, %s3160_s15  ;;  %v1376_v40 = vpop.permute.xlu2 %1375 }
 0x1b9   : > { %1461 = vst.msk [vmem:[#allocation3 + $0x2c] sm:$0xf] %vm1449_vm7, %v1376_v40 }
 0x1ba   : > { %v1362_v44 = vpop.permute.xlu1 %1361 }
 0x1bb   : > { %1454 = vst.msk [vmem:[#allocation3 + $0x10] sm:$0xf] %vm1449_vm7, %v1362_v44  ;;  %1616 = vrot.lane.b32.xlu0 %v3605_v60, %s3160_s15  ;;  %v3975_v60 = vpack.c.bf16 %v1502_v57, %v1502_v57 }
 0x1bd   : > { %v1372_v49 = vpop.permute.xlu0 %1371 }
 0x1be   : > { %1459 = vst.msk [vmem:[#allocation3 + $0x24] sm:$0xf] %vm1449_vm7, %v1372_v49  ;;  %1608 = vrot.lane.b32.xlu2 %v3957_v3, %s3160_s15 }
 0x1c0   : > { %1612 = vrot.lane.b32.xlu1 %v3962_v41, %s3160_s15  ;;  %v1382_v53 = vpop.permute.xlu2 %1381 }
 0x1c1   : > { %1464 = vst.msk [vmem:[#allocation3 + $0x38] sm:$0xf] %vm1449_vm7, %v1382_v53  ;;  %v1710_v53 = vld [vmem:[#allocation2 + $0x48] sm:$0xff] }
 0x1c2   : > { %v1368_v58 = vpop.permute.xlu1 %1367 }
 0x1c3   : > { %1457 = vst.msk [vmem:[#allocation3 + $0x1c] sm:$0xf] %vm1449_vm7, %v1368_v58  ;;  %1622 = vrot.lane.b32.xlu0 %v3626_v23, %s3160_s15  ;;  %v3988_v23 = vpack.c.bf16 %v1505_v24, %v1505_v24 }
 0x1c5   : > { %v1378_v4 = vpop.permute.xlu0 %1377 }
 0x1c6   : > { %1462 = vst.msk [vmem:[#allocation3 + $0x30] sm:$0xf] %vm1449_vm7, %v1378_v4  ;;  %1614 = vrot.lane.b32.xlu2 %v3970_v0, %s3160_s15  ;;  %v1711_v4 = vld [vmem:[#allocation2 + $0x50] sm:$0xff] }
 0x1c7   : > { %v1743_v24 = vpack.c.bf16 %v1711_v4, %v1711_v4 }
 0x1c8   : > { %1618 = vrot.lane.b32.xlu1 %v3975_v60, %s3160_s15  ;;  %v1388_v7 = vpop.permute.xlu2 %1387 }
 0x1c9   : > { %1467 = vst.msk [vmem:[#allocation3 + $0x44] sm:$0xf] %vm1449_vm7, %v1388_v7 }
 0x1ca   : > { %v1374_v34 = vpop.permute.xlu1 %1373 }
 0x1cb   : > { %1460 = vst.msk [vmem:[#allocation3 + $0x28] sm:$0xf] %vm1449_vm7, %v1374_v34  ;;  %1628 = vrot.lane.b32.xlu0 %v3647_v48, %s3160_s15  ;;  %v4001_v48 = vpack.c.bf16 %v1508_v59, %v1508_v59  ;;  %v1749_v34 = vpack.c.bf16 %v1717_v5, %v1717_v5  ;;  %v2169_v5 = vld [vmem:[#allocation2 + $0xb2] sm:$0xff] }
 0x1cd   : > { %v1384_v47 = vpop.permute.xlu0 %1383 }
 0x1ce   : > { %1465 = vst.msk [vmem:[#allocation3 + $0x3c] sm:$0xf] %vm1449_vm7, %v1384_v47  ;;  %1620 = vrot.lane.b32.xlu2 %v3983_v9, %s3160_s15 }
 0x1d0   : > { %1624 = vrot.lane.b32.xlu1 %v3988_v23, %s3160_s15  ;;  %v1394_v19 = vpop.permute.xlu2 %1393 }
 0x1d1   : > { %1470 = vst.msk [vmem:[#allocation3 + $0x50] sm:$0xf] %vm1449_vm7, %v1394_v19 }
 0x1d2   : > { %v1380_v20 = vpop.permute.xlu1 %1379 }
 0x1d3   : > { %1463 = vst.msk [vmem:[#allocation3 + $0x34] sm:$0xf] %vm1449_vm7, %v1380_v20  ;;  %1634 = vrot.lane.b32.xlu0 %v3662_v63, %s3160_s15  ;;  %v1740_v63 = vpack.c.bf16 %v1708_v6, %v1708_v6 }
 0x1d5   : > { %v1390_v54 = vpop.permute.xlu0 %1389 }
 0x1d6   : > { %1468 = vst.msk [vmem:[#allocation3 + $0x48] sm:$0xf] %vm1449_vm7, %v1390_v54  ;;  %1626 = vrot.lane.b32.xlu2 %v3996_v38, %s3160_s15 }
 0x1d8   : > { %1630 = vrot.lane.b32.xlu1 %v4001_v48, %s3160_s15  ;;  %v1400_v28 = vpop.permute.xlu2 %1399 }
 0x1d9   : > { %1473 = vst.msk [vmem:[#allocation3 + $0x5c] sm:$0xf] %vm1449_vm7, %v1400_v28  ;;  %v2175_v28 = vld [vmem:[#allocation2 + $0xfa] sm:$0xff] }
 0x1da   : > { %v1386_v32 = vpop.permute.xlu1 %1385 }
 0x1db   : > { %1466 = vst.msk [vmem:[#allocation3 + $0x40] sm:$0xf] %vm1449_vm7, %v1386_v32  ;;  %2029 = vrot.lane.b32.xlu0 %v3784_v10, %s3161_s16  ;;  %v1716_v10 = vld [vmem:[#allocation2 + $0x90] sm:$0xff] }
 0x1dc   : > { %v1748_v49 = vpack.c.bf16 %v1716_v10, %v1716_v10 }
 0x1dd   : > { %v1396_v52 = vpop.permute.xlu0 %1395 }
 0x1de   : > { %1471 = vst.msk [vmem:[#allocation3 + $0x54] sm:$0xf] %vm1449_vm7, %v1396_v52  ;;  %1632 = vrot.lane.b32.xlu2 %v4009_v16, %s3160_s15 }
 0x1e0   : > { %1804 = vrot.lane.b32.xlu1 %v1740_v63, %s3162_s17  ;;  %v1406_v46 = vpop.permute.xlu2 %1405 }
 0x1e1   : > { %1476 = vst.msk [vmem:[#allocation3 + $0x68] sm:$0xf] %vm1449_vm7, %v1406_v46 }
 0x1e2   : > { %v1392_v40 = vpop.permute.xlu1 %1391 }
 0x1e3   : > { %1469 = vst.msk [vmem:[#allocation3 + $0x4c] sm:$0xf] %vm1449_vm7, %v1392_v40  ;;  %2256 = vrot.lane.b32.xlu0 %v3905_v22, %s3163_s18  ;;  %v1742_v22 = vpack.c.bf16 %v1710_v53, %v1710_v53  ;;  %v1719_v53 = vld [vmem:[#allocation2 + $0xb0] sm:$0xff] }
 0x1e5   : > { %v1402_v44 = vpop.permute.xlu0 %1401 }
 0x1e6   : > { %1474 = vst.msk [vmem:[#allocation3 + $0x60] sm:$0xf] %vm1449_vm7, %v1402_v44  ;;  %1806 = vrot.lane.b32.xlu2 %v1741_v42, %s3162_s17  ;;  %v1712_v42 = vld [vmem:[#allocation2 + $0x60] sm:$0xff] }
 0x1e7   : > { %v1744_v44 = vpack.c.bf16 %v1712_v42, %v1712_v42 }
 0x1e8   : > { %2031 = vrot.lane.b32.xlu1 %v3771_v2, %s3161_s16  ;;  %v1412_v51 = vpop.permute.xlu2 %1411 }
 0x1e9   : > { %1479 = vst.msk [vmem:[#allocation3 + $0x74] sm:$0xf] %vm1449_vm7, %v1412_v51  ;;  %v1713_v51 = vld [vmem:[#allocation2 + $0x68] sm:$0xff] }
 0x1ea   : > { %v1398_v57 = vpop.permute.xlu1 %1397 }
 0x1eb   : > { %1472 = vst.msk [vmem:[#allocation3 + $0x58] sm:$0xf] %vm1449_vm7, %v1398_v57  ;;  %1820 = vrot.lane.b32.xlu0 %v1748_v49, %s3162_s17 }
 0x1ed   : > { %v1408_v58 = vpop.permute.xlu0 %1407 }
 0x1ee   : > { %1477 = vst.msk [vmem:[#allocation3 + $0x6c] sm:$0xf] %vm1449_vm7, %v1408_v58  ;;  %2254 = vrot.lane.b32.xlu2 %v3898_v61, %s3163_s18  ;;  %v1751_v58 = vpack.c.bf16 %v1719_v53, %v1719_v53  ;;  %v1721_v53 = vld [vmem:[#allocation2 + $0xc8] sm:$0xff] }
 0x1f0   : > { %1808 = vrot.lane.b32.xlu1 %v1742_v22, %s3162_s17  ;;  %v1579_v2 = vpop.permute.xlu2 %1578  ;;  %v1745_v22 = vpack.c.bf16 %v1713_v51, %v1713_v51 }
 0x1f1   : > { %1675 = vst.msk [vmem:[#allocation3] sm:$0xf] %vm1674_vm8, %v1579_v2 }
 0x1f2   : > { %v1404_v7 = vpop.permute.xlu1 %1403 }
 0x1f3   : > { %1475 = vst.msk [vmem:[#allocation3 + $0x64] sm:$0xf] %vm1449_vm7, %v1404_v7  ;;  %2035 = vrot.lane.b32.xlu0 %v3797_v62, %s3161_s16 }
 0x1f5   : > { %v1414_v47 = vpop.permute.xlu0 %1413 }
 0x1f6   : > { %1480 = vst.msk [vmem:[#allocation3 + $0x78] sm:$0xf] %vm1449_vm7, %v1414_v47  ;;  %1810 = vrot.lane.b32.xlu2 %v1743_v24, %s3162_s17 }
 0x1f8   : > { %1822 = vrot.lane.b32.xlu1 %v1749_v34, %s3162_s17  ;;  %v1585_v61 = vpop.permute.xlu2 %1584  ;;  %v2201_v34 = vpack.c.bf16 %v2169_v5, %v2169_v5 }
 0x1f9   : > { %1678 = vst.msk [vmem:[#allocation3 + $0xc] sm:$0xf] %vm1674_vm8, %v1585_v61 }
 0x1fa   : > { %v1410_v13 = vpop.permute.xlu1 %1409 }
 0x1fb   : > { %1478 = vst.msk [vmem:[#allocation3 + $0x70] sm:$0xf] %vm1449_vm7, %v1410_v13  ;;  %2258 = vrot.lane.b32.xlu0 %v3891_v39, %s3163_s18  ;;  %v2166_v39 = vld [vmem:[#allocation2 + $0x92] sm:$0xff] }
 0x1fc   : > { %v2198_v14 = vpack.c.bf16 %v2166_v39, %v2166_v39 }
 0x1fd   : > { %v1581_v19 = vpop.permute.xlu0 %1580 }
 0x1fe   : > { %1676 = vst.msk [vmem:[#allocation3 + $0x4] sm:$0xf] %vm1674_vm8, %v1581_v19  ;;  %2033 = vrot.lane.b32.xlu2 %v3789_v12, %s3161_s16 }
 0x200   : > { %2045 = vrot.lane.b32.xlu1 %v3814_v25, %s3161_s16  ;;  %v1591_v62 = vpop.permute.xlu2 %1590  ;;  %v1724_v25 = vld [vmem:[#allocation2 + $0xf0] sm:$0xff] }
 0x201   : > { %1681 = vst.msk [vmem:[#allocation3 + $0x18] sm:$0xf] %vm1674_vm8, %v1591_v62  ;;  %v1732_v62 = vld [vmem:[#allocation2 + $0x150] sm:$0xff] }
 0x202   : > { %v1416_v59 = vpop.permute.xlu1 %1415 }
 0x203   : > { %1481 = vst.msk [vmem:[#allocation3 + $0x7c] sm:$0xf] %vm1449_vm7, %v1416_v59  ;;  %2272 = vrot.lane.b32.xlu0 %v3936_v1, %s3163_s18  ;;  %v1756_v1 = vpack.c.bf16 %v1724_v25, %v1724_v25  ;;  %v1726_v25 = vld [vmem:[#allocation2 + $0x108] sm:$0xff] }
 0x205   : > { %v1587_v20 = vpop.permute.xlu0 %1586 }
 0x206   : > { %1679 = vst.msk [vmem:[#allocation3 + $0x10] sm:$0xf] %vm1674_vm8, %v1587_v20  ;;  %2047 = vrot.lane.b32.xlu2 %v3821_v33, %s3161_s16  ;;  %v2207_v33 = vpack.c.bf16 %v2175_v28, %v2175_v28  ;;  %v1764_v20 = vpack.c.bf16 %v1732_v62, %v1732_v62  ;;  %v1727_v28 = vld [vmem:[#allocation2 + $0x110] sm:$0xff] }
 0x208   : > { %2260 = vrot.lane.b32.xlu1 %v3910_v8, %s3163_s18  ;;  %v1597_v12 = vpop.permute.xlu2 %1596  ;;  %v1725_v8 = vld [vmem:[#allocation2 + $0xf8] sm:$0xff] }
 0x209   : > { %1684 = vst.msk [vmem:[#allocation3 + $0x24] sm:$0xf] %vm1674_vm8, %v1597_v12  ;;  %v1757_v52 = vpack.c.bf16 %v1725_v8, %v1725_v8  ;;  %v3109_v12 = vld [vmem:[%s4543_s3 + $0x10] sm:$0xff]  ;;  %v1733_v8 = vld [vmem:[#allocation2 + $0x158] sm:$0xff] }
 0x20a   : > { %v1583_v54 = vpop.permute.xlu1 %1582 }
 0x20b   : > { %1677 = vst.msk [vmem:[#allocation3 + $0x8] sm:$0xf] %vm1674_vm8, %v1583_v54  ;;  %2061 = vrot.lane.b32.xlu0 %v3830_v27, %s3161_s16  ;;  %v1718_v27 = vld [vmem:[#allocation2 + $0xa8] sm:$0xff] }
 0x20c   : > { %v1750_v46 = vpack.c.bf16 %v1718_v27, %v1718_v27 }
 0x20d   : > { %v1593_v6 = vpop.permute.xlu0 %1592 }
 0x20e   : > { %1682 = vst.msk [vmem:[#allocation3 + $0x1c] sm:$0xf] %vm1674_vm8, %v1593_v6  ;;  %2270 = vrot.lane.b32.xlu2 %v2198_v14, %s3163_s18  ;;  %v3108_v14 = vld [vmem:[%s4543_s3 + $0x8] sm:$0xff] }
 0x210   : > { %1836 = vrot.lane.b32.xlu1 %v1756_v1, %s3162_s17  ;;  %v1603_v32 = vpop.permute.xlu2 %1602 }
 0x211   : > { %1687 = vst.msk [vmem:[#allocation3 + $0x30] sm:$0xf] %vm1674_vm8, %v1603_v32 }
 0x212   : > { %v1589_v63 = vpop.permute.xlu1 %1588 }
 0x213   : > { %1680 = vst.msk [vmem:[#allocation3 + $0x14] sm:$0xf] %vm1674_vm8, %v1589_v63  ;;  %2288 = vrot.lane.b32.xlu0 %v2207_v33, %s3163_s18  ;;  %v3107_v33 = vld [vmem:[%s4543_s3] sm:$0xff]  ;;  %v1759_v63 = vpack.c.bf16 %v1727_v28, %v1727_v28 }
 0x215   : > { %v1599_v36 = vpop.permute.xlu0 %1598 }
 0x216   : > { %1685 = vst.msk [vmem:[#allocation3 + $0x28] sm:$0xf] %vm1674_vm8, %v1599_v36  ;;  %1838 = vrot.lane.b32.xlu2 %v1757_v52, %s3162_s17 }
 0x218   : > { %2063 = vrot.lane.b32.xlu1 %v3850_v55, %s3161_s16  ;;  %v1609_v40 = vpop.permute.xlu2 %1608 }
 0x219   : > { %1690 = vst.msk [vmem:[#allocation3 + $0x3c] sm:$0xf] %vm1674_vm8, %v1609_v40 }
 0x21a   : > { %v1595_v10 = vpop.permute.xlu1 %1594 }
 0x21b   : > { %1683 = vst.msk [vmem:[#allocation3 + $0x20] sm:$0xf] %vm1674_vm8, %v1595_v10  ;;  %1824 = vrot.lane.b32.xlu0 %v1750_v46, %s3162_s17  ;;  %v1714_v10 = vld [vmem:[#allocation2 + $0x78] sm:$0xff] }
 0x21d   : > { %v1605_v49 = vpop.permute.xlu0 %1604 }
 0x21e   : > { %1688 = vst.msk [vmem:[#allocation3 + $0x34] sm:$0xf] %vm1674_vm8, %v1605_v49  ;;  %2286 = vrot.lane.b32.xlu2 %v3970_v0, %s3163_s18  ;;  %v1940_v49 = vld [vmem:[#allocation2 + $0x81] sm:$0xff] }
 0x220   : > { %1812 = vrot.lane.b32.xlu1 %v1744_v44, %s3162_s17  ;;  %v1615_v55 = vpop.permute.xlu2 %1614 }
 0x221   : > { %1693 = vst.msk [vmem:[#allocation3 + $0x48] sm:$0xf] %vm1674_vm8, %v1615_v55  ;;  %v1715_v55 = vld [vmem:[#allocation2 + $0x80] sm:$0xff] }
 0x222   : > { %v1601_v57 = vpop.permute.xlu1 %1600 }
 0x223   : > { %1686 = vst.msk [vmem:[#allocation3 + $0x2c] sm:$0xf] %vm1674_vm8, %v1601_v57  ;;  %2039 = vrot.lane.b32.xlu0 %v3801_v30, %s3161_s16  ;;  %v2423_v30 = vld [vmem:[%s4543_s3 + $0x20] sm:$0xf] }
 0x224   : > { %v2521_v24 = vunpack.c.l.b16 %v2423_v30 }
 0x225   : > { %v1611_v4 = vpop.permute.xlu0 %1610 }
 0x226   : > { %1691 = vst.msk [vmem:[#allocation3 + $0x40] sm:$0xf] %vm1674_vm8, %v1611_v4  ;;  %1814 = vrot.lane.b32.xlu2 %v1745_v22, %s3162_s17  ;;  %v2526_v47 = vpack.c.b16 %v2521_v24, %v2521_v24  ;;  %v1747_v22 = vpack.c.bf16 %v1715_v55, %v1715_v55  ;;  %v1753_v4 = vpack.c.bf16 %v1721_v53, %v1721_v53  ;;  %v1946_v24 = vld [vmem:[#allocation2 + $0xc9] sm:$0xff]  ;;  %v1948_v55 = vld [vmem:[#allocation2 + $0xe1] sm:$0xff] }
 0x228   : > { %1826 = vrot.lane.b32.xlu1 %v1751_v58, %s3162_s17  ;;  %v1621_v0 = vpop.permute.xlu2 %1620  ;;  %v2582_v13 = vsel %vm2580_vm9, %v2526_v47, 0 }
 0x229   : > { %1696 = vst.msk [vmem:[#allocation3 + $0x54] sm:$0xf] %vm1674_vm8, %v1621_v0  ;;  %2587 = vmatpush.bf16.msra.mxu0 %v2582_v13  ;;  %3111 = vmatpush.bf16.msra.mxu1 %v2582_v13 }
 0x22a   : > { %v1607_v2 = vpop.permute.xlu1 %1606  ;;  %3112 = vmatpush.bf16.msra.mxu2 %v2582_v13  ;;  %3113 = vmatpush.bf16.msra.mxu3 %v2582_v13 }
 0x22b   : > { %1689 = vst.msk [vmem:[#allocation3 + $0x38] sm:$0xf] %vm1674_vm8, %v1607_v2  ;;  %2262 = vrot.lane.b32.xlu0 %v3918_v43, %s3163_s18  ;;  %v2163_v43 = vld [vmem:[#allocation2 + $0x6a] sm:$0xff] }
 0x22d   : > { %v1617_v7 = vpop.permute.xlu0 %1616 }
 0x22e   : > { %1694 = vst.msk [vmem:[#allocation3 + $0x4c] sm:$0xf] %vm1674_vm8, %v1617_v7  ;;  %2037 = vrot.lane.b32.xlu2 %v3780_v29, %s3161_s16  ;;  %v2195_v29 = vpack.c.bf16 %v2163_v43, %v2163_v43 }
 0x230   : > { %2049 = vrot.lane.b32.xlu1 %v3806_v15, %s3161_s16  ;;  %v1627_v61 = vpop.permute.xlu2 %1626  ;;  %v3110_v15 = vld [vmem:[%s4543_s3 + $0x18] sm:$0xff] }
 0x231   : > { %1699 = vst.msk [vmem:[#allocation3 + $0x60] sm:$0xf] %vm1674_vm8, %v1627_v61  ;;  %2588 = vmatpush.bf16.msra.mxu0 %v3110_v15  ;;  %3114 = vmatpush.bf16.msra.mxu1 %v3110_v15  ;;  %v1978_v61 = vpack.c.bf16 %v1946_v24, %v1946_v24 }
 0x232   : > { %v1613_v19 = vpop.permute.xlu1 %1612  ;;  %3115 = vmatpush.bf16.msra.mxu2 %v3110_v15  ;;  %3116 = vmatpush.bf16.msra.mxu3 %v3110_v15 }
 0x233   : > { %1692 = vst.msk [vmem:[#allocation3 + $0x44] sm:$0xf] %vm1674_vm8, %v1613_v19  ;;  %2276 = vrot.lane.b32.xlu0 %v2201_v34, %s3163_s18  ;;  %v1728_v19 = vld [vmem:[#allocation2 + $0x120] sm:$0xff] }
 0x235   : > { %v1623_v59 = vpop.permute.xlu0 %1622  ;;  %2589 = vmatpush.bf16.msra.mxu0 %v3109_v12  ;;  %3117 = vmatpush.bf16.msra.mxu1 %v3109_v12 }
 0x236   : > { %1697 = vst.msk [vmem:[#allocation3 + $0x58] sm:$0xf] %vm1674_vm8, %v1623_v59  ;;  %2051 = vrot.lane.b32.xlu2 %v3825_v31, %s3161_s16  ;;  %v1758_v31 = vpack.c.bf16 %v1726_v25, %v1726_v25  ;;  %3118 = vmatpush.bf16.msra.mxu2 %v3109_v12  ;;  %v1729_v59 = vld [vmem:[#allocation2 + $0x128] sm:$0xff] }
 0x237   : > { %3119 = vmatpush.bf16.msra.mxu3 %v3109_v12  ;;  %v1761_v25 = vpack.c.bf16 %v1729_v59, %v1729_v59  ;;  %v1956_v59 = vld [vmem:[#allocation2 + $0x141] sm:$0xff] }
 0x238   : > { %2264 = vrot.lane.b32.xlu1 %v2195_v29, %s3163_s18  ;;  %v1633_v39 = vpop.permute.xlu2 %1632 }
 0x239   : > { %1702 = vst.msk [vmem:[#allocation3 + $0x6c] sm:$0xf] %vm1674_vm8, %v1633_v39  ;;  %2590 = vmatpush.bf16.msra.mxu0 %v3108_v14  ;;  %3120 = vmatpush.bf16.msra.mxu1 %v3108_v14 }
 0x23a   : > { %v1619_v54 = vpop.permute.xlu1 %1618  ;;  %3121 = vmatpush.bf16.msra.mxu2 %v3108_v14 }
 0x23b   : > { %1695 = vst.msk [vmem:[#allocation3 + $0x50] sm:$0xf] %vm1674_vm8, %v1619_v54  ;;  %1852 = vrot.lane.b32.xlu0 %v1764_v20, %s3162_s17  ;;  %3122 = vmatpush.bf16.msra.mxu3 %v3108_v14  ;;  %v2178_v54 = vld [vmem:[#allocation2 + $0x122] sm:$0xff] }
 0x23c   : > { %v2210_v14 = vpack.c.bf16 %v2178_v54, %v2178_v54  ;;  %v1961_v54 = vld [vmem:[#allocation2 + $0x181] sm:$0xff] }
 0x23d   : > { %v1629_v1 = vpop.permute.xlu0 %1628  ;;  %2591 = vmatpush.bf16.msra.mxu0 %v3107_v33  ;;  %3123 = vmatpush.bf16.msra.mxu1 %v3107_v33 }
 0x23e   : > { %1700 = vst.msk [vmem:[#allocation3 + $0x64] sm:$0xf] %vm1674_vm8, %v1629_v1  ;;  %2274 = vrot.lane.b32.xlu2 %v3944_v35, %s3163_s18  ;;  %v1765_v35 = vpack.c.bf16 %v1733_v8, %v1733_v8  ;;  %3124 = vmatpush.bf16.msra.mxu2 %v3107_v33  ;;  %v1953_v1 = vld [vmem:[#allocation2 + $0x121] sm:$0xff] }
 0x23f   : > { %3125 = vmatpush.bf16.msra.mxu3 %v3107_v33  ;;  %v1985_v8 = vpack.c.bf16 %v1953_v1, %v1953_v1  ;;  %v1993_v1 = vpack.c.bf16 %v1961_v54, %v1961_v54 }
 0x240   : > { %1840 = vrot.lane.b32.xlu1 %v1758_v31, %s3162_s17  ;;  %v1807_v6 = vpop.permute.xlu2 %1806 }
 0x241   : > { %1902 = vst.msk [vmem:[#allocation3 + $0x4] sm:$0xf] %vm1900_vm10, %v1807_v6  ;;  %v1959_v6 = vld [vmem:[#allocation2 + $0x169] sm:$0xff] }
 0x242   : > { %v1625_v32 = vpop.permute.xlu1 %1624 }
 0x243   : > { %1698 = vst.msk [vmem:[#allocation3 + $0x5c] sm:$0xf] %vm1674_vm8, %v1625_v32  ;;  %2067 = vrot.lane.b32.xlu0 %v3843_v45, %s3161_s16  ;;  %v2185_v32 = vld [vmem:[#allocation2 + $0x172] sm:$0xff] }
 0x245   : > { %v1635_v52 = vpop.permute.xlu0 %1634 }
 0x246   : > { %1703 = vst.msk [vmem:[#allocation3 + $0x70] sm:$0xf] %vm1674_vm8, %v1635_v52  ;;  %1842 = vrot.lane.b32.xlu2 %v1759_v63, %s3162_s17  ;;  %v1960_v52 = vld [vmem:[#allocation2 + $0x171] sm:$0xff] }
 0x248   : > { %1854 = vrot.lane.b32.xlu1 %v1765_v35, %s3162_s17  ;;  %v2255_v27 = vpop.permute.xlu2 %2254  ;;  %v2217_v35 = vpack.c.bf16 %v2185_v32, %v2185_v32 }
 0x24a   : > { %v1631_v36 = vpop.permute.xlu1 %1630 }
 0x24b   : > { %1701 = vst.msk [vmem:[#allocation3 + $0x68] sm:$0xf] %vm1674_vm8, %v1631_v36  ;;  %2290 = vrot.lane.b32.xlu0 %v3975_v60, %s3163_s18  ;;  %v1720_v60 = vld [vmem:[#allocation2 + $0xc0] sm:$0xff] }
 0x24d   : > { %v2030_v46 = vpop.permute.xlu0 %2029 }
 0x24e   : > { %2065 = vrot.lane.b32.xlu2 %v3857_v37, %s3161_s16  ;;  %v1752_v37 = vpack.c.bf16 %v1720_v60, %v1720_v60 }
 0x250   : > { %2077 = vrot.lane.b32.xlu1 %v3878_v56, %s3161_s16  ;;  %v1811_v45 = vpop.permute.xlu2 %1810 }
 0x251   : > { %1904 = vst.msk [vmem:[#allocation3 + $0xc] sm:$0xf] %vm1900_vm10, %v1811_v45 }
 0x252   : > { %v1805_v40 = vpop.permute.xlu1 %1804 }
 0x253   : > { %1901 = vst.msk [vmem:[#allocation3] sm:$0xf] %vm1900_vm10, %v1805_v40  ;;  %2304 = vrot.lane.b32.xlu0 %v4009_v16, %s3163_s18  ;;  %v1746_v16 = vpack.c.bf16 %v1714_v10, %v1714_v10  ;;  %v1947_v40 = vld [vmem:[#allocation2 + $0xd9] sm:$0xff] }
 0x254   : > { %2126 = vst.msk [vmem:[#allocation3] sm:$0xf] %vm2125_vm11, %v2030_v46  ;;  %v1992_v46 = vpack.c.bf16 %v1960_v52, %v1960_v52  ;;  %v1722_v10 = vld [vmem:[#allocation2 + $0xd8] sm:$0xff] }
 0x255   : > { %v2257_v42 = vpop.permute.xlu0 %2256  ;;  %2351 = vst.msk [vmem:[#allocation3] sm:$0xf] %vm2350_vm12, %v2255_v27 }
 0x256   : > { %2079 = vrot.lane.b32.xlu2 %v3864_v18, %s3161_s16  ;;  %v1972_v18 = vpack.c.bf16 %v1940_v49, %v1940_v49  ;;  %v1754_v49 = vpack.c.bf16 %v1722_v10, %v1722_v10  ;;  %v1739_v10 = vld [vmem:[#allocation2 + $0x1a0] sm:$0xff] }
 0x258   : > { %2292 = vrot.lane.b32.xlu1 %v3983_v9, %s3163_s18  ;;  %v2034_v56 = vpop.permute.xlu2 %2033 }
 0x25a   : > { %v2032_v44 = vpop.permute.xlu1 %2031 }
 0x25b   : > { %2127 = vst.msk [vmem:[#allocation3 + $0x4] sm:$0xf] %vm2125_vm11, %v2032_v44  ;;  %1828 = vrot.lane.b32.xlu0 %v1752_v37, %s3162_s17  ;;  %v2184_v37 = vld [vmem:[#allocation2 + $0x16a] sm:$0xff] }
 0x25c   : > { %2352 = vst.msk [vmem:[#allocation3 + $0x4] sm:$0xf] %vm2350_vm12, %v2257_v42  ;;  %v1979_v42 = vpack.c.bf16 %v1947_v40, %v1947_v40 }
 0x25d   : > { %v1821_v51 = vpop.permute.xlu0 %1820 }
 0x25e   : > { %1909 = vst.msk [vmem:[#allocation3 + $0x20] sm:$0xf] %vm1900_vm10, %v1821_v51  ;;  %2302 = vrot.lane.b32.xlu2 %v4001_v48, %s3163_s18  ;;  %v1939_v48 = vld [vmem:[#allocation2 + $0x79] sm:$0xff] }
 0x25f   : > { %v1971_v30 = vpack.c.bf16 %v1939_v48, %v1939_v48 }
 0x260   : > { %1816 = vrot.lane.b32.xlu1 %v1746_v16, %s3162_s17  ;;  %v2048_v9 = vpop.permute.xlu2 %2047  ;;  %v2216_v16 = vpack.c.bf16 %v2184_v37, %v2184_v37 }
 0x262   : > { %v1809_v57 = vpop.permute.xlu1 %1808 }
 0x263   : > { %1903 = vst.msk [vmem:[#allocation3 + $0x8] sm:$0xf] %vm1900_vm10, %v1809_v57  ;;  %2043 = vrot.lane.b32.xlu0 %v1972_v18, %s3161_s16  ;;  %v3091_v58 = vld [vmem:[#allocation3] sm:$0xff]  ;;  %v1723_v18 = vld [vmem:[#allocation2 + $0xe0] sm:$0xff]  ;;  %v1980_v57 = vpack.c.bf16 %v1948_v55, %v1948_v55 }
 0x264   : > { %2128 = vst.msk [vmem:[#allocation3 + $0x8] sm:$0xf] %vm2125_vm11, %v2034_v56  ;;  %3071 = vmatmul.msk.bf16.vlgmr.msra.gmra.mxu0 %vm2531_vm13, %v3091_v58  ;;  %v1755_v53 = vpack.c.bf16 %v1723_v18, %v1723_v18  ;;  %v2188_v55 = vld [vmem:[#allocation2 + $0x19a] sm:$0xff] }
 0x265   : > { %v2036_v0 = vpop.permute.xlu0 %2035 }
 0x266   : > { %2129 = vst.msk [vmem:[#allocation3 + $0xc] sm:$0xf] %vm2125_vm11, %v2036_v0  ;;  %1818 = vrot.lane.b32.xlu2 %v1747_v22, %s3162_s17  ;;  %v1731_v22 = vld [vmem:[#allocation2 + $0x140] sm:$0xff] }
 0x267   : > { %v2172_v0 = vld [vmem:[#allocation2 + $0xda] sm:$0xff] }
 0x268   : > { %1830 = vrot.lane.b32.xlu1 %v1753_v4, %s3162_s17  ;;  %v2271_v2 = vpop.permute.xlu2 %2270  ;;  %v1763_v4 = vpack.c.bf16 %v1731_v22, %v1731_v22  ;;  %v2220_v22 = vpack.c.bf16 %v2188_v55, %v2188_v55 }
 0x26a   : > { %v1823_v5 = vpop.permute.xlu1 %1822 }
 0x26b   : > { %1910 = vst.msk [vmem:[#allocation3 + $0x24] sm:$0xf] %vm1900_vm10, %v1823_v5  ;;  %2266 = vrot.lane.b32.xlu0 %v3923_v50, %s3163_s18  ;;  %v1734_v50 = vld [vmem:[#allocation2 + $0x168] sm:$0xff]  ;;  %v2204_v5 = vpack.c.bf16 %v2172_v0, %v2172_v0 }
 0x26c   : > { %2135 = vst.msk [vmem:[#allocation3 + $0x24] sm:$0xf] %vm2125_vm11, %v2048_v9  ;;  %v1766_v13 = vpack.c.bf16 %v1734_v50, %v1734_v50 }
 0x26d   : > { %v2259_v7 = vpop.permute.xlu0 %2258 }
 0x26e   : > { %2353 = vst.msk [vmem:[#allocation3 + $0x8] sm:$0xf] %vm2350_vm12, %v2259_v7  ;;  %2041 = vrot.lane.b32.xlu2 %v1971_v30, %s3161_s16 }
 0x270   : > { %2053 = vrot.lane.b32.xlu1 %v3835_v11, %s3161_s16  ;;  %v1839_v34 = vpop.permute.xlu2 %1838 }
 0x271   : > { %1918 = vst.msk [vmem:[#allocation3 + $0x44] sm:$0xf] %vm1900_vm10, %v1839_v34  ;;  %v1730_v34 = vld [vmem:[#allocation2 + $0x138] sm:$0xff] }
 0x272   : > { %v2046_v47 = vpop.permute.xlu1 %2045 }
 0x273   : > { %2134 = vst.msk [vmem:[#allocation3 + $0x20] sm:$0xf] %vm2125_vm11, %v2046_v47  ;;  %2280 = vrot.lane.b32.xlu0 %v3957_v3, %s3163_s18  ;;  %v1760_v3 = vpack.c.bf16 %v1728_v19, %v1728_v19  ;;  %v1962_v19 = vld [vmem:[#allocation2 + $0x189] sm:$0xff] }
 0x274   : > { %2359 = vst.msk [vmem:[#allocation3 + $0x20] sm:$0xf] %vm2350_vm12, %v2271_v2 }
 0x275   : > { %v2273_v43 = vpop.permute.xlu0 %2272 }
 0x276   : > { %2360 = vst.msk [vmem:[#allocation3 + $0x24] sm:$0xf] %vm2350_vm12, %v2273_v43  ;;  %2055 = vrot.lane.b32.xlu2 %v1978_v61, %s3161_s16  ;;  %v1736_v61 = vld [vmem:[#allocation2 + $0x180] sm:$0xff] }
 0x278   : > { %2268 = vrot.lane.b32.xlu1 %v3931_v26, %s3163_s18  ;;  %v2287_v11 = vpop.permute.xlu2 %2286  ;;  %v1735_v26 = vld [vmem:[#allocation2 + $0x170] sm:$0xff] }
 0x27a   : > { %v2261_v29 = vpop.permute.xlu1 %2260 }
 0x27b   : > { %2354 = vst.msk [vmem:[#allocation3 + $0xc] sm:$0xf] %vm2350_vm12, %v2261_v29  ;;  %1856 = vrot.lane.b32.xlu0 %v1766_v13, %s3162_s17  ;;  %v1762_v13 = vpack.c.bf16 %v1730_v34, %v1730_v34 }
 0x27d   : > { %v2062_v62 = vpop.permute.xlu0 %2061  ;;  %v3095_v15 = vld [vmem:[#allocation3 + $0x20] sm:$0xff] }
 0x27e   : > { %2278 = vrot.lane.b32.xlu2 %v3949_v21, %s3163_s18  ;;  %3075 = vmatmul.msk.bf16.vlgmr.msra.gmra.mxu1 %vm2531_vm13, %v3095_v15  ;;  %v1767_v21 = vpack.c.bf16 %v1735_v26, %v1735_v26 }
 0x280   : > { %1844 = vrot.lane.b32.xlu1 %v1760_v3, %s3162_s17  ;;  %v1815_v20 = vpop.permute.xlu2 %1814  ;;  %v1994_v3 = vpack.c.bf16 %v1962_v19, %v1962_v19 }
 0x281   : > { %1906 = vst.msk [vmem:[#allocation3 + $0x14] sm:$0xf] %vm1900_vm10, %v1815_v20 }
 0x282   : > { %v1837_v39 = vpop.permute.xlu1 %1836  ;;  %v3092_v12 = vld [vmem:[#allocation3 + $0x8] sm:$0xff] }
 0x283   : > { %1917 = vst.msk [vmem:[#allocation3 + $0x40] sm:$0xf] %vm1900_vm10, %v1837_v39  ;;  %2071 = vrot.lane.b32.xlu0 %v3868_v17, %s3161_s16  ;;  %3072 = vmatmul.msk.bf16.gmra.mxu0 %vm2531_vm13, %v3092_v12  ;;  %v1991_v17 = vpack.c.bf16 %v1959_v6, %v1959_v6  ;;  %v1988_v39 = vpack.c.bf16 %v1956_v59, %v1956_v59  ;;  %v2186_v12 = vld [vmem:[#allocation2 + $0x182] sm:$0xff] }
 0x284   : > { %2142 = vst.msk [vmem:[#allocation3 + $0x40] sm:$0xf] %vm2125_vm11, %v2062_v62  ;;  %v1737_v62 = vld [vmem:[#allocation2 + $0x188] sm:$0xff] }
 0x285   : > { %v2289_v31 = vpop.permute.xlu0 %2288  ;;  %2367 = vst.msk [vmem:[#allocation3 + $0x40] sm:$0xf] %vm2350_vm12, %v2287_v11  ;;  %v1768_v11 = vpack.c.bf16 %v1736_v61, %v1736_v61  ;;  %v1769_v26 = vpack.c.bf16 %v1737_v62, %v1737_v62 }
 0x286   : > { %1846 = vrot.lane.b32.xlu2 %v1761_v25, %s3162_s17 }
 0x288   : > { %1858 = vrot.lane.b32.xlu1 %v1767_v21, %s3162_s17  ;;  %v2038_v28 = vpop.permute.xlu2 %2037  ;;  %v2218_v21 = vpack.c.bf16 %v2186_v12, %v2186_v12 }
 0x28a   : > { %v2064_v33 = vpop.permute.xlu1 %2063 }
 0x28b   : > { %2143 = vst.msk [vmem:[#allocation3 + $0x44] sm:$0xf] %vm2125_vm11, %v2064_v33  ;;  %2294 = vrot.lane.b32.xlu0 %v2210_v14, %s3163_s18 }
 0x28c   : > { %2368 = vst.msk [vmem:[#allocation3 + $0x44] sm:$0xf] %vm2350_vm12, %v2289_v31 }
 0x28d   : > { %v1825_v63 = vpop.permute.xlu0 %1824 }
 0x28e   : > { %1911 = vst.msk [vmem:[#allocation3 + $0x28] sm:$0xf] %vm1900_vm10, %v1825_v63  ;;  %2069 = vrot.lane.b32.xlu2 %v1985_v8, %s3161_s16  ;;  %v2181_v8 = vld [vmem:[#allocation2 + $0x142] sm:$0xff] }
 0x28f   : > { %v2213_v63 = vpack.c.bf16 %v2181_v8, %v2181_v8 }
 0x290   : > { %2081 = vrot.lane.b32.xlu1 %v1991_v17, %s3161_s16  ;;  %v2052_v27 = vpop.permute.xlu2 %2051 }
 0x292   : > { %v1813_v36 = vpop.permute.xlu1 %1812 }
 0x293   : > { %1905 = vst.msk [vmem:[#allocation3 + $0x10] sm:$0xf] %vm1900_vm10, %v1813_v36  ;;  %2308 = vrot.lane.b32.xlu0 %v2217_v35, %s3163_s18  ;;  %v3099_v45 = vld [vmem:[#allocation3 + $0x40] sm:$0xff] }
 0x294   : > { %2130 = vst.msk [vmem:[#allocation3 + $0x10] sm:$0xf] %vm2125_vm11, %v2038_v28  ;;  %3079 = vmatmul.msk.bf16.vlgmr.msra.gmra.mxu2 %vm2531_vm13, %v3099_v45  ;;  %v2187_v28 = vld [vmem:[#allocation2 + $0x18a] sm:$0xff] }
 0x295   : > { %v2040_v60 = vpop.permute.xlu0 %2039  ;;  %v2219_v33 = vpack.c.bf16 %v2187_v28, %v2187_v28 }
 0x296   : > { %2131 = vst.msk [vmem:[#allocation3 + $0x14] sm:$0xf] %vm2125_vm11, %v2040_v60  ;;  %2083 = vrot.lane.b32.xlu2 %v1992_v46, %s3161_s16  ;;  %v1738_v46 = vld [vmem:[#allocation2 + $0x198] sm:$0xff] }
 0x297   : > { %v1770_v60 = vpack.c.bf16 %v1738_v46, %v1738_v46 }
 0x298   : > { %2296 = vrot.lane.b32.xlu1 %v3988_v23, %s3163_s18  ;;  %v2275_v56 = vpop.permute.xlu2 %2274 }
 0x29a   : > { %v1827_v44 = vpop.permute.xlu1 %1826 }
 0x29b   : > { %1912 = vst.msk [vmem:[#allocation3 + $0x2c] sm:$0xf] %vm1900_vm10, %v1827_v44  ;;  %2057 = vrot.lane.b32.xlu0 %v1979_v42, %s3161_s16  ;;  %v2189_v42 = vld [vmem:[#allocation2 + $0x1a2] sm:$0xff] }
 0x29c   : > { %2137 = vst.msk [vmem:[#allocation3 + $0x2c] sm:$0xf] %vm2125_vm11, %v2052_v27 }
 0x29d   : > { %v2263_v51 = vpop.permute.xlu0 %2262 }
 0x29e   : > { %2355 = vst.msk [vmem:[#allocation3 + $0x10] sm:$0xf] %vm2350_vm12, %v2263_v51  ;;  %2306 = vrot.lane.b32.xlu2 %v2216_v16, %s3163_s18  ;;  %v1964_v16 = vld [vmem:[#allocation2 + $0x1a1] sm:$0xff]  ;;  %v1771_v51 = vpack.c.bf16 %v1739_v10, %v1739_v10 }
 0x29f   : > { %v1996_v18 = vpack.c.bf16 %v1964_v16, %v1964_v16 }
 0x2a0   : > { %1832 = vrot.lane.b32.xlu1 %v1754_v49, %s3162_s17  ;;  %v1843_v23 = vpop.permute.xlu2 %1842 }
 0x2a1   : > { %1920 = vst.msk [vmem:[#allocation3 + $0x4c] sm:$0xf] %vm1900_vm10, %v1843_v23 }
 0x2a2   : > { %v2050_v9 = vpop.permute.xlu1 %2049 }
 0x2a3   : > { %2136 = vst.msk [vmem:[#allocation3 + $0x28] sm:$0xf] %vm2125_vm11, %v2050_v9  ;;  %2284 = vrot.lane.b32.xlu0 %v3962_v41, %s3163_s18  ;;  %v1955_v41 = vld [vmem:[#allocation2 + $0x139] sm:$0xff] }
 0x2a4   : > { %2361 = vst.msk [vmem:[#allocation3 + $0x28] sm:$0xf] %vm2350_vm12, %v2275_v56  ;;  %v1987_v24 = vpack.c.bf16 %v1955_v41, %v1955_v41  ;;  %v2221_v56 = vpack.c.bf16 %v2189_v42, %v2189_v42 }
 0x2a5   : > { %v2277_v58 = vpop.permute.xlu0 %2276 }
 0x2a6   : > { %2362 = vst.msk [vmem:[#allocation3 + $0x2c] sm:$0xf] %vm2350_vm12, %v2277_v58  ;;  %1834 = vrot.lane.b32.xlu2 %v1755_v53, %s3162_s17 }
 0x2a8   : > { %2059 = vrot.lane.b32.xlu1 %v1980_v57, %s3161_s16  ;;  %v2066_v48 = vpop.permute.xlu2 %2065 }
 0x2aa   : > { %v2265_v2 = vpop.permute.xlu1 %2264 }
 0x2ab   : > { %2356 = vst.msk [vmem:[#allocation3 + $0x14] sm:$0xf] %vm2350_vm12, %v2265_v2  ;;  %1850 = vrot.lane.b32.xlu0 %v1763_v4, %s3162_s17 }
 0x2ad   : > { %v1853_v30 = vpop.permute.xlu0 %1852  ;;  %v3096_v7 = vld [vmem:[#allocation3 + $0x28] sm:$0xff] }
 0x2ae   : > { %1925 = vst.msk [vmem:[#allocation3 + $0x60] sm:$0xf] %vm1900_vm10, %v1853_v30  ;;  %2282 = vrot.lane.b32.xlu2 %v2204_v5, %s3163_s18  ;;  %3076 = vmatmul.msk.bf16.gmra.mxu1 %vm2531_vm13, %v3096_v7 }
 0x2b0   : > { %1636 = vrot.lane.b32.xlu1 %v2217_v35, %s3160_s15  ;;  %v2080_v47 = vpop.permute.xlu2 %2079  ;;  %v1963_v35 = vld [vmem:[#allocation2 + $0x199] sm:$0xff] }
 0x2b1   : > { %v1995_v36 = vpack.c.bf16 %v1963_v35, %v1963_v35 }
 0x2b2   : > { %v1841_v50 = vpop.permute.xlu1 %1840  ;;  %v3093_v43 = vld [vmem:[#allocation3 + $0x10] sm:$0xff] }
 0x2b3   : > { %1919 = vst.msk [vmem:[#allocation3 + $0x48] sm:$0xf] %vm1900_vm10, %v1841_v50  ;;  %2073 = vrot.lane.b32.xlu0 %v1987_v24, %s3161_s16  ;;  %3073 = vmatmul.msk.bf16.gmra.mxu0 %vm2531_vm13, %v3093_v43 }
 0x2b4   : > { %2144 = vst.msk [vmem:[#allocation3 + $0x48] sm:$0xf] %vm2125_vm11, %v2066_v48 }
 0x2b5   : > { %v2068_v29 = vpop.permute.xlu0 %2067 }
 0x2b6   : > { %2145 = vst.msk [vmem:[#allocation3 + $0x4c] sm:$0xf] %vm2125_vm11, %v2068_v29  ;;  %1848 = vrot.lane.b32.xlu2 %v1762_v13, %s3162_s17 }
 0x2b8   : > { %1860 = vrot.lane.b32.xlu1 %v1768_v11, %s3162_s17  ;;  %v2303_v15 = vpop.permute.xlu2 %2302 }
 0x2ba   : > { %v1855_v20 = vpop.permute.xlu1 %1854 }
 0x2bb   : > { %1926 = vst.msk [vmem:[#allocation3 + $0x64] sm:$0xf] %vm1900_vm10, %v1855_v20  ;;  %2087 = vrot.lane.b32.xlu0 %v1994_v3, %s3161_s16 }
 0x2bc   : > { %2151 = vst.msk [vmem:[#allocation3 + $0x64] sm:$0xf] %vm2125_vm11, %v2080_v47 }
 0x2bd   : > { %v2291_v25 = vpop.permute.xlu0 %2290 }
 0x2be   : > { %2369 = vst.msk [vmem:[#allocation3 + $0x48] sm:$0xf] %vm2350_vm12, %v2291_v25  ;;  %1862 = vrot.lane.b32.xlu2 %v1769_v26, %s3162_s17 }
 0x2c0   : > { %2075 = vrot.lane.b32.xlu1 %v1988_v39, %s3161_s16  ;;  %v1819_v31 = vpop.permute.xlu2 %1818 }
 0x2c1   : > { %1908 = vst.msk [vmem:[#allocation3 + $0x1c] sm:$0xf] %vm1900_vm10, %v1819_v31 }
 0x2c2   : > { %v2078_v14 = vpop.permute.xlu1 %2077 }
 0x2c3   : > { %2150 = vst.msk [vmem:[#allocation3 + $0x60] sm:$0xf] %vm2125_vm11, %v2078_v14  ;;  %2310 = vrot.lane.b32.xlu0 %v2218_v21, %s3163_s18 }
 0x2c4   : > { %2375 = vst.msk [vmem:[#allocation3 + $0x60] sm:$0xf] %vm2350_vm12, %v2303_v15 }
 0x2c5   : > { %v2305_v6 = vpop.permute.xlu0 %2304 }
 0x2c6   : > { %2376 = vst.msk [vmem:[#allocation3 + $0x64] sm:$0xf] %vm2350_vm12, %v2305_v6  ;;  %2085 = vrot.lane.b32.xlu2 %v1993_v1, %s3161_s16 }
 0x2c8   : > { %2298 = vrot.lane.b32.xlu1 %v3996_v38, %s3163_s18  ;;  %v2042_v17 = vpop.permute.xlu2 %2041 }
 0x2ca   : > { %v2293_v32 = vpop.permute.xlu1 %2292 }
 0x2cb   : > { %2370 = vst.msk [vmem:[#allocation3 + $0x4c] sm:$0xf] %vm2350_vm12, %v2293_v32  ;;  %1640 = vrot.lane.b32.xlu0 %v2219_v33, %s3160_s15 }
 0x2cd   : > { %v1829_v52 = vpop.permute.xlu0 %1828  ;;  %v3103_v27 = vld [vmem:[#allocation3 + $0x60] sm:$0xff] }
 0x2ce   : > { %1913 = vst.msk [vmem:[#allocation3 + $0x30] sm:$0xf] %vm1900_vm10, %v1829_v52  ;;  %2300 = vrot.lane.b32.xlu2 %v2213_v63, %s3163_s18  ;;  %3083 = vmatmul.msk.bf16.vlgmr.msra.gmra.mxu3 %vm2531_vm13, %v3103_v27 }
 0x2d0   : > { %2312 = vrot.lane.b32.xlu1 %v2219_v33, %s3163_s18  ;;  %v2056_v38 = vpop.permute.xlu2 %2055 }
 0x2d2   : > { %v1817_v45 = vpop.permute.xlu1 %1816  ;;  %v3100_v40 = vld [vmem:[#allocation3 + $0x48] sm:$0xff] }
 0x2d3   : > { %1907 = vst.msk [vmem:[#allocation3 + $0x18] sm:$0xf] %vm1900_vm10, %v1817_v45  ;;  %2089 = vrot.lane.b32.xlu0 %v1995_v36, %s3161_s16  ;;  %3080 = vmatmul.msk.bf16.gmra.mxu2 %vm2531_vm13, %v3100_v40 }
 0x2d4   : > { %2132 = vst.msk [vmem:[#allocation3 + $0x18] sm:$0xf] %vm2125_vm11, %v2042_v17 }
 0x2d5   : > { %v2044_v37 = vpop.permute.xlu0 %2043 }
 0x2d6   : > { %2133 = vst.msk [vmem:[#allocation3 + $0x1c] sm:$0xf] %vm2125_vm11, %v2044_v37  ;;  %1638 = vrot.lane.b32.xlu2 %v2218_v21, %s3160_s15  ;;  %s268_s15 = scalar_lea.vmem %s4546_s6, %s4548_s22 }
 0x2d8   : > { %1864 = vrot.lane.b32.xlu1 %v1770_v60, %s3162_s17  ;;  %v2279_v44 = vpop.permute.xlu2 %2278 }
 0x2da   : > { %v1831_v49 = vpop.permute.xlu1 %1830 }
 0x2db   : > { %1914 = vst.msk [vmem:[#allocation3 + $0x34] sm:$0xf] %vm1900_vm10, %v1831_v49  ;;  %2316 = vrot.lane.b32.xlu0 %v2221_v56, %s3163_s18 }
 0x2dc   : > { %2139 = vst.msk [vmem:[#allocation3 + $0x34] sm:$0xf] %vm2125_vm11, %v2056_v38 }
 0x2dd   : > { %v2267_v23 = vpop.permute.xlu0 %2266 }
 0x2de   : > { %2357 = vst.msk [vmem:[#allocation3 + $0x18] sm:$0xf] %vm2350_vm12, %v2267_v23  ;;  %1866 = vrot.lane.b32.xlu2 %v1771_v51, %s3162_s17 }
 0x2e0   : > { %2091 = vrot.lane.b32.xlu1 %v1996_v18, %s3161_s16  ;;  %v1847_v9 = vpop.permute.xlu2 %1846 }
 0x2e1   : > { %1922 = vst.msk [vmem:[#allocation3 + $0x54] sm:$0xf] %vm1900_vm10, %v1847_v9  ;;  %v2593_v57 = vpop.f32.mrf.mxu0 }
 0x2e2   : > { %v2054_v53 = vpop.permute.xlu1 %2053  ;;  %2673 = vst.msk [vmem:[%s4273_s10] sm:$0xff] %vm406_vm0, %v2593_v57  ;;  %v2775_v0 = vmul.f32 %v2593_v57, %v2593_v57  ;;  %v2705_v5 = vsel %vm406_vm0, %v2593_v57, 0.0 }
 0x2e3   : > { %2138 = vst.msk [vmem:[#allocation3 + $0x30] sm:$0xf] %vm2125_vm11, %v2054_v53 }
 0x2e4   : > { %2363 = vst.msk [vmem:[#allocation3 + $0x30] sm:$0xf] %vm2350_vm12, %v2279_v44  ;;  %v2807_v24 = vsel %vm406_vm0, %v2775_v0, 0.0 }
 0x2e5   : > { %v2281_v58 = vpop.permute.xlu0 %2280 }
 0x2e6   : > { %2364 = vst.msk [vmem:[#allocation3 + $0x34] sm:$0xf] %vm2350_vm12, %v2281_v58  ;;  %2314 = vrot.lane.b32.xlu2 %v2220_v22, %s3163_s18 }
 0x2e8   : > { %v2070_v4 = vpop.permute.xlu2 %2069 }
 0x2e9   : > { %v2595_v2 = vpop.f32.mrf.mxu0 }
 0x2ea   : > { %v2269_v48 = vpop.permute.xlu1 %2268  ;;  %v2706_v41 = vsel %vm406_vm0, %v2595_v2, 0.0  ;;  %v2776_v30 = vmul.f32 %v2595_v2, %v2595_v2  ;;  %2674 = vst.msk [vmem:[%s4273_s10 + $0x8] sm:$0xff] %vm406_vm0, %v2595_v2 }
 0x2eb   : > { %2358 = vst.msk [vmem:[#allocation3 + $0x1c] sm:$0xf] %vm2350_vm12, %v2269_v48  ;;  %v2707_v7 = vadd.f32 %v2706_v41, %v2705_v5 }
 0x2ec   : > { %v2808_v34 = vsel %vm406_vm0, %v2776_v30, 0.0 }
 0x2ed   : > { %v1857_v47 = vpop.permute.xlu0 %1856  ;;  %v3097_v61 = vld [vmem:[#allocation3 + $0x30] sm:$0xff]  ;;  %v2809_v50 = vadd.f32 %v2808_v34, %v2807_v24 }
 0x2ee   : > { %1927 = vst.msk [vmem:[#allocation3 + $0x68] sm:$0xf] %vm1900_vm10, %v1857_v47  ;;  %3077 = vmatmul.msk.bf16.gmra.mxu1 %vm2531_vm13, %v3097_v61 }
 0x2f0   : > { %v2084_v43 = vpop.permute.xlu2 %2083 }
 0x2f2   : > { %v1845_v13 = vpop.permute.xlu1 %1844  ;;  %v3094_v11 = vld [vmem:[#allocation3 + $0x18] sm:$0xff] }
 0x2f3   : > { %1921 = vst.msk [vmem:[#allocation3 + $0x50] sm:$0xf] %vm1900_vm10, %v1845_v13  ;;  %3074 = vmatmul.msk.bf16.gmra.mxu0 %vm2531_vm13, %v3094_v11 }
 0x2f4   : > { %2146 = vst.msk [vmem:[#allocation3 + $0x50] sm:$0xf] %vm2125_vm11, %v2070_v4 }
 0x2f5   : > { %v2072_v19 = vpop.permute.xlu0 %2071 }
 0x2f6   : > { %2147 = vst.msk [vmem:[#allocation3 + $0x54] sm:$0xf] %vm2125_vm11, %v2072_v19 }
 0x2f8   : > { %v2307_v29 = vpop.permute.xlu2 %2306 }
 0x2fa   : > { %v1859_v3 = vpop.permute.xlu1 %1858 }
 0x2fb   : > { %1928 = vst.msk [vmem:[#allocation3 + $0x6c] sm:$0xf] %vm1900_vm10, %v1859_v3  ;;  %v4297_v62 = vpop.f32.mrf.mxu1 }
 0x2fc   : > { %2153 = vst.msk [vmem:[#allocation3 + $0x6c] sm:$0xf] %vm2125_vm11, %v2084_v43 }
 0x2fd   : > { %v2295_v15 = vpop.permute.xlu0 %2294  ;;  %2681 = vst.msk [vmem:[%s4273_s10 + $0x40] sm:$0xff] %vm406_vm0, %v4297_v62 }
 0x2fe   : > { %2371 = vst.msk [vmem:[#allocation3 + $0x50] sm:$0xf] %vm2350_vm12, %v2295_v15 }
 0x300   : > { %v1835_v59 = vpop.permute.xlu2 %1834  ;;  %v2598_v20 = vpop.f32.mrf.mxu0 }
 0x301   : > { %1916 = vst.msk [vmem:[#allocation3 + $0x3c] sm:$0xf] %vm1900_vm10, %v1835_v59  ;;  %v2708_v39 = vsel %vm406_vm0, %v2598_v20, 0.0  ;;  %v2777_v12 = vmul.f32 %v2598_v20, %v2598_v20 }
 0x302   : > { %v2082_v26 = vpop.permute.xlu1 %2081  ;;  %2675 = vst.msk [vmem:[%s4273_s10 + $0x10] sm:$0xff] %vm406_vm0, %v2598_v20  ;;  %v2709_v25 = vadd.f32 %v2708_v39, %v2707_v7 }
 0x303   : > { %2152 = vst.msk [vmem:[#allocation3 + $0x68] sm:$0xf] %vm2125_vm11, %v2082_v26  ;;  %v2810_v21 = vsel %vm406_vm0, %v2777_v12, 0.0  ;;  %v4310_v54 = vpop.f32.mrf.mxu1 }
 0x304   : > { %2377 = vst.msk [vmem:[#allocation3 + $0x68] sm:$0xf] %vm2350_vm12, %v2307_v29  ;;  %v2811_v31 = vadd.f32 %v2810_v21, %v2809_v50 }
 0x305   : > { %v2309_v14 = vpop.permute.xlu0 %2308  ;;  %2682 = vst.msk [vmem:[%s4273_s10 + $0x48] sm:$0xff] %vm406_vm0, %v4310_v54 }
 0x306   : > { %2378 = vst.msk [vmem:[#allocation3 + $0x6c] sm:$0xf] %vm2350_vm12, %v2309_v14 }
 0x308   : > { %v2283_v1 = vpop.permute.xlu2 %2282  ;;  %v2600_v28 = vpop.f32.mrf.mxu0 }
 0x309   : > { %2676 = vst.msk [vmem:[%s4273_s10 + $0x18] sm:$0xff] %vm406_vm0, %v2600_v28  ;;  %v2710_v33 = vsel %vm406_vm0, %v2600_v28, 0.0  ;;  %v2778_v8 = vmul.f32 %v2600_v28, %v2600_v28 }
 0x30a   : > { %v2297_v6 = vpop.permute.xlu1 %2296  ;;  %v2711_v17 = vadd.f32 %v2710_v33, %v2709_v25 }
 0x30b   : > { %2372 = vst.msk [vmem:[#allocation3 + $0x54] sm:$0xf] %vm2350_vm12, %v2297_v6  ;;  %v2812_v32 = vsel %vm406_vm0, %v2778_v8, 0.0 }
 0x30c   : > { %v2813_v63 = vadd.f32 %v2812_v32, %v2811_v31  ;;  %v2783_v32 = vmul.f32 %v4297_v62, %v4297_v62 }
 0x30d   : > { %v3104_v35 = vld [vmem:[#allocation3 + $0x68] sm:$0xff]  ;;  %v2058_v52 = vpop.permute.xlu0 %2057 }
 0x30e   : > { %3084 = vmatmul.msk.bf16.gmra.mxu3 %vm2531_vm13, %v3104_v35 }
 0x310   : > { %v1849_v27 = vpop.permute.xlu2 %1848 }
 0x311   : > { %1923 = vst.msk [vmem:[#allocation3 + $0x58] sm:$0xf] %vm1900_vm10, %v1849_v27  ;;  %v2720_v27 = vsel %vm406_vm0, %v4297_v62, 0.0 }
 0x312   : > { %v1833_v36 = vpop.permute.xlu1 %1832  ;;  %v3101_v38 = vld [vmem:[#allocation3 + $0x50] sm:$0xff] }
 0x313   : > { %1915 = vst.msk [vmem:[#allocation3 + $0x38] sm:$0xf] %vm1900_vm10, %v1833_v36  ;;  %3081 = vmatmul.msk.bf16.gmra.mxu2 %vm2531_vm13, %v3101_v38  ;;  %v2784_v36 = vmul.f32 %v4310_v54, %v4310_v54 }
 0x314   : > { %2140 = vst.msk [vmem:[#allocation3 + $0x38] sm:$0xf] %vm2125_vm11, %v2058_v52 }
 0x315   : > { %2365 = vst.msk [vmem:[#allocation3 + $0x38] sm:$0xf] %vm2350_vm12, %v2283_v1  ;;  %v2285_v46 = vpop.permute.xlu0 %2284 }
 0x317   : > { %v4327_v45 = vpop.f32.mrf.mxu2 }
 0x318   : > { %v1863_v40 = vpop.permute.xlu2 %1862  ;;  %2689 = vst.msk [vmem:[%s4273_s10 + $0x80] sm:$0xff] %vm406_vm0, %v4327_v45 }
 0x31a   : > { %v2060_v60 = vpop.permute.xlu1 %2059 }
 0x31b   : > { %2141 = vst.msk [vmem:[#allocation3 + $0x3c] sm:$0xf] %vm2125_vm11, %v2060_v60  ;;  %v2822_v60 = vsel %vm406_vm0, %v2783_v32, 0.0 }
 0x31c   : > { %2366 = vst.msk [vmem:[#allocation3 + $0x3c] sm:$0xf] %vm2350_vm12, %v2285_v46 }
 0x31d   : > { %v1851_v42 = vpop.permute.xlu0 %1850 }
 0x31e   : > { %1924 = vst.msk [vmem:[#allocation3 + $0x5c] sm:$0xf] %vm1900_vm10, %v1851_v42  ;;  %v2722_v42 = vsel %vm406_vm0, %v4310_v54, 0.0 }
 0x31f   : > { %v4335_v37 = vpop.f32.mrf.mxu2 }
 0x320   : > { %v2086_v56 = vpop.permute.xlu2 %2085  ;;  %2690 = vst.msk [vmem:[%s4273_s10 + $0x88] sm:$0xff] %vm406_vm0, %v4335_v37 }
 0x322   : > { %v1637_v10 = vpop.permute.xlu1 %1636 }
 0x323   : > { %1704 = vst.msk [vmem:[#allocation3 + $0x74] sm:$0xf] %vm1674_vm8, %v1637_v10  ;;  %v3098_v44 = vld [vmem:[#allocation3 + $0x38] sm:$0xff] }
 0x324   : > { %1930 = vst.msk [vmem:[#allocation3 + $0x74] sm:$0xf] %vm1900_vm10, %v1863_v40  ;;  %3078 = vmatmul.msk.bf16.gmra.mxu1 %vm2531_vm13, %v3098_v44 }
 0x325   : > { %v2074_v16 = vpop.permute.xlu0 %2073 }
 0x326   : > { %2148 = vst.msk [vmem:[#allocation3 + $0x58] sm:$0xf] %vm2125_vm11, %v2074_v16  ;;  %v2824_v16 = vsel %vm406_vm0, %v2784_v36, 0.0 }
 0x328   : > { %v2301_v49 = vpop.permute.xlu2 %2300 }
 0x32a   : > { %v1861_v51 = vpop.permute.xlu1 %1860 }
 0x32b   : > { %1929 = vst.msk [vmem:[#allocation3 + $0x70] sm:$0xf] %vm1900_vm10, %v1861_v51  ;;  %v4345_v18 = vpop.f32.mrf.mxu1 }
 0x32c   : > { %2154 = vst.msk [vmem:[#allocation3 + $0x70] sm:$0xf] %vm2125_vm11, %v2086_v56  ;;  %v2785_v56 = vmul.f32 %v4345_v18, %v4345_v18  ;;  %v2724_v62 = vsel %vm406_vm0, %v4345_v18, 0.0 }
 0x32d   : > { %2683 = vst.msk [vmem:[%s4273_s10 + $0x50] sm:$0xff] %vm406_vm0, %v4345_v18  ;;  %v2088_v23 = vpop.permute.xlu0 %2087 }
 0x32e   : > { %2155 = vst.msk [vmem:[#allocation3 + $0x74] sm:$0xf] %vm2125_vm11, %v2088_v23 }
 0x330   : > { %v1639_v55 = vpop.permute.xlu2 %1638  ;;  %v2603_v9 = vpop.f32.mrf.mxu0 }
 0x331   : > { %1705 = vst.msk [vmem:[#allocation3 + $0x78] sm:$0xf] %vm1674_vm8, %v1639_v55  ;;  %v2712_v57 = vsel %vm406_vm0, %v2603_v9, 0.0  ;;  %v2779_v22 = vmul.f32 %v2603_v9, %v2603_v9  ;;  %v2826_v55 = vsel %vm406_vm0, %v2785_v56, 0.0 }
 0x332   : > { %v2076_v53 = vpop.permute.xlu1 %2075  ;;  %2677 = vst.msk [vmem:[%s4273_s10 + $0x20] sm:$0xff] %vm406_vm0, %v2603_v9  ;;  %v2713_v58 = vadd.f32 %v2712_v57, %v2711_v17 }
 0x333   : > { %2149 = vst.msk [vmem:[#allocation3 + $0x5c] sm:$0xf] %vm2125_vm11, %v2076_v53  ;;  %v2814_v4 = vsel %vm406_vm0, %v2779_v22, 0.0  ;;  %v4358_v0 = vpop.f32.mrf.mxu1 }
 0x334   : > { %2374 = vst.msk [vmem:[#allocation3 + $0x5c] sm:$0xf] %vm2350_vm12, %v2301_v49  ;;  %v2815_v48 = vadd.f32 %v2814_v4, %v2813_v63  ;;  %v2786_v49 = vmul.f32 %v4358_v0, %v4358_v0  ;;  %v2726_v54 = vsel %vm406_vm0, %v4358_v0, 0.0 }
 0x335   : > { %2684 = vst.msk [vmem:[%s4273_s10 + $0x58] sm:$0xff] %vm406_vm0, %v4358_v0  ;;  %v2311_v2 = vpop.permute.xlu0 %2310 }
 0x336   : > { %2379 = vst.msk [vmem:[#allocation3 + $0x70] sm:$0xf] %vm2350_vm12, %v2311_v2  ;;  %v2828_v22 = vsel %vm406_vm0, %v2786_v49, 0.0 }
 0x338   : > { %v2605_v5 = vpop.f32.mrf.mxu0  ;;  %v1867_v47 = vpop.permute.xlu2 %1866 }
 0x339   : > { %2678 = vst.msk [vmem:[%s4273_s10 + $0x28] sm:$0xff] %vm406_vm0, %v2605_v5  ;;  %v2714_v30 = vsel %vm406_vm0, %v2605_v5, 0.0  ;;  %v2780_v7 = vmul.f32 %v2605_v5, %v2605_v5 }
 0x33a   : > { %v2299_v41 = vpop.permute.xlu1 %2298  ;;  %v2715_v24 = vadd.f32 %v2714_v30, %v2713_v58 }
 0x33b   : > { %2373 = vst.msk [vmem:[#allocation3 + $0x58] sm:$0xf] %vm2350_vm12, %v2299_v41  ;;  %v2816_v34 = vsel %vm406_vm0, %v2780_v7, 0.0 }
 0x33c   : > { %v2817_v61 = vadd.f32 %v2816_v34, %v2815_v48 }
 0x33d   : > { %v1641_v50 = vpop.permute.xlu0 %1640 }
 0x33e   : > { %1706 = vst.msk [vmem:[#allocation3 + $0x7c] sm:$0xf] %vm1674_vm8, %v1641_v50 }
 0x33f   : > { %1932 = vst.msk [vmem:[#allocation3 + $0x7c] sm:$0xf] %vm1900_vm10, %v1867_v47 }
 0x340   : > { %v2315_v3 = vpop.permute.xlu2 %2314 }
 0x342   : > { %v2313_v43 = vpop.permute.xlu1 %2312  ;;  %v3102_v13 = vld [vmem:[#allocation3 + $0x58] sm:$0xff] }
 0x343   : > { %2380 = vst.msk [vmem:[#allocation3 + $0x74] sm:$0xf] %vm2350_vm12, %v2313_v43  ;;  %3082 = vmatmul.msk.bf16.gmra.mxu2 %vm2531_vm13, %v3102_v13 }
 0x345   : > { %v2090_v11 = vpop.permute.xlu0 %2089 }
 0x34a   : > { %v1865_v19 = vpop.permute.xlu1 %1864  ;;  %v3105_v29 = vld [vmem:[#allocation3 + $0x70] sm:$0xff] }
 0x34b   : > { %1931 = vst.msk [vmem:[#allocation3 + $0x78] sm:$0xf] %vm1900_vm10, %v1865_v19  ;;  %3085 = vmatmul.msk.bf16.gmra.mxu3 %vm2531_vm13, %v3105_v29 }
 0x34c   : > { %2156 = vst.msk [vmem:[#allocation3 + $0x78] sm:$0xf] %vm2125_vm11, %v2090_v11 }
 0x34d   : > { %2381 = vst.msk [vmem:[#allocation3 + $0x78] sm:$0xf] %vm2350_vm12, %v2315_v3  ;;  %v2317_v15 = vpop.permute.xlu0 %2316  ;;  %v2791_v3 = vmul.f32 %v4327_v45, %v4327_v45 }
 0x351   : > { %v4378_v20 = vpop.f32.mrf.mxu3 }
 0x352   : > { %v2092_v59 = vpop.permute.xlu1 %2091  ;;  %2697 = vst.msk [vmem:[%s4273_s10 + $0xc0] sm:$0xff] %vm406_vm0, %v4378_v20 }
 0x353   : > { %2157 = vst.msk [vmem:[#allocation3 + $0x7c] sm:$0xf] %vm2125_vm11, %v2092_v59 }
 0x354   : > { %2382 = vst.msk [vmem:[#allocation3 + $0x7c] sm:$0xf] %vm2350_vm12, %v2317_v15 }
 0x356   : > { %v4385_v26 = vpop.f32.mrf.mxu2 }
 0x357   : > { %2691 = vst.msk [vmem:[%s4273_s10 + $0x90] sm:$0xff] %vm406_vm0, %v4385_v26 }
 0x359   : > { %v4390_v39 = vpop.f32.mrf.mxu3 }
 0x35a   : > { %2698 = vst.msk [vmem:[%s4273_s10 + $0xc8] sm:$0xff] %vm406_vm0, %v4390_v39 }
 0x35b   : > { %v3106_v12 = vld [vmem:[#allocation3 + $0x78] sm:$0xff] }
 0x35c   : > { %3086 = vmatmul.msk.bf16.gmra.mxu3 %vm2531_vm13, %v3106_v12 }
 0x35e   : > { %v4396_v25 = vpop.f32.mrf.mxu2 }
 0x35f   : > { %2692 = vst.msk [vmem:[%s4273_s10 + $0x98] sm:$0xff] %vm406_vm0, %v4396_v25 }
 0x36b   : > { %v2623_v21 = vpop.f32.mrf.mxu1 }
 0x36c   : > { %2685 = vst.msk [vmem:[%s4273_s10 + $0x60] sm:$0xff] %vm406_vm0, %v2623_v21  ;;  %v2787_v9 = vmul.f32 %v2623_v21, %v2623_v21  ;;  %v2728_v18 = vsel %vm406_vm0, %v2623_v21, 0.0 }
 0x36e   : > { %v2830_v2 = vsel %vm406_vm0, %v2787_v9, 0.0 }
 0x370   : > { %v2608_v31 = vpop.f32.mrf.mxu0 }
 0x371   : > { %2679 = vst.msk [vmem:[%s4273_s10 + $0x30] sm:$0xff] %vm406_vm0, %v2608_v31  ;;  %v2716_v14 = vsel %vm406_vm0, %v2608_v31, 0.0  ;;  %v2781_v1 = vmul.f32 %v2608_v31, %v2608_v31  ;;  %v2736_v31 = vsel %vm406_vm0, %v4327_v45, 0.0 }
 0x372   : > { %v2717_v28 = vadd.f32 %v2716_v14, %v2715_v24  ;;  %v2792_v14 = vmul.f32 %v4335_v37, %v4335_v37 }
 0x373   : > { %v2818_v6 = vsel %vm406_vm0, %v2781_v1, 0.0  ;;  %v2625_v33 = vpop.f32.mrf.mxu1 }
 0x374   : > { %v2819_v8 = vadd.f32 %v2818_v6, %v2817_v61  ;;  %2686 = vst.msk [vmem:[%s4273_s10 + $0x68] sm:$0xff] %vm406_vm0, %v2625_v33  ;;  %v2788_v58 = vmul.f32 %v2625_v33, %v2625_v33  ;;  %v2730_v5 = vsel %vm406_vm0, %v2625_v33, 0.0  ;;  %v2838_v33 = vsel %vm406_vm0, %v2791_v3, 0.0 }
 0x375   : > { %v2840_v45 = vsel %vm406_vm0, %v2792_v14, 0.0 }
 0x376   : > { %v2832_v30 = vsel %vm406_vm0, %v2788_v58, 0.0  ;;  %v2799_v58 = vmul.f32 %v4378_v20, %v4378_v20 }
 0x378   : > { %v2610_v17 = vpop.f32.mrf.mxu0 }
 0x379   : > { %2680 = vst.msk [vmem:[%s4273_s10 + $0x38] sm:$0xff] %vm406_vm0, %v2610_v17  ;;  %v2718_v63 = vsel %vm406_vm0, %v2610_v17, 0.0  ;;  %v2782_v35 = vmul.f32 %v2610_v17, %v2610_v17  ;;  %v2793_v17 = vmul.f32 %v4385_v26, %v4385_v26 }
 0x37a   : > { %v2719_v52 = vadd.f32 %v2718_v63, %v2717_v28 }
 0x37b   : > { %v2820_v38 = vsel %vm406_vm0, %v2782_v35, 0.0  ;;  %v2740_v35 = vsel %vm406_vm0, %v4385_v26, 0.0 }
 0x37c   : > { %v2721_v46 = vadd.f32 %v2720_v27, %v2719_v52  ;;  %v2821_v40 = vadd.f32 %v2820_v38, %v2819_v8  ;;  %v2738_v8 = vsel %vm406_vm0, %v4335_v37, 0.0  ;;  %v2794_v52 = vmul.f32 %v4396_v25, %v4396_v25 }
 0x37d   : > { %v2842_v38 = vsel %vm406_vm0, %v2793_v17, 0.0  ;;  %v2742_v37 = vsel %vm406_vm0, %v4396_v25, 0.0 }
 0x37e   : > { %v2723_v10 = vadd.f32 %v2722_v42, %v2721_v46  ;;  %v2823_v44 = vadd.f32 %v2822_v60, %v2821_v40  ;;  %v2844_v60 = vsel %vm406_vm0, %v2794_v52, 0.0 }
 0x380   : > { %v2725_v51 = vadd.f32 %v2724_v62, %v2723_v10  ;;  %v2825_v23 = vadd.f32 %v2824_v16, %v2823_v44 }
 0x382   : > { %v2827_v53 = vadd.f32 %v2826_v55, %v2825_v23  ;;  %v2727_v57 = vadd.f32 %v2726_v54, %v2725_v51 }
 0x384   : > { %v2729_v4 = vadd.f32 %v2728_v18, %v2727_v57  ;;  %v2829_v48 = vadd.f32 %v2828_v22, %v2827_v53 }
 0x386   : > { %v2731_v0 = vadd.f32 %v2730_v5, %v2729_v4  ;;  %v2831_v41 = vadd.f32 %v2830_v2, %v2829_v48 }
 0x388   : > { %v2833_v7 = vadd.f32 %v2832_v30, %v2831_v41  ;;  %v2800_v41 = vmul.f32 %v4390_v39, %v4390_v39 }
 0x391   : > { %v4437_v24 = vpop.f32.mrf.mxu3 }
 0x392   : > { %2699 = vst.msk [vmem:[%s4273_s10 + $0xd0] sm:$0xff] %vm406_vm0, %v4437_v24 }
 0x396   : > { %v2643_v34 = vpop.f32.mrf.mxu2 }
 0x397   : > { %2693 = vst.msk [vmem:[%s4273_s10 + $0xa0] sm:$0xff] %vm406_vm0, %v2643_v34  ;;  %v2795_v56 = vmul.f32 %v2643_v34, %v2643_v34  ;;  %v2744_v44 = vsel %vm406_vm0, %v2643_v34, 0.0 }
 0x399   : > { %v4444_v47 = vpop.f32.mrf.mxu3  ;;  %v2846_v16 = vsel %vm406_vm0, %v2795_v56, 0.0 }
 0x39a   : > { %2700 = vst.msk [vmem:[%s4273_s10 + $0xd8] sm:$0xff] %vm406_vm0, %v4444_v47 }
 0x39e   : > { %v2645_v61 = vpop.f32.mrf.mxu2 }
 0x39f   : > { %2694 = vst.msk [vmem:[%s4273_s10 + $0xa8] sm:$0xff] %vm406_vm0, %v2645_v61  ;;  %v2796_v62 = vmul.f32 %v2645_v61, %v2645_v61  ;;  %v2746_v25 = vsel %vm406_vm0, %v2645_v61, 0.0  ;;  %v2854_v61 = vsel %vm406_vm0, %v2799_v58, 0.0 }
 0x3a1   : > { %v2628_v50 = vpop.f32.mrf.mxu1  ;;  %v2848_v54 = vsel %vm406_vm0, %v2796_v62, 0.0 }
 0x3a2   : > { %2687 = vst.msk [vmem:[%s4273_s10 + $0x70] sm:$0xff] %vm406_vm0, %v2628_v50  ;;  %v2789_v43 = vmul.f32 %v2628_v50, %v2628_v50  ;;  %v2732_v13 = vsel %vm406_vm0, %v2628_v50, 0.0  ;;  %v2754_v50 = vsel %vm406_vm0, %v4390_v39, 0.0  ;;  %v2758_v39 = vsel %vm406_vm0, %v4444_v47, 0.0 }
 0x3a3   : > { %v2733_v19 = vadd.f32 %v2732_v13, %v2731_v0  ;;  %v2752_v0 = vsel %vm406_vm0, %v4378_v20, 0.0  ;;  %v2856_v20 = vsel %vm406_vm0, %v2800_v41, 0.0 }
 0x3a4   : > { %v2834_v11 = vsel %vm406_vm0, %v2789_v43, 0.0  ;;  %v2801_v43 = vmul.f32 %v4437_v24, %v4437_v24 }
 0x3a5   : > { %v2835_v12 = vadd.f32 %v2834_v11, %v2833_v7 }
 0x3a9   : > { %v2630_v29 = vpop.f32.mrf.mxu1 }
 0x3aa   : > { %2688 = vst.msk [vmem:[%s4273_s10 + $0x78] sm:$0xff] %vm406_vm0, %v2630_v29  ;;  %v2734_v15 = vsel %vm406_vm0, %v2630_v29, 0.0  ;;  %v2790_v59 = vmul.f32 %v2630_v29, %v2630_v29  ;;  %v2802_v29 = vmul.f32 %v4444_v47, %v4444_v47 }
 0x3ab   : > { %v2735_v21 = vadd.f32 %v2734_v15, %v2733_v19  ;;  %v2756_v19 = vsel %vm406_vm0, %v4437_v24, 0.0 }
 0x3ac   : > { %v2836_v1 = vsel %vm406_vm0, %v2790_v59, 0.0  ;;  %v2860_v14 = vsel %vm406_vm0, %v2802_v29, 0.0 }
 0x3ad   : > { %v2737_v28 = vadd.f32 %v2736_v31, %v2735_v21  ;;  %v2837_v6 = vadd.f32 %v2836_v1, %v2835_v12  ;;  %v2858_v12 = vsel %vm406_vm0, %v2801_v43, 0.0 }
 0x3af   : > { %v2739_v32 = vadd.f32 %v2738_v8, %v2737_v28  ;;  %v2839_v63 = vadd.f32 %v2838_v33, %v2837_v6 }
 0x3b1   : > { %v2741_v27 = vadd.f32 %v2740_v35, %v2739_v32  ;;  %v2841_v36 = vadd.f32 %v2840_v45, %v2839_v63 }
 0x3b3   : > { %v2843_v46 = vadd.f32 %v2842_v38, %v2841_v36  ;;  %v2743_v40 = vadd.f32 %v2742_v37, %v2741_v27 }
 0x3b5   : > { %v2845_v42 = vadd.f32 %v2844_v60, %v2843_v46  ;;  %v2745_v26 = vadd.f32 %v2744_v44, %v2743_v40 }
 0x3b7   : > { %v2847_v51 = vadd.f32 %v2846_v16, %v2845_v42  ;;  %v2747_v55 = vadd.f32 %v2746_v25, %v2745_v26 }
 0x3b9   : > { %v2849_v57 = vadd.f32 %v2848_v54, %v2847_v51 }
 0x3c6   : > { %v2648_v10 = vpop.f32.mrf.mxu2 }
 0x3c7   : > { %2695 = vst.msk [vmem:[%s4273_s10 + $0xb0] sm:$0xff] %vm406_vm0, %v2648_v10  ;;  %v2797_v49 = vmul.f32 %v2648_v10, %v2648_v10  ;;  %v2748_v23 = vsel %vm406_vm0, %v2648_v10, 0.0 }
 0x3c8   : > { %v2749_v53 = vadd.f32 %v2748_v23, %v2747_v55 }
 0x3c9   : > { %v2850_v9 = vsel %vm406_vm0, %v2797_v49, 0.0 }
 0x3ca   : > { %v2851_v2 = vadd.f32 %v2850_v9, %v2849_v57 }
 0x3ce   : > { %v2650_v22 = vpop.f32.mrf.mxu2  ;;  %v2663_v18 = vpop.f32.mrf.mxu3 }
 0x3cf   : > { %2696 = vst.msk [vmem:[%s4273_s10 + $0xb8] sm:$0xff] %vm406_vm0, %v2650_v22  ;;  %v2750_v4 = vsel %vm406_vm0, %v2650_v22, 0.0  ;;  %v2798_v48 = vmul.f32 %v2650_v22, %v2650_v22  ;;  %v2803_v28 = vmul.f32 %v2663_v18, %v2663_v18  ;;  %v2760_v6 = vsel %vm406_vm0, %v2663_v18, 0.0 }
 0x3d0   : > { %v2751_v5 = vadd.f32 %v2750_v4, %v2749_v53  ;;  %2701 = vst.msk [vmem:[%s4273_s10 + $0xe0] sm:$0xff] %vm406_vm0, %v2663_v18 }
 0x3d1   : > { %v2852_v30 = vsel %vm406_vm0, %v2798_v48, 0.0  ;;  %v2862_v8 = vsel %vm406_vm0, %v2803_v28, 0.0 }
 0x3d2   : > { %v2753_v7 = vadd.f32 %v2752_v0, %v2751_v5  ;;  %v2853_v34 = vadd.f32 %v2852_v30, %v2851_v2 }
 0x3d4   : > { %v2755_v13 = vadd.f32 %v2754_v50, %v2753_v7  ;;  %v2855_v11 = vadd.f32 %v2854_v61, %v2853_v34 }
 0x3d6   : > { %v2857_v3 = vadd.f32 %v2856_v20, %v2855_v11  ;;  %v2757_v15 = vadd.f32 %v2756_v19, %v2755_v13  ;;  %v2665_v59 = vpop.f32.mrf.mxu3 }
 0x3d7   : > { %2702 = vst.msk [vmem:[%s4273_s10 + $0xe8] sm:$0xff] %vm406_vm0, %v2665_v59  ;;  %v2804_v17 = vmul.f32 %v2665_v59, %v2665_v59  ;;  %v2762_v63 = vsel %vm406_vm0, %v2665_v59, 0.0 }
 0x3d8   : > { %v2759_v21 = vadd.f32 %v2758_v39, %v2757_v15  ;;  %v2859_v31 = vadd.f32 %v2858_v12, %v2857_v3 }
 0x3d9   : > { %v2864_v52 = vsel %vm406_vm0, %v2804_v17, 0.0 }
 0x3da   : > { %v2861_v1 = vadd.f32 %v2860_v14, %v2859_v31  ;;  %v2761_v33 = vadd.f32 %v2760_v6, %v2759_v21 }
 0x3dc   : > { %v2863_v47 = vadd.f32 %v2862_v8, %v2861_v1  ;;  %v2763_v35 = vadd.f32 %v2762_v63, %v2761_v33 }
 0x3de   : > { %v2865_v36 = vadd.f32 %v2864_v52, %v2863_v47 }
 0x3df   : > { %v2668_v24 = vpop.f32.mrf.mxu3 }
 0x3e0   : > { %2703 = vst.msk [vmem:[%s4273_s10 + $0xf0] sm:$0xff] %vm406_vm0, %v2668_v24  ;;  %v2805_v32 = vmul.f32 %v2668_v24, %v2668_v24  ;;  %v2764_v45 = vsel %vm406_vm0, %v2668_v24, 0.0 }
 0x3e1   : > { %v2765_v38 = vadd.f32 %v2764_v45, %v2763_v35 }
 0x3e2   : > { %v2866_v27 = vsel %vm406_vm0, %v2805_v32, 0.0 }
 0x3e3   : > { %v2867_v60 = vadd.f32 %v2866_v27, %v2865_v36 }
 0x3e7   : > { %v2670_v37 = vpop.f32.mrf.mxu3 }
 0x3e8   : > { %2704 = vst.msk [vmem:[%s4273_s10 + $0xf8] sm:$0xff] %vm406_vm0, %v2670_v37  ;;  %v2766_v46 = vsel %vm406_vm0, %v2670_v37, 0.0  ;;  %v2806_v40 = vmul.f32 %v2670_v37, %v2670_v37 }
 0x3e9   : > { %v2767_v42 = vadd.f32 %v2766_v46, %v2765_v38 }
 0x3ea   : > { %v2868_v56 = vsel %vm406_vm0, %v2806_v40, 0.0 }
 0x3eb   : > { %v2768_v10 = vrot.slane %v2767_v42, 4  ;;  %v2869_v44 = vadd.f32 %v2868_v56, %v2867_v60 }
 0x3ed   : > { %v2769_v26 = vadd.f32 %v2768_v10, %v2767_v42  ;;  %v2870_v16 = vrot.slane %v2869_v44, 4 }
 0x3ef   : > { %v2770_v62 = vrot.slane %v2769_v26, 2  ;;  %v2871_v49 = vadd.f32 %v2870_v16, %v2869_v44 }
 0x3f1   : > { %v2771_v51 = vadd.f32 %v2770_v62, %v2769_v26  ;;  %v2872_v25 = vrot.slane %v2871_v49, 2 }
 0x3f3   : > { %v2772_v23 = vrot.slane %v2771_v51, 1  ;;  %v2873_v55 = vadd.f32 %v2872_v25, %v2871_v49 }
 0x3f5   : > { %v2773_v54 = vadd.f32 %v2772_v23, %v2771_v51  ;;  %v2874_v9 = vrot.slane %v2873_v55, 1 }
 0x3f7   : > { %2774 = vst.msk [vmem:[%s265_s12] sm:$0x1] %vm415_vm1, %v2773_v54  ;;  %v2875_v53 = vadd.f32 %v2874_v9, %v2873_v55 }
 0x3f9   : > { %2876 = vst.msk [vmem:[%s268_s15] sm:$0x1] %vm415_vm1, %v2875_v53 }
 0x3fa PF: > { %s17_s21 = sadd.s32 1, %s3153_s21  }
 0x3fb   : > { %p14_p4 = scmp.ge.s32.totalorder %s17_s21, 4  }
 0x3fd   :  { %16 = sbr.rel (!%p14_p4) target bundleno = 1 (0x1), region = 93 }

</bundles_post_ra>
